<compile_context>
chip_gen: v7x
topology: tpu7x:2x2x1
jax: 0.10.0
libtpu: 0.0.40
codegen_flags: <defaults>
</compile_context>

<pallas_src>
import jax
import jax.numpy as jnp
from jax import lax
from jax.experimental import pallas as pl
from jax.experimental.pallas import tpu as pltpu


def _round_up(x, m):
    return ((x + m - 1) // m) * m


# --------------------------------------------------------------------------
# Fused Pallas kernel factory: all layers, one bptt chunk per grid step.
# --------------------------------------------------------------------------
def _make_kernel(L, T, BB, D0, Hs, Tsub):
    """Build the fused stacked-LSTM kernel for static (L, T, BB, widths).

    Ref layout (positional):
      x_ref                    (T, BB, D0)      bf16 embedded chunk
      w_ih[l] for l in 0..L-1  (Din_l, 4*H_l)   bf16, VMEM-resident (Buffered(1))
      w_hh[l]                  (H_l, 4*H_l)     bf16 (WeightDrop already applied)
      b[l]                     (1, 4*H_l)       f32 combined bias
      out[l]                   (T, BB, H_l)     bf16 per-step hidden outputs
      h_st[l], c_st[l]         (BB, H_l)        f32 carried state (scratch)
      xp_ref                   (Tsub*BB, 4*Hmax) f32 gate-projection scratch
    """
    Dins = [D0] + list(Hs[:-1])
    Hmax = max(Hs)
    del Hmax  # width used only at allocation time

    def kernel(*refs):
        x_ref = refs[0]
        w_ih = refs[1:1 + L]
        w_hh = refs[1 + L:1 + 2 * L]
        b = refs[1 + 2 * L:1 + 3 * L]
        out = refs[1 + 3 * L:1 + 4 * L]
        h_st = refs[1 + 4 * L:1 + 5 * L]
        c_st = refs[1 + 5 * L:1 + 6 * L]
        xp_ref = refs[1 + 6 * L]

        # Zero carried (h, c) at the first chunk of each batch block —
        # matches the hidden-state reset at the top of MultiBatchRNN.forward().
        @pl.when(pl.program_id(1) == 0)
        def _init():
            for l in range(L):
                h_st[l][...] = jnp.zeros_like(h_st[l])
                c_st[l][...] = jnp.zeros_like(c_st[l])

        for l in range(L):                      # static unroll over layers
            H = Hs[l]
            Din = Dins[l]
            w_i = w_ih[l][...]                  # (Din, 4H) bf16, VMEM-resident
            w_h = w_hh[l][...]                  # (H, 4H)  bf16
            bias = b[l][...]                    # (1, 4H)  f32
            h = h_st[l][...]                    # (BB, H)  f32
            c = c_st[l][...]

            t0 = 0
            while t0 < T:                       # static sub-chunks (caps xp)
                ts = min(Tsub, T - t0)
                # Layer input for this sub-chunk: embedded tokens for layer 0,
                # otherwise the previous layer's output still resident in its
                # VMEM output block (no HBM round trip).  (ts,BB,W)->(ts*BB,W)
                # is (8,128)-tile aligned, so the flat view needs no relayout.
                if l == 0:
                    x_sub = x_ref[t0:t0 + ts].reshape(ts * BB, Din)
                else:
                    x_sub = out[l - 1][t0:t0 + ts].reshape(ts * BB, Din)

                # Sub-chunk input projection + bias: one MXU pass per
                # (chunk, layer, sub-chunk); parked in f32 scratch.
                xp_ref[pl.ds(0, ts * BB), 0:4 * H] = (
                    jnp.dot(x_sub.astype(w_i.dtype), w_i,
                            preferred_element_type=jnp.float32) + bias)

                def step(t, carry, _t0=t0, _H=H, _l=l, _wh=w_h):
                    h, c = carry
                    row = t * BB
                    if not isinstance(row, int):
                        row = pl.multiple_of(row, BB)   # sublane-aligned hint
                    gates = xp_ref[pl.ds(row, BB), 0:4 * _H] + jnp.dot(
                        h.astype(_wh.dtype), _wh,
                        preferred_element_type=jnp.float32)
                    # PyTorch LSTM gate order: i, f, g, o.  Per-gate width is
                    # a multiple of 128, so every slice is lane-aligned.
                    i_g = jax.nn.sigmoid(gates[:, 0:_H])
                    f_g = jax.nn.sigmoid(gates[:, _H:2 * _H])
                    g_g = jnp.tanh(gates[:, 2 * _H:3 * _H])
                    o_g = jax.nn.sigmoid(gates[:, 3 * _H:4 * _H])
                    c = f_g * c + i_g * g_g             # cell/hidden stay f32
                    h = o_g * jnp.tanh(c)
                    out[_l][_t0 + t] = h.astype(out[_l].dtype)  # lane-dense
                    return h, c

                if ts <= 8:                     # short: full static unroll
                    for t in range(ts):
                        h, c = step(t, (h, c))
                else:                           # long bptt: bounded unroll
                    h, c = lax.fori_loop(0, ts, step, (h, c), unroll=4)
                t0 += ts

            h_st[l][...] = h
            c_st[l][...] = c

    return kernel


# --------------------------------------------------------------------------
# Scoped-VMEM budget: actual block/scratch sizes, capped by the chip's VMEM.
# --------------------------------------------------------------------------
def _vmem_limit_bytes(T, BB, D0, Hs, Tsub, x_dtype, out_dtype, w_dtype):
    xb = jnp.dtype(x_dtype).itemsize
    ob = jnp.dtype(out_dtype).itemsize
    wb = jnp.dtype(w_dtype).itemsize
    f32 = 4
    L = len(Hs)
    Dins = [D0] + list(Hs[:-1])
    x_blk = 2 * T * BB * D0 * xb                              # double-buffered
    out_blk = 2 * sum(T * BB * H * ob for H in Hs)            # double-buffered
    weights = sum((Dins[l] * 4 * Hs[l] + Hs[l] * 4 * Hs[l]) * wb
                  + 4 * Hs[l] * f32 for l in range(L))        # Buffered(1)
    state = 2 * sum(BB * H for H in Hs) * f32
    xp = Tsub * BB * 4 * max(Hs) * f32
    total = x_blk + out_blk + weights + state + 2 * xp + (8 << 20)
    try:
        cap = int(pltpu.get_tpu_info().vmem_capacity_bytes * 0.9)
    except Exception:
        cap = 64 << 20   # conservative: fits every generation incl. v7x
    return int(min(max(total, 16 << 20), cap))


# --------------------------------------------------------------------------
# Wrapper around pallas_call.
# --------------------------------------------------------------------------
def stacked_lstm_chunks(emb, w_ih_list, w_hh_list, b_list, *, bptt, n_chunks,
                        c0_chunk, n_collected, tsub=16,
                        out_dtype=jnp.bfloat16, batch_block=None):
    """Run the fused stacked-LSTM kernel over the whole padded sequence."""
    sl_pad, Bpad, D0 = emb.shape
    L = len(w_ih_list)
    Hs = [int(w_hh_list[l].shape[0]) for l in range(L)]
    Dins = [int(w_ih_list[l].shape[0]) for l in range(L)]
    assert Dins[0] == D0 and all(Dins[l] == Hs[l - 1] for l in range(1, L))
    T = bptt
    assert sl_pad == n_chunks * T
    BB = Bpad if batch_block is None else batch_block
    assert Bpad % BB == 0 and BB % 8 == 0
    n_bb = Bpad // BB
    Tsub = max(1, min(tsub, T))
    Hmax = max(Hs)

    kernel = _make_kernel(L, T, BB, D0, Hs, Tsub)

    # Outputs: per layer, bf16, per-layer padded width, sized to the collected
    # chunk suffix only.  Uncollected chunks alias collected block 0, which is
    # fully rewritten by the first collected chunk before the block index
    # advances -> their HBM writeback is skipped.
    out_shapes = tuple(
        jax.ShapeDtypeStruct((n_collected * T, Bpad, Hs[l]), out_dtype)
        for l in range(L))

    def out_map(b, i):
        return (jnp.maximum(i - c0_chunk, 0), b, 0)

    out_specs = tuple(pl.BlockSpec((T, BB, Hs[l]), out_map) for l in range(L))

    scratch = ([pltpu.VMEM((BB, Hs[l]), jnp.float32) for l in range(L)]    # h
               + [pltpu.VMEM((BB, Hs[l]), jnp.float32) for l in range(L)]  # c
               + [pltpu.VMEM((Tsub * BB, 4 * Hmax), jnp.float32)])         # xp

    vmem_bytes = _vmem_limit_bytes(T, BB, D0, Hs, Tsub, emb.dtype, out_dtype,
                                   w_ih_list[0].dtype)

    def build(weight_pipeline_mode):
        kw = ({} if weight_pipeline_mode is None
              else {"pipeline_mode": weight_pipeline_mode})
        in_specs = [pl.BlockSpec((T, BB, D0), lambda b, i: (i, b, 0))]
        for arrs in (w_ih_list, w_hh_list, b_list):
            for a in arrs:
                in_specs.append(
                    pl.BlockSpec(tuple(a.shape), lambda b, i: (0, 0), **kw))
        grid_spec = pltpu.PrefetchScalarGridSpec(
            num_scalar_prefetch=0,
            grid=(n_bb, n_chunks),        # batch blocks parallel, chunks carry
            in_specs=in_specs,
            out_specs=out_specs,
            scratch_shapes=scratch)
        return pl.pallas_call(
            kernel,
            out_shape=out_shapes,
            grid_spec=grid_spec,
            compiler_params=pltpu.CompilerParams(
                dimension_semantics=("parallel", "arbitrary"),
                vmem_limit_bytes=vmem_bytes))

    args = (emb, *w_ih_list, *w_hh_list, *b_list)
    try:
        # Constant-index weights/bias never re-DMA across chunks: single
        # buffer them so their VMEM footprint is not doubled for nothing.
        return build(pl.Buffered(1))(*args)
    except Exception:
        # Fallback if single-buffered constant blocks are rejected.
        return build(None)(*args)


# --------------------------------------------------------------------------
# Parameter construction + WeightDrop + per-layer padding/packing.
# --------------------------------------------------------------------------
def init_params(key, n_tok, emb_sz, nhid, nlayers, initrange=0.1):
    keys = jax.random.split(key, 1 + 4 * nlayers)
    emb_w = jax.random.uniform(
        keys[0], (n_tok, emb_sz), jnp.float32, -initrange, initrange)
    lstm_params = []
    for l in range(nlayers):
        d_in = emb_sz if l == 0 else nhid
        h = nhid if l != nlayers - 1 else emb_sz
        k = 1.0 / jnp.sqrt(h)
        kw = keys[1 + 4 * l: 1 + 4 * (l + 1)]
        w_ih = jax.random.uniform(kw[0], (d_in, 4 * h), jnp.float32, -k, k)
        w_hh = jax.random.uniform(kw[1], (h, 4 * h), jnp.float32, -k, k)
        b_ih = jax.random.uniform(kw[2], (1, 4 * h), jnp.float32, -k, k)
        b_hh = jax.random.uniform(kw[3], (1, 4 * h), jnp.float32, -k, k)
        lstm_params.append((w_ih, w_hh, b_ih + b_hh))
    return {'emb': emb_w, 'lstm': lstm_params}


def pack_lstm_params(lstm_params, *, weight_dtype=jnp.bfloat16,
                     wdrop=0.0, training=False, key=None):
    """WeightDrop + per-layer 128-lane gate padding + layer-local widths.

    WeightDrop: F.dropout(weight_hh_raw, p=wdrop, training) is applied to the
    hidden-to-hidden weight before the LSTM sees it.  In eval mode it is the
    identity, matching the PyTorch reference.

    Invariant: padded weight rows/columns and bias lanes are zero, so padded
    gate lanes stay exactly zero and never leak into downstream layers
    (padded input rows of the next layer are zero too).
    """
    w_ih_list, w_hh_list, b_list = [], [], []
    for l, (w_ih, w_hh_raw, b) in enumerate(lstm_params):
        if training and wdrop > 0.0:
            kl = jax.random.fold_in(key, l)
            keep = jax.random.bernoulli(kl, 1.0 - wdrop, w_hh_raw.shape)
            w_hh = jnp.where(keep, w_hh_raw / (1.0 - wdrop), 0.0)
        else:
            w_hh = w_hh_raw
        d_in, four_h = w_ih.shape
        h = four_h // 4
        Din = _round_up(d_in, 128)
        H = _round_up(h, 128)
        wi = jnp.zeros((Din, 4 * H), weight_dtype)
        wh = jnp.zeros((H, 4 * H), weight_dtype)
        bb = jnp.zeros((1, 4 * H), jnp.float32)
        for g in range(4):
            wi = wi.at[:d_in, g * H:g * H + h].set(
                w_ih[:, g * h:(g + 1) * h].astype(weight_dtype))
            wh = wh.at[:h, g * H:g * H + h].set(
                w_hh[:, g * h:(g + 1) * h].astype(weight_dtype))
            bb = bb.at[:, g * H:g * H + h].set(b[:, g * h:(g + 1) * h])
        w_ih_list.append(wi)
        w_hh_list.append(wh)
        b_list.append(bb)
    return w_ih_list, w_hh_list, b_list


# --------------------------------------------------------------------------
# MultiBatchRNN forward (eval mode by default).
# --------------------------------------------------------------------------
def multibatch_rnn_forward(params, x_tokens, *, bptt, max_seq, emb_sz, nhid,
                           nlayers, pad_token=1, wdrop=0.0, training=False,
                           dropout_key=None, weight_dtype=jnp.bfloat16,
                           out_dtype=jnp.bfloat16, tsub=16):
    sl, bs = x_tokens.shape
    hid_sizes = [nhid if l != nlayers - 1 else emb_sz for l in range(nlayers)]

    D0 = _round_up(emb_sz, 128)                # layer-0 input lane width
    Bpad = _round_up(bs, 8)                    # sublane-aligned batch
    # TODO(synk): for MXU row utilization, concatenate independent sequences
    # along batch so Bpad reaches >=128 (v5e) / >=256 (v6e/v7x).
    n_chunks = -(-sl // bptt)
    sl_pad = n_chunks * bptt

    # Collected chunks (i > sl - max_seq) form a contiguous suffix.
    collected = [ci for ci in range(n_chunks) if ci * bptt > sl - max_seq]
    assert collected, "max_seq too small: no chunks collected"
    c0_chunk = collected[0]
    n_collected = len(collected)
    t0 = c0_chunk * bptt

    # Embedding lookup: one XLA gather for the whole padded sequence; the
    # embedded chunk ships to the kernel in bf16 (its MXU LHS dtype anyway).
    # TODO(synk): fuse this gather into the kernel via PrefetchScalarGridSpec
    # (token ids as scalar prefetch) + pl.Element row-gather on the table.
    x_p = jnp.full((sl_pad, Bpad), pad_token, jnp.int32)
    x_p = x_p.at[:sl, :bs].set(x_tokens)
    emb = jnp.take(params['emb'], x_p, axis=0).astype(weight_dtype)
    emb = jnp.pad(emb, ((0, 0), (0, 0), (0, D0 - emb_sz)))

    # WeightDrop + per-layer pad/cast once per forward.
    w_ih_list, w_hh_list, b_list = pack_lstm_params(
        params['lstm'], weight_dtype=weight_dtype, wdrop=wdrop,
        training=training, key=dropout_key)

    outs = stacked_lstm_chunks(
        emb, w_ih_list, w_hh_list, b_list, bptt=bptt, n_chunks=n_chunks,
        c0_chunk=c0_chunk, n_collected=n_collected, tsub=tsub,
        out_dtype=out_dtype)

    # Collected suffix covers timesteps [t0, sl_pad); trim trailing padding,
    # padded batch rows and padded hidden lanes; return f32 like the module.
    n_keep = sl - t0
    raw_outputs = [outs[l][:n_keep, :bs, :hid_sizes[l]].astype(jnp.float32)
                   for l in range(nlayers)]
    outputs = list(raw_outputs)   # eval: activation dropouts are identity
    return raw_outputs, outputs


# --------------------------------------------------------------------------
# Plain-JAX reference (same bf16 weight cast) for a numerical self-check.
# --------------------------------------------------------------------------
def _reference_forward(params, x_tokens, *, bptt, max_seq, emb_sz, nhid,
                       nlayers, weight_dtype):
    sl, bs = x_tokens.shape
    hid_sizes = [nhid if l != nlayers - 1 else emb_sz for l in range(nlayers)]
    hidden = [(jnp.zeros((bs, h), jnp.float32), jnp.zeros((bs, h), jnp.float32))
              for h in hid_sizes]
    collected = []
    for i in range(0, sl, bptt):
        xc = x_tokens[i:min(i + bptt, sl)]
        inp = jnp.take(params['emb'], xc, axis=0)
        layer_outs, new_hidden = [], []
        for l in range(nlayers):
            w_ih, w_hh, b = params['lstm'][l]
            w_ih = w_ih.astype(weight_dtype)
            w_hh = w_hh.astype(weight_dtype)
            h, c = hidden[l]
            H = hid_sizes[l]
            outs = []
            for t in range(inp.shape[0]):
                g = (jnp.dot(inp[t].astype(weight_dtype), w_ih,
                             preferred_element_type=jnp.float32) + b
                     + jnp.dot(h.astype(weight_dtype), w_hh,
                               preferred_element_type=jnp.float32))
                i_g = jax.nn.sigmoid(g[:, 0:H])
                f_g = jax.nn.sigmoid(g[:, H:2 * H])
                g_g = jnp.tanh(g[:, 2 * H:3 * H])
                o_g = jax.nn.sigmoid(g[:, 3 * H:4 * H])
                c = f_g * c + i_g * g_g
                h = o_g * jnp.tanh(c)
                outs.append(h)
            new_hidden.append((h, c))
            layer_outs.append(jnp.stack(outs, axis=0))
            inp = layer_outs[-1]
        hidden = new_hidden
        if i > sl - max_seq:
            collected.append(layer_outs)
    return [jnp.concatenate([ch[l] for ch in collected], axis=0)
            for l in range(nlayers)]


# --------------------------------------------------------------------------
if __name__ == "__main__":
    # Small config consistent with the module.
    n_tok, emb_sz, nhid, nlayers = 50, 16, 32, 3
    pad_token = 1
    bptt = 4
    sl, bs = 10, 2            # sl % bptt != 0 exercises the padded tail
    wdrop = 0.5               # WeightDrop p on weight_hh (identity in eval)

    key = jax.random.PRNGKey(0)
    k_param, k_tok = jax.random.split(key)
    params = init_params(k_param, n_tok, emb_sz, nhid, nlayers)
    x_tokens = jax.random.randint(k_tok, (sl, bs), 0, n_tok, dtype=jnp.int32)

    # max_seq=20: all chunks collected; max_seq=5: only the last chunk
    # (exercises the skipped-writeback path for uncollected chunks).
    for max_seq in (20, 5):
        raw_outputs, outputs = multibatch_rnn_forward(
            params, x_tokens, bptt=bptt, max_seq=max_seq,
            emb_sz=emb_sz, nhid=nhid, nlayers=nlayers,
            pad_token=pad_token, wdrop=wdrop, training=False)

        for arr in raw_outputs + outputs:
            jax.block_until_ready(arr)

        # Shape sanity: last layer width emb_sz, others nhid.
        n_keep = raw_outputs[0].shape[0]
        assert raw_outputs[-1].shape == (n_keep, bs, emb_sz)
        assert raw_outputs[0].shape == (n_keep, bs, nhid)

        # Numerical self-check against the plain-JAX reference (same bf16
        # weight cast; kernel outputs round-trip through bf16 storage).
        ref_outputs = _reference_forward(
            params, x_tokens, bptt=bptt, max_seq=max_seq, emb_sz=emb_sz,
            nhid=nhid, nlayers=nlayers, weight_dtype=jnp.bfloat16)
        for got, want in zip(raw_outputs, ref_outputs):
            assert got.shape == want.shape, (got.shape, want.shape)
            err = float(jnp.max(jnp.abs(got - want)))
            assert err < 1e-2, f"mismatch vs reference: max abs err {err}"

    print("KERNEL_OK")
</pallas_src>

<mosaic_0001>
module attributes {stable_mosaic.version = 11 : i64} {
  func.func @kernel(%arg0: i32, %arg1: i32, %arg2: memref<4x8x128xbf16, #tpu.memory_space<vmem>>, %arg3: memref<128x512xbf16, #tpu.memory_space<vmem>>, %arg4: memref<128x512xbf16, #tpu.memory_space<vmem>>, %arg5: memref<128x512xbf16, #tpu.memory_space<vmem>>, %arg6: memref<128x512xbf16, #tpu.memory_space<vmem>>, %arg7: memref<128x512xbf16, #tpu.memory_space<vmem>>, %arg8: memref<128x512xbf16, #tpu.memory_space<vmem>>, %arg9: memref<1x512xf32, #tpu.memory_space<vmem>>, %arg10: memref<1x512xf32, #tpu.memory_space<vmem>>, %arg11: memref<1x512xf32, #tpu.memory_space<vmem>>, %arg12: memref<4x8x128xbf16, #tpu.memory_space<vmem>>, %arg13: memref<4x8x128xbf16, #tpu.memory_space<vmem>>, %arg14: memref<4x8x128xbf16, #tpu.memory_space<vmem>>, %arg15: memref<8x128xf32, #tpu.memory_space<vmem>>, %arg16: memref<8x128xf32, #tpu.memory_space<vmem>>, %arg17: memref<8x128xf32, #tpu.memory_space<vmem>>, %arg18: memref<8x128xf32, #tpu.memory_space<vmem>>, %arg19: memref<8x128xf32, #tpu.memory_space<vmem>>, %arg20: memref<8x128xf32, #tpu.memory_space<vmem>>, %arg21: memref<32x512xf32, #tpu.memory_space<vmem>>) attributes {dimension_semantics = [#tpu.dimension_semantics<parallel>, #tpu.dimension_semantics<arbitrary>], iteration_bounds = array<i64: 1, 3>, scalar_prefetch = 0 : i64, scratch_operands = 7 : i64, tpu.core_type = #tpu.core_type<tc>, window_params = [{transform_indices = @transform_0, window_bounds = array<i64: 4, 8, 128>}, {pipeline_mode = #tpu.pipeline_mode<synchronous>, transform_indices = @transform_1, window_bounds = array<i64: 128, 512>}, {pipeline_mode = #tpu.pipeline_mode<synchronous>, transform_indices = @transform_2, window_bounds = array<i64: 128, 512>}, {pipeline_mode = #tpu.pipeline_mode<synchronous>, transform_indices = @transform_3, window_bounds = array<i64: 128, 512>}, {pipeline_mode = #tpu.pipeline_mode<synchronous>, transform_indices = @transform_4, window_bounds = array<i64: 128, 512>}, {pipeline_mode = #tpu.pipeline_mode<synchronous>, transform_indices = @transform_5, window_bounds = array<i64: 128, 512>}, {pipeline_mode = #tpu.pipeline_mode<synchronous>, transform_indices = @transform_6, window_bounds = array<i64: 128, 512>}, {pipeline_mode = #tpu.pipeline_mode<synchronous>, transform_indices = @transform_7, window_bounds = array<i64: 1, 512>}, {pipeline_mode = #tpu.pipeline_mode<synchronous>, transform_indices = @transform_8, window_bounds = array<i64: 1, 512>}, {pipeline_mode = #tpu.pipeline_mode<synchronous>, transform_indices = @transform_9, window_bounds = array<i64: 1, 512>}, {transform_indices = @transform_10, window_bounds = array<i64: 4, 8, 128>}, {transform_indices = @transform_11, window_bounds = array<i64: 4, 8, 128>}, {transform_indices = @transform_12, window_bounds = array<i64: 4, 8, 128>}]} {
    %c0_i32 = arith.constant 0 : i32
    %0 = arith.cmpi eq, %arg1, %c0_i32 : i32
    %1 = arith.extui %0 : i1 to i32
    %c0_i32_0 = arith.constant 0 : i32
    %2 = arith.cmpi ne, %1, %c0_i32_0 : i32
    scf.if %2 {
      %cst_161 = arith.constant 0.000000e+00 : f32
      %438 = vector.broadcast %cst_161 : f32 to vector<8x128xf32>
      %c0_162 = arith.constant 0 : index
      %c0_163 = arith.constant 0 : index
      %439 = vector.load %arg15[%c0_162, %c0_163] : memref<8x128xf32, #tpu.memory_space<vmem>>, vector<8x128xf32>
      tpu.vector_store %arg15[%c0_162, %c0_163], %438 {strides = array<i32>} : memref<8x128xf32, #tpu.memory_space<vmem>>, vector<8x128xf32>,
      %cst_164 = arith.constant 0.000000e+00 : f32
      %440 = vector.broadcast %cst_164 : f32 to vector<8x128xf32>
      %c0_165 = arith.constant 0 : index
      %c0_166 = arith.constant 0 : index
      %441 = vector.load %arg18[%c0_165, %c0_166] : memref<8x128xf32, #tpu.memory_space<vmem>>, vector<8x128xf32>
      tpu.vector_store %arg18[%c0_165, %c0_166], %440 {strides = array<i32>} : memref<8x128xf32, #tpu.memory_space<vmem>>, vector<8x128xf32>,
      %cst_167 = arith.constant 0.000000e+00 : f32
      %442 = vector.broadcast %cst_167 : f32 to vector<8x128xf32>
      %c0_168 = arith.constant 0 : index
      %c0_169 = arith.constant 0 : index
      %443 = vector.load %arg16[%c0_168, %c0_169] : memref<8x128xf32, #tpu.memory_space<vmem>>, vector<8x128xf32>
      tpu.vector_store %arg16[%c0_168, %c0_169], %442 {strides = array<i32>} : memref<8x128xf32, #tpu.memory_space<vmem>>, vector<8x128xf32>,
      %cst_170 = arith.constant 0.000000e+00 : f32
      %444 = vector.broadcast %cst_170 : f32 to vector<8x128xf32>
      %c0_171 = arith.constant 0 : index
      %c0_172 = arith.constant 0 : index
      %445 = vector.load %arg19[%c0_171, %c0_172] : memref<8x128xf32, #tpu.memory_space<vmem>>, vector<8x128xf32>
      tpu.vector_store %arg19[%c0_171, %c0_172], %444 {strides = array<i32>} : memref<8x128xf32, #tpu.memory_space<vmem>>, vector<8x128xf32>,
      %cst_173 = arith.constant 0.000000e+00 : f32
      %446 = vector.broadcast %cst_173 : f32 to vector<8x128xf32>
      %c0_174 = arith.constant 0 : index
      %c0_175 = arith.constant 0 : index
      %447 = vector.load %arg17[%c0_174, %c0_175] : memref<8x128xf32, #tpu.memory_space<vmem>>, vector<8x128xf32>
      tpu.vector_store %arg17[%c0_174, %c0_175], %446 {strides = array<i32>} : memref<8x128xf32, #tpu.memory_space<vmem>>, vector<8x128xf32>,
      %cst_176 = arith.constant 0.000000e+00 : f32
      %448 = vector.broadcast %cst_176 : f32 to vector<8x128xf32>
      %c0_177 = arith.constant 0 : index
      %c0_178 = arith.constant 0 : index
      %449 = vector.load %arg20[%c0_177, %c0_178] : memref<8x128xf32, #tpu.memory_space<vmem>>, vector<8x128xf32>
      tpu.vector_store %arg20[%c0_177, %c0_178], %448 {strides = array<i32>} : memref<8x128xf32, #tpu.memory_space<vmem>>, vector<8x128xf32>,
    } else {
    }
    %c0 = arith.constant 0 : index
    %c0_1 = arith.constant 0 : index
    %3 = vector.load %arg3[%c0, %c0_1] : memref<128x512xbf16, #tpu.memory_space<vmem>>, vector<128x512xbf16>
    %c0_2 = arith.constant 0 : index
    %c0_3 = arith.constant 0 : index
    %4 = vector.load %arg6[%c0_2, %c0_3] : memref<128x512xbf16, #tpu.memory_space<vmem>>, vector<128x512xbf16>
    %c0_4 = arith.constant 0 : index
    %c0_5 = arith.constant 0 : index
    %5 = vector.load %arg9[%c0_4, %c0_5] : memref<1x512xf32, #tpu.memory_space<vmem>>, vector<1x512xf32>
    %c0_6 = arith.constant 0 : index
    %c0_7 = arith.constant 0 : index
    %6 = vector.load %arg15[%c0_6, %c0_7] : memref<8x128xf32, #tpu.memory_space<vmem>>, vector<8x128xf32>
    %c0_8 = arith.constant 0 : index
    %c0_9 = arith.constant 0 : index
    %7 = vector.load %arg18[%c0_8, %c0_9] : memref<8x128xf32, #tpu.memory_space<vmem>>, vector<8x128xf32>
    %c0_10 = arith.constant 0 : index
    %c0_11 = arith.constant 0 : index
    %c0_12 = arith.constant 0 : index
    %8 = vector.load %arg2[%c0_10, %c0_11, %c0_12] : memref<4x8x128xbf16, #tpu.memory_space<vmem>>, vector<4x8x128xbf16>
    %9 = vector.shape_cast %8 : vector<4x8x128xbf16> to vector<32x128xbf16>
    %cst = arith.constant dense<0.000000e+00> : vector<32x512xf32>
    %10 = tpu.matmul %9, %3, %cst {dimension_numbers = #tpu.dot_dimension_numbers<[1], [0], [0], [1], [0, 0, 1, 1], [], []>} : vector<32x128xbf16>, vector<128x512xbf16>, vector<32x512xf32> -> vector<32x512xf32>
    %11 = vector.broadcast %5 : vector<1x512xf32> to vector<32x512xf32>
    %12 = arith.addf %10, %11 : vector<32x512xf32>
    %c0_13 = arith.constant 0 : index
    %c0_14 = arith.constant 0 : index
    %13 = vector.load %arg21[%c0_13, %c0_14] : memref<32x512xf32, #tpu.memory_space<vmem>>, vector<32x512xf32>
    tpu.vector_store %arg21[%c0_13, %c0_14], %12 {strides = array<i32>} : memref<32x512xf32, #tpu.memory_space<vmem>>, vector<32x512xf32>,
    %c0_15 = arith.constant 0 : index
    %c0_16 = arith.constant 0 : index
    %14 = vector.load %arg21[%c0_15, %c0_16] : memref<32x512xf32, #tpu.memory_space<vmem>>, vector<8x512xf32>
    %15 = arith.truncf %6 : vector<8x128xf32> to vector<8x128xbf16>
    %cst_17 = arith.constant dense<0.000000e+00> : vector<8x512xf32>
    %16 = tpu.matmul %15, %4, %cst_17 {dimension_numbers = #tpu.dot_dimension_numbers<[1], [0], [0], [1], [0, 0, 1, 1], [], []>} : vector<8x128xbf16>, vector<128x512xbf16>, vector<8x512xf32> -> vector<8x512xf32>
    %17 = arith.addf %14, %16 : vector<8x512xf32>
    %18 = vector.extract_strided_slice %17 {offsets = [0, 0], sizes = [8, 128], strides = [1, 1]} : vector<8x512xf32> to vector<8x128xf32>
    %19 = arith.negf %18 : vector<8x128xf32>
    %20 = math.exp %19 : vector<8x128xf32>
    %cst_18 = arith.constant 1.000000e+00 : f32
    %21 = vector.broadcast %cst_18 : f32 to vector<8x128xf32>
    %22 = arith.addf %21, %20 : vector<8x128xf32>
    %23 = arith.divf %21, %22 : vector<8x128xf32>
    %24 = vector.extract_strided_slice %17 {offsets = [0, 128], sizes = [8, 128], strides = [1, 1]} : vector<8x512xf32> to vector<8x128xf32>
    %25 = arith.negf %24 : vector<8x128xf32>
    %26 = math.exp %25 : vector<8x128xf32>
    %cst_19 = arith.constant 1.000000e+00 : f32
    %27 = vector.broadcast %cst_19 : f32 to vector<8x128xf32>
    %28 = arith.addf %27, %26 : vector<8x128xf32>
    %29 = arith.divf %27, %28 : vector<8x128xf32>
    %30 = vector.extract_strided_slice %17 {offsets = [0, 256], sizes = [8, 128], strides = [1, 1]} : vector<8x512xf32> to vector<8x128xf32>
    %31 = math.tanh %30 : vector<8x128xf32>
    %32 = vector.extract_strided_slice %17 {offsets = [0, 384], sizes = [8, 128], strides = [1, 1]} : vector<8x512xf32> to vector<8x128xf32>
    %33 = arith.negf %32 : vector<8x128xf32>
    %34 = math.exp %33 : vector<8x128xf32>
    %cst_20 = arith.constant 1.000000e+00 : f32
    %35 = vector.broadcast %cst_20 : f32 to vector<8x128xf32>
    %36 = arith.addf %35, %34 : vector<8x128xf32>
    %37 = arith.divf %35, %36 : vector<8x128xf32>
    %38 = arith.mulf %29, %7 : vector<8x128xf32>
    %39 = arith.mulf %23, %31 : vector<8x128xf32>
    %40 = arith.addf %38, %39 : vector<8x128xf32>
    %41 = math.tanh %40 : vector<8x128xf32>
    %42 = arith.mulf %37, %41 : vector<8x128xf32>
    %43 = arith.truncf %42 : vector<8x128xf32> to vector<8x128xbf16>
    %c0_21 = arith.constant 0 : index
    %c0_22 = arith.constant 0 : index
    %c0_23 = arith.constant 0 : index
    %44 = vector.load %arg12[%c0_21, %c0_22, %c0_23] : memref<4x8x128xbf16, #tpu.memory_space<vmem>>, vector<1x8x128xbf16>
    %45 = vector.shape_cast %44 : vector<1x8x128xbf16> to vector<8x128xbf16>
    %46 = vector.shape_cast %43 : vector<8x128xbf16> to vector<1x8x128xbf16>
    tpu.vector_store %arg12[%c0_21, %c0_22, %c0_23], %46 {strides = array<i32>} : memref<4x8x128xbf16, #tpu.memory_space<vmem>>, vector<1x8x128xbf16>,
    %c8 = arith.constant 8 : index
    %c0_24 = arith.constant 0 : index
    %47 = vector.load %arg21[%c8, %c0_24] : memref<32x512xf32, #tpu.memory_space<vmem>>, vector<8x512xf32>
    %48 = arith.truncf %42 : vector<8x128xf32> to vector<8x128xbf16>
    %cst_25 = arith.constant dense<0.000000e+00> : vector<8x512xf32>
    %49 = tpu.matmul %48, %4, %cst_25 {dimension_numbers = #tpu.dot_dimension_numbers<[1], [0], [0], [1], [0, 0, 1, 1], [], []>} : vector<8x128xbf16>, vector<128x512xbf16>, vector<8x512xf32> -> vector<8x512xf32>
    %50 = arith.addf %47, %49 : vector<8x512xf32>
    %51 = vector.extract_strided_slice %50 {offsets = [0, 0], sizes = [8, 128], strides = [1, 1]} : vector<8x512xf32> to vector<8x128xf32>
    %52 = arith.negf %51 : vector<8x128xf32>
    %53 = math.exp %52 : vector<8x128xf32>
    %cst_26 = arith.constant 1.000000e+00 : f32
    %54 = vector.broadcast %cst_26 : f32 to vector<8x128xf32>
    %55 = arith.addf %54, %53 : vector<8x128xf32>
    %56 = arith.divf %54, %55 : vector<8x128xf32>
    %57 = vector.extract_strided_slice %50 {offsets = [0, 128], sizes = [8, 128], strides = [1, 1]} : vector<8x512xf32> to vector<8x128xf32>
    %58 = arith.negf %57 : vector<8x128xf32>
    %59 = math.exp %58 : vector<8x128xf32>
    %cst_27 = arith.constant 1.000000e+00 : f32
    %60 = vector.broadcast %cst_27 : f32 to vector<8x128xf32>
    %61 = arith.addf %60, %59 : vector<8x128xf32>
    %62 = arith.divf %60, %61 : vector<8x128xf32>
    %63 = vector.extract_strided_slice %50 {offsets = [0, 256], sizes = [8, 128], strides = [1, 1]} : vector<8x512xf32> to vector<8x128xf32>
    %64 = math.tanh %63 : vector<8x128xf32>
    %65 = vector.extract_strided_slice %50 {offsets = [0, 384], sizes = [8, 128], strides = [1, 1]} : vector<8x512xf32> to vector<8x128xf32>
    %66 = arith.negf %65 : vector<8x128xf32>
    %67 = math.exp %66 : vector<8x128xf32>
    %cst_28 = arith.constant 1.000000e+00 : f32
    %68 = vector.broadcast %cst_28 : f32 to vector<8x128xf32>
    %69 = arith.addf %68, %67 : vector<8x128xf32>
    %70 = arith.divf %68, %69 : vector<8x128xf32>
    %71 = arith.mulf %62, %40 : vector<8x128xf32>
    %72 = arith.mulf %56, %64 : vector<8x128xf32>
    %73 = arith.addf %71, %72 : vector<8x128xf32>
    %74 = math.tanh %73 : vector<8x128xf32>
    %75 = arith.mulf %70, %74 : vector<8x128xf32>
    %76 = arith.truncf %75 : vector<8x128xf32> to vector<8x128xbf16>
    %c1 = arith.constant 1 : index
    %c0_29 = arith.constant 0 : index
    %c0_30 = arith.constant 0 : index
    %77 = vector.load %arg12[%c1, %c0_29, %c0_30] : memref<4x8x128xbf16, #tpu.memory_space<vmem>>, vector<1x8x128xbf16>
    %78 = vector.shape_cast %77 : vector<1x8x128xbf16> to vector<8x128xbf16>
    %79 = vector.shape_cast %76 : vector<8x128xbf16> to vector<1x8x128xbf16>
    tpu.vector_store %arg12[%c1, %c0_29, %c0_30], %79 {strides = array<i32>} : memref<4x8x128xbf16, #tpu.memory_space<vmem>>, vector<1x8x128xbf16>,
    %c16 = arith.constant 16 : index
    %c0_31 = arith.constant 0 : index
    %80 = vector.load %arg21[%c16, %c0_31] : memref<32x512xf32, #tpu.memory_space<vmem>>, vector<8x512xf32>
    %81 = arith.truncf %75 : vector<8x128xf32> to vector<8x128xbf16>
    %cst_32 = arith.constant dense<0.000000e+00> : vector<8x512xf32>
    %82 = tpu.matmul %81, %4, %cst_32 {dimension_numbers = #tpu.dot_dimension_numbers<[1], [0], [0], [1], [0, 0, 1, 1], [], []>} : vector<8x128xbf16>, vector<128x512xbf16>, vector<8x512xf32> -> vector<8x512xf32>
    %83 = arith.addf %80, %82 : vector<8x512xf32>
    %84 = vector.extract_strided_slice %83 {offsets = [0, 0], sizes = [8, 128], strides = [1, 1]} : vector<8x512xf32> to vector<8x128xf32>
    %85 = arith.negf %84 : vector<8x128xf32>
    %86 = math.exp %85 : vector<8x128xf32>
    %cst_33 = arith.constant 1.000000e+00 : f32
    %87 = vector.broadcast %cst_33 : f32 to vector<8x128xf32>
    %88 = arith.addf %87, %86 : vector<8x128xf32>
    %89 = arith.divf %87, %88 : vector<8x128xf32>
    %90 = vector.extract_strided_slice %83 {offsets = [0, 128], sizes = [8, 128], strides = [1, 1]} : vector<8x512xf32> to vector<8x128xf32>
    %91 = arith.negf %90 : vector<8x128xf32>
    %92 = math.exp %91 : vector<8x128xf32>
    %cst_34 = arith.constant 1.000000e+00 : f32
    %93 = vector.broadcast %cst_34 : f32 to vector<8x128xf32>
    %94 = arith.addf %93, %92 : vector<8x128xf32>
    %95 = arith.divf %93, %94 : vector<8x128xf32>
    %96 = vector.extract_strided_slice %83 {offsets = [0, 256], sizes = [8, 128], strides = [1, 1]} : vector<8x512xf32> to vector<8x128xf32>
    %97 = math.tanh %96 : vector<8x128xf32>
    %98 = vector.extract_strided_slice %83 {offsets = [0, 384], sizes = [8, 128], strides = [1, 1]} : vector<8x512xf32> to vector<8x128xf32>
    %99 = arith.negf %98 : vector<8x128xf32>
    %100 = math.exp %99 : vector<8x128xf32>
    %cst_35 = arith.constant 1.000000e+00 : f32
    %101 = vector.broadcast %cst_35 : f32 to vector<8x128xf32>
    %102 = arith.addf %101, %100 : vector<8x128xf32>
    %103 = arith.divf %101, %102 : vector<8x128xf32>
    %104 = arith.mulf %95, %73 : vector<8x128xf32>
    %105 = arith.mulf %89, %97 : vector<8x128xf32>
    %106 = arith.addf %104, %105 : vector<8x128xf32>
    %107 = math.tanh %106 : vector<8x128xf32>
    %108 = arith.mulf %103, %107 : vector<8x128xf32>
    %109 = arith.truncf %108 : vector<8x128xf32> to vector<8x128xbf16>
    %c2 = arith.constant 2 : index
    %c0_36 = arith.constant 0 : index
    %c0_37 = arith.constant 0 : index
    %110 = vector.load %arg12[%c2, %c0_36, %c0_37] : memref<4x8x128xbf16, #tpu.memory_space<vmem>>, vector<1x8x128xbf16>
    %111 = vector.shape_cast %110 : vector<1x8x128xbf16> to vector<8x128xbf16>
    %112 = vector.shape_cast %109 : vector<8x128xbf16> to vector<1x8x128xbf16>
    tpu.vector_store %arg12[%c2, %c0_36, %c0_37], %112 {strides = array<i32>} : memref<4x8x128xbf16, #tpu.memory_space<vmem>>, vector<1x8x128xbf16>,
    %c24 = arith.constant 24 : index
    %c0_38 = arith.constant 0 : index
    %113 = vector.load %arg21[%c24, %c0_38] : memref<32x512xf32, #tpu.memory_space<vmem>>, vector<8x512xf32>
    %114 = arith.truncf %108 : vector<8x128xf32> to vector<8x128xbf16>
    %cst_39 = arith.constant dense<0.000000e+00> : vector<8x512xf32>
    %115 = tpu.matmul %114, %4, %cst_39 {dimension_numbers = #tpu.dot_dimension_numbers<[1], [0], [0], [1], [0, 0, 1, 1], [], []>} : vector<8x128xbf16>, vector<128x512xbf16>, vector<8x512xf32> -> vector<8x512xf32>
    %116 = arith.addf %113, %115 : vector<8x512xf32>
    %117 = vector.extract_strided_slice %116 {offsets = [0, 0], sizes = [8, 128], strides = [1, 1]} : vector<8x512xf32> to vector<8x128xf32>
    %118 = arith.negf %117 : vector<8x128xf32>
    %119 = math.exp %118 : vector<8x128xf32>
    %cst_40 = arith.constant 1.000000e+00 : f32
    %120 = vector.broadcast %cst_40 : f32 to vector<8x128xf32>
    %121 = arith.addf %120, %119 : vector<8x128xf32>
    %122 = arith.divf %120, %121 : vector<8x128xf32>
    %123 = vector.extract_strided_slice %116 {offsets = [0, 128], sizes = [8, 128], strides = [1, 1]} : vector<8x512xf32> to vector<8x128xf32>
    %124 = arith.negf %123 : vector<8x128xf32>
    %125 = math.exp %124 : vector<8x128xf32>
    %cst_41 = arith.constant 1.000000e+00 : f32
    %126 = vector.broadcast %cst_41 : f32 to vector<8x128xf32>
    %127 = arith.addf %126, %125 : vector<8x128xf32>
    %128 = arith.divf %126, %127 : vector<8x128xf32>
    %129 = vector.extract_strided_slice %116 {offsets = [0, 256], sizes = [8, 128], strides = [1, 1]} : vector<8x512xf32> to vector<8x128xf32>
    %130 = math.tanh %129 : vector<8x128xf32>
    %131 = vector.extract_strided_slice %116 {offsets = [0, 384], sizes = [8, 128], strides = [1, 1]} : vector<8x512xf32> to vector<8x128xf32>
    %132 = arith.negf %131 : vector<8x128xf32>
    %133 = math.exp %132 : vector<8x128xf32>
    %cst_42 = arith.constant 1.000000e+00 : f32
    %134 = vector.broadcast %cst_42 : f32 to vector<8x128xf32>
    %135 = arith.addf %134, %133 : vector<8x128xf32>
    %136 = arith.divf %134, %135 : vector<8x128xf32>
    %137 = arith.mulf %128, %106 : vector<8x128xf32>
    %138 = arith.mulf %122, %130 : vector<8x128xf32>
    %139 = arith.addf %137, %138 : vector<8x128xf32>
    %140 = math.tanh %139 : vector<8x128xf32>
    %141 = arith.mulf %136, %140 : vector<8x128xf32>
    %142 = arith.truncf %141 : vector<8x128xf32> to vector<8x128xbf16>
    %c3 = arith.constant 3 : index
    %c0_43 = arith.constant 0 : index
    %c0_44 = arith.constant 0 : index
    %143 = vector.load %arg12[%c3, %c0_43, %c0_44] : memref<4x8x128xbf16, #tpu.memory_space<vmem>>, vector<1x8x128xbf16>
    %144 = vector.shape_cast %143 : vector<1x8x128xbf16> to vector<8x128xbf16>
    %145 = vector.shape_cast %142 : vector<8x128xbf16> to vector<1x8x128xbf16>
    tpu.vector_store %arg12[%c3, %c0_43, %c0_44], %145 {strides = array<i32>} : memref<4x8x128xbf16, #tpu.memory_space<vmem>>, vector<1x8x128xbf16>,
    %c0_45 = arith.constant 0 : index
    %c0_46 = arith.constant 0 : index
    %146 = vector.load %arg15[%c0_45, %c0_46] : memref<8x128xf32, #tpu.memory_space<vmem>>, vector<8x128xf32>
    tpu.vector_store %arg15[%c0_45, %c0_46], %141 {strides = array<i32>} : memref<8x128xf32, #tpu.memory_space<vmem>>, vector<8x128xf32>,
    %c0_47 = arith.constant 0 : index
    %c0_48 = arith.constant 0 : index
    %147 = vector.load %arg18[%c0_47, %c0_48] : memref<8x128xf32, #tpu.memory_space<vmem>>, vector<8x128xf32>
    tpu.vector_store %arg18[%c0_47, %c0_48], %139 {strides = array<i32>} : memref<8x128xf32, #tpu.memory_space<vmem>>, vector<8x128xf32>,
    %c0_49 = arith.constant 0 : index
    %c0_50 = arith.constant 0 : index
    %148 = vector.load %arg4[%c0_49, %c0_50] : memref<128x512xbf16, #tpu.memory_space<vmem>>, vector<128x512xbf16>
    %c0_51 = arith.constant 0 : index
    %c0_52 = arith.constant 0 : index
    %149 = vector.load %arg7[%c0_51, %c0_52] : memref<128x512xbf16, #tpu.memory_space<vmem>>, vector<128x512xbf16>
    %c0_53 = arith.constant 0 : index
    %c0_54 = arith.constant 0 : index
    %150 = vector.load %arg10[%c0_53, %c0_54] : memref<1x512xf32, #tpu.memory_space<vmem>>, vector<1x512xf32>
    %c0_55 = arith.constant 0 : index
    %c0_56 = arith.constant 0 : index
    %151 = vector.load %arg16[%c0_55, %c0_56] : memref<8x128xf32, #tpu.memory_space<vmem>>, vector<8x128xf32>
    %c0_57 = arith.constant 0 : index
    %c0_58 = arith.constant 0 : index
    %152 = vector.load %arg19[%c0_57, %c0_58] : memref<8x128xf32, #tpu.memory_space<vmem>>, vector<8x128xf32>
    %c0_59 = arith.constant 0 : index
    %c0_60 = arith.constant 0 : index
    %c0_61 = arith.constant 0 : index
    %153 = vector.load %arg12[%c0_59, %c0_60, %c0_61] : memref<4x8x128xbf16, #tpu.memory_space<vmem>>, vector<4x8x128xbf16>
    %154 = vector.shape_cast %153 : vector<4x8x128xbf16> to vector<32x128xbf16>
    %cst_62 = arith.constant dense<0.000000e+00> : vector<32x512xf32>
    %155 = tpu.matmul %154, %148, %cst_62 {dimension_numbers = #tpu.dot_dimension_numbers<[1], [0], [0], [1], [0, 0, 1, 1], [], []>} : vector<32x128xbf16>, vector<128x512xbf16>, vector<32x512xf32> -> vector<32x512xf32>
    %156 = vector.broadcast %150 : vector<1x512xf32> to vector<32x512xf32>
    %157 = arith.addf %155, %156 : vector<32x512xf32>
    %c0_63 = arith.constant 0 : index
    %c0_64 = arith.constant 0 : index
    %158 = vector.load %arg21[%c0_63, %c0_64] : memref<32x512xf32, #tpu.memory_space<vmem>>, vector<32x512xf32>
    tpu.vector_store %arg21[%c0_63, %c0_64], %157 {strides = array<i32>} : memref<32x512xf32, #tpu.memory_space<vmem>>, vector<32x512xf32>,
    %c0_65 = arith.constant 0 : index
    %c0_66 = arith.constant 0 : index
    %159 = vector.load %arg21[%c0_65, %c0_66] : memref<32x512xf32, #tpu.memory_space<vmem>>, vector<8x512xf32>
    %160 = arith.truncf %151 : vector<8x128xf32> to vector<8x128xbf16>
    %cst_67 = arith.constant dense<0.000000e+00> : vector<8x512xf32>
    %161 = tpu.matmul %160, %149, %cst_67 {dimension_numbers = #tpu.dot_dimension_numbers<[1], [0], [0], [1], [0, 0, 1, 1], [], []>} : vector<8x128xbf16>, vector<128x512xbf16>, vector<8x512xf32> -> vector<8x512xf32>
    %162 = arith.addf %159, %161 : vector<8x512xf32>
    %163 = vector.extract_strided_slice %162 {offsets = [0, 0], sizes = [8, 128], strides = [1, 1]} : vector<8x512xf32> to vector<8x128xf32>
    %164 = arith.negf %163 : vector<8x128xf32>
    %165 = math.exp %164 : vector<8x128xf32>
    %cst_68 = arith.constant 1.000000e+00 : f32
    %166 = vector.broadcast %cst_68 : f32 to vector<8x128xf32>
    %167 = arith.addf %166, %165 : vector<8x128xf32>
    %168 = arith.divf %166, %167 : vector<8x128xf32>
    %169 = vector.extract_strided_slice %162 {offsets = [0, 128], sizes = [8, 128], strides = [1, 1]} : vector<8x512xf32> to vector<8x128xf32>
    %170 = arith.negf %169 : vector<8x128xf32>
    %171 = math.exp %170 : vector<8x128xf32>
    %cst_69 = arith.constant 1.000000e+00 : f32
    %172 = vector.broadcast %cst_69 : f32 to vector<8x128xf32>
    %173 = arith.addf %172, %171 : vector<8x128xf32>
    %174 = arith.divf %172, %173 : vector<8x128xf32>
    %175 = vector.extract_strided_slice %162 {offsets = [0, 256], sizes = [8, 128], strides = [1, 1]} : vector<8x512xf32> to vector<8x128xf32>
    %176 = math.tanh %175 : vector<8x128xf32>
    %177 = vector.extract_strided_slice %162 {offsets = [0, 384], sizes = [8, 128], strides = [1, 1]} : vector<8x512xf32> to vector<8x128xf32>
    %178 = arith.negf %177 : vector<8x128xf32>
    %179 = math.exp %178 : vector<8x128xf32>
    %cst_70 = arith.constant 1.000000e+00 : f32
    %180 = vector.broadcast %cst_70 : f32 to vector<8x128xf32>
    %181 = arith.addf %180, %179 : vector<8x128xf32>
    %182 = arith.divf %180, %181 : vector<8x128xf32>
    %183 = arith.mulf %174, %152 : vector<8x128xf32>
    %184 = arith.mulf %168, %176 : vector<8x128xf32>
    %185 = arith.addf %183, %184 : vector<8x128xf32>
    %186 = math.tanh %185 : vector<8x128xf32>
    %187 = arith.mulf %182, %186 : vector<8x128xf32>
    %188 = arith.truncf %187 : vector<8x128xf32> to vector<8x128xbf16>
    %c0_71 = arith.constant 0 : index
    %c0_72 = arith.constant 0 : index
    %c0_73 = arith.constant 0 : index
    %189 = vector.load %arg13[%c0_71, %c0_72, %c0_73] : memref<4x8x128xbf16, #tpu.memory_space<vmem>>, vector<1x8x128xbf16>
    %190 = vector.shape_cast %189 : vector<1x8x128xbf16> to vector<8x128xbf16>
    %191 = vector.shape_cast %188 : vector<8x128xbf16> to vector<1x8x128xbf16>
    tpu.vector_store %arg13[%c0_71, %c0_72, %c0_73], %191 {strides = array<i32>} : memref<4x8x128xbf16, #tpu.memory_space<vmem>>, vector<1x8x128xbf16>,
    %c8_74 = arith.constant 8 : index
    %c0_75 = arith.constant 0 : index
    %192 = vector.load %arg21[%c8_74, %c0_75] : memref<32x512xf32, #tpu.memory_space<vmem>>, vector<8x512xf32>
    %193 = arith.truncf %187 : vector<8x128xf32> to vector<8x128xbf16>
    %cst_76 = arith.constant dense<0.000000e+00> : vector<8x512xf32>
    %194 = tpu.matmul %193, %149, %cst_76 {dimension_numbers = #tpu.dot_dimension_numbers<[1], [0], [0], [1], [0, 0, 1, 1], [], []>} : vector<8x128xbf16>, vector<128x512xbf16>, vector<8x512xf32> -> vector<8x512xf32>
    %195 = arith.addf %192, %194 : vector<8x512xf32>
    %196 = vector.extract_strided_slice %195 {offsets = [0, 0], sizes = [8, 128], strides = [1, 1]} : vector<8x512xf32> to vector<8x128xf32>
    %197 = arith.negf %196 : vector<8x128xf32>
    %198 = math.exp %197 : vector<8x128xf32>
    %cst_77 = arith.constant 1.000000e+00 : f32
    %199 = vector.broadcast %cst_77 : f32 to vector<8x128xf32>
    %200 = arith.addf %199, %198 : vector<8x128xf32>
    %201 = arith.divf %199, %200 : vector<8x128xf32>
    %202 = vector.extract_strided_slice %195 {offsets = [0, 128], sizes = [8, 128], strides = [1, 1]} : vector<8x512xf32> to vector<8x128xf32>
    %203 = arith.negf %202 : vector<8x128xf32>
    %204 = math.exp %203 : vector<8x128xf32>
    %cst_78 = arith.constant 1.000000e+00 : f32
    %205 = vector.broadcast %cst_78 : f32 to vector<8x128xf32>
    %206 = arith.addf %205, %204 : vector<8x128xf32>
    %207 = arith.divf %205, %206 : vector<8x128xf32>
    %208 = vector.extract_strided_slice %195 {offsets = [0, 256], sizes = [8, 128], strides = [1, 1]} : vector<8x512xf32> to vector<8x128xf32>
    %209 = math.tanh %208 : vector<8x128xf32>
    %210 = vector.extract_strided_slice %195 {offsets = [0, 384], sizes = [8, 128], strides = [1, 1]} : vector<8x512xf32> to vector<8x128xf32>
    %211 = arith.negf %210 : vector<8x128xf32>
    %212 = math.exp %211 : vector<8x128xf32>
    %cst_79 = arith.constant 1.000000e+00 : f32
    %213 = vector.broadcast %cst_79 : f32 to vector<8x128xf32>
    %214 = arith.addf %213, %212 : vector<8x128xf32>
    %215 = arith.divf %213, %214 : vector<8x128xf32>
    %216 = arith.mulf %207, %185 : vector<8x128xf32>
    %217 = arith.mulf %201, %209 : vector<8x128xf32>
    %218 = arith.addf %216, %217 : vector<8x128xf32>
    %219 = math.tanh %218 : vector<8x128xf32>
    %220 = arith.mulf %215, %219 : vector<8x128xf32>
    %221 = arith.truncf %220 : vector<8x128xf32> to vector<8x128xbf16>
    %c1_80 = arith.constant 1 : index
    %c0_81 = arith.constant 0 : index
    %c0_82 = arith.constant 0 : index
    %222 = vector.load %arg13[%c1_80, %c0_81, %c0_82] : memref<4x8x128xbf16, #tpu.memory_space<vmem>>, vector<1x8x128xbf16>
    %223 = vector.shape_cast %222 : vector<1x8x128xbf16> to vector<8x128xbf16>
    %224 = vector.shape_cast %221 : vector<8x128xbf16> to vector<1x8x128xbf16>
    tpu.vector_store %arg13[%c1_80, %c0_81, %c0_82], %224 {strides = array<i32>} : memref<4x8x128xbf16, #tpu.memory_space<vmem>>, vector<1x8x128xbf16>,
    %c16_83 = arith.constant 16 : index
    %c0_84 = arith.constant 0 : index
    %225 = vector.load %arg21[%c16_83, %c0_84] : memref<32x512xf32, #tpu.memory_space<vmem>>, vector<8x512xf32>
    %226 = arith.truncf %220 : vector<8x128xf32> to vector<8x128xbf16>
    %cst_85 = arith.constant dense<0.000000e+00> : vector<8x512xf32>
    %227 = tpu.matmul %226, %149, %cst_85 {dimension_numbers = #tpu.dot_dimension_numbers<[1], [0], [0], [1], [0, 0, 1, 1], [], []>} : vector<8x128xbf16>, vector<128x512xbf16>, vector<8x512xf32> -> vector<8x512xf32>
    %228 = arith.addf %225, %227 : vector<8x512xf32>
    %229 = vector.extract_strided_slice %228 {offsets = [0, 0], sizes = [8, 128], strides = [1, 1]} : vector<8x512xf32> to vector<8x128xf32>
    %230 = arith.negf %229 : vector<8x128xf32>
    %231 = math.exp %230 : vector<8x128xf32>
    %cst_86 = arith.constant 1.000000e+00 : f32
    %232 = vector.broadcast %cst_86 : f32 to vector<8x128xf32>
    %233 = arith.addf %232, %231 : vector<8x128xf32>
    %234 = arith.divf %232, %233 : vector<8x128xf32>
    %235 = vector.extract_strided_slice %228 {offsets = [0, 128], sizes = [8, 128], strides = [1, 1]} : vector<8x512xf32> to vector<8x128xf32>
    %236 = arith.negf %235 : vector<8x128xf32>
    %237 = math.exp %236 : vector<8x128xf32>
    %cst_87 = arith.constant 1.000000e+00 : f32
    %238 = vector.broadcast %cst_87 : f32 to vector<8x128xf32>
    %239 = arith.addf %238, %237 : vector<8x128xf32>
    %240 = arith.divf %238, %239 : vector<8x128xf32>
    %241 = vector.extract_strided_slice %228 {offsets = [0, 256], sizes = [8, 128], strides = [1, 1]} : vector<8x512xf32> to vector<8x128xf32>
    %242 = math.tanh %241 : vector<8x128xf32>
    %243 = vector.extract_strided_slice %228 {offsets = [0, 384], sizes = [8, 128], strides = [1, 1]} : vector<8x512xf32> to vector<8x128xf32>
    %244 = arith.negf %243 : vector<8x128xf32>
    %245 = math.exp %244 : vector<8x128xf32>
    %cst_88 = arith.constant 1.000000e+00 : f32
    %246 = vector.broadcast %cst_88 : f32 to vector<8x128xf32>
    %247 = arith.addf %246, %245 : vector<8x128xf32>
    %248 = arith.divf %246, %247 : vector<8x128xf32>
    %249 = arith.mulf %240, %218 : vector<8x128xf32>
    %250 = arith.mulf %234, %242 : vector<8x128xf32>
    %251 = arith.addf %249, %250 : vector<8x128xf32>
    %252 = math.tanh %251 : vector<8x128xf32>
    %253 = arith.mulf %248, %252 : vector<8x128xf32>
    %254 = arith.truncf %253 : vector<8x128xf32> to vector<8x128xbf16>
    %c2_89 = arith.constant 2 : index
    %c0_90 = arith.constant 0 : index
    %c0_91 = arith.constant 0 : index
    %255 = vector.load %arg13[%c2_89, %c0_90, %c0_91] : memref<4x8x128xbf16, #tpu.memory_space<vmem>>, vector<1x8x128xbf16>
    %256 = vector.shape_cast %255 : vector<1x8x128xbf16> to vector<8x128xbf16>
    %257 = vector.shape_cast %254 : vector<8x128xbf16> to vector<1x8x128xbf16>
    tpu.vector_store %arg13[%c2_89, %c0_90, %c0_91], %257 {strides = array<i32>} : memref<4x8x128xbf16, #tpu.memory_space<vmem>>, vector<1x8x128xbf16>,
    %c24_92 = arith.constant 24 : index
    %c0_93 = arith.constant 0 : index
    %258 = vector.load %arg21[%c24_92, %c0_93] : memref<32x512xf32, #tpu.memory_space<vmem>>, vector<8x512xf32>
    %259 = arith.truncf %253 : vector<8x128xf32> to vector<8x128xbf16>
    %cst_94 = arith.constant dense<0.000000e+00> : vector<8x512xf32>
    %260 = tpu.matmul %259, %149, %cst_94 {dimension_numbers = #tpu.dot_dimension_numbers<[1], [0], [0], [1], [0, 0, 1, 1], [], []>} : vector<8x128xbf16>, vector<128x512xbf16>, vector<8x512xf32> -> vector<8x512xf32>
    %261 = arith.addf %258, %260 : vector<8x512xf32>
    %262 = vector.extract_strided_slice %261 {offsets = [0, 0], sizes = [8, 128], strides = [1, 1]} : vector<8x512xf32> to vector<8x128xf32>
    %263 = arith.negf %262 : vector<8x128xf32>
    %264 = math.exp %263 : vector<8x128xf32>
    %cst_95 = arith.constant 1.000000e+00 : f32
    %265 = vector.broadcast %cst_95 : f32 to vector<8x128xf32>
    %266 = arith.addf %265, %264 : vector<8x128xf32>
    %267 = arith.divf %265, %266 : vector<8x128xf32>
    %268 = vector.extract_strided_slice %261 {offsets = [0, 128], sizes = [8, 128], strides = [1, 1]} : vector<8x512xf32> to vector<8x128xf32>
    %269 = arith.negf %268 : vector<8x128xf32>
    %270 = math.exp %269 : vector<8x128xf32>
    %cst_96 = arith.constant 1.000000e+00 : f32
    %271 = vector.broadcast %cst_96 : f32 to vector<8x128xf32>
    %272 = arith.addf %271, %270 : vector<8x128xf32>
    %273 = arith.divf %271, %272 : vector<8x128xf32>
    %274 = vector.extract_strided_slice %261 {offsets = [0, 256], sizes = [8, 128], strides = [1, 1]} : vector<8x512xf32> to vector<8x128xf32>
    %275 = math.tanh %274 : vector<8x128xf32>
    %276 = vector.extract_strided_slice %261 {offsets = [0, 384], sizes = [8, 128], strides = [1, 1]} : vector<8x512xf32> to vector<8x128xf32>
    %277 = arith.negf %276 : vector<8x128xf32>
    %278 = math.exp %277 : vector<8x128xf32>
    %cst_97 = arith.constant 1.000000e+00 : f32
    %279 = vector.broadcast %cst_97 : f32 to vector<8x128xf32>
    %280 = arith.addf %279, %278 : vector<8x128xf32>
    %281 = arith.divf %279, %280 : vector<8x128xf32>
    %282 = arith.mulf %273, %251 : vector<8x128xf32>
    %283 = arith.mulf %267, %275 : vector<8x128xf32>
    %284 = arith.addf %282, %283 : vector<8x128xf32>
    %285 = math.tanh %284 : vector<8x128xf32>
    %286 = arith.mulf %281, %285 : vector<8x128xf32>
    %287 = arith.truncf %286 : vector<8x128xf32> to vector<8x128xbf16>
    %c3_98 = arith.constant 3 : index
    %c0_99 = arith.constant 0 : index
    %c0_100 = arith.constant 0 : index
    %288 = vector.load %arg13[%c3_98, %c0_99, %c0_100] : memref<4x8x128xbf16, #tpu.memory_space<vmem>>, vector<1x8x128xbf16>
    %289 = vector.shape_cast %288 : vector<1x8x128xbf16> to vector<8x128xbf16>
    %290 = vector.shape_cast %287 : vector<8x128xbf16> to vector<1x8x128xbf16>
    tpu.vector_store %arg13[%c3_98, %c0_99, %c0_100], %290 {strides = array<i32>} : memref<4x8x128xbf16, #tpu.memory_space<vmem>>, vector<1x8x128xbf16>,
    %c0_101 = arith.constant 0 : index
    %c0_102 = arith.constant 0 : index
    %291 = vector.load %arg16[%c0_101, %c0_102] : memref<8x128xf32, #tpu.memory_space<vmem>>, vector<8x128xf32>
    tpu.vector_store %arg16[%c0_101, %c0_102], %286 {strides = array<i32>} : memref<8x128xf32, #tpu.memory_space<vmem>>, vector<8x128xf32>,
    %c0_103 = arith.constant 0 : index
    %c0_104 = arith.constant 0 : index
    %292 = vector.load %arg19[%c0_103, %c0_104] : memref<8x128xf32, #tpu.memory_space<vmem>>, vector<8x128xf32>
    tpu.vector_store %arg19[%c0_103, %c0_104], %284 {strides = array<i32>} : memref<8x128xf32, #tpu.memory_space<vmem>>, vector<8x128xf32>,
    %c0_105 = arith.constant 0 : index
    %c0_106 = arith.constant 0 : index
    %293 = vector.load %arg5[%c0_105, %c0_106] : memref<128x512xbf16, #tpu.memory_space<vmem>>, vector<128x512xbf16>
    %c0_107 = arith.constant 0 : index
    %c0_108 = arith.constant 0 : index
    %294 = vector.load %arg8[%c0_107, %c0_108] : memref<128x512xbf16, #tpu.memory_space<vmem>>, vector<128x512xbf16>
    %c0_109 = arith.constant 0 : index
    %c0_110 = arith.constant 0 : index
    %295 = vector.load %arg11[%c0_109, %c0_110] : memref<1x512xf32, #tpu.memory_space<vmem>>, vector<1x512xf32>
    %c0_111 = arith.constant 0 : index
    %c0_112 = arith.constant 0 : index
    %296 = vector.load %arg17[%c0_111, %c0_112] : memref<8x128xf32, #tpu.memory_space<vmem>>, vector<8x128xf32>
    %c0_113 = arith.constant 0 : index
    %c0_114 = arith.constant 0 : index
    %297 = vector.load %arg20[%c0_113, %c0_114] : memref<8x128xf32, #tpu.memory_space<vmem>>, vector<8x128xf32>
    %c0_115 = arith.constant 0 : index
    %c0_116 = arith.constant 0 : index
    %c0_117 = arith.constant 0 : index
    %298 = vector.load %arg13[%c0_115, %c0_116, %c0_117] : memref<4x8x128xbf16, #tpu.memory_space<vmem>>, vector<4x8x128xbf16>
    %299 = vector.shape_cast %298 : vector<4x8x128xbf16> to vector<32x128xbf16>
    %cst_118 = arith.constant dense<0.000000e+00> : vector<32x512xf32>
    %300 = tpu.matmul %299, %293, %cst_118 {dimension_numbers = #tpu.dot_dimension_numbers<[1], [0], [0], [1], [0, 0, 1, 1], [], []>} : vector<32x128xbf16>, vector<128x512xbf16>, vector<32x512xf32> -> vector<32x512xf32>
    %301 = vector.broadcast %295 : vector<1x512xf32> to vector<32x512xf32>
    %302 = arith.addf %300, %301 : vector<32x512xf32>
    %c0_119 = arith.constant 0 : index
    %c0_120 = arith.constant 0 : index
    %303 = vector.load %arg21[%c0_119, %c0_120] : memref<32x512xf32, #tpu.memory_space<vmem>>, vector<32x512xf32>
    tpu.vector_store %arg21[%c0_119, %c0_120], %302 {strides = array<i32>} : memref<32x512xf32, #tpu.memory_space<vmem>>, vector<32x512xf32>,
    %c0_121 = arith.constant 0 : index
    %c0_122 = arith.constant 0 : index
    %304 = vector.load %arg21[%c0_121, %c0_122] : memref<32x512xf32, #tpu.memory_space<vmem>>, vector<8x512xf32>
    %305 = arith.truncf %296 : vector<8x128xf32> to vector<8x128xbf16>
    %cst_123 = arith.constant dense<0.000000e+00> : vector<8x512xf32>
    %306 = tpu.matmul %305, %294, %cst_123 {dimension_numbers = #tpu.dot_dimension_numbers<[1], [0], [0], [1], [0, 0, 1, 1], [], []>} : vector<8x128xbf16>, vector<128x512xbf16>, vector<8x512xf32> -> vector<8x512xf32>
    %307 = arith.addf %304, %306 : vector<8x512xf32>
    %308 = vector.extract_strided_slice %307 {offsets = [0, 0], sizes = [8, 128], strides = [1, 1]} : vector<8x512xf32> to vector<8x128xf32>
    %309 = arith.negf %308 : vector<8x128xf32>
    %310 = math.exp %309 : vector<8x128xf32>
    %cst_124 = arith.constant 1.000000e+00 : f32
    %311 = vector.broadcast %cst_124 : f32 to vector<8x128xf32>
    %312 = arith.addf %311, %310 : vector<8x128xf32>
    %313 = arith.divf %311, %312 : vector<8x128xf32>
    %314 = vector.extract_strided_slice %307 {offsets = [0, 128], sizes = [8, 128], strides = [1, 1]} : vector<8x512xf32> to vector<8x128xf32>
    %315 = arith.negf %314 : vector<8x128xf32>
    %316 = math.exp %315 : vector<8x128xf32>
    %cst_125 = arith.constant 1.000000e+00 : f32
    %317 = vector.broadcast %cst_125 : f32 to vector<8x128xf32>
    %318 = arith.addf %317, %316 : vector<8x128xf32>
    %319 = arith.divf %317, %318 : vector<8x128xf32>
    %320 = vector.extract_strided_slice %307 {offsets = [0, 256], sizes = [8, 128], strides = [1, 1]} : vector<8x512xf32> to vector<8x128xf32>
    %321 = math.tanh %320 : vector<8x128xf32>
    %322 = vector.extract_strided_slice %307 {offsets = [0, 384], sizes = [8, 128], strides = [1, 1]} : vector<8x512xf32> to vector<8x128xf32>
    %323 = arith.negf %322 : vector<8x128xf32>
    %324 = math.exp %323 : vector<8x128xf32>
    %cst_126 = arith.constant 1.000000e+00 : f32
    %325 = vector.broadcast %cst_126 : f32 to vector<8x128xf32>
    %326 = arith.addf %325, %324 : vector<8x128xf32>
    %327 = arith.divf %325, %326 : vector<8x128xf32>
    %328 = arith.mulf %319, %297 : vector<8x128xf32>
    %329 = arith.mulf %313, %321 : vector<8x128xf32>
    %330 = arith.addf %328, %329 : vector<8x128xf32>
    %331 = math.tanh %330 : vector<8x128xf32>
    %332 = arith.mulf %327, %331 : vector<8x128xf32>
    %333 = arith.truncf %332 : vector<8x128xf32> to vector<8x128xbf16>
    %c0_127 = arith.constant 0 : index
    %c0_128 = arith.constant 0 : index
    %c0_129 = arith.constant 0 : index
    %334 = vector.load %arg14[%c0_127, %c0_128, %c0_129] : memref<4x8x128xbf16, #tpu.memory_space<vmem>>, vector<1x8x128xbf16>
    %335 = vector.shape_cast %334 : vector<1x8x128xbf16> to vector<8x128xbf16>
    %336 = vector.shape_cast %333 : vector<8x128xbf16> to vector<1x8x128xbf16>
    tpu.vector_store %arg14[%c0_127, %c0_128, %c0_129], %336 {strides = array<i32>} : memref<4x8x128xbf16, #tpu.memory_space<vmem>>, vector<1x8x128xbf16>,
    %c8_130 = arith.constant 8 : index
    %c0_131 = arith.constant 0 : index
    %337 = vector.load %arg21[%c8_130, %c0_131] : memref<32x512xf32, #tpu.memory_space<vmem>>, vector<8x512xf32>
    %338 = arith.truncf %332 : vector<8x128xf32> to vector<8x128xbf16>
    %cst_132 = arith.constant dense<0.000000e+00> : vector<8x512xf32>
    %339 = tpu.matmul %338, %294, %cst_132 {dimension_numbers = #tpu.dot_dimension_numbers<[1], [0], [0], [1], [0, 0, 1, 1], [], []>} : vector<8x128xbf16>, vector<128x512xbf16>, vector<8x512xf32> -> vector<8x512xf32>
    %340 = arith.addf %337, %339 : vector<8x512xf32>
    %341 = vector.extract_strided_slice %340 {offsets = [0, 0], sizes = [8, 128], strides = [1, 1]} : vector<8x512xf32> to vector<8x128xf32>
    %342 = arith.negf %341 : vector<8x128xf32>
    %343 = math.exp %342 : vector<8x128xf32>
    %cst_133 = arith.constant 1.000000e+00 : f32
    %344 = vector.broadcast %cst_133 : f32 to vector<8x128xf32>
    %345 = arith.addf %344, %343 : vector<8x128xf32>
    %346 = arith.divf %344, %345 : vector<8x128xf32>
    %347 = vector.extract_strided_slice %340 {offsets = [0, 128], sizes = [8, 128], strides = [1, 1]} : vector<8x512xf32> to vector<8x128xf32>
    %348 = arith.negf %347 : vector<8x128xf32>
    %349 = math.exp %348 : vector<8x128xf32>
    %cst_134 = arith.constant 1.000000e+00 : f32
    %350 = vector.broadcast %cst_134 : f32 to vector<8x128xf32>
    %351 = arith.addf %350, %349 : vector<8x128xf32>
    %352 = arith.divf %350, %351 : vector<8x128xf32>
    %353 = vector.extract_strided_slice %340 {offsets = [0, 256], sizes = [8, 128], strides = [1, 1]} : vector<8x512xf32> to vector<8x128xf32>
    %354 = math.tanh %353 : vector<8x128xf32>
    %355 = vector.extract_strided_slice %340 {offsets = [0, 384], sizes = [8, 128], strides = [1, 1]} : vector<8x512xf32> to vector<8x128xf32>
    %356 = arith.negf %355 : vector<8x128xf32>
    %357 = math.exp %356 : vector<8x128xf32>
    %cst_135 = arith.constant 1.000000e+00 : f32
    %358 = vector.broadcast %cst_135 : f32 to vector<8x128xf32>
    %359 = arith.addf %358, %357 : vector<8x128xf32>
    %360 = arith.divf %358, %359 : vector<8x128xf32>
    %361 = arith.mulf %352, %330 : vector<8x128xf32>
    %362 = arith.mulf %346, %354 : vector<8x128xf32>
    %363 = arith.addf %361, %362 : vector<8x128xf32>
    %364 = math.tanh %363 : vector<8x128xf32>
    %365 = arith.mulf %360, %364 : vector<8x128xf32>
    %366 = arith.truncf %365 : vector<8x128xf32> to vector<8x128xbf16>
    %c1_136 = arith.constant 1 : index
    %c0_137 = arith.constant 0 : index
    %c0_138 = arith.constant 0 : index
    %367 = vector.load %arg14[%c1_136, %c0_137, %c0_138] : memref<4x8x128xbf16, #tpu.memory_space<vmem>>, vector<1x8x128xbf16>
    %368 = vector.shape_cast %367 : vector<1x8x128xbf16> to vector<8x128xbf16>
    %369 = vector.shape_cast %366 : vector<8x128xbf16> to vector<1x8x128xbf16>
    tpu.vector_store %arg14[%c1_136, %c0_137, %c0_138], %369 {strides = array<i32>} : memref<4x8x128xbf16, #tpu.memory_space<vmem>>, vector<1x8x128xbf16>,
    %c16_139 = arith.constant 16 : index
    %c0_140 = arith.constant 0 : index
    %370 = vector.load %arg21[%c16_139, %c0_140] : memref<32x512xf32, #tpu.memory_space<vmem>>, vector<8x512xf32>
    %371 = arith.truncf %365 : vector<8x128xf32> to vector<8x128xbf16>
    %cst_141 = arith.constant dense<0.000000e+00> : vector<8x512xf32>
    %372 = tpu.matmul %371, %294, %cst_141 {dimension_numbers = #tpu.dot_dimension_numbers<[1], [0], [0], [1], [0, 0, 1, 1], [], []>} : vector<8x128xbf16>, vector<128x512xbf16>, vector<8x512xf32> -> vector<8x512xf32>
    %373 = arith.addf %370, %372 : vector<8x512xf32>
    %374 = vector.extract_strided_slice %373 {offsets = [0, 0], sizes = [8, 128], strides = [1, 1]} : vector<8x512xf32> to vector<8x128xf32>
    %375 = arith.negf %374 : vector<8x128xf32>
    %376 = math.exp %375 : vector<8x128xf32>
    %cst_142 = arith.constant 1.000000e+00 : f32
    %377 = vector.broadcast %cst_142 : f32 to vector<8x128xf32>
    %378 = arith.addf %377, %376 : vector<8x128xf32>
    %379 = arith.divf %377, %378 : vector<8x128xf32>
    %380 = vector.extract_strided_slice %373 {offsets = [0, 128], sizes = [8, 128], strides = [1, 1]} : vector<8x512xf32> to vector<8x128xf32>
    %381 = arith.negf %380 : vector<8x128xf32>
    %382 = math.exp %381 : vector<8x128xf32>
    %cst_143 = arith.constant 1.000000e+00 : f32
    %383 = vector.broadcast %cst_143 : f32 to vector<8x128xf32>
    %384 = arith.addf %383, %382 : vector<8x128xf32>
    %385 = arith.divf %383, %384 : vector<8x128xf32>
    %386 = vector.extract_strided_slice %373 {offsets = [0, 256], sizes = [8, 128], strides = [1, 1]} : vector<8x512xf32> to vector<8x128xf32>
    %387 = math.tanh %386 : vector<8x128xf32>
    %388 = vector.extract_strided_slice %373 {offsets = [0, 384], sizes = [8, 128], strides = [1, 1]} : vector<8x512xf32> to vector<8x128xf32>
    %389 = arith.negf %388 : vector<8x128xf32>
    %390 = math.exp %389 : vector<8x128xf32>
    %cst_144 = arith.constant 1.000000e+00 : f32
    %391 = vector.broadcast %cst_144 : f32 to vector<8x128xf32>
    %392 = arith.addf %391, %390 : vector<8x128xf32>
    %393 = arith.divf %391, %392 : vector<8x128xf32>
    %394 = arith.mulf %385, %363 : vector<8x128xf32>
    %395 = arith.mulf %379, %387 : vector<8x128xf32>
    %396 = arith.addf %394, %395 : vector<8x128xf32>
    %397 = math.tanh %396 : vector<8x128xf32>
    %398 = arith.mulf %393, %397 : vector<8x128xf32>
    %399 = arith.truncf %398 : vector<8x128xf32> to vector<8x128xbf16>
    %c2_145 = arith.constant 2 : index
    %c0_146 = arith.constant 0 : index
    %c0_147 = arith.constant 0 : index
    %400 = vector.load %arg14[%c2_145, %c0_146, %c0_147] : memref<4x8x128xbf16, #tpu.memory_space<vmem>>, vector<1x8x128xbf16>
    %401 = vector.shape_cast %400 : vector<1x8x128xbf16> to vector<8x128xbf16>
    %402 = vector.shape_cast %399 : vector<8x128xbf16> to vector<1x8x128xbf16>
    tpu.vector_store %arg14[%c2_145, %c0_146, %c0_147], %402 {strides = array<i32>} : memref<4x8x128xbf16, #tpu.memory_space<vmem>>, vector<1x8x128xbf16>,
    %c24_148 = arith.constant 24 : index
    %c0_149 = arith.constant 0 : index
    %403 = vector.load %arg21[%c24_148, %c0_149] : memref<32x512xf32, #tpu.memory_space<vmem>>, vector<8x512xf32>
    %404 = arith.truncf %398 : vector<8x128xf32> to vector<8x128xbf16>
    %cst_150 = arith.constant dense<0.000000e+00> : vector<8x512xf32>
    %405 = tpu.matmul %404, %294, %cst_150 {dimension_numbers = #tpu.dot_dimension_numbers<[1], [0], [0], [1], [0, 0, 1, 1], [], []>} : vector<8x128xbf16>, vector<128x512xbf16>, vector<8x512xf32> -> vector<8x512xf32>
    %406 = arith.addf %403, %405 : vector<8x512xf32>
    %407 = vector.extract_strided_slice %406 {offsets = [0, 0], sizes = [8, 128], strides = [1, 1]} : vector<8x512xf32> to vector<8x128xf32>
    %408 = arith.negf %407 : vector<8x128xf32>
    %409 = math.exp %408 : vector<8x128xf32>
    %cst_151 = arith.constant 1.000000e+00 : f32
    %410 = vector.broadcast %cst_151 : f32 to vector<8x128xf32>
    %411 = arith.addf %410, %409 : vector<8x128xf32>
    %412 = arith.divf %410, %411 : vector<8x128xf32>
    %413 = vector.extract_strided_slice %406 {offsets = [0, 128], sizes = [8, 128], strides = [1, 1]} : vector<8x512xf32> to vector<8x128xf32>
    %414 = arith.negf %413 : vector<8x128xf32>
    %415 = math.exp %414 : vector<8x128xf32>
    %cst_152 = arith.constant 1.000000e+00 : f32
    %416 = vector.broadcast %cst_152 : f32 to vector<8x128xf32>
    %417 = arith.addf %416, %415 : vector<8x128xf32>
    %418 = arith.divf %416, %417 : vector<8x128xf32>
    %419 = vector.extract_strided_slice %406 {offsets = [0, 256], sizes = [8, 128], strides = [1, 1]} : vector<8x512xf32> to vector<8x128xf32>
    %420 = math.tanh %419 : vector<8x128xf32>
    %421 = vector.extract_strided_slice %406 {offsets = [0, 384], sizes = [8, 128], strides = [1, 1]} : vector<8x512xf32> to vector<8x128xf32>
    %422 = arith.negf %421 : vector<8x128xf32>
    %423 = math.exp %422 : vector<8x128xf32>
    %cst_153 = arith.constant 1.000000e+00 : f32
    %424 = vector.broadcast %cst_153 : f32 to vector<8x128xf32>
    %425 = arith.addf %424, %423 : vector<8x128xf32>
    %426 = arith.divf %424, %425 : vector<8x128xf32>
    %427 = arith.mulf %418, %396 : vector<8x128xf32>
    %428 = arith.mulf %412, %420 : vector<8x128xf32>
    %429 = arith.addf %427, %428 : vector<8x128xf32>
    %430 = math.tanh %429 : vector<8x128xf32>
    %431 = arith.mulf %426, %430 : vector<8x128xf32>
    %432 = arith.truncf %431 : vector<8x128xf32> to vector<8x128xbf16>
    %c3_154 = arith.constant 3 : index
    %c0_155 = arith.constant 0 : index
    %c0_156 = arith.constant 0 : index
    %433 = vector.load %arg14[%c3_154, %c0_155, %c0_156] : memref<4x8x128xbf16, #tpu.memory_space<vmem>>, vector<1x8x128xbf16>
    %434 = vector.shape_cast %433 : vector<1x8x128xbf16> to vector<8x128xbf16>
    %435 = vector.shape_cast %432 : vector<8x128xbf16> to vector<1x8x128xbf16>
    tpu.vector_store %arg14[%c3_154, %c0_155, %c0_156], %435 {strides = array<i32>} : memref<4x8x128xbf16, #tpu.memory_space<vmem>>, vector<1x8x128xbf16>,
    %c0_157 = arith.constant 0 : index
    %c0_158 = arith.constant 0 : index
    %436 = vector.load %arg17[%c0_157, %c0_158] : memref<8x128xf32, #tpu.memory_space<vmem>>, vector<8x128xf32>
    tpu.vector_store %arg17[%c0_157, %c0_158], %431 {strides = array<i32>} : memref<8x128xf32, #tpu.memory_space<vmem>>, vector<8x128xf32>,
    %c0_159 = arith.constant 0 : index
    %c0_160 = arith.constant 0 : index
    %437 = vector.load %arg20[%c0_159, %c0_160] : memref<8x128xf32, #tpu.memory_space<vmem>>, vector<8x128xf32>
    tpu.vector_store %arg20[%c0_159, %c0_160], %429 {strides = array<i32>} : memref<8x128xf32, #tpu.memory_space<vmem>>, vector<8x128xf32>,
    return
  }
  func.func @transform_0(%arg0: i32, %arg1: i32) -> (i32, i32, i32) {
    %c0_i32 = arith.constant 0 : i32
    %c0_i32_0 = arith.constant 0 : i32
    return %arg1, %arg0, %c0_i32 : i32, i32, i32
  }
  func.func @transform_1(%arg0: i32, %arg1: i32) -> (i32, i32) {
    %c0_i32 = arith.constant 0 : i32
    %c0_i32_0 = arith.constant 0 : i32
    %c0_i32_1 = arith.constant 0 : i32
    return %c0_i32, %c0_i32_0 : i32, i32
  }
  func.func @transform_2(%arg0: i32, %arg1: i32) -> (i32, i32) {
    %c0_i32 = arith.constant 0 : i32
    %c0_i32_0 = arith.constant 0 : i32
    %c0_i32_1 = arith.constant 0 : i32
    return %c0_i32, %c0_i32_0 : i32, i32
  }
  func.func @transform_3(%arg0: i32, %arg1: i32) -> (i32, i32) {
    %c0_i32 = arith.constant 0 : i32
    %c0_i32_0 = arith.constant 0 : i32
    %c0_i32_1 = arith.constant 0 : i32
    return %c0_i32, %c0_i32_0 : i32, i32
  }
  func.func @transform_4(%arg0: i32, %arg1: i32) -> (i32, i32) {
    %c0_i32 = arith.constant 0 : i32
    %c0_i32_0 = arith.constant 0 : i32
    %c0_i32_1 = arith.constant 0 : i32
    return %c0_i32, %c0_i32_0 : i32, i32
  }
  func.func @transform_5(%arg0: i32, %arg1: i32) -> (i32, i32) {
    %c0_i32 = arith.constant 0 : i32
    %c0_i32_0 = arith.constant 0 : i32
    %c0_i32_1 = arith.constant 0 : i32
    return %c0_i32, %c0_i32_0 : i32, i32
  }
  func.func @transform_6(%arg0: i32, %arg1: i32) -> (i32, i32) {
    %c0_i32 = arith.constant 0 : i32
    %c0_i32_0 = arith.constant 0 : i32
    %c0_i32_1 = arith.constant 0 : i32
    return %c0_i32, %c0_i32_0 : i32, i32
  }
  func.func @transform_7(%arg0: i32, %arg1: i32) -> (i32, i32) {
    %c0_i32 = arith.constant 0 : i32
    %c0_i32_0 = arith.constant 0 : i32
    %c0_i32_1 = arith.constant 0 : i32
    return %c0_i32, %c0_i32_0 : i32, i32
  }
  func.func @transform_8(%arg0: i32, %arg1: i32) -> (i32, i32) {
    %c0_i32 = arith.constant 0 : i32
    %c0_i32_0 = arith.constant 0 : i32
    %c0_i32_1 = arith.constant 0 : i32
    return %c0_i32, %c0_i32_0 : i32, i32
  }
  func.func @transform_9(%arg0: i32, %arg1: i32) -> (i32, i32) {
    %c0_i32 = arith.constant 0 : i32
    %c0_i32_0 = arith.constant 0 : i32
    %c0_i32_1 = arith.constant 0 : i32
    return %c0_i32, %c0_i32_0 : i32, i32
  }
  func.func @transform_10(%arg0: i32, %arg1: i32) -> (i32, i32, i32) {
    %c0_i32 = arith.constant 0 : i32
    %0 = arith.subi %arg1, %c0_i32 : i32
    %c0_i32_0 = arith.constant 0 : i32
    %1 = arith.maxsi %0, %c0_i32_0 : i32
    %c0_i32_1 = arith.constant 0 : i32
    %c0_i32_2 = arith.constant 0 : i32
    return %1, %arg0, %c0_i32_1 : i32, i32, i32
  }
  func.func @transform_11(%arg0: i32, %arg1: i32) -> (i32, i32, i32) {
    %c0_i32 = arith.constant 0 : i32
    %0 = arith.subi %arg1, %c0_i32 : i32
    %c0_i32_0 = arith.constant 0 : i32
    %1 = arith.maxsi %0, %c0_i32_0 : i32
    %c0_i32_1 = arith.constant 0 : i32
    %c0_i32_2 = arith.constant 0 : i32
    return %1, %arg0, %c0_i32_1 : i32, i32, i32
  }
  func.func @transform_12(%arg0: i32, %arg1: i32) -> (i32, i32, i32) {
    %c0_i32 = arith.constant 0 : i32
    %0 = arith.subi %arg1, %c0_i32 : i32
    %c0_i32_0 = arith.constant 0 : i32
    %1 = arith.maxsi %0, %c0_i32_0 : i32
    %c0_i32_1 = arith.constant 0 : i32
    %c0_i32_2 = arith.constant 0 : i32
    return %1, %arg0, %c0_i32_1 : i32, i32, i32
  }
}

module attributes {stable_mosaic.version = 11 : i64} {
  func.func @kernel(%arg0: i32, %arg1: i32, %arg2: memref<4x8x128xbf16, #tpu.memory_space<vmem>>, %arg3: memref<128x512xbf16, #tpu.memory_space<vmem>>, %arg4: memref<128x512xbf16, #tpu.memory_space<vmem>>, %arg5: memref<128x512xbf16, #tpu.memory_space<vmem>>, %arg6: memref<128x512xbf16, #tpu.memory_space<vmem>>, %arg7: memref<128x512xbf16, #tpu.memory_space<vmem>>, %arg8: memref<128x512xbf16, #tpu.memory_space<vmem>>, %arg9: memref<1x512xf32, #tpu.memory_space<vmem>>, %arg10: memref<1x512xf32, #tpu.memory_space<vmem>>, %arg11: memref<1x512xf32, #tpu.memory_space<vmem>>, %arg12: memref<4x8x128xbf16, #tpu.memory_space<vmem>>, %arg13: memref<4x8x128xbf16, #tpu.memory_space<vmem>>, %arg14: memref<4x8x128xbf16, #tpu.memory_space<vmem>>, %arg15: memref<8x128xf32, #tpu.memory_space<vmem>>, %arg16: memref<8x128xf32, #tpu.memory_space<vmem>>, %arg17: memref<8x128xf32, #tpu.memory_space<vmem>>, %arg18: memref<8x128xf32, #tpu.memory_space<vmem>>, %arg19: memref<8x128xf32, #tpu.memory_space<vmem>>, %arg20: memref<8x128xf32, #tpu.memory_space<vmem>>, %arg21: memref<32x512xf32, #tpu.memory_space<vmem>>) attributes {dimension_semantics = [#tpu.dimension_semantics<parallel>, #tpu.dimension_semantics<arbitrary>], iteration_bounds = array<i64: 1, 3>, scalar_prefetch = 0 : i64, scratch_operands = 7 : i64, tpu.core_type = #tpu.core_type<tc>, window_params = [{transform_indices = @transform_0, window_bounds = array<i64: 4, 8, 128>}, {pipeline_mode = #tpu.pipeline_mode<synchronous>, transform_indices = @transform_1, window_bounds = array<i64: 128, 512>}, {pipeline_mode = #tpu.pipeline_mode<synchronous>, transform_indices = @transform_2, window_bounds = array<i64: 128, 512>}, {pipeline_mode = #tpu.pipeline_mode<synchronous>, transform_indices = @transform_3, window_bounds = array<i64: 128, 512>}, {pipeline_mode = #tpu.pipeline_mode<synchronous>, transform_indices = @transform_4, window_bounds = array<i64: 128, 512>}, {pipeline_mode = #tpu.pipeline_mode<synchronous>, transform_indices = @transform_5, window_bounds = array<i64: 128, 512>}, {pipeline_mode = #tpu.pipeline_mode<synchronous>, transform_indices = @transform_6, window_bounds = array<i64: 128, 512>}, {pipeline_mode = #tpu.pipeline_mode<synchronous>, transform_indices = @transform_7, window_bounds = array<i64: 1, 512>}, {pipeline_mode = #tpu.pipeline_mode<synchronous>, transform_indices = @transform_8, window_bounds = array<i64: 1, 512>}, {pipeline_mode = #tpu.pipeline_mode<synchronous>, transform_indices = @transform_9, window_bounds = array<i64: 1, 512>}, {transform_indices = @transform_10, window_bounds = array<i64: 4, 8, 128>}, {transform_indices = @transform_11, window_bounds = array<i64: 4, 8, 128>}, {transform_indices = @transform_12, window_bounds = array<i64: 4, 8, 128>}]} {
    %c0_i32 = arith.constant 0 : i32
    %0 = arith.cmpi eq, %arg1, %c0_i32 : i32
    %1 = arith.extui %0 : i1 to i32
    %c0_i32_0 = arith.constant 0 : i32
    %2 = arith.cmpi ne, %1, %c0_i32_0 : i32
    scf.if %2 {
      %cst_161 = arith.constant 0.000000e+00 : f32
      %438 = vector.broadcast %cst_161 : f32 to vector<8x128xf32>
      %c0_162 = arith.constant 0 : index
      %c0_163 = arith.constant 0 : index
      %439 = vector.load %arg15[%c0_162, %c0_163] : memref<8x128xf32, #tpu.memory_space<vmem>>, vector<8x128xf32>
      tpu.vector_store %arg15[%c0_162, %c0_163], %438 {strides = array<i32>} : memref<8x128xf32, #tpu.memory_space<vmem>>, vector<8x128xf32>,
      %cst_164 = arith.constant 0.000000e+00 : f32
      %440 = vector.broadcast %cst_164 : f32 to vector<8x128xf32>
      %c0_165 = arith.constant 0 : index
      %c0_166 = arith.constant 0 : index
      %441 = vector.load %arg18[%c0_165, %c0_166] : memref<8x128xf32, #tpu.memory_space<vmem>>, vector<8x128xf32>
      tpu.vector_store %arg18[%c0_165, %c0_166], %440 {strides = array<i32>} : memref<8x128xf32, #tpu.memory_space<vmem>>, vector<8x128xf32>,
      %cst_167 = arith.constant 0.000000e+00 : f32
      %442 = vector.broadcast %cst_167 : f32 to vector<8x128xf32>
      %c0_168 = arith.constant 0 : index
      %c0_169 = arith.constant 0 : index
      %443 = vector.load %arg16[%c0_168, %c0_169] : memref<8x128xf32, #tpu.memory_space<vmem>>, vector<8x128xf32>
      tpu.vector_store %arg16[%c0_168, %c0_169], %442 {strides = array<i32>} : memref<8x128xf32, #tpu.memory_space<vmem>>, vector<8x128xf32>,
      %cst_170 = arith.constant 0.000000e+00 : f32
      %444 = vector.broadcast %cst_170 : f32 to vector<8x128xf32>
      %c0_171 = arith.constant 0 : index
      %c0_172 = arith.constant 0 : index
      %445 = vector.load %arg19[%c0_171, %c0_172] : memref<8x128xf32, #tpu.memory_space<vmem>>, vector<8x128xf32>
      tpu.vector_store %arg19[%c0_171, %c0_172], %444 {strides = array<i32>} : memref<8x128xf32, #tpu.memory_space<vmem>>, vector<8x128xf32>,
      %cst_173 = arith.constant 0.000000e+00 : f32
      %446 = vector.broadcast %cst_173 : f32 to vector<8x128xf32>
      %c0_174 = arith.constant 0 : index
      %c0_175 = arith.constant 0 : index
      %447 = vector.load %arg17[%c0_174, %c0_175] : memref<8x128xf32, #tpu.memory_space<vmem>>, vector<8x128xf32>
      tpu.vector_store %arg17[%c0_174, %c0_175], %446 {strides = array<i32>} : memref<8x128xf32, #tpu.memory_space<vmem>>, vector<8x128xf32>,
      %cst_176 = arith.constant 0.000000e+00 : f32
      %448 = vector.broadcast %cst_176 : f32 to vector<8x128xf32>
      %c0_177 = arith.constant 0 : index
      %c0_178 = arith.constant 0 : index
      %449 = vector.load %arg20[%c0_177, %c0_178] : memref<8x128xf32, #tpu.memory_space<vmem>>, vector<8x128xf32>
      tpu.vector_store %arg20[%c0_177, %c0_178], %448 {strides = array<i32>} : memref<8x128xf32, #tpu.memory_space<vmem>>, vector<8x128xf32>,
    } else {
    }
    %c0 = arith.constant 0 : index
    %c0_1 = arith.constant 0 : index
    %3 = vector.load %arg3[%c0, %c0_1] : memref<128x512xbf16, #tpu.memory_space<vmem>>, vector<128x512xbf16>
    %c0_2 = arith.constant 0 : index
    %c0_3 = arith.constant 0 : index
    %4 = vector.load %arg6[%c0_2, %c0_3] : memref<128x512xbf16, #tpu.memory_space<vmem>>, vector<128x512xbf16>
    %c0_4 = arith.constant 0 : index
    %c0_5 = arith.constant 0 : index
    %5 = vector.load %arg9[%c0_4, %c0_5] : memref<1x512xf32, #tpu.memory_space<vmem>>, vector<1x512xf32>
    %c0_6 = arith.constant 0 : index
    %c0_7 = arith.constant 0 : index
    %6 = vector.load %arg15[%c0_6, %c0_7] : memref<8x128xf32, #tpu.memory_space<vmem>>, vector<8x128xf32>
    %c0_8 = arith.constant 0 : index
    %c0_9 = arith.constant 0 : index
    %7 = vector.load %arg18[%c0_8, %c0_9] : memref<8x128xf32, #tpu.memory_space<vmem>>, vector<8x128xf32>
    %c0_10 = arith.constant 0 : index
    %c0_11 = arith.constant 0 : index
    %c0_12 = arith.constant 0 : index
    %8 = vector.load %arg2[%c0_10, %c0_11, %c0_12] : memref<4x8x128xbf16, #tpu.memory_space<vmem>>, vector<4x8x128xbf16>
    %9 = vector.shape_cast %8 : vector<4x8x128xbf16> to vector<32x128xbf16>
    %cst = arith.constant dense<0.000000e+00> : vector<32x512xf32>
    %10 = tpu.matmul %9, %3, %cst {dimension_numbers = #tpu.dot_dimension_numbers<[1], [0], [0], [1], [0, 0, 1, 1], [], []>} : vector<32x128xbf16>, vector<128x512xbf16>, vector<32x512xf32> -> vector<32x512xf32>
    %11 = vector.broadcast %5 : vector<1x512xf32> to vector<32x512xf32>
    %12 = arith.addf %10, %11 : vector<32x512xf32>
    %c0_13 = arith.constant 0 : index
    %c0_14 = arith.constant 0 : index
    %13 = vector.load %arg21[%c0_13, %c0_14] : memref<32x512xf32, #tpu.memory_space<vmem>>, vector<32x512xf32>
    tpu.vector_store %arg21[%c0_13, %c0_14], %12 {strides = array<i32>} : memref<32x512xf32, #tpu.memory_space<vmem>>, vector<32x512xf32>,
    %c0_15 = arith.constant 0 : index
    %c0_16 = arith.constant 0 : index
    %14 = vector.load %arg21[%c0_15, %c0_16] : memref<32x512xf32, #tpu.memory_space<vmem>>, vector<8x512xf32>
    %15 = arith.truncf %6 : vector<8x128xf32> to vector<8x128xbf16>
    %cst_17 = arith.constant dense<0.000000e+00> : vector<8x512xf32>
    %16 = tpu.matmul %15, %4, %cst_17 {dimension_numbers = #tpu.dot_dimension_numbers<[1], [0], [0], [1], [0, 0, 1, 1], [], []>} : vector<8x128xbf16>, vector<128x512xbf16>, vector<8x512xf32> -> vector<8x512xf32>
    %17 = arith.addf %14, %16 : vector<8x512xf32>
    %18 = vector.extract_strided_slice %17 {offsets = [0, 0], sizes = [8, 128], strides = [1, 1]} : vector<8x512xf32> to vector<8x128xf32>
    %19 = arith.negf %18 : vector<8x128xf32>
    %20 = math.exp %19 : vector<8x128xf32>
    %cst_18 = arith.constant 1.000000e+00 : f32
    %21 = vector.broadcast %cst_18 : f32 to vector<8x128xf32>
    %22 = arith.addf %21, %20 : vector<8x128xf32>
    %23 = arith.divf %21, %22 : vector<8x128xf32>
    %24 = vector.extract_strided_slice %17 {offsets = [0, 128], sizes = [8, 128], strides = [1, 1]} : vector<8x512xf32> to vector<8x128xf32>
    %25 = arith.negf %24 : vector<8x128xf32>
    %26 = math.exp %25 : vector<8x128xf32>
    %cst_19 = arith.constant 1.000000e+00 : f32
    %27 = vector.broadcast %cst_19 : f32 to vector<8x128xf32>
    %28 = arith.addf %27, %26 : vector<8x128xf32>
    %29 = arith.divf %27, %28 : vector<8x128xf32>
    %30 = vector.extract_strided_slice %17 {offsets = [0, 256], sizes = [8, 128], strides = [1, 1]} : vector<8x512xf32> to vector<8x128xf32>
    %31 = math.tanh %30 : vector<8x128xf32>
    %32 = vector.extract_strided_slice %17 {offsets = [0, 384], sizes = [8, 128], strides = [1, 1]} : vector<8x512xf32> to vector<8x128xf32>
    %33 = arith.negf %32 : vector<8x128xf32>
    %34 = math.exp %33 : vector<8x128xf32>
    %cst_20 = arith.constant 1.000000e+00 : f32
    %35 = vector.broadcast %cst_20 : f32 to vector<8x128xf32>
    %36 = arith.addf %35, %34 : vector<8x128xf32>
    %37 = arith.divf %35, %36 : vector<8x128xf32>
    %38 = arith.mulf %29, %7 : vector<8x128xf32>
    %39 = arith.mulf %23, %31 : vector<8x128xf32>
    %40 = arith.addf %38, %39 : vector<8x128xf32>
    %41 = math.tanh %40 : vector<8x128xf32>
    %42 = arith.mulf %37, %41 : vector<8x128xf32>
    %43 = arith.truncf %42 : vector<8x128xf32> to vector<8x128xbf16>
    %c0_21 = arith.constant 0 : index
    %c0_22 = arith.constant 0 : index
    %c0_23 = arith.constant 0 : index
    %44 = vector.load %arg12[%c0_21, %c0_22, %c0_23] : memref<4x8x128xbf16, #tpu.memory_space<vmem>>, vector<1x8x128xbf16>
    %45 = vector.shape_cast %44 : vector<1x8x128xbf16> to vector<8x128xbf16>
    %46 = vector.shape_cast %43 : vector<8x128xbf16> to vector<1x8x128xbf16>
    tpu.vector_store %arg12[%c0_21, %c0_22, %c0_23], %46 {strides = array<i32>} : memref<4x8x128xbf16, #tpu.memory_space<vmem>>, vector<1x8x128xbf16>,
    %c8 = arith.constant 8 : index
    %c0_24 = arith.constant 0 : index
    %47 = vector.load %arg21[%c8, %c0_24] : memref<32x512xf32, #tpu.memory_space<vmem>>, vector<8x512xf32>
    %48 = arith.truncf %42 : vector<8x128xf32> to vector<8x128xbf16>
    %cst_25 = arith.constant dense<0.000000e+00> : vector<8x512xf32>
    %49 = tpu.matmul %48, %4, %cst_25 {dimension_numbers = #tpu.dot_dimension_numbers<[1], [0], [0], [1], [0, 0, 1, 1], [], []>} : vector<8x128xbf16>, vector<128x512xbf16>, vector<8x512xf32> -> vector<8x512xf32>
    %50 = arith.addf %47, %49 : vector<8x512xf32>
    %51 = vector.extract_strided_slice %50 {offsets = [0, 0], sizes = [8, 128], strides = [1, 1]} : vector<8x512xf32> to vector<8x128xf32>
    %52 = arith.negf %51 : vector<8x128xf32>
    %53 = math.exp %52 : vector<8x128xf32>
    %cst_26 = arith.constant 1.000000e+00 : f32
    %54 = vector.broadcast %cst_26 : f32 to vector<8x128xf32>
    %55 = arith.addf %54, %53 : vector<8x128xf32>
    %56 = arith.divf %54, %55 : vector<8x128xf32>
    %57 = vector.extract_strided_slice %50 {offsets = [0, 128], sizes = [8, 128], strides = [1, 1]} : vector<8x512xf32> to vector<8x128xf32>
    %58 = arith.negf %57 : vector<8x128xf32>
    %59 = math.exp %58 : vector<8x128xf32>
    %cst_27 = arith.constant 1.000000e+00 : f32
    %60 = vector.broadcast %cst_27 : f32 to vector<8x128xf32>
    %61 = arith.addf %60, %59 : vector<8x128xf32>
    %62 = arith.divf %60, %61 : vector<8x128xf32>
    %63 = vector.extract_strided_slice %50 {offsets = [0, 256], sizes = [8, 128], strides = [1, 1]} : vector<8x512xf32> to vector<8x128xf32>
    %64 = math.tanh %63 : vector<8x128xf32>
    %65 = vector.extract_strided_slice %50 {offsets = [0, 384], sizes = [8, 128], strides = [1, 1]} : vector<8x512xf32> to vector<8x128xf32>
    %66 = arith.negf %65 : vector<8x128xf32>
    %67 = math.exp %66 : vector<8x128xf32>
    %cst_28 = arith.constant 1.000000e+00 : f32
    %68 = vector.broadcast %cst_28 : f32 to vector<8x128xf32>
    %69 = arith.addf %68, %67 : vector<8x128xf32>
    %70 = arith.divf %68, %69 : vector<8x128xf32>
    %71 = arith.mulf %62, %40 : vector<8x128xf32>
    %72 = arith.mulf %56, %64 : vector<8x128xf32>
    %73 = arith.addf %71, %72 : vector<8x128xf32>
    %74 = math.tanh %73 : vector<8x128xf32>
    %75 = arith.mulf %70, %74 : vector<8x128xf32>
    %76 = arith.truncf %75 : vector<8x128xf32> to vector<8x128xbf16>
    %c1 = arith.constant 1 : index
    %c0_29 = arith.constant 0 : index
    %c0_30 = arith.constant 0 : index
    %77 = vector.load %arg12[%c1, %c0_29, %c0_30] : memref<4x8x128xbf16, #tpu.memory_space<vmem>>, vector<1x8x128xbf16>
    %78 = vector.shape_cast %77 : vector<1x8x128xbf16> to vector<8x128xbf16>
    %79 = vector.shape_cast %76 : vector<8x128xbf16> to vector<1x8x128xbf16>
    tpu.vector_store %arg12[%c1, %c0_29, %c0_30], %79 {strides = array<i32>} : memref<4x8x128xbf16, #tpu.memory_space<vmem>>, vector<1x8x128xbf16>,
    %c16 = arith.constant 16 : index
    %c0_31 = arith.constant 0 : index
    %80 = vector.load %arg21[%c16, %c0_31] : memref<32x512xf32, #tpu.memory_space<vmem>>, vector<8x512xf32>
    %81 = arith.truncf %75 : vector<8x128xf32> to vector<8x128xbf16>
    %cst_32 = arith.constant dense<0.000000e+00> : vector<8x512xf32>
    %82 = tpu.matmul %81, %4, %cst_32 {dimension_numbers = #tpu.dot_dimension_numbers<[1], [0], [0], [1], [0, 0, 1, 1], [], []>} : vector<8x128xbf16>, vector<128x512xbf16>, vector<8x512xf32> -> vector<8x512xf32>
    %83 = arith.addf %80, %82 : vector<8x512xf32>
    %84 = vector.extract_strided_slice %83 {offsets = [0, 0], sizes = [8, 128], strides = [1, 1]} : vector<8x512xf32> to vector<8x128xf32>
    %85 = arith.negf %84 : vector<8x128xf32>
    %86 = math.exp %85 : vector<8x128xf32>
    %cst_33 = arith.constant 1.000000e+00 : f32
    %87 = vector.broadcast %cst_33 : f32 to vector<8x128xf32>
    %88 = arith.addf %87, %86 : vector<8x128xf32>
    %89 = arith.divf %87, %88 : vector<8x128xf32>
    %90 = vector.extract_strided_slice %83 {offsets = [0, 128], sizes = [8, 128], strides = [1, 1]} : vector<8x512xf32> to vector<8x128xf32>
    %91 = arith.negf %90 : vector<8x128xf32>
    %92 = math.exp %91 : vector<8x128xf32>
    %cst_34 = arith.constant 1.000000e+00 : f32
    %93 = vector.broadcast %cst_34 : f32 to vector<8x128xf32>
    %94 = arith.addf %93, %92 : vector<8x128xf32>
    %95 = arith.divf %93, %94 : vector<8x128xf32>
    %96 = vector.extract_strided_slice %83 {offsets = [0, 256], sizes = [8, 128], strides = [1, 1]} : vector<8x512xf32> to vector<8x128xf32>
    %97 = math.tanh %96 : vector<8x128xf32>
    %98 = vector.extract_strided_slice %83 {offsets = [0, 384], sizes = [8, 128], strides = [1, 1]} : vector<8x512xf32> to vector<8x128xf32>
    %99 = arith.negf %98 : vector<8x128xf32>
    %100 = math.exp %99 : vector<8x128xf32>
    %cst_35 = arith.constant 1.000000e+00 : f32
    %101 = vector.broadcast %cst_35 : f32 to vector<8x128xf32>
    %102 = arith.addf %101, %100 : vector<8x128xf32>
    %103 = arith.divf %101, %102 : vector<8x128xf32>
    %104 = arith.mulf %95, %73 : vector<8x128xf32>
    %105 = arith.mulf %89, %97 : vector<8x128xf32>
    %106 = arith.addf %104, %105 : vector<8x128xf32>
    %107 = math.tanh %106 : vector<8x128xf32>
    %108 = arith.mulf %103, %107 : vector<8x128xf32>
    %109 = arith.truncf %108 : vector<8x128xf32> to vector<8x128xbf16>
    %c2 = arith.constant 2 : index
    %c0_36 = arith.constant 0 : index
    %c0_37 = arith.constant 0 : index
    %110 = vector.load %arg12[%c2, %c0_36, %c0_37] : memref<4x8x128xbf16, #tpu.memory_space<vmem>>, vector<1x8x128xbf16>
    %111 = vector.shape_cast %110 : vector<1x8x128xbf16> to vector<8x128xbf16>
    %112 = vector.shape_cast %109 : vector<8x128xbf16> to vector<1x8x128xbf16>
    tpu.vector_store %arg12[%c2, %c0_36, %c0_37], %112 {strides = array<i32>} : memref<4x8x128xbf16, #tpu.memory_space<vmem>>, vector<1x8x128xbf16>,
    %c24 = arith.constant 24 : index
    %c0_38 = arith.constant 0 : index
    %113 = vector.load %arg21[%c24, %c0_38] : memref<32x512xf32, #tpu.memory_space<vmem>>, vector<8x512xf32>
    %114 = arith.truncf %108 : vector<8x128xf32> to vector<8x128xbf16>
    %cst_39 = arith.constant dense<0.000000e+00> : vector<8x512xf32>
    %115 = tpu.matmul %114, %4, %cst_39 {dimension_numbers = #tpu.dot_dimension_numbers<[1], [0], [0], [1], [0, 0, 1, 1], [], []>} : vector<8x128xbf16>, vector<128x512xbf16>, vector<8x512xf32> -> vector<8x512xf32>
    %116 = arith.addf %113, %115 : vector<8x512xf32>
    %117 = vector.extract_strided_slice %116 {offsets = [0, 0], sizes = [8, 128], strides = [1, 1]} : vector<8x512xf32> to vector<8x128xf32>
    %118 = arith.negf %117 : vector<8x128xf32>
    %119 = math.exp %118 : vector<8x128xf32>
    %cst_40 = arith.constant 1.000000e+00 : f32
    %120 = vector.broadcast %cst_40 : f32 to vector<8x128xf32>
    %121 = arith.addf %120, %119 : vector<8x128xf32>
    %122 = arith.divf %120, %121 : vector<8x128xf32>
    %123 = vector.extract_strided_slice %116 {offsets = [0, 128], sizes = [8, 128], strides = [1, 1]} : vector<8x512xf32> to vector<8x128xf32>
    %124 = arith.negf %123 : vector<8x128xf32>
    %125 = math.exp %124 : vector<8x128xf32>
    %cst_41 = arith.constant 1.000000e+00 : f32
    %126 = vector.broadcast %cst_41 : f32 to vector<8x128xf32>
    %127 = arith.addf %126, %125 : vector<8x128xf32>
    %128 = arith.divf %126, %127 : vector<8x128xf32>
    %129 = vector.extract_strided_slice %116 {offsets = [0, 256], sizes = [8, 128], strides = [1, 1]} : vector<8x512xf32> to vector<8x128xf32>
    %130 = math.tanh %129 : vector<8x128xf32>
    %131 = vector.extract_strided_slice %116 {offsets = [0, 384], sizes = [8, 128], strides = [1, 1]} : vector<8x512xf32> to vector<8x128xf32>
    %132 = arith.negf %131 : vector<8x128xf32>
    %133 = math.exp %132 : vector<8x128xf32>
    %cst_42 = arith.constant 1.000000e+00 : f32
    %134 = vector.broadcast %cst_42 : f32 to vector<8x128xf32>
    %135 = arith.addf %134, %133 : vector<8x128xf32>
    %136 = arith.divf %134, %135 : vector<8x128xf32>
    %137 = arith.mulf %128, %106 : vector<8x128xf32>
    %138 = arith.mulf %122, %130 : vector<8x128xf32>
    %139 = arith.addf %137, %138 : vector<8x128xf32>
    %140 = math.tanh %139 : vector<8x128xf32>
    %141 = arith.mulf %136, %140 : vector<8x128xf32>
    %142 = arith.truncf %141 : vector<8x128xf32> to vector<8x128xbf16>
    %c3 = arith.constant 3 : index
    %c0_43 = arith.constant 0 : index
    %c0_44 = arith.constant 0 : index
    %143 = vector.load %arg12[%c3, %c0_43, %c0_44] : memref<4x8x128xbf16, #tpu.memory_space<vmem>>, vector<1x8x128xbf16>
    %144 = vector.shape_cast %143 : vector<1x8x128xbf16> to vector<8x128xbf16>
    %145 = vector.shape_cast %142 : vector<8x128xbf16> to vector<1x8x128xbf16>
    tpu.vector_store %arg12[%c3, %c0_43, %c0_44], %145 {strides = array<i32>} : memref<4x8x128xbf16, #tpu.memory_space<vmem>>, vector<1x8x128xbf16>,
    %c0_45 = arith.constant 0 : index
    %c0_46 = arith.constant 0 : index
    %146 = vector.load %arg15[%c0_45, %c0_46] : memref<8x128xf32, #tpu.memory_space<vmem>>, vector<8x128xf32>
    tpu.vector_store %arg15[%c0_45, %c0_46], %141 {strides = array<i32>} : memref<8x128xf32, #tpu.memory_space<vmem>>, vector<8x128xf32>,
    %c0_47 = arith.constant 0 : index
    %c0_48 = arith.constant 0 : index
    %147 = vector.load %arg18[%c0_47, %c0_48] : memref<8x128xf32, #tpu.memory_space<vmem>>, vector<8x128xf32>
    tpu.vector_store %arg18[%c0_47, %c0_48], %139 {strides = array<i32>} : memref<8x128xf32, #tpu.memory_space<vmem>>, vector<8x128xf32>,
    %c0_49 = arith.constant 0 : index
    %c0_50 = arith.constant 0 : index
    %148 = vector.load %arg4[%c0_49, %c0_50] : memref<128x512xbf16, #tpu.memory_space<vmem>>, vector<128x512xbf16>
    %c0_51 = arith.constant 0 : index
    %c0_52 = arith.constant 0 : index
    %149 = vector.load %arg7[%c0_51, %c0_52] : memref<128x512xbf16, #tpu.memory_space<vmem>>, vector<128x512xbf16>
    %c0_53 = arith.constant 0 : index
    %c0_54 = arith.constant 0 : index
    %150 = vector.load %arg10[%c0_53, %c0_54] : memref<1x512xf32, #tpu.memory_space<vmem>>, vector<1x512xf32>
    %c0_55 = arith.constant 0 : index
    %c0_56 = arith.constant 0 : index
    %151 = vector.load %arg16[%c0_55, %c0_56] : memref<8x128xf32, #tpu.memory_space<vmem>>, vector<8x128xf32>
    %c0_57 = arith.constant 0 : index
    %c0_58 = arith.constant 0 : index
    %152 = vector.load %arg19[%c0_57, %c0_58] : memref<8x128xf32, #tpu.memory_space<vmem>>, vector<8x128xf32>
    %c0_59 = arith.constant 0 : index
    %c0_60 = arith.constant 0 : index
    %c0_61 = arith.constant 0 : index
    %153 = vector.load %arg12[%c0_59, %c0_60, %c0_61] : memref<4x8x128xbf16, #tpu.memory_space<vmem>>, vector<4x8x128xbf16>
    %154 = vector.shape_cast %153 : vector<4x8x128xbf16> to vector<32x128xbf16>
    %cst_62 = arith.constant dense<0.000000e+00> : vector<32x512xf32>
    %155 = tpu.matmul %154, %148, %cst_62 {dimension_numbers = #tpu.dot_dimension_numbers<[1], [0], [0], [1], [0, 0, 1, 1], [], []>} : vector<32x128xbf16>, vector<128x512xbf16>, vector<32x512xf32> -> vector<32x512xf32>
    %156 = vector.broadcast %150 : vector<1x512xf32> to vector<32x512xf32>
    %157 = arith.addf %155, %156 : vector<32x512xf32>
    %c0_63 = arith.constant 0 : index
    %c0_64 = arith.constant 0 : index
    %158 = vector.load %arg21[%c0_63, %c0_64] : memref<32x512xf32, #tpu.memory_space<vmem>>, vector<32x512xf32>
    tpu.vector_store %arg21[%c0_63, %c0_64], %157 {strides = array<i32>} : memref<32x512xf32, #tpu.memory_space<vmem>>, vector<32x512xf32>,
    %c0_65 = arith.constant 0 : index
    %c0_66 = arith.constant 0 : index
    %159 = vector.load %arg21[%c0_65, %c0_66] : memref<32x512xf32, #tpu.memory_space<vmem>>, vector<8x512xf32>
    %160 = arith.truncf %151 : vector<8x128xf32> to vector<8x128xbf16>
    %cst_67 = arith.constant dense<0.000000e+00> : vector<8x512xf32>
    %161 = tpu.matmul %160, %149, %cst_67 {dimension_numbers = #tpu.dot_dimension_numbers<[1], [0], [0], [1], [0, 0, 1, 1], [], []>} : vector<8x128xbf16>, vector<128x512xbf16>, vector<8x512xf32> -> vector<8x512xf32>
    %162 = arith.addf %159, %161 : vector<8x512xf32>
    %163 = vector.extract_strided_slice %162 {offsets = [0, 0], sizes = [8, 128], strides = [1, 1]} : vector<8x512xf32> to vector<8x128xf32>
    %164 = arith.negf %163 : vector<8x128xf32>
    %165 = math.exp %164 : vector<8x128xf32>
    %cst_68 = arith.constant 1.000000e+00 : f32
    %166 = vector.broadcast %cst_68 : f32 to vector<8x128xf32>
    %167 = arith.addf %166, %165 : vector<8x128xf32>
    %168 = arith.divf %166, %167 : vector<8x128xf32>
    %169 = vector.extract_strided_slice %162 {offsets = [0, 128], sizes = [8, 128], strides = [1, 1]} : vector<8x512xf32> to vector<8x128xf32>
    %170 = arith.negf %169 : vector<8x128xf32>
    %171 = math.exp %170 : vector<8x128xf32>
    %cst_69 = arith.constant 1.000000e+00 : f32
    %172 = vector.broadcast %cst_69 : f32 to vector<8x128xf32>
    %173 = arith.addf %172, %171 : vector<8x128xf32>
    %174 = arith.divf %172, %173 : vector<8x128xf32>
    %175 = vector.extract_strided_slice %162 {offsets = [0, 256], sizes = [8, 128], strides = [1, 1]} : vector<8x512xf32> to vector<8x128xf32>
    %176 = math.tanh %175 : vector<8x128xf32>
    %177 = vector.extract_strided_slice %162 {offsets = [0, 384], sizes = [8, 128], strides = [1, 1]} : vector<8x512xf32> to vector<8x128xf32>
    %178 = arith.negf %177 : vector<8x128xf32>
    %179 = math.exp %178 : vector<8x128xf32>
    %cst_70 = arith.constant 1.000000e+00 : f32
    %180 = vector.broadcast %cst_70 : f32 to vector<8x128xf32>
    %181 = arith.addf %180, %179 : vector<8x128xf32>
    %182 = arith.divf %180, %181 : vector<8x128xf32>
    %183 = arith.mulf %174, %152 : vector<8x128xf32>
    %184 = arith.mulf %168, %176 : vector<8x128xf32>
    %185 = arith.addf %183, %184 : vector<8x128xf32>
    %186 = math.tanh %185 : vector<8x128xf32>
    %187 = arith.mulf %182, %186 : vector<8x128xf32>
    %188 = arith.truncf %187 : vector<8x128xf32> to vector<8x128xbf16>
    %c0_71 = arith.constant 0 : index
    %c0_72 = arith.constant 0 : index
    %c0_73 = arith.constant 0 : index
    %189 = vector.load %arg13[%c0_71, %c0_72, %c0_73] : memref<4x8x128xbf16, #tpu.memory_space<vmem>>, vector<1x8x128xbf16>
    %190 = vector.shape_cast %189 : vector<1x8x128xbf16> to vector<8x128xbf16>
    %191 = vector.shape_cast %188 : vector<8x128xbf16> to vector<1x8x128xbf16>
    tpu.vector_store %arg13[%c0_71, %c0_72, %c0_73], %191 {strides = array<i32>} : memref<4x8x128xbf16, #tpu.memory_space<vmem>>, vector<1x8x128xbf16>,
    %c8_74 = arith.constant 8 : index
    %c0_75 = arith.constant 0 : index
    %192 = vector.load %arg21[%c8_74, %c0_75] : memref<32x512xf32, #tpu.memory_space<vmem>>, vector<8x512xf32>
    %193 = arith.truncf %187 : vector<8x128xf32> to vector<8x128xbf16>
    %cst_76 = arith.constant dense<0.000000e+00> : vector<8x512xf32>
    %194 = tpu.matmul %193, %149, %cst_76 {dimension_numbers = #tpu.dot_dimension_numbers<[1], [0], [0], [1], [0, 0, 1, 1], [], []>} : vector<8x128xbf16>, vector<128x512xbf16>, vector<8x512xf32> -> vector<8x512xf32>
    %195 = arith.addf %192, %194 : vector<8x512xf32>
    %196 = vector.extract_strided_slice %195 {offsets = [0, 0], sizes = [8, 128], strides = [1, 1]} : vector<8x512xf32> to vector<8x128xf32>
    %197 = arith.negf %196 : vector<8x128xf32>
    %198 = math.exp %197 : vector<8x128xf32>
    %cst_77 = arith.constant 1.000000e+00 : f32
    %199 = vector.broadcast %cst_77 : f32 to vector<8x128xf32>
    %200 = arith.addf %199, %198 : vector<8x128xf32>
    %201 = arith.divf %199, %200 : vector<8x128xf32>
    %202 = vector.extract_strided_slice %195 {offsets = [0, 128], sizes = [8, 128], strides = [1, 1]} : vector<8x512xf32> to vector<8x128xf32>
    %203 = arith.negf %202 : vector<8x128xf32>
    %204 = math.exp %203 : vector<8x128xf32>
    %cst_78 = arith.constant 1.000000e+00 : f32
    %205 = vector.broadcast %cst_78 : f32 to vector<8x128xf32>
    %206 = arith.addf %205, %204 : vector<8x128xf32>
    %207 = arith.divf %205, %206 : vector<8x128xf32>
    %208 = vector.extract_strided_slice %195 {offsets = [0, 256], sizes = [8, 128], strides = [1, 1]} : vector<8x512xf32> to vector<8x128xf32>
    %209 = math.tanh %208 : vector<8x128xf32>
    %210 = vector.extract_strided_slice %195 {offsets = [0, 384], sizes = [8, 128], strides = [1, 1]} : vector<8x512xf32> to vector<8x128xf32>
    %211 = arith.negf %210 : vector<8x128xf32>
    %212 = math.exp %211 : vector<8x128xf32>
    %cst_79 = arith.constant 1.000000e+00 : f32
    %213 = vector.broadcast %cst_79 : f32 to vector<8x128xf32>
    %214 = arith.addf %213, %212 : vector<8x128xf32>
    %215 = arith.divf %213, %214 : vector<8x128xf32>
    %216 = arith.mulf %207, %185 : vector<8x128xf32>
    %217 = arith.mulf %201, %209 : vector<8x128xf32>
    %218 = arith.addf %216, %217 : vector<8x128xf32>
    %219 = math.tanh %218 : vector<8x128xf32>
    %220 = arith.mulf %215, %219 : vector<8x128xf32>
    %221 = arith.truncf %220 : vector<8x128xf32> to vector<8x128xbf16>
    %c1_80 = arith.constant 1 : index
    %c0_81 = arith.constant 0 : index
    %c0_82 = arith.constant 0 : index
    %222 = vector.load %arg13[%c1_80, %c0_81, %c0_82] : memref<4x8x128xbf16, #tpu.memory_space<vmem>>, vector<1x8x128xbf16>
    %223 = vector.shape_cast %222 : vector<1x8x128xbf16> to vector<8x128xbf16>
    %224 = vector.shape_cast %221 : vector<8x128xbf16> to vector<1x8x128xbf16>
    tpu.vector_store %arg13[%c1_80, %c0_81, %c0_82], %224 {strides = array<i32>} : memref<4x8x128xbf16, #tpu.memory_space<vmem>>, vector<1x8x128xbf16>,
    %c16_83 = arith.constant 16 : index
    %c0_84 = arith.constant 0 : index
    %225 = vector.load %arg21[%c16_83, %c0_84] : memref<32x512xf32, #tpu.memory_space<vmem>>, vector<8x512xf32>
    %226 = arith.truncf %220 : vector<8x128xf32> to vector<8x128xbf16>
    %cst_85 = arith.constant dense<0.000000e+00> : vector<8x512xf32>
    %227 = tpu.matmul %226, %149, %cst_85 {dimension_numbers = #tpu.dot_dimension_numbers<[1], [0], [0], [1], [0, 0, 1, 1], [], []>} : vector<8x128xbf16>, vector<128x512xbf16>, vector<8x512xf32> -> vector<8x512xf32>
    %228 = arith.addf %225, %227 : vector<8x512xf32>
    %229 = vector.extract_strided_slice %228 {offsets = [0, 0], sizes = [8, 128], strides = [1, 1]} : vector<8x512xf32> to vector<8x128xf32>
    %230 = arith.negf %229 : vector<8x128xf32>
    %231 = math.exp %230 : vector<8x128xf32>
    %cst_86 = arith.constant 1.000000e+00 : f32
    %232 = vector.broadcast %cst_86 : f32 to vector<8x128xf32>
    %233 = arith.addf %232, %231 : vector<8x128xf32>
    %234 = arith.divf %232, %233 : vector<8x128xf32>
    %235 = vector.extract_strided_slice %228 {offsets = [0, 128], sizes = [8, 128], strides = [1, 1]} : vector<8x512xf32> to vector<8x128xf32>
    %236 = arith.negf %235 : vector<8x128xf32>
    %237 = math.exp %236 : vector<8x128xf32>
    %cst_87 = arith.constant 1.000000e+00 : f32
    %238 = vector.broadcast %cst_87 : f32 to vector<8x128xf32>
    %239 = arith.addf %238, %237 : vector<8x128xf32>
    %240 = arith.divf %238, %239 : vector<8x128xf32>
    %241 = vector.extract_strided_slice %228 {offsets = [0, 256], sizes = [8, 128], strides = [1, 1]} : vector<8x512xf32> to vector<8x128xf32>
    %242 = math.tanh %241 : vector<8x128xf32>
    %243 = vector.extract_strided_slice %228 {offsets = [0, 384], sizes = [8, 128], strides = [1, 1]} : vector<8x512xf32> to vector<8x128xf32>
    %244 = arith.negf %243 : vector<8x128xf32>
    %245 = math.exp %244 : vector<8x128xf32>
    %cst_88 = arith.constant 1.000000e+00 : f32
    %246 = vector.broadcast %cst_88 : f32 to vector<8x128xf32>
    %247 = arith.addf %246, %245 : vector<8x128xf32>
    %248 = arith.divf %246, %247 : vector<8x128xf32>
    %249 = arith.mulf %240, %218 : vector<8x128xf32>
    %250 = arith.mulf %234, %242 : vector<8x128xf32>
    %251 = arith.addf %249, %250 : vector<8x128xf32>
    %252 = math.tanh %251 : vector<8x128xf32>
    %253 = arith.mulf %248, %252 : vector<8x128xf32>
    %254 = arith.truncf %253 : vector<8x128xf32> to vector<8x128xbf16>
    %c2_89 = arith.constant 2 : index
    %c0_90 = arith.constant 0 : index
    %c0_91 = arith.constant 0 : index
    %255 = vector.load %arg13[%c2_89, %c0_90, %c0_91] : memref<4x8x128xbf16, #tpu.memory_space<vmem>>, vector<1x8x128xbf16>
    %256 = vector.shape_cast %255 : vector<1x8x128xbf16> to vector<8x128xbf16>
    %257 = vector.shape_cast %254 : vector<8x128xbf16> to vector<1x8x128xbf16>
    tpu.vector_store %arg13[%c2_89, %c0_90, %c0_91], %257 {strides = array<i32>} : memref<4x8x128xbf16, #tpu.memory_space<vmem>>, vector<1x8x128xbf16>,
    %c24_92 = arith.constant 24 : index
    %c0_93 = arith.constant 0 : index
    %258 = vector.load %arg21[%c24_92, %c0_93] : memref<32x512xf32, #tpu.memory_space<vmem>>, vector<8x512xf32>
    %259 = arith.truncf %253 : vector<8x128xf32> to vector<8x128xbf16>
    %cst_94 = arith.constant dense<0.000000e+00> : vector<8x512xf32>
    %260 = tpu.matmul %259, %149, %cst_94 {dimension_numbers = #tpu.dot_dimension_numbers<[1], [0], [0], [1], [0, 0, 1, 1], [], []>} : vector<8x128xbf16>, vector<128x512xbf16>, vector<8x512xf32> -> vector<8x512xf32>
    %261 = arith.addf %258, %260 : vector<8x512xf32>
    %262 = vector.extract_strided_slice %261 {offsets = [0, 0], sizes = [8, 128], strides = [1, 1]} : vector<8x512xf32> to vector<8x128xf32>
    %263 = arith.negf %262 : vector<8x128xf32>
    %264 = math.exp %263 : vector<8x128xf32>
    %cst_95 = arith.constant 1.000000e+00 : f32
    %265 = vector.broadcast %cst_95 : f32 to vector<8x128xf32>
    %266 = arith.addf %265, %264 : vector<8x128xf32>
    %267 = arith.divf %265, %266 : vector<8x128xf32>
    %268 = vector.extract_strided_slice %261 {offsets = [0, 128], sizes = [8, 128], strides = [1, 1]} : vector<8x512xf32> to vector<8x128xf32>
    %269 = arith.negf %268 : vector<8x128xf32>
    %270 = math.exp %269 : vector<8x128xf32>
    %cst_96 = arith.constant 1.000000e+00 : f32
    %271 = vector.broadcast %cst_96 : f32 to vector<8x128xf32>
    %272 = arith.addf %271, %270 : vector<8x128xf32>
    %273 = arith.divf %271, %272 : vector<8x128xf32>
    %274 = vector.extract_strided_slice %261 {offsets = [0, 256], sizes = [8, 128], strides = [1, 1]} : vector<8x512xf32> to vector<8x128xf32>
    %275 = math.tanh %274 : vector<8x128xf32>
    %276 = vector.extract_strided_slice %261 {offsets = [0, 384], sizes = [8, 128], strides = [1, 1]} : vector<8x512xf32> to vector<8x128xf32>
    %277 = arith.negf %276 : vector<8x128xf32>
    %278 = math.exp %277 : vector<8x128xf32>
    %cst_97 = arith.constant 1.000000e+00 : f32
    %279 = vector.broadcast %cst_97 : f32 to vector<8x128xf32>
    %280 = arith.addf %279, %278 : vector<8x128xf32>
    %281 = arith.divf %279, %280 : vector<8x128xf32>
    %282 = arith.mulf %273, %251 : vector<8x128xf32>
    %283 = arith.mulf %267, %275 : vector<8x128xf32>
    %284 = arith.addf %282, %283 : vector<8x128xf32>
    %285 = math.tanh %284 : vector<8x128xf32>
    %286 = arith.mulf %281, %285 : vector<8x128xf32>
    %287 = arith.truncf %286 : vector<8x128xf32> to vector<8x128xbf16>
    %c3_98 = arith.constant 3 : index
    %c0_99 = arith.constant 0 : index
    %c0_100 = arith.constant 0 : index
    %288 = vector.load %arg13[%c3_98, %c0_99, %c0_100] : memref<4x8x128xbf16, #tpu.memory_space<vmem>>, vector<1x8x128xbf16>
    %289 = vector.shape_cast %288 : vector<1x8x128xbf16> to vector<8x128xbf16>
    %290 = vector.shape_cast %287 : vector<8x128xbf16> to vector<1x8x128xbf16>
    tpu.vector_store %arg13[%c3_98, %c0_99, %c0_100], %290 {strides = array<i32>} : memref<4x8x128xbf16, #tpu.memory_space<vmem>>, vector<1x8x128xbf16>,
    %c0_101 = arith.constant 0 : index
    %c0_102 = arith.constant 0 : index
    %291 = vector.load %arg16[%c0_101, %c0_102] : memref<8x128xf32, #tpu.memory_space<vmem>>, vector<8x128xf32>
    tpu.vector_store %arg16[%c0_101, %c0_102], %286 {strides = array<i32>} : memref<8x128xf32, #tpu.memory_space<vmem>>, vector<8x128xf32>,
    %c0_103 = arith.constant 0 : index
    %c0_104 = arith.constant 0 : index
    %292 = vector.load %arg19[%c0_103, %c0_104] : memref<8x128xf32, #tpu.memory_space<vmem>>, vector<8x128xf32>
    tpu.vector_store %arg19[%c0_103, %c0_104], %284 {strides = array<i32>} : memref<8x128xf32, #tpu.memory_space<vmem>>, vector<8x128xf32>,
    %c0_105 = arith.constant 0 : index
    %c0_106 = arith.constant 0 : index
    %293 = vector.load %arg5[%c0_105, %c0_106] : memref<128x512xbf16, #tpu.memory_space<vmem>>, vector<128x512xbf16>
    %c0_107 = arith.constant 0 : index
    %c0_108 = arith.constant 0 : index
    %294 = vector.load %arg8[%c0_107, %c0_108] : memref<128x512xbf16, #tpu.memory_space<vmem>>, vector<128x512xbf16>
    %c0_109 = arith.constant 0 : index
    %c0_110 = arith.constant 0 : index
    %295 = vector.load %arg11[%c0_109, %c0_110] : memref<1x512xf32, #tpu.memory_space<vmem>>, vector<1x512xf32>
    %c0_111 = arith.constant 0 : index
    %c0_112 = arith.constant 0 : index
    %296 = vector.load %arg17[%c0_111, %c0_112] : memref<8x128xf32, #tpu.memory_space<vmem>>, vector<8x128xf32>
    %c0_113 = arith.constant 0 : index
    %c0_114 = arith.constant 0 : index
    %297 = vector.load %arg20[%c0_113, %c0_114] : memref<8x128xf32, #tpu.memory_space<vmem>>, vector<8x128xf32>
    %c0_115 = arith.constant 0 : index
    %c0_116 = arith.constant 0 : index
    %c0_117 = arith.constant 0 : index
    %298 = vector.load %arg13[%c0_115, %c0_116, %c0_117] : memref<4x8x128xbf16, #tpu.memory_space<vmem>>, vector<4x8x128xbf16>
    %299 = vector.shape_cast %298 : vector<4x8x128xbf16> to vector<32x128xbf16>
    %cst_118 = arith.constant dense<0.000000e+00> : vector<32x512xf32>
    %300 = tpu.matmul %299, %293, %cst_118 {dimension_numbers = #tpu.dot_dimension_numbers<[1], [0], [0], [1], [0, 0, 1, 1], [], []>} : vector<32x128xbf16>, vector<128x512xbf16>, vector<32x512xf32> -> vector<32x512xf32>
    %301 = vector.broadcast %295 : vector<1x512xf32> to vector<32x512xf32>
    %302 = arith.addf %300, %301 : vector<32x512xf32>
    %c0_119 = arith.constant 0 : index
    %c0_120 = arith.constant 0 : index
    %303 = vector.load %arg21[%c0_119, %c0_120] : memref<32x512xf32, #tpu.memory_space<vmem>>, vector<32x512xf32>
    tpu.vector_store %arg21[%c0_119, %c0_120], %302 {strides = array<i32>} : memref<32x512xf32, #tpu.memory_space<vmem>>, vector<32x512xf32>,
    %c0_121 = arith.constant 0 : index
    %c0_122 = arith.constant 0 : index
    %304 = vector.load %arg21[%c0_121, %c0_122] : memref<32x512xf32, #tpu.memory_space<vmem>>, vector<8x512xf32>
    %305 = arith.truncf %296 : vector<8x128xf32> to vector<8x128xbf16>
    %cst_123 = arith.constant dense<0.000000e+00> : vector<8x512xf32>
    %306 = tpu.matmul %305, %294, %cst_123 {dimension_numbers = #tpu.dot_dimension_numbers<[1], [0], [0], [1], [0, 0, 1, 1], [], []>} : vector<8x128xbf16>, vector<128x512xbf16>, vector<8x512xf32> -> vector<8x512xf32>
    %307 = arith.addf %304, %306 : vector<8x512xf32>
    %308 = vector.extract_strided_slice %307 {offsets = [0, 0], sizes = [8, 128], strides = [1, 1]} : vector<8x512xf32> to vector<8x128xf32>
    %309 = arith.negf %308 : vector<8x128xf32>
    %310 = math.exp %309 : vector<8x128xf32>
    %cst_124 = arith.constant 1.000000e+00 : f32
    %311 = vector.broadcast %cst_124 : f32 to vector<8x128xf32>
    %312 = arith.addf %311, %310 : vector<8x128xf32>
    %313 = arith.divf %311, %312 : vector<8x128xf32>
    %314 = vector.extract_strided_slice %307 {offsets = [0, 128], sizes = [8, 128], strides = [1, 1]} : vector<8x512xf32> to vector<8x128xf32>
    %315 = arith.negf %314 : vector<8x128xf32>
    %316 = math.exp %315 : vector<8x128xf32>
    %cst_125 = arith.constant 1.000000e+00 : f32
    %317 = vector.broadcast %cst_125 : f32 to vector<8x128xf32>
    %318 = arith.addf %317, %316 : vector<8x128xf32>
    %319 = arith.divf %317, %318 : vector<8x128xf32>
    %320 = vector.extract_strided_slice %307 {offsets = [0, 256], sizes = [8, 128], strides = [1, 1]} : vector<8x512xf32> to vector<8x128xf32>
    %321 = math.tanh %320 : vector<8x128xf32>
    %322 = vector.extract_strided_slice %307 {offsets = [0, 384], sizes = [8, 128], strides = [1, 1]} : vector<8x512xf32> to vector<8x128xf32>
    %323 = arith.negf %322 : vector<8x128xf32>
    %324 = math.exp %323 : vector<8x128xf32>
    %cst_126 = arith.constant 1.000000e+00 : f32
    %325 = vector.broadcast %cst_126 : f32 to vector<8x128xf32>
    %326 = arith.addf %325, %324 : vector<8x128xf32>
    %327 = arith.divf %325, %326 : vector<8x128xf32>
    %328 = arith.mulf %319, %297 : vector<8x128xf32>
    %329 = arith.mulf %313, %321 : vector<8x128xf32>
    %330 = arith.addf %328, %329 : vector<8x128xf32>
    %331 = math.tanh %330 : vector<8x128xf32>
    %332 = arith.mulf %327, %331 : vector<8x128xf32>
    %333 = arith.truncf %332 : vector<8x128xf32> to vector<8x128xbf16>
    %c0_127 = arith.constant 0 : index
    %c0_128 = arith.constant 0 : index
    %c0_129 = arith.constant 0 : index
    %334 = vector.load %arg14[%c0_127, %c0_128, %c0_129] : memref<4x8x128xbf16, #tpu.memory_space<vmem>>, vector<1x8x128xbf16>
    %335 = vector.shape_cast %334 : vector<1x8x128xbf16> to vector<8x128xbf16>
    %336 = vector.shape_cast %333 : vector<8x128xbf16> to vector<1x8x128xbf16>
    tpu.vector_store %arg14[%c0_127, %c0_128, %c0_129], %336 {strides = array<i32>} : memref<4x8x128xbf16, #tpu.memory_space<vmem>>, vector<1x8x128xbf16>,
    %c8_130 = arith.constant 8 : index
    %c0_131 = arith.constant 0 : index
    %337 = vector.load %arg21[%c8_130, %c0_131] : memref<32x512xf32, #tpu.memory_space<vmem>>, vector<8x512xf32>
    %338 = arith.truncf %332 : vector<8x128xf32> to vector<8x128xbf16>
    %cst_132 = arith.constant dense<0.000000e+00> : vector<8x512xf32>
    %339 = tpu.matmul %338, %294, %cst_132 {dimension_numbers = #tpu.dot_dimension_numbers<[1], [0], [0], [1], [0, 0, 1, 1], [], []>} : vector<8x128xbf16>, vector<128x512xbf16>, vector<8x512xf32> -> vector<8x512xf32>
    %340 = arith.addf %337, %339 : vector<8x512xf32>
    %341 = vector.extract_strided_slice %340 {offsets = [0, 0], sizes = [8, 128], strides = [1, 1]} : vector<8x512xf32> to vector<8x128xf32>
    %342 = arith.negf %341 : vector<8x128xf32>
    %343 = math.exp %342 : vector<8x128xf32>
    %cst_133 = arith.constant 1.000000e+00 : f32
    %344 = vector.broadcast %cst_133 : f32 to vector<8x128xf32>
    %345 = arith.addf %344, %343 : vector<8x128xf32>
    %346 = arith.divf %344, %345 : vector<8x128xf32>
    %347 = vector.extract_strided_slice %340 {offsets = [0, 128], sizes = [8, 128], strides = [1, 1]} : vector<8x512xf32> to vector<8x128xf32>
    %348 = arith.negf %347 : vector<8x128xf32>
    %349 = math.exp %348 : vector<8x128xf32>
    %cst_134 = arith.constant 1.000000e+00 : f32
    %350 = vector.broadcast %cst_134 : f32 to vector<8x128xf32>
    %351 = arith.addf %350, %349 : vector<8x128xf32>
    %352 = arith.divf %350, %351 : vector<8x128xf32>
    %353 = vector.extract_strided_slice %340 {offsets = [0, 256], sizes = [8, 128], strides = [1, 1]} : vector<8x512xf32> to vector<8x128xf32>
    %354 = math.tanh %353 : vector<8x128xf32>
    %355 = vector.extract_strided_slice %340 {offsets = [0, 384], sizes = [8, 128], strides = [1, 1]} : vector<8x512xf32> to vector<8x128xf32>
    %356 = arith.negf %355 : vector<8x128xf32>
    %357 = math.exp %356 : vector<8x128xf32>
    %cst_135 = arith.constant 1.000000e+00 : f32
    %358 = vector.broadcast %cst_135 : f32 to vector<8x128xf32>
    %359 = arith.addf %358, %357 : vector<8x128xf32>
    %360 = arith.divf %358, %359 : vector<8x128xf32>
    %361 = arith.mulf %352, %330 : vector<8x128xf32>
    %362 = arith.mulf %346, %354 : vector<8x128xf32>
    %363 = arith.addf %361, %362 : vector<8x128xf32>
    %364 = math.tanh %363 : vector<8x128xf32>
    %365 = arith.mulf %360, %364 : vector<8x128xf32>
    %366 = arith.truncf %365 : vector<8x128xf32> to vector<8x128xbf16>
    %c1_136 = arith.constant 1 : index
    %c0_137 = arith.constant 0 : index
    %c0_138 = arith.constant 0 : index
    %367 = vector.load %arg14[%c1_136, %c0_137, %c0_138] : memref<4x8x128xbf16, #tpu.memory_space<vmem>>, vector<1x8x128xbf16>
    %368 = vector.shape_cast %367 : vector<1x8x128xbf16> to vector<8x128xbf16>
    %369 = vector.shape_cast %366 : vector<8x128xbf16> to vector<1x8x128xbf16>
    tpu.vector_store %arg14[%c1_136, %c0_137, %c0_138], %369 {strides = array<i32>} : memref<4x8x128xbf16, #tpu.memory_space<vmem>>, vector<1x8x128xbf16>,
    %c16_139 = arith.constant 16 : index
    %c0_140 = arith.constant 0 : index
    %370 = vector.load %arg21[%c16_139, %c0_140] : memref<32x512xf32, #tpu.memory_space<vmem>>, vector<8x512xf32>
    %371 = arith.truncf %365 : vector<8x128xf32> to vector<8x128xbf16>
    %cst_141 = arith.constant dense<0.000000e+00> : vector<8x512xf32>
    %372 = tpu.matmul %371, %294, %cst_141 {dimension_numbers = #tpu.dot_dimension_numbers<[1], [0], [0], [1], [0, 0, 1, 1], [], []>} : vector<8x128xbf16>, vector<128x512xbf16>, vector<8x512xf32> -> vector<8x512xf32>
    %373 = arith.addf %370, %372 : vector<8x512xf32>
    %374 = vector.extract_strided_slice %373 {offsets = [0, 0], sizes = [8, 128], strides = [1, 1]} : vector<8x512xf32> to vector<8x128xf32>
    %375 = arith.negf %374 : vector<8x128xf32>
    %376 = math.exp %375 : vector<8x128xf32>
    %cst_142 = arith.constant 1.000000e+00 : f32
    %377 = vector.broadcast %cst_142 : f32 to vector<8x128xf32>
    %378 = arith.addf %377, %376 : vector<8x128xf32>
    %379 = arith.divf %377, %378 : vector<8x128xf32>
    %380 = vector.extract_strided_slice %373 {offsets = [0, 128], sizes = [8, 128], strides = [1, 1]} : vector<8x512xf32> to vector<8x128xf32>
    %381 = arith.negf %380 : vector<8x128xf32>
    %382 = math.exp %381 : vector<8x128xf32>
    %cst_143 = arith.constant 1.000000e+00 : f32
    %383 = vector.broadcast %cst_143 : f32 to vector<8x128xf32>
    %384 = arith.addf %383, %382 : vector<8x128xf32>
    %385 = arith.divf %383, %384 : vector<8x128xf32>
    %386 = vector.extract_strided_slice %373 {offsets = [0, 256], sizes = [8, 128], strides = [1, 1]} : vector<8x512xf32> to vector<8x128xf32>
    %387 = math.tanh %386 : vector<8x128xf32>
    %388 = vector.extract_strided_slice %373 {offsets = [0, 384], sizes = [8, 128], strides = [1, 1]} : vector<8x512xf32> to vector<8x128xf32>
    %389 = arith.negf %388 : vector<8x128xf32>
    %390 = math.exp %389 : vector<8x128xf32>
    %cst_144 = arith.constant 1.000000e+00 : f32
    %391 = vector.broadcast %cst_144 : f32 to vector<8x128xf32>
    %392 = arith.addf %391, %390 : vector<8x128xf32>
    %393 = arith.divf %391, %392 : vector<8x128xf32>
    %394 = arith.mulf %385, %363 : vector<8x128xf32>
    %395 = arith.mulf %379, %387 : vector<8x128xf32>
    %396 = arith.addf %394, %395 : vector<8x128xf32>
    %397 = math.tanh %396 : vector<8x128xf32>
    %398 = arith.mulf %393, %397 : vector<8x128xf32>
    %399 = arith.truncf %398 : vector<8x128xf32> to vector<8x128xbf16>
    %c2_145 = arith.constant 2 : index
    %c0_146 = arith.constant 0 : index
    %c0_147 = arith.constant 0 : index
    %400 = vector.load %arg14[%c2_145, %c0_146, %c0_147] : memref<4x8x128xbf16, #tpu.memory_space<vmem>>, vector<1x8x128xbf16>
    %401 = vector.shape_cast %400 : vector<1x8x128xbf16> to vector<8x128xbf16>
    %402 = vector.shape_cast %399 : vector<8x128xbf16> to vector<1x8x128xbf16>
    tpu.vector_store %arg14[%c2_145, %c0_146, %c0_147], %402 {strides = array<i32>} : memref<4x8x128xbf16, #tpu.memory_space<vmem>>, vector<1x8x128xbf16>,
    %c24_148 = arith.constant 24 : index
    %c0_149 = arith.constant 0 : index
    %403 = vector.load %arg21[%c24_148, %c0_149] : memref<32x512xf32, #tpu.memory_space<vmem>>, vector<8x512xf32>
    %404 = arith.truncf %398 : vector<8x128xf32> to vector<8x128xbf16>
    %cst_150 = arith.constant dense<0.000000e+00> : vector<8x512xf32>
    %405 = tpu.matmul %404, %294, %cst_150 {dimension_numbers = #tpu.dot_dimension_numbers<[1], [0], [0], [1], [0, 0, 1, 1], [], []>} : vector<8x128xbf16>, vector<128x512xbf16>, vector<8x512xf32> -> vector<8x512xf32>
    %406 = arith.addf %403, %405 : vector<8x512xf32>
    %407 = vector.extract_strided_slice %406 {offsets = [0, 0], sizes = [8, 128], strides = [1, 1]} : vector<8x512xf32> to vector<8x128xf32>
    %408 = arith.negf %407 : vector<8x128xf32>
    %409 = math.exp %408 : vector<8x128xf32>
    %cst_151 = arith.constant 1.000000e+00 : f32
    %410 = vector.broadcast %cst_151 : f32 to vector<8x128xf32>
    %411 = arith.addf %410, %409 : vector<8x128xf32>
    %412 = arith.divf %410, %411 : vector<8x128xf32>
    %413 = vector.extract_strided_slice %406 {offsets = [0, 128], sizes = [8, 128], strides = [1, 1]} : vector<8x512xf32> to vector<8x128xf32>
    %414 = arith.negf %413 : vector<8x128xf32>
    %415 = math.exp %414 : vector<8x128xf32>
    %cst_152 = arith.constant 1.000000e+00 : f32
    %416 = vector.broadcast %cst_152 : f32 to vector<8x128xf32>
    %417 = arith.addf %416, %415 : vector<8x128xf32>
    %418 = arith.divf %416, %417 : vector<8x128xf32>
    %419 = vector.extract_strided_slice %406 {offsets = [0, 256], sizes = [8, 128], strides = [1, 1]} : vector<8x512xf32> to vector<8x128xf32>
    %420 = math.tanh %419 : vector<8x128xf32>
    %421 = vector.extract_strided_slice %406 {offsets = [0, 384], sizes = [8, 128], strides = [1, 1]} : vector<8x512xf32> to vector<8x128xf32>
    %422 = arith.negf %421 : vector<8x128xf32>
    %423 = math.exp %422 : vector<8x128xf32>
    %cst_153 = arith.constant 1.000000e+00 : f32
    %424 = vector.broadcast %cst_153 : f32 to vector<8x128xf32>
    %425 = arith.addf %424, %423 : vector<8x128xf32>
    %426 = arith.divf %424, %425 : vector<8x128xf32>
    %427 = arith.mulf %418, %396 : vector<8x128xf32>
    %428 = arith.mulf %412, %420 : vector<8x128xf32>
    %429 = arith.addf %427, %428 : vector<8x128xf32>
    %430 = math.tanh %429 : vector<8x128xf32>
    %431 = arith.mulf %426, %430 : vector<8x128xf32>
    %432 = arith.truncf %431 : vector<8x128xf32> to vector<8x128xbf16>
    %c3_154 = arith.constant 3 : index
    %c0_155 = arith.constant 0 : index
    %c0_156 = arith.constant 0 : index
    %433 = vector.load %arg14[%c3_154, %c0_155, %c0_156] : memref<4x8x128xbf16, #tpu.memory_space<vmem>>, vector<1x8x128xbf16>
    %434 = vector.shape_cast %433 : vector<1x8x128xbf16> to vector<8x128xbf16>
    %435 = vector.shape_cast %432 : vector<8x128xbf16> to vector<1x8x128xbf16>
    tpu.vector_store %arg14[%c3_154, %c0_155, %c0_156], %435 {strides = array<i32>} : memref<4x8x128xbf16, #tpu.memory_space<vmem>>, vector<1x8x128xbf16>,
    %c0_157 = arith.constant 0 : index
    %c0_158 = arith.constant 0 : index
    %436 = vector.load %arg17[%c0_157, %c0_158] : memref<8x128xf32, #tpu.memory_space<vmem>>, vector<8x128xf32>
    tpu.vector_store %arg17[%c0_157, %c0_158], %431 {strides = array<i32>} : memref<8x128xf32, #tpu.memory_space<vmem>>, vector<8x128xf32>,
    %c0_159 = arith.constant 0 : index
    %c0_160 = arith.constant 0 : index
    %437 = vector.load %arg20[%c0_159, %c0_160] : memref<8x128xf32, #tpu.memory_space<vmem>>, vector<8x128xf32>
    tpu.vector_store %arg20[%c0_159, %c0_160], %429 {strides = array<i32>} : memref<8x128xf32, #tpu.memory_space<vmem>>, vector<8x128xf32>,
    return
  }
  func.func @transform_0(%arg0: i32, %arg1: i32) -> (i32, i32, i32) {
    %c0_i32 = arith.constant 0 : i32
    %c0_i32_0 = arith.constant 0 : i32
    return %arg1, %arg0, %c0_i32 : i32, i32, i32
  }
  func.func @transform_1(%arg0: i32, %arg1: i32) -> (i32, i32) {
    %c0_i32 = arith.constant 0 : i32
    %c0_i32_0 = arith.constant 0 : i32
    %c0_i32_1 = arith.constant 0 : i32
    return %c0_i32, %c0_i32_0 : i32, i32
  }
  func.func @transform_2(%arg0: i32, %arg1: i32) -> (i32, i32) {
    %c0_i32 = arith.constant 0 : i32
    %c0_i32_0 = arith.constant 0 : i32
    %c0_i32_1 = arith.constant 0 : i32
    return %c0_i32, %c0_i32_0 : i32, i32
  }
  func.func @transform_3(%arg0: i32, %arg1: i32) -> (i32, i32) {
    %c0_i32 = arith.constant 0 : i32
    %c0_i32_0 = arith.constant 0 : i32
    %c0_i32_1 = arith.constant 0 : i32
    return %c0_i32, %c0_i32_0 : i32, i32
  }
  func.func @transform_4(%arg0: i32, %arg1: i32) -> (i32, i32) {
    %c0_i32 = arith.constant 0 : i32
    %c0_i32_0 = arith.constant 0 : i32
    %c0_i32_1 = arith.constant 0 : i32
    return %c0_i32, %c0_i32_0 : i32, i32
  }
  func.func @transform_5(%arg0: i32, %arg1: i32) -> (i32, i32) {
    %c0_i32 = arith.constant 0 : i32
    %c0_i32_0 = arith.constant 0 : i32
    %c0_i32_1 = arith.constant 0 : i32
    return %c0_i32, %c0_i32_0 : i32, i32
  }
  func.func @transform_6(%arg0: i32, %arg1: i32) -> (i32, i32) {
    %c0_i32 = arith.constant 0 : i32
    %c0_i32_0 = arith.constant 0 : i32
    %c0_i32_1 = arith.constant 0 : i32
    return %c0_i32, %c0_i32_0 : i32, i32
  }
  func.func @transform_7(%arg0: i32, %arg1: i32) -> (i32, i32) {
    %c0_i32 = arith.constant 0 : i32
    %c0_i32_0 = arith.constant 0 : i32
    %c0_i32_1 = arith.constant 0 : i32
    return %c0_i32, %c0_i32_0 : i32, i32
  }
  func.func @transform_8(%arg0: i32, %arg1: i32) -> (i32, i32) {
    %c0_i32 = arith.constant 0 : i32
    %c0_i32_0 = arith.constant 0 : i32
    %c0_i32_1 = arith.constant 0 : i32
    return %c0_i32, %c0_i32_0 : i32, i32
  }
  func.func @transform_9(%arg0: i32, %arg1: i32) -> (i32, i32) {
    %c0_i32 = arith.constant 0 : i32
    %c0_i32_0 = arith.constant 0 : i32
    %c0_i32_1 = arith.constant 0 : i32
    return %c0_i32, %c0_i32_0 : i32, i32
  }
  func.func @transform_10(%arg0: i32, %arg1: i32) -> (i32, i32, i32) {
    %c0_i32 = arith.constant 0 : i32
    %0 = arith.subi %arg1, %c0_i32 : i32
    %c0_i32_0 = arith.constant 0 : i32
    %1 = arith.maxsi %0, %c0_i32_0 : i32
    %c0_i32_1 = arith.constant 0 : i32
    %c0_i32_2 = arith.constant 0 : i32
    return %1, %arg0, %c0_i32_1 : i32, i32, i32
  }
  func.func @transform_11(%arg0: i32, %arg1: i32) -> (i32, i32, i32) {
    %c0_i32 = arith.constant 0 : i32
    %0 = arith.subi %arg1, %c0_i32 : i32
    %c0_i32_0 = arith.constant 0 : i32
    %1 = arith.maxsi %0, %c0_i32_0 : i32
    %c0_i32_1 = arith.constant 0 : i32
    %c0_i32_2 = arith.constant 0 : i32
    return %1, %arg0, %c0_i32_1 : i32, i32, i32
  }
  func.func @transform_12(%arg0: i32, %arg1: i32) -> (i32, i32, i32) {
    %c0_i32 = arith.constant 0 : i32
    %0 = arith.subi %arg1, %c0_i32 : i32
    %c0_i32_0 = arith.constant 0 : i32
    %1 = arith.maxsi %0, %c0_i32_0 : i32
    %c0_i32_1 = arith.constant 0 : i32
    %c0_i32_2 = arith.constant 0 : i32
    return %1, %arg0, %c0_i32_1 : i32, i32, i32
  }
}

</mosaic_0001>

<bundles_post_ra>
// kernel: tpu_custom_call.1
= control target key start
LH: loop header
LB: loop body
LE: loop exit
PB: predicated region body
PF: predicated region fallthrough
CT: control target
= control target key end

     0   :  { %s6678_s0 = inlined_call_operand.hbm [shape: bf16[12,8,128], index: 0, kind: input, shape index: {}]   ;;  %s6679_s1 = inlined_call_operand.hbm [shape: bf16[128,512], index: 1, kind: input, shape index: {}]   ;;  %s6680_s2 = inlined_call_operand.hbm [shape: bf16[128,512], index: 2, kind: input, shape index: {}]   ;;  %s6681_s3 = inlined_call_operand.hbm [shape: bf16[128,512], index: 3, kind: input, shape index: {}]   ;;  %s6682_s4 = inlined_call_operand.hbm [shape: bf16[128,512], index: 4, kind: input, shape index: {}]   ;;  %s6683_s5 = inlined_call_operand.hbm [shape: bf16[128,512], index: 5, kind: input, shape index: {}]   ;;  %s6684_s6 = inlined_call_operand.hbm [shape: bf16[128,512], index: 6, kind: input, shape index: {}]   ;;  %s6685_s7 = inlined_call_operand.vmem [shape: f32[1,512], index: 7, kind: input, shape index: {}]   ;;  %s6686_s8 = inlined_call_operand.vmem [shape: f32[1,512], index: 8, kind: input, shape index: {}]   ;;  %s6687_s9 = inlined_call_operand.vmem [shape: f32[1,512], index: 9, kind: input, shape index: {}]   ;;  %s6688_s10 = inlined_call_operand.hbm [shape: bf16[12,8,128], index: 10, kind: output, shape index: {0}]   ;;  %s6689_s11 = inlined_call_operand.hbm [shape: bf16[12,8,128], index: 11, kind: output, shape index: {1}]   ;;  %s6690_s12 = inlined_call_operand.hbm [shape: bf16[12,8,128], index: 12, kind: output, shape index: {2}]  }
   0x1   :  { %6714 = sst [smem:[#allocation44_spill]] %s6678_s0 }
   0x2   :  { %6715 = sst [smem:[#allocation45_spill]] %s6679_s1 }
   0x3   :  { %6716 = sst [smem:[#allocation46_spill]] %s6680_s2 }
   0x4   :  { %6717 = sst [smem:[#allocation47_spill]] %s6681_s3 }
   0x5   :  { %6718 = sst [smem:[#allocation48_spill]] %s6682_s4 }
   0x6   :  { %6719 = sst [smem:[#allocation49_spill]] %s6683_s5 }
   0x7   :  { %6720 = sst [smem:[#allocation50_spill]] %s6685_s7 }
   0x8   :  { %6721 = sst [smem:[#allocation51_spill]] %s6686_s8 }
   0x9   :  { %6722 = sst [smem:[#allocation52_spill]] %s6687_s9 }
   0xa   :  { %6723 = sst [smem:[#allocation53_spill]] %s6688_s10 }
   0xb   :  { %6724 = sst [smem:[#allocation54_spill]] %s6689_s11 }
   0xc   :  { %6725 = sst [smem:[#allocation55_spill]] %s6690_s12 }
   0xd   :  { %18 = vsyncpa [#allocation10], 0 }
   0xe   :  { %20 = vsyncpa [#allocation10 + $0x1], 0 }
   0xf   :  { %21 = vsyncpa [#allocation13], 0 }
  0x10   :  { %22 = vsyncpa [#allocation16], 0 }
  0x11   :  { %23 = vsyncpa [#allocation19], 0 }
  0x12   :  { %24 = vsyncpa [#allocation11], 0 }
  0x13   :  { %26 = vsyncpa [#allocation11 + $0x1], 0 }
  0x14   :  { %27 = vsyncpa [#allocation23], 0 }
  0x15   :  { %29 = vsyncpa [#allocation23 + $0x1], 0  ;;  %s5306_s21 = smov 0   ;;  %s5308_s22 = smov 0  }
  0x16   :  { %s5310_s23 = smov 0   ;;  %s5312_s24 = smov 0  }
  0x17   :  { %s5314_s25 = smov 0   ;;  %s5316_s26 = smov 0  }
  0x18   :  { %s5318_s27 = smov 0   ;;  %s5320_s28 = smov 0  }
  0x19   :  { %s5322_s29 = smov 0  }
  0x1a LB: > { %6726 = sst [smem:[#allocation31_spill]] %s5213_s27  ;;  %s5352_s30 = sadd.s32 4294967295, %s5221_s29   ;;  %s5221_s29 = sphi %s5322_s29, %s35_s29   ;;  %s5217_s28 = sphi %s5320_s28, %s6828_s28   ;;  %s5213_s27 = sphi %s5318_s27, %s6827_s27   ;;  %s5209_s26 = sphi %s5316_s26, %s6826_s26   ;;  %s5205_s25 = sphi %s5314_s25, %s6825_s25   ;;  %s5201_s24 = sphi %s5312_s24, %s6824_s24   ;;  %s5197_s23 = sphi %s5310_s23, %s6823_s23   ;;  %s5193_s22 = sphi %s5308_s22, %s6822_s22   ;;  %s5189_s21 = sphi %s5306_s21, %s6821_s21  }
  0x1b   : > { %p3913_p0 = scmp.ge.s32.totalorder %s5221_s29, 1  ;;  %p6697_p1 = scmp.eq.s32.totalorder %s5352_s30, 0 }
  0x1c   : > { %p365_p3 = scmp.lt.s32.totalorder %s5221_s29, 4  ;;  %s5223_s14 = smov [#allocation12]  }
  0x1d   : > { %s377_s15 = sshll.u32 %s5223_s14, 4  ;;  %s5224_s17 = smov [#allocation15]   ;;  %s5362_s15 = int_to_ptr.vmem [resolvable:$true] %s377_s15 }
  0x1e   : > { %p5358_p4 = pnand %p3913_p0, %p365_p3  ;;  %s403_s18 = sshll.u32 %s5224_s17, 4  ;;  %s5372_s18 = int_to_ptr.vmem [resolvable:$true] %s403_s18 }
  0x1f   : > { %s5225_s19 = smov [#allocation18]   ;;  %s6730_s1 = sld [smem:[#allocation45_spill]] }
  0x20   : > { %s6727_s13 = scalar_select %p5358_p4, 1, 0 }
  0x21   : > { %p4226_p5 = pneg %p5358_p4  ;;  %s429_s20 = sshll.u32 %s5225_s19, 4  ;;  %s5374_s20 = int_to_ptr.vmem [resolvable:$true] %s429_s20 }
  0x22   : > { %6728 = sst [smem:[#allocation32_spill]] %s6727_s13 }
  0x23   : > { %p5368_p6 = pnand %p4226_p5, %p6697_p1 }
  0x25   : > { %s4845_s10 = scalar_lea.hbm %s6730_s1, 4096  ;;  %p5384_p8 = pneg %p5368_p6 }
  0x26   : > { %p4846_p7 = scmp.ne.s32.totalorder %s6730_s1, %s4845_s10  ;;  %p4852_p11 = scmp.lt.u32.totalorder %s4845_s10, %s6730_s1 }
  0x28   : > { %p4848_p9 = pnand %p5384_p8, %p4846_p7 }
  0x2a   : > { %p4849_p10 = pneg %p4848_p9 }
  0x2c   : > { %p4854_p12 = pnand %p4852_p11, %p4849_p10 }
  0x2e   : > { %4857 = shalt.err (!%p4854_p12)
}
  0x2f   : > { %s4858_s9 = scalar_lea.vmem %s5362_s15, 4096  ;;  %p4866_p5 = scmp.lt.s32.totalorder %s5362_s15, %s5362_s15 }
  0x30   : > { %p4859_p13 = scmp.ne.s32.totalorder %s5362_s15, %s4858_s9  ;;  %p4867_p2 = scmp.lt.s32.totalorder %s4858_s9, %s4858_s9 }
  0x32   : > { %p4861_p0 = pnand %p4859_p13, %p5384_p8  ;;  %p4868_p7 = por %p4867_p2, %p4866_p5 }
  0x34   : > { %p4862_p3 = pneg %p4861_p0 }
  0x36   : > { %p4869_p9 = pnand %p4868_p7, %p4862_p3 }
  0x38   : > { %4872 = shalt.err (!%p4869_p9)
}
  0x39   : > { %s5226_s11 = smov 256   ;;  %s5227_s10 = smov 16  }
  0x3a   : > { %4229 = dma.hbm_to_vmem [thread:$0]  (!%p5368_p6), %s6730_s1, 4096, %s5362_s15, [#allocation13], %s5226_s11, %s5226_s11, %s5227_s10  }
  0x3b   : > { %s6732_s3 = sld [smem:[#allocation47_spill]] }
  0x41   : > { %s4873_s9 = scalar_lea.hbm %s6732_s3, 4096 }
  0x42   : > { %p4874_p2 = scmp.ne.s32.totalorder %s6732_s3, %s4873_s9  ;;  %p4880_p12 = scmp.lt.u32.totalorder %s4873_s9, %s6732_s3 }
  0x44   : > { %p4876_p10 = pnand %p4874_p2, %p5384_p8 }
  0x46   : > { %p4877_p11 = pneg %p4876_p10 }
  0x48   : > { %p4882_p13 = pnand %p4880_p12, %p4877_p11 }
  0x4a   : > { %4885 = shalt.err (!%p4882_p13)
}
  0x4b   : > { %s4886_s15 = scalar_lea.vmem %s5372_s18, 4096  ;;  %p4894_p7 = scmp.lt.s32.totalorder %s5372_s18, %s5372_s18 }
  0x4c   : > { %p4887_p0 = scmp.ne.s32.totalorder %s5372_s18, %s4886_s15  ;;  %p4895_p9 = scmp.lt.s32.totalorder %s4886_s15, %s4886_s15 }
  0x4e   : > { %p4889_p3 = pnand %p4887_p0, %p5384_p8  ;;  %p4896_p2 = por %p4895_p9, %p4894_p7 }
  0x50   : > { %p4890_p5 = pneg %p4889_p3 }
  0x52   : > { %p4897_p10 = pnand %p4896_p2, %p4890_p5 }
  0x54   : > { %4900 = shalt.err (!%p4897_p10)
}
  0x55   : > { %4235 = dma.hbm_to_vmem [thread:$0]  (!%p5368_p6), %s6732_s3, 4096, %s5372_s18, [#allocation16], %s5226_s11, %s5226_s11, %s5227_s10  }
  0x56   : > { %s6733_s5 = sld [smem:[#allocation49_spill]] }
  0x5c   : > { %s4901_s12 = scalar_lea.hbm %s6733_s5, 4096 }
  0x5d   : > { %p4902_p11 = scmp.ne.s32.totalorder %s6733_s5, %s4901_s12  ;;  %p4908_p0 = scmp.lt.u32.totalorder %s4901_s12, %s6733_s5 }
  0x5f   : > { %p4904_p12 = pnand %p4902_p11, %p5384_p8 }
  0x61   : > { %p4905_p13 = pneg %p4904_p12 }
  0x63   : > { %p4910_p3 = pnand %p4908_p0, %p4905_p13 }
  0x65   : > { %4913 = shalt.err (!%p4910_p3)
}
  0x66   : > { %s4914_s18 = scalar_lea.vmem %s5374_s20, 4096  ;;  %p4922_p2 = scmp.lt.s32.totalorder %s5374_s20, %s5374_s20 }
  0x67   : > { %p4915_p5 = scmp.ne.s32.totalorder %s5374_s20, %s4914_s18  ;;  %p4923_p10 = scmp.lt.s32.totalorder %s4914_s18, %s4914_s18 }
  0x69   : > { %p4917_p7 = pnand %p4915_p5, %p5384_p8  ;;  %p4924_p11 = por %p4923_p10, %p4922_p2 }
  0x6b   : > { %p4918_p9 = pneg %p4917_p7 }
  0x6d   : > { %p4925_p12 = pnand %p4924_p11, %p4918_p9 }
  0x6f   : > { %4928 = shalt.err (!%p4925_p12)
}
  0x70   : > { %4241 = dma.hbm_to_vmem [thread:$0]  (!%p5368_p6), %s6733_s5, 4096, %s5374_s20, [#allocation19], %s5226_s11, %s5226_s11, %s5227_s10  }
  0x71   : > { %s5228_s7 = smov [#allocation14]   ;;  %s5229_s13 = smov [#allocation17]  }
  0x72   : > { %s390_s27 = sshll.u32 %s5228_s7, 4  ;;  %s416_s12 = sshll.u32 %s5229_s13, 4  ;;  %s391_s27 = int_to_ptr.vmem [resolvable:$true] %s390_s27  ;;  %s5460_s12 = int_to_ptr.vmem [resolvable:$true] %s416_s12 }
  0x73   : > { %s6734_s2 = sld [smem:[#allocation46_spill]] }
  0x79   : > { %s4929_s19 = scalar_lea.hbm %s6734_s2, 4096 }
  0x7a   : > { %p4930_p13 = scmp.ne.s32.totalorder %s6734_s2, %s4929_s19  ;;  %p4936_p5 = scmp.lt.u32.totalorder %s4929_s19, %s6734_s2 }
  0x7c   : > { %p4932_p0 = pnand %p4930_p13, %p5384_p8 }
  0x7e   : > { %p4933_p3 = pneg %p4932_p0 }
  0x80   : > { %p4938_p7 = pnand %p4936_p5, %p4933_p3 }
  0x82   : > { %4941 = shalt.err (!%p4938_p7)
}
  0x83   : > { %s4942_s0 = scalar_lea.vmem %s391_s27, 4096  ;;  %p4950_p11 = scmp.lt.s32.totalorder %s391_s27, %s391_s27 }
  0x84   : > { %p4943_p9 = scmp.ne.s32.totalorder %s391_s27, %s4942_s0  ;;  %p4951_p12 = scmp.lt.s32.totalorder %s4942_s0, %s4942_s0 }
  0x86   : > { %p4945_p2 = pnand %p4943_p9, %p5384_p8  ;;  %p4952_p1 = por %p4951_p12, %p4950_p11 }
  0x88   : > { %p4946_p10 = pneg %p4945_p2 }
  0x8a   : > { %p4953_p4 = pnand %p4952_p1, %p4946_p10 }
  0x8c   : > { %4956 = shalt.err (!%p4953_p4)
}
  0x8d   : > { %4232 = dma.hbm_to_vmem [thread:$0]  (!%p5368_p6), %s6734_s2, 4096, %s391_s27, [#allocation13], %s5226_s11, %s5226_s11, %s5227_s10  }
  0x8e   : > { %s6735_s4 = sld [smem:[#allocation48_spill]] }
  0x94   : > { %s4957_s19 = scalar_lea.hbm %s6735_s4, 4096 }
  0x95   : > { %p4958_p13 = scmp.ne.s32.totalorder %s6735_s4, %s4957_s19  ;;  %p4964_p0 = scmp.lt.u32.totalorder %s4957_s19, %s6735_s4 }
  0x97   : > { %p4960_p1 = pnand %p4958_p13, %p5384_p8 }
  0x99   : > { %p4961_p4 = pneg %p4960_p1 }
  0x9b   : > { %p4966_p3 = pnand %p4964_p0, %p4961_p4 }
  0x9d   : > { %4969 = shalt.err (!%p4966_p3)
}
  0x9e   : > { %s4970_s27 = scalar_lea.vmem %s5460_s12, 4096  ;;  %p4978_p2 = scmp.lt.s32.totalorder %s5460_s12, %s5460_s12 }
  0x9f   : > { %p4971_p5 = scmp.ne.s32.totalorder %s5460_s12, %s4970_s27  ;;  %p4979_p10 = scmp.lt.s32.totalorder %s4970_s27, %s4970_s27 }
  0xa1   : > { %p4973_p7 = pnand %p4971_p5, %p5384_p8  ;;  %p4980_p11 = por %p4979_p10, %p4978_p2 }
  0xa3   : > { %p4974_p9 = pneg %p4973_p7 }
  0xa5   : > { %p4981_p12 = pnand %p4980_p11, %p4974_p9 }
  0xa7   : > { %4984 = shalt.err (!%p4981_p12)
}
  0xa8   : > { %4238 = dma.hbm_to_vmem [thread:$0]  (!%p5368_p6), %s6735_s4, 4096, %s5460_s12, [#allocation16], %s5226_s11, %s5226_s11, %s5227_s10  }
  0xa9   : > { %s5230_s13 = smov [#allocation20]   ;;  %s4985_s9 = scalar_lea.hbm %s6684_s6, 4096 }
  0xaa   : > { %s442_s14 = sshll.u32 %s5230_s13, 4  ;;  %p4986_p13 = scmp.ne.s32.totalorder %s6684_s6, %s4985_s9  ;;  %s443_s14 = int_to_ptr.vmem [resolvable:$true] %s442_s14 }
  0xab   : > { %p4992_p0 = scmp.lt.u32.totalorder %s4985_s9, %s6684_s6 }
  0xac   : > { %p4988_p1 = pnand %p4986_p13, %p5384_p8 }
  0xae   : > { %p4989_p4 = pneg %p4988_p1 }
  0xb0   : > { %p4994_p3 = pnand %p4992_p0, %p4989_p4 }
  0xb2   : > { %4997 = shalt.err (!%p4994_p3)
}
  0xb3   : > { %s4998_s12 = scalar_lea.vmem %s443_s14, 4096  ;;  %p5006_p2 = scmp.lt.s32.totalorder %s443_s14, %s443_s14 }
  0xb4   : > { %p4999_p5 = scmp.ne.s32.totalorder %s443_s14, %s4998_s12  ;;  %p5007_p10 = scmp.lt.s32.totalorder %s4998_s12, %s4998_s12 }
  0xb6   : > { %p5001_p7 = pnand %p4999_p5, %p5384_p8  ;;  %p5008_p11 = por %p5007_p10, %p5006_p2 }
  0xb8   : > { %p5002_p9 = pneg %p5001_p7 }
  0xba   : > { %p5009_p12 = pnand %p5008_p11, %p5002_p9 }
  0xbc   : > { %5012 = shalt.err (!%p5009_p12)
}
  0xbd   : > { %4244 = dma.hbm_to_vmem [thread:$0]  (!%p5368_p6), %s6684_s6, 4096, %s443_s14, [#allocation19], %s5226_s11, %s5226_s11, %s5227_s10  }
  0xbe   : > { %s6699_s8 = sadd.s32 4294967294, %s5221_s29   ;;  %s44_s16 = sadd.s32 1, %s5217_s28 }
  0xbf   : > { %s56_s13 = sadd.s32 1, %s5209_s26  ;;  %p45_p8 = scmp.ge.s32.totalorder %s44_s16, 3 }
  0xc0   : > { %p63_p13 = scmp.ne.s32.totalorder %s5209_s26, %s5205_s25  ;;  %p64_p1 = scmp.eq.s32.totalorder %s5221_s29, 0 }
  0xc1   : > { %p69_p4 = scmp.ne.s32.totalorder %s5205_s25, %s5201_s24  ;;  %s6830_s16 = smov (%p45_p8, %s44_s16), 0 }
  0xc2   : > { %p5540_p6 = por %p64_p1, %p63_p13  ;;  %p6737_p0 = scmp.eq.s32.totalorder %s5352_s30, 0 }
  0xc3   : > { %s51_s14 = ssub.s32 %s5217_s28, %s6830_s16  ;;  %p268_p5 = scmp.gt.s32.totalorder %s5217_s28, 0 }
  0xc4   : > { %p5546_p3 = por %p6737_p0, %p69_p4  ;;  %p54_p7 = scmp.eq.s32.totalorder %s51_s14, 0 }
  0xc5   : > { %p270_p9 = scmp.gt.s32.totalorder %s6830_s16, 0  ;;  %s277_s9 = sadd.s32 1, %s5197_s23 }
  0xc6   : > { %s269_s24 = scalar_select %p268_p5, %s5217_s28, 0 }
  0xc7   : > { %s5556_s17 = scalar_select %p54_p7, %s5209_s26, %s56_s13  }
  0xc8   : > { %s271_s19 = scalar_select %p270_p9, %s6830_s16, 0 }
  0xc9   : > { %p287_p2 = scmp.ne.s32.totalorder %s5197_s23, %s5193_s22  ;;  %p293_p10 = scmp.ne.s32.totalorder %s5193_s22, %s5189_s21 }
  0xca   : > { %s272_s18 = ssub.s32 %s269_s24, %s271_s19  ;;  %p6739_p12 = scmp.eq.s32.totalorder %s5352_s30, 2 }
  0xcb   : > { %p275_p11 = scmp.eq.s32.totalorder %s272_s18, 0  ;;  %p294_p13 = scmp.eq.s32.totalorder %s6699_s8, 2 }
  0xcc   : > { %p5566_p8 = por %p6739_p12, %p287_p2  ;;  %p4265_p1 = scmp.lt.s32.totalorder %s5221_s29, 3 }
  0xcd   : > { %s5574_s20 = scalar_select %p275_p11, %s5197_s23, %s277_s9  }
  0xce   : > { %s6740_s15 = scalar_select %p5566_p8, 1, 0 }
  0xcf   : > { %p5576_p4 = por %p294_p13, %p293_p10  ;;  %s465_s12 = sand.u32 1, %s5209_s26  }
  0xd0   : > { %s3921_s0 = sshll.u32 %s465_s12, 4  ;;  %s4190_s7 = sshll.u32 %s5217_s28, 8 }
  0xd1   : > { %s6741_s27 = scalar_select %p5576_p4, 1, 0 }
  0xd2   : > { %s6742_s24 = sld [smem:[#allocation44_spill]]  ;;  %s469_s8 = scalar_lea.vmem [#allocation9], %s3921_s0 }
  0xd3   : > { %s477_s1 = sshll.u32 %s469_s8, 4  ;;  %p5591_p0 = pnand %p4265_p1, %p5540_p6  ;;  %s5587_s1 = int_to_ptr.vmem [resolvable:$true] %s477_s1 }
  0xd4   : > { %s5595_s2 = scalar_lea.sflag [#allocation10], %s465_s12 }
  0xd5   : > { %p5015_p7 = pneg %p5591_p0 }
  0xd8   : > { %s6743_s19 = smov %s6742_s24  ;;  %s5585_s18 = scalar_lea.hbm %s6742_s24, %s4190_s7 }
  0xd9   : > { %s5013_s13 = scalar_lea.hbm %s5585_s18, 256  ;;  %s5018_s11 = scalar_lea.hbm %s6743_s19, 768 }
  0xda   : > { %p5014_p5 = scmp.ne.s32.totalorder %s5585_s18, %s5013_s13  ;;  %p5019_p6 = scmp.lt.u32.totalorder %s5585_s18, %s6743_s19 }
  0xdb   : > { %p5020_p10 = scmp.lt.u32.totalorder %s5018_s11, %s5013_s13  ;;  %p5022_p12 = scmp.lt.u32.totalorder %s5013_s13, %s5585_s18 }
  0xdc   : > { %p5016_p9 = pnand %p5015_p7, %p5014_p5 }
  0xdd   : > { %p5021_p11 = por %p5020_p10, %p5019_p6 }
  0xde   : > { %p5017_p2 = pneg %p5016_p9 }
  0xdf   : > { %p5023_p13 = por %p5022_p12, %p5021_p11 }
  0xe1   : > { %p5024_p1 = pnand %p5023_p13, %p5017_p2 }
  0xe3   : > { %5027 = shalt.err (!%p5024_p1)
}
  0xe4   : > { %s5028_s12 = scalar_lea.vmem %s5587_s1, 256  ;;  %s5231_s24 = smov [#allocation9]  }
  0xe5   : > { %p5029_p5 = scmp.ne.s32.totalorder %s5587_s1, %s5028_s12  ;;  %s5033_s8 = sshll.u32 %s5231_s24, 4  ;;  %s5034_s8 = int_to_ptr.vmem [resolvable:$false] %s5033_s8 }
  0xe6   : > { %s5035_s0 = scalar_lea.vmem %s5034_s8, 512  ;;  %p5036_p8 = scmp.lt.s32.totalorder %s5587_s1, %s5034_s8 }
  0xe7   : > { %p5031_p9 = pnand %p5029_p5, %p5015_p7  ;;  %p5037_p6 = scmp.lt.s32.totalorder %s5035_s0, %s5028_s12 }
  0xe9   : > { %p5032_p4 = pneg %p5031_p9  ;;  %p5038_p10 = por %p5037_p6, %p5036_p8 }
  0xeb   : > { %p5039_p11 = pnand %p5038_p10, %p5032_p4 }
  0xed   : > { %5042 = shalt.err (!%p5039_p11)
}
  0xee   : > { %s5232_s13 = smov 64   ;;  %s5233_s11 = smov 4  }
  0xef   : > { %4248 = dma.hbm_to_vmem [thread:$0]  (!%p5591_p0), %s5585_s18, 256, %s5587_s1, %s5595_s2, %s5232_s13, %s5232_s13, %s5233_s11  }
  0xf0   : > { %s6745_s7 = sld [smem:[#allocation32_spill]] }
  0xf6   : > { %p6746_p7 = scmp.ne.s32.totalorder %s6745_s7, 0 }
  0xf8   : > { %489 = sbr.rel (%p6746_p7) target bundleno = 3516 (0xdbc), region = 60 }
  0xff   : > { %s491_s14 = sand.u32 1, %s5205_s25  }
 0x100   : > { %s5626_s24 = sshll.u32 %s491_s14, 4  ;;  %s492_s12 = scalar_lea.sflag [#allocation10], %s491_s14 }
 0x101   : > { %s495_s8 = scalar_lea.vmem [#allocation9], %s5626_s24 }
 0x102   : > { %5164 = dma.done.wait (%p5546_p3), %s492_s12, 256  }
 0x103   : > { %5166 = vsyncadd (%p5546_p3), %s492_s12, 4294967040  ;;  %p6747_p8 = scmp.eq.s32.totalorder %s5352_s30, 0 }
 0x105   : > { %5168 = dma.done.wait (%p6747_p8), [#allocation13], 8192   ;;  %p6748_p4 = pmov %p6747_p8 }
 0x107   : > { %5170 = vsyncadd (%p6748_p4), [#allocation13], 4294959104  ;;  %p6749_p0 = pmov %p6748_p4 }
 0x109   : > { %5172 = dma.done.wait (%p6749_p0), [#allocation16], 8192   ;;  %p6750_p2 = pmov %p6749_p0 }
 0x10a   : > { %p6751_p12 = pmov %p6749_p0 }
 0x10b   : > { %5174 = vsyncadd (%p6750_p2), [#allocation16], 4294959104 }
 0x10c   : > { %5176 = dma.done.wait (%p6751_p12), [#allocation19], 8192   ;;  %p6752_p13 = pmov %p6749_p0 }
 0x10d   : > { %s6711_s1 = sand.u32 1, %s5193_s22   ;;  %s6753_s0 = sld [smem:[#allocation31_spill]] }
 0x10e   : > { %5178 = vsyncadd (%p6752_p13), [#allocation19], 4294959104  ;;  %s3932_s2 = sshll.u32 %s6711_s1, 4 }
 0x10f   : > { %s5648_s10 = scalar_lea.vmem [#allocation21], %s3932_s2  ;;  %s5650_s18 = scalar_lea.vmem [#allocation22], %s3932_s2 }
 0x110   : > { %s5652_s9 = scalar_lea.vmem [#allocation24], %s3932_s2 }
 0x113   : > { %p3935_p3 = scmp.ne.s32.totalorder %s6753_s0, 0 }
 0x114   : > { %v5234_v0 = vmov (!%p3935_p3), 0.0  }
 0x115   : > { %584 = sbr.rel (%p3935_p3) target bundleno = 284 (0x11c), region = 92  ;;  %585 = vst [vmem:[#allocation2] sm:$0xff] (!%p3935_p3), %v5234_v0  ;;  %586 = vst [vmem:[#allocation5] sm:$0xff] (!%p3935_p3), %v5234_v0 }
 0x116   : > { %587 = vst [vmem:[#allocation3] sm:$0xff] (!%p3935_p3), %v5234_v0  ;;  %588 = vst [vmem:[#allocation6] sm:$0xff] (!%p3935_p3), %v5234_v0 }
 0x117   : > { %589 = vst [vmem:[#allocation4] sm:$0xff] (!%p3935_p3), %v5234_v0  ;;  %590 = vst [vmem:[#allocation7] sm:$0xff] (!%p3935_p3), %v5234_v0 }
 0x11c PF: > { %v4359_v1 = vld [vmem:[#allocation12 + $0x4] ss:$16 sps:$4 sm:$0xff]   ;;  %v4361_v2 = vld [vmem:[#allocation12 + $0xc] ss:$16 sps:$4 sm:$0xff]   ;;  %v6701_v3 = vmov 0   ;;  %s6756_s7 = sld [smem:[#allocation50_spill]] }
 0x11d   : > { %887 = vmatprep.mubr.bf16.mxu0 %v6701_v3  ;;  %940 = vmatprep.mubr.bf16.mxu1 %v6701_v3  ;;  %v4363_v4 = vld [vmem:[#allocation12] ss:$16 sps:$4 sm:$0xff]   ;;  %v4364_v5 = vld [vmem:[#allocation12 + $0x8] ss:$16 sps:$4 sm:$0xff]   ;;  %v4365_v6 = vld [vmem:[#allocation12 + $0x24] ss:$16 sps:$4 sm:$0xff]  }
 0x11e   : > { %855 = vmatprep.subr.bf16.mxu0 %v4359_v1  ;;  %908 = vmatprep.subr.bf16.mxu1 %v4361_v2  ;;  %v4367_v7 = vld [vmem:[#allocation12 + $0x2c] ss:$16 sps:$4 sm:$0xff]   ;;  %v4369_v8 = vld [vmem:[#allocation12 + $0x20] ss:$16 sps:$4 sm:$0xff]   ;;  %v4370_v9 = vld [vmem:[#allocation12 + $0x28] ss:$16 sps:$4 sm:$0xff]  }
 0x11f   : > { %856 = vmatpush1.bf16.msra.mxu0 %v4363_v4  ;;  %909 = vmatpush1.bf16.msra.mxu1 %v4364_v5  ;;  %v4371_v10 = vld [vmem:[#allocation12 + $0x44] ss:$16 sps:$4 sm:$0xff]   ;;  %v4373_v11 = vld [vmem:[#allocation12 + $0x4c] ss:$16 sps:$4 sm:$0xff]   ;;  %v4375_v12 = vld [vmem:[#allocation12 + $0x40] ss:$16 sps:$4 sm:$0xff]  }
 0x120   : > { %857 = vmatprep.subr.bf16.mxu0 %v4365_v6  ;;  %910 = vmatprep.subr.bf16.mxu1 %v4367_v7  ;;  %v4376_v13 = vld [vmem:[#allocation12 + $0x48] ss:$16 sps:$4 sm:$0xff]   ;;  %v4377_v14 = vld [vmem:[#allocation12 + $0x64] ss:$16 sps:$4 sm:$0xff]   ;;  %v4379_v15 = vld [vmem:[#allocation12 + $0x6c] ss:$16 sps:$4 sm:$0xff]   ;;  %v663_v7 = vlaneseq }
 0x121   : > { %v4381_v16 = vld [vmem:[#allocation12 + $0x60] ss:$16 sps:$4 sm:$0xff]   ;;  %v4382_v17 = vld [vmem:[#allocation12 + $0x68] ss:$16 sps:$4 sm:$0xff]   ;;  %v4383_v18 = vld [vmem:[#allocation12 + $0x84] ss:$16 sps:$4 sm:$0xff]  }
 0x122   : > { %v4385_v19 = vld [vmem:[#allocation12 + $0x8c] ss:$16 sps:$4 sm:$0xff]   ;;  %v4387_v20 = vld [vmem:[#allocation12 + $0x80] ss:$16 sps:$4 sm:$0xff]   ;;  %v4388_v21 = vld [vmem:[#allocation12 + $0x88] ss:$16 sps:$4 sm:$0xff]  }
 0x123   : > { %858 = vmatpush1.bf16.msra.mxu0 %v4369_v8  ;;  %911 = vmatpush1.bf16.msra.mxu1 %v4370_v9  ;;  %v4389_v22 = vld [vmem:[#allocation12 + $0xa4] ss:$16 sps:$4 sm:$0xff]   ;;  %v4391_v23 = vld [vmem:[#allocation12 + $0xac] ss:$16 sps:$4 sm:$0xff]   ;;  %v4393_v24 = vld [vmem:[#allocation12 + $0xa0] ss:$16 sps:$4 sm:$0xff]  }
 0x124   : > { %859 = vmatprep.subr.bf16.mxu0 %v4371_v10  ;;  %912 = vmatprep.subr.bf16.mxu1 %v4373_v11  ;;  %v4394_v25 = vld [vmem:[#allocation12 + $0xa8] ss:$16 sps:$4 sm:$0xff]   ;;  %v4395_v26 = vld [vmem:[#allocation12 + $0xc4] ss:$16 sps:$4 sm:$0xff]   ;;  %v4397_v27 = vld [vmem:[#allocation12 + $0xcc] ss:$16 sps:$4 sm:$0xff]  }
 0x125   : > { %v4399_v28 = vld [vmem:[#allocation12 + $0xc0] ss:$16 sps:$4 sm:$0xff]   ;;  %v4400_v29 = vld [vmem:[#allocation12 + $0xc8] ss:$16 sps:$4 sm:$0xff]   ;;  %v4401_v30 = vld [vmem:[#allocation12 + $0xe4] ss:$16 sps:$4 sm:$0xff]  }
 0x126   : > { %v4403_v31 = vld [vmem:[#allocation12 + $0xec] ss:$16 sps:$4 sm:$0xff]   ;;  %v4405_v32 = vld [vmem:[#allocation12 + $0xe0] ss:$16 sps:$4 sm:$0xff]   ;;  %v4406_v33 = vld [vmem:[#allocation12 + $0xe8] ss:$16 sps:$4 sm:$0xff]  }
 0x127   : > { %860 = vmatpush1.bf16.msra.mxu0 %v4375_v12  ;;  %913 = vmatpush1.bf16.msra.mxu1 %v4376_v13  ;;  %v5657_v34 = vld [vmem:[#allocation17 + $0x4] ss:$16 sps:$4 sm:$0xff]   ;;  %v5659_v35 = vld [vmem:[#allocation17 + $0xc] ss:$16 sps:$4 sm:$0xff]   ;;  %v5663_v37 = vld [vmem:[#allocation17] ss:$16 sps:$4 sm:$0xff]  }
 0x128   : > { %861 = vmatprep.subr.bf16.mxu0 %v4377_v14  ;;  %914 = vmatprep.subr.bf16.mxu1 %v4379_v15  ;;  %v4407_v36 = vld [vmem:[%s495_s8] sm:$0xff]   ;;  %v5665_v38 = vld [vmem:[#allocation17 + $0x8] ss:$16 sps:$4 sm:$0xff]   ;;  %v5671_v40 = vld [vmem:[#allocation17 + $0x2c] ss:$16 sps:$4 sm:$0xff]   ;;  %v664_v8 = vshrl.u32 %v663_v7, 7 }
 0x129   : > { %v5667_v39 = vld [vmem:[#allocation17 + $0x24] ss:$16 sps:$4 sm:$0xff]   ;;  %v5673_v41 = vld [vmem:[#allocation17 + $0x20] ss:$16 sps:$4 sm:$0xff]   ;;  %v5675_v42 = vld [vmem:[#allocation17 + $0x28] ss:$16 sps:$4 sm:$0xff]  }
 0x12a   : > { %v5679_v43 = vld [vmem:[#allocation17 + $0x44] ss:$16 sps:$4 sm:$0xff]   ;;  %v5683_v44 = vld [vmem:[#allocation17 + $0x4c] ss:$16 sps:$4 sm:$0xff]   ;;  %v5685_v45 = vld [vmem:[#allocation17 + $0x40] ss:$16 sps:$4 sm:$0xff]  }
 0x12b   : > { %862 = vmatpush1.bf16.msra.mxu0 %v4381_v16  ;;  %915 = vmatpush1.bf16.msra.mxu1 %v4382_v17  ;;  %v4442_v46 = vld [vmem:[%s495_s8 + $0x8] sm:$0xff]   ;;  %v5697_v48 = vld [vmem:[#allocation17 + $0x64] ss:$16 sps:$4 sm:$0xff]   ;;  %v5703_v50 = vld [vmem:[#allocation17 + $0x60] ss:$16 sps:$4 sm:$0xff]   ;;  %v5797_v9 = vsub.s32 0, %v664_v8 }
 0x12c   : > { %863 = vmatprep.subr.bf16.mxu0 %v4383_v18  ;;  %916 = vmatprep.subr.bf16.mxu1 %v4385_v19  ;;  %v5693_v47 = vld [vmem:[#allocation17 + $0x48] ss:$16 sps:$4 sm:$0xff]   ;;  %v5699_v49 = vld [vmem:[#allocation17 + $0x6c] ss:$16 sps:$4 sm:$0xff]   ;;  %v5707_v52 = vld [vmem:[#allocation17 + $0x84] ss:$16 sps:$4 sm:$0xff]  }
 0x12d   : > { %v5705_v51 = vld [vmem:[#allocation17 + $0x68] ss:$16 sps:$4 sm:$0xff]   ;;  %v5711_v53 = vld [vmem:[#allocation17 + $0x8c] ss:$16 sps:$4 sm:$0xff]   ;;  %v5713_v54 = vld [vmem:[#allocation17 + $0x80] ss:$16 sps:$4 sm:$0xff]  }
 0x12e   : > { %v5715_v55 = vld [vmem:[#allocation17 + $0x88] ss:$16 sps:$4 sm:$0xff]   ;;  %v5719_v56 = vld [vmem:[#allocation17 + $0xa4] ss:$16 sps:$4 sm:$0xff]   ;;  %v5721_v57 = vld [vmem:[#allocation17 + $0xac] ss:$16 sps:$4 sm:$0xff]  }
 0x12f   : > { %864 = vmatpush1.bf16.msra.mxu0 %v4387_v20  ;;  %917 = vmatpush1.bf16.msra.mxu1 %v4388_v21  ;;  %v5727_v58 = vld [vmem:[#allocation17 + $0xa0] ss:$16 sps:$4 sm:$0xff]   ;;  %v5729_v59 = vld [vmem:[#allocation17 + $0xa8] ss:$16 sps:$4 sm:$0xff]   ;;  %v5731_v60 = vld [vmem:[#allocation17 + $0xc4] ss:$16 sps:$4 sm:$0xff]  }
 0x130   : > { %865 = vmatprep.subr.bf16.mxu0 %v4389_v22  ;;  %918 = vmatprep.subr.bf16.mxu1 %v4391_v23  ;;  %v5733_v61 = vld [vmem:[#allocation17 + $0xcc] ss:$16 sps:$4 sm:$0xff]   ;;  %v5739_v62 = vld [vmem:[#allocation17 + $0xc0] ss:$16 sps:$4 sm:$0xff]   ;;  %v5741_v63 = vld [vmem:[#allocation17 + $0xc8] ss:$16 sps:$4 sm:$0xff]  }
 0x131   : > { %v5743_v0 = vld [vmem:[#allocation17 + $0xe4] ss:$16 sps:$4 sm:$0xff]   ;;  %v5745_v1 = vld [vmem:[#allocation17 + $0xec] ss:$16 sps:$4 sm:$0xff]   ;;  %v5751_v2 = vld [vmem:[#allocation17 + $0xe0] ss:$16 sps:$4 sm:$0xff]  }
 0x132   : > { %v5753_v4 = vld [vmem:[#allocation17 + $0xe8] ss:$16 sps:$4 sm:$0xff]   ;;  %v656_v5 = vld [vmem:[#allocation2] sm:$0xff]  ;;  %6754 = vst [vmem:[#allocation33_spill] sm:$0xff] %v5797_v9  ;;  %v5799_v10 = vsub.s32 2, %v664_v8  ;;  %v5804_v12 = vsub.s32 3, %v664_v8 }
 0x133   : > { %866 = vmatpush1.bf16.msra.mxu0 %v4393_v24  ;;  %919 = vmatpush1.bf16.msra.mxu1 %v4394_v25  ;;  %v981_v6 = vpack.c.bf16 %v656_v5, %v656_v5  ;;  %v655_v11 = vld [vmem:[%s6756_s7] sm:$0xf]  ;;  %v5806_v13 = vsub.s32 1, %v664_v8  ;;  %s6774_s12 = sld [smem:[#allocation51_spill]]  ;;  %s6793_s0 = sld [smem:[#allocation52_spill]] }
 0x134   : > { %867 = vmatprep.subr.bf16.mxu0 %v4395_v26  ;;  %920 = vmatprep.subr.bf16.mxu1 %v4397_v27  ;;  %6755 = vst [vmem:[#allocation34_spill] sm:$0xff] %v5799_v10  ;;  %6757 = vst [vmem:[#allocation35_spill] sm:$0xff] %v5804_v12  ;;  %v666_v14 = vrot.slane %v655_v11, %v5797_v9  ;;  %v674_v15 = vrot.slane %v655_v11, %v5799_v10  ;;  %s6808_s13 = sld [smem:[#allocation31_spill]]  ;;  %s3644_s11 = sand.u32 1, %s5352_s30  }
 0x135   : > { %6758 = vst [vmem:[#allocation36_spill] sm:$0xff] %v5806_v13  ;;  %v678_v18 = vrot.slane %v655_v11, %v5804_v12  ;;  %v670_v21 = vrot.slane %v655_v11, %v5806_v13  ;;  %s3685_s2 = sshll.u32 %s5650_s18, 4  ;;  %p6810_p9 = scmp.ne.s32.totalorder %s6740_s15, 0  ;;  %s6534_s2 = int_to_ptr.vmem [resolvable:$true] %s3685_s2 }
 0x136   : > { %s5043_s1 = scalar_lea.vmem %s6534_s2, 256  ;;  %s5236_s30 = smov [#allocation22]  }
 0x137   : > { %868 = vmatpush1.bf16.msra.mxu0 %v4399_v28  ;;  %921 = vmatpush1.bf16.msra.mxu1 %v4400_v29  ;;  %p5044_p5 = scmp.ne.s32.totalorder %s6534_s2, %s5043_s1 }
 0x138   : > { %869 = vmatprep.subr.bf16.mxu0 %v4401_v30  ;;  %922 = vmatprep.subr.bf16.mxu1 %v4403_v31 }
 0x139   : > { %p5045_p6 = pnand %p5044_p5, %p6810_p9 }
 0x13a   : > { %p3657_p1 = scmp.gt.s32.totalorder %s6808_s13, 0 }
 0x13b   : > { %870 = vmatpush1.bf16.msra.mxu0 %v4405_v32  ;;  %923 = vmatpush1.bf16.msra.mxu1 %v4406_v33  ;;  %p5046_p10 = pneg %p5045_p6 }
 0x13c   : > { %1142 = vmatprep.subr.bf16.mxu0 %v5657_v34  ;;  %1183 = vmatprep.subr.bf16.mxu1 %v5659_v35  ;;  %s6832_s13 = smov (!%p3657_p1, %s6808_s13), 0 }
 0x13d   : > { %s6525_s7 = sshll.u32 %s6832_s13, 8  ;;  %s5047_s13 = sshll.u32 %s5236_s30, 4  ;;  %s5048_s13 = int_to_ptr.vmem [resolvable:$false] %s5047_s13 }
 0x13e   : > { %888 = vmatmul.mubr.bf16.vlgmr.msra.gmra.mrb[0].mxu0 %v4407_v36  ;;  %941 = vmatmul.mubr.bf16.vlgmr.msra.gmra.mrb[0].mxu1 %v4407_v36  ;;  %s5049_s3 = scalar_lea.vmem %s5048_s13, 512  ;;  %p5050_p11 = scmp.lt.s32.totalorder %s6534_s2, %s5048_s13 }
 0x13f   : > { %1143 = vmatpush1.bf16.msra.mxu0 %v5663_v37  ;;  %1184 = vmatpush1.bf16.msra.mxu1 %v5665_v38  ;;  %p5051_p7 = scmp.lt.s32.totalorder %s5049_s3, %s5043_s1 }
 0x140   : > { %1144 = vmatprep.subr.bf16.mxu0 %v5667_v39  ;;  %1185 = vmatprep.subr.bf16.mxu1 %v5671_v40 }
 0x141   : > { %897 = vmatprep.mubr.bf16.mxu0 %v6701_v3  ;;  %950 = vmatprep.mubr.bf16.mxu1 %v6701_v3  ;;  %p5052_p8 = por %p5051_p7, %p5050_p11 }
 0x143   : > { %1145 = vmatpush1.bf16.msra.mxu0 %v5673_v41  ;;  %1186 = vmatpush1.bf16.msra.mxu1 %v5675_v42  ;;  %p5053_p4 = pnand %p5052_p8, %p5046_p10 }
 0x144   : > { %1146 = vmatprep.subr.bf16.mxu0 %v5679_v43  ;;  %1187 = vmatprep.subr.bf16.mxu1 %v5683_v44 }
 0x146   : > { %898 = vmatmul.mubr.bf16.gmra.mrb[4].mxu0 %v4442_v46  ;;  %951 = vmatmul.mubr.bf16.gmra.mrb[4].mxu1 %v4442_v46 }
 0x147   : > { %1147 = vmatpush1.bf16.msra.mxu0 %v5685_v45  ;;  %1188 = vmatpush1.bf16.msra.mxu1 %v5693_v47 }
 0x148   : > { %1148 = vmatprep.subr.bf16.mxu0 %v5697_v48  ;;  %1189 = vmatprep.subr.bf16.mxu1 %v5699_v49 }
 0x149   : > { %1174 = vmatprep.mubr.bf16.mxu0 %v6701_v3  ;;  %1215 = vmatprep.mubr.bf16.mxu1 %v6701_v3 }
 0x14b   : > { %1149 = vmatpush1.bf16.msra.mxu0 %v5703_v50  ;;  %1190 = vmatpush1.bf16.msra.mxu1 %v5705_v51 }
 0x14c   : > { %1150 = vmatprep.subr.bf16.mxu0 %v5707_v52  ;;  %1191 = vmatprep.subr.bf16.mxu1 %v5711_v53 }
 0x14f   : > { %1151 = vmatpush1.bf16.msra.mxu0 %v5713_v54  ;;  %1192 = vmatpush1.bf16.msra.mxu1 %v5715_v55 }
 0x150   : > { %1152 = vmatprep.subr.bf16.mxu0 %v5719_v56  ;;  %1193 = vmatprep.subr.bf16.mxu1 %v5721_v57 }
 0x153   : > { %1153 = vmatpush1.bf16.msra.mxu0 %v5727_v58  ;;  %1194 = vmatpush1.bf16.msra.mxu1 %v5729_v59 }
 0x154   : > { %1154 = vmatprep.subr.bf16.mxu0 %v5731_v60  ;;  %1195 = vmatprep.subr.bf16.mxu1 %v5733_v61 }
 0x157   : > { %1155 = vmatpush1.bf16.msra.mxu0 %v5739_v62  ;;  %1196 = vmatpush1.bf16.msra.mxu1 %v5741_v63 }
 0x158   : > { %1156 = vmatprep.subr.bf16.mxu0 %v5743_v0  ;;  %1197 = vmatprep.subr.bf16.mxu1 %v5745_v1 }
 0x15b   : > { %1157 = vmatpush1.bf16.msra.mxu0 %v5751_v2  ;;  %1198 = vmatpush1.bf16.msra.mxu1 %v5753_v4 }
 0x15c   : > { %1258 = vmatprep.subr.bf16.mxu0 %v5657_v34  ;;  %1299 = vmatprep.subr.bf16.mxu1 %v5659_v35 }
 0x15e   : > { %1175 = vmatmul.mubr.bf16.vlgmr.msra.gmra.mrb[8].mxu0 %v981_v6  ;;  %1216 = vmatmul.mubr.bf16.vlgmr.msra.gmra.mrb[8].mxu1 %v981_v6 }
 0x15f   : > { %1259 = vmatpush1.bf16.msra.mxu0 %v5663_v37  ;;  %1300 = vmatpush1.bf16.msra.mxu1 %v5665_v38 }
 0x160   : > { %1260 = vmatprep.subr.bf16.mxu0 %v5667_v39  ;;  %1301 = vmatprep.subr.bf16.mxu1 %v5671_v40 }
 0x161   : > { %1290 = vmatprep.mubr.bf16.mxu0 %v6701_v3  ;;  %1331 = vmatprep.mubr.bf16.mxu1 %v6701_v3 }
 0x163   : > { %1261 = vmatpush1.bf16.msra.mxu0 %v5673_v41  ;;  %1302 = vmatpush1.bf16.msra.mxu1 %v5675_v42 }
 0x164   : > { %1262 = vmatprep.subr.bf16.mxu0 %v5679_v43  ;;  %1303 = vmatprep.subr.bf16.mxu1 %v5683_v44 }
 0x167   : > { %1263 = vmatpush1.bf16.msra.mxu0 %v5685_v45  ;;  %1304 = vmatpush1.bf16.msra.mxu1 %v5693_v47 }
 0x168   : > { %1264 = vmatprep.subr.bf16.mxu0 %v5697_v48  ;;  %1305 = vmatprep.subr.bf16.mxu1 %v5699_v49 }
 0x16b   : > { %1265 = vmatpush1.bf16.msra.mxu0 %v5703_v50  ;;  %1306 = vmatpush1.bf16.msra.mxu1 %v5705_v51 }
 0x16c   : > { %1266 = vmatprep.subr.bf16.mxu0 %v5707_v52  ;;  %1307 = vmatprep.subr.bf16.mxu1 %v5711_v53 }
 0x16f   : > { %1267 = vmatpush1.bf16.msra.mxu0 %v5713_v54  ;;  %1308 = vmatpush1.bf16.msra.mxu1 %v5715_v55 }
 0x170   : > { %1268 = vmatprep.subr.bf16.mxu0 %v5719_v56  ;;  %1309 = vmatprep.subr.bf16.mxu1 %v5721_v57 }
 0x173   : > { %1269 = vmatpush1.bf16.msra.mxu0 %v5727_v58  ;;  %1310 = vmatpush1.bf16.msra.mxu1 %v5729_v59 }
 0x174   : > { %1270 = vmatprep.subr.bf16.mxu0 %v5731_v60  ;;  %1311 = vmatprep.subr.bf16.mxu1 %v5733_v61 }
 0x177   : > { %1271 = vmatpush1.bf16.msra.mxu0 %v5739_v62  ;;  %1312 = vmatpush1.bf16.msra.mxu1 %v5741_v63 }
 0x178   : > { %1272 = vmatprep.subr.bf16.mxu0 %v5743_v0  ;;  %1313 = vmatprep.subr.bf16.mxu1 %v5745_v1 }
 0x17b   : > { %1273 = vmatpush1.bf16.msra.mxu0 %v5751_v2  ;;  %1314 = vmatpush1.bf16.msra.mxu1 %v5753_v4 }
 0x17c   : > { %1375 = vmatprep.subr.bf16.mxu0 %v5657_v34  ;;  %1416 = vmatprep.subr.bf16.mxu1 %v5659_v35 }
 0x211   : > { %v889_v16 = vpop.f32.mrb[0].mxu0  ;;  %v942_v17 = vpop.f32.mrb[0].mxu1 }
 0x212   : > { %v891_v19 = vpop.f32.mrb[1].mxu0  ;;  %v944_v20 = vpop.f32.mrb[1].mxu1  ;;  %v890_v3 = vadd.f32 %v889_v16, %v666_v14 }
 0x213   : > { %v893_v22 = vpop.f32.mrb[2].mxu0  ;;  %v946_v23 = vpop.f32.mrb[2].mxu1  ;;  %v892_v12 = vadd.f32 %v891_v19, %v670_v21  ;;  %v945_v13 = vadd.f32 %v944_v20, %v678_v18 }
 0x214   : > { %v5812_v24 = vadd.f32 %v893_v22, %v666_v14  ;;  %v895_v25 = vpop.f32.mrb[3].mxu0  ;;  %v5814_v26 = vadd.f32 %v946_v23, %v674_v15  ;;  %v948_v27 = vpop.f32.mrb[3].mxu1 }
 0x215   : > { %v5816_v28 = vadd.f32 %v895_v25, %v670_v21  ;;  %v5818_v29 = vadd.f32 %v948_v27, %v678_v18 }
 0x219   : > { %v899_v30 = vpop.f32.mrb[4].mxu0  ;;  %v952_v31 = vpop.f32.mrb[4].mxu1 }
 0x21a   : > { %v5820_v32 = vadd.f32 %v899_v30, %v666_v14  ;;  %v901_v33 = vpop.f32.mrb[5].mxu0  ;;  %v5822_v36 = vadd.f32 %v952_v31, %v674_v15  ;;  %v954_v46 = vpop.f32.mrb[5].mxu1  ;;  %v943_v31 = vadd.f32 %v942_v17, %v674_v15 }
 0x21b   : > { %v5824_v5 = vadd.f32 %v901_v33, %v670_v21  ;;  %v903_v6 = vpop.f32.mrb[6].mxu0  ;;  %v5826_v7 = vadd.f32 %v954_v46, %v678_v18  ;;  %v956_v8 = vpop.f32.mrb[6].mxu1 }
 0x21c   : > { %6759 = vst [vmem:[#allocation37_spill] sm:$0xff] %v5820_v32  ;;  %6760 = vst [vmem:[#allocation38_spill] sm:$0xff] %v5822_v36  ;;  %v5828_v11 = vadd.f32 %v903_v6, %v666_v14  ;;  %v905_v22 = vpop.f32.mrb[7].mxu0  ;;  %v5830_v23 = vadd.f32 %v956_v8, %v674_v15  ;;  %v958_v25 = vpop.f32.mrb[7].mxu1 }
 0x21d   : > { %6761 = vst [vmem:[#allocation39_spill] sm:$0xff] %v5824_v5  ;;  %6762 = vst [vmem:[#allocation40_spill] sm:$0xff] %v5826_v7  ;;  %v5832_v27 = vadd.f32 %v905_v22, %v670_v21  ;;  %v5834_v30 = vadd.f32 %v958_v25, %v678_v18 }
 0x21e   : > { %6763 = vst [vmem:[#allocation41_spill] sm:$0xff] %v5828_v11  ;;  %6764 = vst [vmem:[#allocation42_spill] sm:$0xff] %v5830_v23 }
 0x21f   : > { %6765 = vst [vmem:[#allocation43_spill] sm:$0xff] %v5832_v27 }
 0x231   : > { %v1176_v33 = vpop.f32.mrb[8].mxu0  ;;  %v1217_v10 = vpop.f32.mrb[8].mxu1 }
 0x232   : > { %v1224_v9 = vadd.f32 %v1176_v33, %v890_v3  ;;  %v1226_v46 = vadd.f32 %v1217_v10, %v943_v31  ;;  %v1178_v7 = vpop.f32.mrb[9].mxu0  ;;  %v1219_v5 = vpop.f32.mrb[9].mxu1 }
 0x233   : > { %v1225_v6 = vadd.f32 %v1178_v7, %v892_v12  ;;  %v1227_v11 = vadd.f32 %v1219_v5, %v945_v13  ;;  %v1180_v36 = vpop.f32.mrb[10].mxu0  ;;  %v1221_v8 = vpop.f32.mrb[10].mxu1  ;;  %v657_v13 = vld [vmem:[#allocation5] sm:$0xff] }
 0x234   : > { %v4002_v23 = vmul.f32 -1.442695, %v1224_v9  ;;  %v1181_v32 = vpop.f32.mrb[11].mxu0  ;;  %v1222_v22 = vpop.f32.mrb[11].mxu1 }
 0x235   : > { %v4003_v27 = vmul.f32 -1.442695, %v1225_v6  ;;  %v4004_v14 = vmul.f32 -1.442695, %v1227_v11 }
 0x236   : > { %4653 = vpow2.f32 %v4002_v23  ;;  %v6766_v23 = vmov 0  }
 0x237   : > { %4655 = vpow2.f32 %v4003_v27 }
 0x238   : > { %4657 = vpow2.f32 %v4004_v14 }
 0x239   : > { %4659 = vtanh.f32 %v1226_v46 }
 0x240   : > { %v4654_v15 = vpop.eup %4653 }
 0x241   : > { %v4656_v16 = vpop.eup %4655  ;;  %v1231_v17 = vadd.f32 1.0, %v4654_v15 }
 0x242   : > { %v1237_v3 = vadd.f32 1.0, %v4656_v16  ;;  %v4658_v10 = vpop.eup %4657 }
 0x243   : > { %4661 = vrcp.f32 %v1231_v17  ;;  %v4660_v12 = vpop.eup %4659  ;;  %v1244_v20 = vadd.f32 1.0, %v4658_v10 }
 0x244   : > { %4663 = vrcp.f32 %v1237_v3 }
 0x245   : > { %4665 = vrcp.f32 %v1244_v20 }
 0x24d   : > { %v4662_v18 = vpop.eup %4661 }
 0x24e   : > { %v4664_v9 = vpop.eup %4663  ;;  %v1248_v19 = vmul.f32 %v4662_v18, %v4660_v12 }
 0x24f   : > { %v1247_v21 = vmul.f32 %v4664_v9, %v657_v13  ;;  %v4666_v36 = vpop.eup %4665 }
 0x251   : > { %v5836_v32 = vadd.f32 %v1248_v19, %v1247_v21 }
 0x253   : > { %4667 = vtanh.f32 %v5836_v32 }
 0x25d   : > { %v4668_v5 = vpop.eup %4667 }
 0x25e   : > { %v1251_v7 = vmul.f32 %v4668_v5, %v4666_v36 }
 0x260   : > { %v1252_v11 = vpack.c.bf16 %v1251_v7, %v1251_v7 }
 0x262   : > { %1253 = vst [vmem:[%s5648_s10] sm:$0xf] %v1252_v11  ;;  %1291 = vmatmul.mubr.bf16.vlgmr.msra.gmra.mrb[12].mxu0 %v1252_v11  ;;  %1332 = vmatmul.mubr.bf16.vlgmr.msra.gmra.mrb[12].mxu1 %v1252_v11 }
 0x263   : > { %1376 = vmatpush1.bf16.msra.mxu0 %v5663_v37  ;;  %1417 = vmatpush1.bf16.msra.mxu1 %v5665_v38 }
 0x264   : > { %1377 = vmatprep.subr.bf16.mxu0 %v5667_v39  ;;  %1418 = vmatprep.subr.bf16.mxu1 %v5671_v40 }
 0x265   : > { %1407 = vmatprep.mubr.bf16.mxu0 %v6766_v23  ;;  %1448 = vmatprep.mubr.bf16.mxu1 %v6766_v23 }
 0x267   : > { %1378 = vmatpush1.bf16.msra.mxu0 %v5673_v41  ;;  %1419 = vmatpush1.bf16.msra.mxu1 %v5675_v42 }
 0x268   : > { %1379 = vmatprep.subr.bf16.mxu0 %v5679_v43  ;;  %1420 = vmatprep.subr.bf16.mxu1 %v5683_v44 }
 0x26b   : > { %1380 = vmatpush1.bf16.msra.mxu0 %v5685_v45  ;;  %1421 = vmatpush1.bf16.msra.mxu1 %v5693_v47 }
 0x26c   : > { %1381 = vmatprep.subr.bf16.mxu0 %v5697_v48  ;;  %1422 = vmatprep.subr.bf16.mxu1 %v5699_v49 }
 0x26f   : > { %1382 = vmatpush1.bf16.msra.mxu0 %v5703_v50  ;;  %1423 = vmatpush1.bf16.msra.mxu1 %v5705_v51 }
 0x270   : > { %1383 = vmatprep.subr.bf16.mxu0 %v5707_v52  ;;  %1424 = vmatprep.subr.bf16.mxu1 %v5711_v53 }
 0x273   : > { %1384 = vmatpush1.bf16.msra.mxu0 %v5713_v54  ;;  %1425 = vmatpush1.bf16.msra.mxu1 %v5715_v55 }
 0x274   : > { %1385 = vmatprep.subr.bf16.mxu0 %v5719_v56  ;;  %1426 = vmatprep.subr.bf16.mxu1 %v5721_v57 }
 0x277   : > { %1386 = vmatpush1.bf16.msra.mxu0 %v5727_v58  ;;  %1427 = vmatpush1.bf16.msra.mxu1 %v5729_v59 }
 0x278   : > { %1387 = vmatprep.subr.bf16.mxu0 %v5731_v60  ;;  %1428 = vmatprep.subr.bf16.mxu1 %v5733_v61 }
 0x27b   : > { %1388 = vmatpush1.bf16.msra.mxu0 %v5739_v62  ;;  %1429 = vmatpush1.bf16.msra.mxu1 %v5741_v63 }
 0x27c   : > { %1389 = vmatprep.subr.bf16.mxu0 %v5743_v0  ;;  %1430 = vmatprep.subr.bf16.mxu1 %v5745_v1 }
 0x27f   : > { %1390 = vmatpush1.bf16.msra.mxu0 %v5751_v2  ;;  %1431 = vmatpush1.bf16.msra.mxu1 %v5753_v4 }
 0x280   : > { %1492 = vmatprep.subr.bf16.mxu0 %v5657_v34  ;;  %1533 = vmatprep.subr.bf16.mxu1 %v5659_v35 }
 0x335   : > { %v1292_v25 = vpop.f32.mrb[12].mxu0  ;;  %v1333_v27 = vpop.f32.mrb[12].mxu1 }
 0x336   : > { %v1340_v31 = vadd.f32 %v1292_v25, %v5812_v24  ;;  %v1342_v33 = vadd.f32 %v1333_v27, %v5814_v26  ;;  %v1294_v46 = vpop.f32.mrb[13].mxu0  ;;  %v1335_v6 = vpop.f32.mrb[13].mxu1 }
 0x337   : > { %v1341_v8 = vadd.f32 %v1294_v46, %v5816_v28  ;;  %v1343_v22 = vadd.f32 %v1335_v6, %v5818_v29  ;;  %v1296_v14 = vpop.f32.mrb[14].mxu0  ;;  %v1337_v15 = vpop.f32.mrb[14].mxu1  ;;  %v4457_v6 = vld [vmem:[#allocation14] ss:$16 sps:$4 sm:$0xff]  }
 0x338   : > { %v4005_v16 = vmul.f32 -1.442695, %v1340_v31  ;;  %v1297_v17 = vpop.f32.mrb[15].mxu0  ;;  %v1338_v3 = vpop.f32.mrb[15].mxu1  ;;  %v4465_v14 = vld [vmem:[#allocation14 + $0x24] ss:$16 sps:$4 sm:$0xff]  }
 0x339   : > { %v4006_v34 = vmul.f32 -1.442695, %v1341_v8  ;;  %v4007_v35 = vmul.f32 -1.442695, %v1343_v22  ;;  %v4460_v8 = vld [vmem:[#allocation14 + $0x8] ss:$16 sps:$4 sm:$0xff]  }
 0x33a   : > { %4669 = vpow2.f32 %v4005_v16  ;;  %v4468_v15 = vld [vmem:[#allocation14 + $0x2c] ss:$16 sps:$4 sm:$0xff]   ;;  %v4463_v16 = vld [vmem:[#allocation14 + $0x20] ss:$16 sps:$4 sm:$0xff]   ;;  %v4466_v17 = vld [vmem:[#allocation14 + $0x28] ss:$16 sps:$4 sm:$0xff]  }
 0x33b   : > { %4671 = vpow2.f32 %v4006_v34  ;;  %v4471_v3 = vld [vmem:[#allocation14 + $0x44] ss:$16 sps:$4 sm:$0xff]   ;;  %v4474_v34 = vld [vmem:[#allocation14 + $0x4c] ss:$16 sps:$4 sm:$0xff]  }
 0x33c   : > { %4673 = vpow2.f32 %v4007_v35  ;;  %v4469_v35 = vld [vmem:[#allocation14 + $0x40] ss:$16 sps:$4 sm:$0xff]  }
 0x33d   : > { %4675 = vtanh.f32 %v1342_v33 }
 0x344   : > { %v4670_v10 = vpop.eup %4669 }
 0x345   : > { %v4672_v12 = vpop.eup %4671  ;;  %v1347_v24 = vadd.f32 1.0, %v4670_v10  ;;  %v4472_v10 = vld [vmem:[#allocation14 + $0x48] ss:$16 sps:$4 sm:$0xff]  }
 0x346   : > { %v1353_v26 = vadd.f32 1.0, %v4672_v12  ;;  %v4674_v28 = vpop.eup %4673  ;;  %v4477_v12 = vld [vmem:[#allocation14 + $0x64] ss:$16 sps:$4 sm:$0xff]  }
 0x347   : > { %4677 = vrcp.f32 %v1347_v24  ;;  %v4676_v29 = vpop.eup %4675  ;;  %v1360_v19 = vadd.f32 1.0, %v4674_v28  ;;  %v4480_v24 = vld [vmem:[#allocation14 + $0x6c] ss:$16 sps:$4 sm:$0xff]   ;;  %v4478_v28 = vld [vmem:[#allocation14 + $0x68] ss:$16 sps:$4 sm:$0xff]  }
 0x348   : > { %4679 = vrcp.f32 %v1353_v26  ;;  %v4475_v26 = vld [vmem:[#allocation14 + $0x60] ss:$16 sps:$4 sm:$0xff]  }
 0x349   : > { %4681 = vrcp.f32 %v1360_v19  ;;  %v4489_v19 = vld [vmem:[#allocation14 + $0xa4] ss:$16 sps:$4 sm:$0xff]  }
 0x351   : > { %v4678_v13 = vpop.eup %4677 }
 0x352   : > { %v4680_v18 = vpop.eup %4679  ;;  %v1364_v9 = vmul.f32 %v4678_v13, %v4676_v29  ;;  %v4483_v29 = vld [vmem:[#allocation14 + $0x84] ss:$16 sps:$4 sm:$0xff]   ;;  %v4486_v13 = vld [vmem:[#allocation14 + $0x8c] ss:$16 sps:$4 sm:$0xff]  }
 0x353   : > { %v1363_v20 = vmul.f32 %v4680_v18, %v5836_v32  ;;  %v4682_v36 = vpop.eup %4681  ;;  %v4481_v18 = vld [vmem:[#allocation14 + $0x80] ss:$16 sps:$4 sm:$0xff]  }
 0x355   : > { %v5879_v21 = vadd.f32 %v1364_v9, %v1363_v20  ;;  %v4484_v9 = vld [vmem:[#allocation14 + $0x88] ss:$16 sps:$4 sm:$0xff]   ;;  %v4492_v20 = vld [vmem:[#allocation14 + $0xac] ss:$16 sps:$4 sm:$0xff]  }
 0x357   : > { %4683 = vtanh.f32 %v5879_v21 }
 0x361   : > { %v4684_v5 = vpop.eup %4683 }
 0x362   : > { %v1367_v7 = vmul.f32 %v4684_v5, %v4682_v36  ;;  %v4490_v36 = vld [vmem:[#allocation14 + $0xa8] ss:$16 sps:$4 sm:$0xff]   ;;  %v4495_v5 = vld [vmem:[#allocation14 + $0xc4] ss:$16 sps:$4 sm:$0xff]  }
 0x364   : > { %v1368_v11 = vpack.c.bf16 %v1367_v7, %v1367_v7  ;;  %v4498_v7 = vld [vmem:[#allocation14 + $0xcc] ss:$16 sps:$4 sm:$0xff]  }
 0x366   : > { %4008 = vst [vmem:[%s5648_s10 + $0x4] sm:$0xf] %v1368_v11  ;;  %1408 = vmatmul.mubr.bf16.vlgmr.msra.gmra.mrb[16].mxu0 %v1368_v11  ;;  %1449 = vmatmul.mubr.bf16.vlgmr.msra.gmra.mrb[16].mxu1 %v1368_v11  ;;  %v4493_v11 = vld [vmem:[#allocation14 + $0xc0] ss:$16 sps:$4 sm:$0xff]  }
 0x367   : > { %1493 = vmatpush1.bf16.msra.mxu0 %v5663_v37  ;;  %1534 = vmatpush1.bf16.msra.mxu1 %v5665_v38  ;;  %v4459_v37 = vld [vmem:[#allocation14 + $0x4] ss:$16 sps:$4 sm:$0xff]   ;;  %v4462_v38 = vld [vmem:[#allocation14 + $0xc] ss:$16 sps:$4 sm:$0xff]  }
 0x368   : > { %1494 = vmatprep.subr.bf16.mxu0 %v5667_v39  ;;  %1535 = vmatprep.subr.bf16.mxu1 %v5671_v40 }
 0x369   : > { %1524 = vmatprep.mubr.bf16.mxu0 %v6766_v23  ;;  %1565 = vmatprep.mubr.bf16.mxu1 %v6766_v23 }
 0x36b   : > { %1495 = vmatpush1.bf16.msra.mxu0 %v5673_v41  ;;  %1536 = vmatpush1.bf16.msra.mxu1 %v5675_v42  ;;  %v6767_v41 = vld [vmem:[#allocation37_spill] sm:$0xff] }
 0x36c   : > { %1496 = vmatprep.subr.bf16.mxu0 %v5679_v43  ;;  %1537 = vmatprep.subr.bf16.mxu1 %v5683_v44  ;;  %v6768_v43 = vld [vmem:[#allocation38_spill] sm:$0xff] }
 0x36f   : > { %1497 = vmatpush1.bf16.msra.mxu0 %v5685_v45  ;;  %1538 = vmatpush1.bf16.msra.mxu1 %v5693_v47 }
 0x370   : > { %1498 = vmatprep.subr.bf16.mxu0 %v5697_v48  ;;  %1539 = vmatprep.subr.bf16.mxu1 %v5699_v49  ;;  %v6769_v48 = vld [vmem:[#allocation39_spill] sm:$0xff] }
 0x373   : > { %1499 = vmatpush1.bf16.msra.mxu0 %v5703_v50  ;;  %1540 = vmatpush1.bf16.msra.mxu1 %v5705_v51  ;;  %v6770_v50 = vld [vmem:[#allocation40_spill] sm:$0xff] }
 0x374   : > { %1500 = vmatprep.subr.bf16.mxu0 %v5707_v52  ;;  %1541 = vmatprep.subr.bf16.mxu1 %v5711_v53 }
 0x377   : > { %1501 = vmatpush1.bf16.msra.mxu0 %v5713_v54  ;;  %1542 = vmatpush1.bf16.msra.mxu1 %v5715_v55 }
 0x378   : > { %1502 = vmatprep.subr.bf16.mxu0 %v5719_v56  ;;  %1543 = vmatprep.subr.bf16.mxu1 %v5721_v57 }
 0x37b   : > { %1503 = vmatpush1.bf16.msra.mxu0 %v5727_v58  ;;  %1544 = vmatpush1.bf16.msra.mxu1 %v5729_v59 }
 0x37c   : > { %1504 = vmatprep.subr.bf16.mxu0 %v5731_v60  ;;  %1545 = vmatprep.subr.bf16.mxu1 %v5733_v61 }
 0x37f   : > { %1505 = vmatpush1.bf16.msra.mxu0 %v5739_v62  ;;  %1546 = vmatpush1.bf16.msra.mxu1 %v5741_v63 }
 0x380   : > { %1506 = vmatprep.subr.bf16.mxu0 %v5743_v0  ;;  %1547 = vmatprep.subr.bf16.mxu1 %v5745_v1 }
 0x383   : > { %1507 = vmatpush1.bf16.msra.mxu0 %v5751_v2  ;;  %1548 = vmatpush1.bf16.msra.mxu1 %v5753_v4 }
 0x384   : > { %1871 = vmatprep.subr.bf16.mxu0 %v4459_v37  ;;  %1924 = vmatprep.subr.bf16.mxu1 %v4462_v38  ;;  %v4496_v37 = vld [vmem:[#allocation14 + $0xc8] ss:$16 sps:$4 sm:$0xff]   ;;  %v4501_v38 = vld [vmem:[#allocation14 + $0xe4] ss:$16 sps:$4 sm:$0xff]  }
 0x439   : > { %v1409_v39 = vpop.f32.mrb[16].mxu0  ;;  %v1450_v40 = vpop.f32.mrb[16].mxu1 }
 0x43a   : > { %v1457_v42 = vadd.f32 %v1409_v39, %v6767_v41  ;;  %v1459_v44 = vadd.f32 %v1450_v40, %v6768_v43  ;;  %v1411_v45 = vpop.f32.mrb[17].mxu0  ;;  %v1452_v47 = vpop.f32.mrb[17].mxu1  ;;  %v4504_v39 = vld [vmem:[#allocation14 + $0xec] ss:$16 sps:$4 sm:$0xff]   ;;  %v4499_v40 = vld [vmem:[#allocation14 + $0xe0] ss:$16 sps:$4 sm:$0xff]  }
 0x43b   : > { %v1458_v49 = vadd.f32 %v1411_v45, %v6769_v48  ;;  %v1460_v51 = vadd.f32 %v1452_v47, %v6770_v50  ;;  %v1413_v52 = vpop.f32.mrb[18].mxu0  ;;  %v1454_v53 = vpop.f32.mrb[18].mxu1  ;;  %v4502_v41 = vld [vmem:[#allocation14 + $0xe8] ss:$16 sps:$4 sm:$0xff]   ;;  %v5929_v43 = vld [vmem:[#allocation18 + $0x4] ss:$16 sps:$4 sm:$0xff]  }
 0x43c   : > { %v4009_v54 = vmul.f32 -1.442695, %v1457_v42  ;;  %v1414_v55 = vpop.f32.mrb[19].mxu0  ;;  %v1455_v56 = vpop.f32.mrb[19].mxu1  ;;  %v4505_v42 = vld [vmem:[%s5648_s10] sm:$0xff]  }
 0x43d   : > { %v4010_v57 = vmul.f32 -1.442695, %v1458_v49  ;;  %v4011_v58 = vmul.f32 -1.442695, %v1460_v51  ;;  %v5933_v45 = vld [vmem:[#allocation18] ss:$16 sps:$4 sm:$0xff]  }
 0x43e   : > { %4685 = vpow2.f32 %v4009_v54  ;;  %v5935_v47 = vld [vmem:[#allocation18 + $0x8] ss:$16 sps:$4 sm:$0xff]   ;;  %v5941_v48 = vld [vmem:[#allocation18 + $0x24] ss:$16 sps:$4 sm:$0xff]   ;;  %v5943_v49 = vld [vmem:[#allocation18 + $0x2c] ss:$16 sps:$4 sm:$0xff]  }
 0x43f   : > { %4687 = vpow2.f32 %v4010_v57  ;;  %v5945_v50 = vld [vmem:[#allocation18 + $0x20] ss:$16 sps:$4 sm:$0xff]   ;;  %v5947_v51 = vld [vmem:[#allocation18 + $0x28] ss:$16 sps:$4 sm:$0xff]   ;;  %v5953_v52 = vld [vmem:[#allocation18 + $0x44] ss:$16 sps:$4 sm:$0xff]  }
 0x440   : > { %4689 = vpow2.f32 %v4011_v58  ;;  %v5955_v53 = vld [vmem:[#allocation18 + $0x4c] ss:$16 sps:$4 sm:$0xff]   ;;  %v5957_v54 = vld [vmem:[#allocation18 + $0x40] ss:$16 sps:$4 sm:$0xff]   ;;  %v5959_v55 = vld [vmem:[#allocation18 + $0x48] ss:$16 sps:$4 sm:$0xff]  }
 0x441   : > { %4691 = vtanh.f32 %v1459_v44  ;;  %v5931_v44 = vld [vmem:[#allocation18 + $0xc] ss:$16 sps:$4 sm:$0xff]   ;;  %v5965_v56 = vld [vmem:[#allocation18 + $0x64] ss:$16 sps:$4 sm:$0xff]   ;;  %v5969_v58 = vld [vmem:[#allocation18 + $0x60] ss:$16 sps:$4 sm:$0xff]  }
 0x442   : > { %v5967_v57 = vld [vmem:[#allocation18 + $0x6c] ss:$16 sps:$4 sm:$0xff]  }
 0x448   : > { %v4686_v59 = vpop.eup %4685 }
 0x449   : > { %v4688_v60 = vpop.eup %4687  ;;  %v1464_v61 = vadd.f32 1.0, %v4686_v59  ;;  %v5971_v59 = vld [vmem:[#allocation18 + $0x68] ss:$16 sps:$4 sm:$0xff]  }
 0x44a   : > { %v1470_v62 = vadd.f32 1.0, %v4688_v60  ;;  %v4690_v63 = vpop.eup %4689  ;;  %v5977_v60 = vld [vmem:[#allocation18 + $0x84] ss:$16 sps:$4 sm:$0xff]  }
 0x44b   : > { %4693 = vrcp.f32 %v1464_v61  ;;  %v4692_v0 = vpop.eup %4691  ;;  %v1477_v32 = vadd.f32 1.0, %v4690_v63  ;;  %v5979_v61 = vld [vmem:[#allocation18 + $0x8c] ss:$16 sps:$4 sm:$0xff]   ;;  %v5983_v63 = vld [vmem:[#allocation18 + $0x88] ss:$16 sps:$4 sm:$0xff]  }
 0x44c   : > { %4695 = vrcp.f32 %v1470_v62  ;;  %v5981_v62 = vld [vmem:[#allocation18 + $0x80] ss:$16 sps:$4 sm:$0xff]  }
 0x44d   : > { %4697 = vrcp.f32 %v1477_v32  ;;  %v6001_v32 = vld [vmem:[#allocation18 + $0xc4] ss:$16 sps:$4 sm:$0xff]  }
 0x455   : > { %v4694_v1 = vpop.eup %4693 }
 0x456   : > { %v4696_v2 = vpop.eup %4695  ;;  %v1481_v4 = vmul.f32 %v4694_v1, %v4692_v0  ;;  %v5985_v0 = vld [vmem:[#allocation18 + $0xa4] ss:$16 sps:$4 sm:$0xff]   ;;  %v5987_v1 = vld [vmem:[#allocation18 + $0xac] ss:$16 sps:$4 sm:$0xff]  }
 0x457   : > { %v1480_v25 = vmul.f32 %v4696_v2, %v5879_v21  ;;  %v4698_v31 = vpop.eup %4697  ;;  %v4487_v21 = vld [vmem:[#allocation14 + $0xa0] ss:$16 sps:$4 sm:$0xff]  }
 0x458   : > { %v5993_v2 = vld [vmem:[#allocation18 + $0xa0] ss:$16 sps:$4 sm:$0xff]  }
 0x459   : > { %v5920_v27 = vadd.f32 %v1481_v4, %v1480_v25  ;;  %v5995_v4 = vld [vmem:[#allocation18 + $0xa8] ss:$16 sps:$4 sm:$0xff]   ;;  %v6003_v25 = vld [vmem:[#allocation18 + $0xcc] ss:$16 sps:$4 sm:$0xff]  }
 0x45b   : > { %4699 = vtanh.f32 %v5920_v27 }
 0x465   : > { %v4700_v33 = vpop.eup %4699 }
 0x466   : > { %v1484_v46 = vmul.f32 %v4700_v33, %v4698_v31  ;;  %v6005_v31 = vld [vmem:[#allocation18 + $0xc0] ss:$16 sps:$4 sm:$0xff]   ;;  %v6007_v33 = vld [vmem:[#allocation18 + $0xc8] ss:$16 sps:$4 sm:$0xff]  }
 0x468   : > { %v1485_v22 = vpack.c.bf16 %v1484_v46, %v1484_v46  ;;  %v6009_v46 = vld [vmem:[#allocation18 + $0xe4] ss:$16 sps:$4 sm:$0xff]  }
 0x46a   : > { %4012 = vst [vmem:[%s5648_s10 + $0x8] sm:$0xf] %v1485_v22  ;;  %1525 = vmatmul.mubr.bf16.vlgmr.msra.gmra.mrb[20].mxu0 %v1485_v22  ;;  %1566 = vmatmul.mubr.bf16.vlgmr.msra.gmra.mrb[20].mxu1 %v1485_v22  ;;  %v6019_v22 = vld [vmem:[#allocation18 + $0xe8] ss:$16 sps:$4 sm:$0xff]  }
 0x46b   : > { %1872 = vmatpush1.bf16.msra.mxu0 %v4457_v6  ;;  %1925 = vmatpush1.bf16.msra.mxu1 %v4460_v8  ;;  %v6013_v6 = vld [vmem:[#allocation18 + $0xec] ss:$16 sps:$4 sm:$0xff]   ;;  %v6017_v8 = vld [vmem:[#allocation18 + $0xe0] ss:$16 sps:$4 sm:$0xff]  }
 0x46c   : > { %1873 = vmatprep.subr.bf16.mxu0 %v4465_v14  ;;  %1926 = vmatprep.subr.bf16.mxu1 %v4468_v15 }
 0x46d   : > { %1903 = vmatprep.mubr.bf16.mxu0 %v6766_v23  ;;  %1956 = vmatprep.mubr.bf16.mxu1 %v6766_v23 }
 0x46f   : > { %1874 = vmatpush1.bf16.msra.mxu0 %v4463_v16  ;;  %1927 = vmatpush1.bf16.msra.mxu1 %v4466_v17  ;;  %v6771_v16 = vld [vmem:[#allocation41_spill] sm:$0xff] }
 0x470   : > { %1875 = vmatprep.subr.bf16.mxu0 %v4471_v3  ;;  %1928 = vmatprep.subr.bf16.mxu1 %v4474_v34  ;;  %v6772_v3 = vld [vmem:[#allocation42_spill] sm:$0xff] }
 0x473   : > { %1876 = vmatpush1.bf16.msra.mxu0 %v4469_v35  ;;  %1929 = vmatpush1.bf16.msra.mxu1 %v4472_v10 }
 0x474   : > { %1877 = vmatprep.subr.bf16.mxu0 %v4477_v12  ;;  %1930 = vmatprep.subr.bf16.mxu1 %v4480_v24  ;;  %v6773_v12 = vld [vmem:[#allocation43_spill] sm:$0xff] }
 0x477   : > { %1878 = vmatpush1.bf16.msra.mxu0 %v4475_v26  ;;  %1931 = vmatpush1.bf16.msra.mxu1 %v4478_v28 }
 0x478   : > { %1879 = vmatprep.subr.bf16.mxu0 %v4483_v29  ;;  %1932 = vmatprep.subr.bf16.mxu1 %v4486_v13 }
 0x47b   : > { %1880 = vmatpush1.bf16.msra.mxu0 %v4481_v18  ;;  %1933 = vmatpush1.bf16.msra.mxu1 %v4484_v9 }
 0x47c   : > { %1881 = vmatprep.subr.bf16.mxu0 %v4489_v19  ;;  %1934 = vmatprep.subr.bf16.mxu1 %v4492_v20 }
 0x47f   : > { %1882 = vmatpush1.bf16.msra.mxu0 %v4487_v21  ;;  %1935 = vmatpush1.bf16.msra.mxu1 %v4490_v36 }
 0x480   : > { %1883 = vmatprep.subr.bf16.mxu0 %v4495_v5  ;;  %1936 = vmatprep.subr.bf16.mxu1 %v4498_v7 }
 0x483   : > { %1884 = vmatpush1.bf16.msra.mxu0 %v4493_v11  ;;  %1937 = vmatpush1.bf16.msra.mxu1 %v4496_v37 }
 0x484   : > { %1885 = vmatprep.subr.bf16.mxu0 %v4501_v38  ;;  %1938 = vmatprep.subr.bf16.mxu1 %v4504_v39 }
 0x487   : > { %1886 = vmatpush1.bf16.msra.mxu0 %v4499_v40  ;;  %1939 = vmatpush1.bf16.msra.mxu1 %v4502_v41 }
 0x488   : > { %2158 = vmatprep.subr.bf16.mxu0 %v5929_v43  ;;  %2199 = vmatprep.subr.bf16.mxu1 %v5931_v44 }
 0x48a   : > { %1904 = vmatmul.mubr.bf16.vlgmr.msra.gmra.mrb[24].mxu0 %v4505_v42  ;;  %1957 = vmatmul.mubr.bf16.vlgmr.msra.gmra.mrb[24].mxu1 %v4505_v42 }
 0x48b   : > { %1913 = vmatprep.mubr.bf16.mxu0 %v6766_v23  ;;  %1966 = vmatprep.mubr.bf16.mxu1 %v6766_v23 }
 0x48c   : > { %2159 = vmatpush1.bf16.msra.mxu0 %v5933_v45  ;;  %2200 = vmatpush1.bf16.msra.mxu1 %v5935_v47 }
 0x48d   : > { %2160 = vmatprep.subr.bf16.mxu0 %v5941_v48  ;;  %2201 = vmatprep.subr.bf16.mxu1 %v5943_v49 }
 0x490   : > { %2161 = vmatpush1.bf16.msra.mxu0 %v5945_v50  ;;  %2202 = vmatpush1.bf16.msra.mxu1 %v5947_v51 }
 0x491   : > { %2162 = vmatprep.subr.bf16.mxu0 %v5953_v52  ;;  %2203 = vmatprep.subr.bf16.mxu1 %v5955_v53 }
 0x494   : > { %2163 = vmatpush1.bf16.msra.mxu0 %v5957_v54  ;;  %2204 = vmatpush1.bf16.msra.mxu1 %v5959_v55 }
 0x495   : > { %2164 = vmatprep.subr.bf16.mxu0 %v5965_v56  ;;  %2205 = vmatprep.subr.bf16.mxu1 %v5967_v57 }
 0x498   : > { %2165 = vmatpush1.bf16.msra.mxu0 %v5969_v58  ;;  %2206 = vmatpush1.bf16.msra.mxu1 %v5971_v59 }
 0x499   : > { %2166 = vmatprep.subr.bf16.mxu0 %v5977_v60  ;;  %2207 = vmatprep.subr.bf16.mxu1 %v5979_v61 }
 0x49c   : > { %2167 = vmatpush1.bf16.msra.mxu0 %v5981_v62  ;;  %2208 = vmatpush1.bf16.msra.mxu1 %v5983_v63 }
 0x49d   : > { %2168 = vmatprep.subr.bf16.mxu0 %v5985_v0  ;;  %2209 = vmatprep.subr.bf16.mxu1 %v5987_v1 }
 0x4a0   : > { %2169 = vmatpush1.bf16.msra.mxu0 %v5993_v2  ;;  %2210 = vmatpush1.bf16.msra.mxu1 %v5995_v4 }
 0x4a1   : > { %2170 = vmatprep.subr.bf16.mxu0 %v6001_v32  ;;  %2211 = vmatprep.subr.bf16.mxu1 %v6003_v25 }
 0x4a4   : > { %2171 = vmatpush1.bf16.msra.mxu0 %v6005_v31  ;;  %2212 = vmatpush1.bf16.msra.mxu1 %v6007_v33 }
 0x4a5   : > { %2172 = vmatprep.subr.bf16.mxu0 %v6009_v46  ;;  %2213 = vmatprep.subr.bf16.mxu1 %v6013_v6 }
 0x4a8   : > { %2173 = vmatpush1.bf16.msra.mxu0 %v6017_v8  ;;  %2214 = vmatpush1.bf16.msra.mxu1 %v6019_v22 }
 0x4a9   : > { %2274 = vmatprep.subr.bf16.mxu0 %v5929_v43  ;;  %2315 = vmatprep.subr.bf16.mxu1 %v5931_v44 }
 0x53d   : > { %v1526_v14 = vpop.f32.mrb[20].mxu0  ;;  %v1567_v15 = vpop.f32.mrb[20].mxu1 }
 0x53e   : > { %v1574_v17 = vadd.f32 %v1526_v14, %v6771_v16  ;;  %v1576_v34 = vadd.f32 %v1567_v15, %v6772_v3  ;;  %v1528_v35 = vpop.f32.mrb[21].mxu0  ;;  %v1569_v10 = vpop.f32.mrb[21].mxu1 }
 0x53f   : > { %v1575_v24 = vadd.f32 %v1528_v35, %v6773_v12  ;;  %v1577_v26 = vadd.f32 %v1569_v10, %v5834_v30  ;;  %v1530_v28 = vpop.f32.mrb[22].mxu0  ;;  %v1571_v29 = vpop.f32.mrb[22].mxu1 }
 0x540   : > { %v4013_v13 = vmul.f32 -1.442695, %v1574_v17  ;;  %v1531_v18 = vpop.f32.mrb[23].mxu0  ;;  %v1572_v9 = vpop.f32.mrb[23].mxu1  ;;  %v1672_v29 = vld [vmem:[#allocation3] sm:$0xff] }
 0x541   : > { %v4014_v19 = vmul.f32 -1.442695, %v1575_v24  ;;  %v4015_v20 = vmul.f32 -1.442695, %v1577_v26  ;;  %v1671_v18 = vld [vmem:[%s6774_s12] sm:$0xf] }
 0x542   : > { %4701 = vpow2.f32 %v4013_v13  ;;  %v1997_v13 = vpack.c.bf16 %v1672_v29, %v1672_v29  ;;  %s6809_s12 = sld [smem:[#allocation54_spill]] }
 0x543   : > { %4703 = vpow2.f32 %v4014_v19 }
 0x544   : > { %4705 = vpow2.f32 %v4015_v20 }
 0x545   : > { %4707 = vtanh.f32 %v1576_v34 }
 0x548   : > { %s6531_s8 = scalar_lea.hbm %s6809_s12, %s6525_s7 }
 0x54c   : > { %v4702_v21 = vpop.eup %4701 }
 0x54d   : > { %v4704_v36 = vpop.eup %4703  ;;  %v1581_v5 = vadd.f32 1.0, %v4702_v21 }
 0x54e   : > { %v1587_v7 = vadd.f32 1.0, %v4704_v36  ;;  %v4706_v11 = vpop.eup %4705 }
 0x54f   : > { %4709 = vrcp.f32 %v1581_v5  ;;  %v4708_v37 = vpop.eup %4707  ;;  %v1594_v40 = vadd.f32 1.0, %v4706_v11 }
 0x550   : > { %4711 = vrcp.f32 %v1587_v7  ;;  %v6780_v7 = vld [vmem:[#allocation33_spill] sm:$0xff] }
 0x551   : > { %4713 = vrcp.f32 %v1594_v40  ;;  %v6102_v11 = vrot.slane %v1671_v18, %v6780_v7  ;;  %v6784_v40 = vld [vmem:[#allocation36_spill] sm:$0xff] }
 0x559   : > { %v4710_v30 = vpop.eup %4709 }
 0x55a   : > { %v4712_v38 = vpop.eup %4711  ;;  %v1598_v39 = vmul.f32 %v4710_v30, %v4708_v37  ;;  %v6781_v37 = vld [vmem:[#allocation34_spill] sm:$0xff] }
 0x55b   : > { %v1597_v41 = vmul.f32 %v4712_v38, %v5920_v27  ;;  %v4714_v10 = vpop.eup %4713  ;;  %v6105_v30 = vrot.slane %v1671_v18, %v6781_v37 }
 0x55d   : > { %v1599_v42 = vadd.f32 %v1598_v39, %v1597_v41  ;;  %v6032_v14 = vpop.f32.mrb[24].mxu0  ;;  %v6034_v15 = vpop.f32.mrb[24].mxu1  ;;  %v6112_v41 = vrot.slane %v1671_v18, %v6784_v40 }
 0x55e   : > { %v6036_v16 = vpop.f32.mrb[25].mxu0  ;;  %v6038_v17 = vpop.f32.mrb[25].mxu1 }
 0x55f   : > { %4715 = vtanh.f32 %v1599_v42  ;;  %1606 = vst [vmem:[#allocation5] sm:$0xff] %v1599_v42  ;;  %v6040_v3 = vpop.f32.mrb[26].mxu0  ;;  %v6042_v34 = vpop.f32.mrb[26].mxu1  ;;  %v6785_v42 = vld [vmem:[#allocation35_spill] sm:$0xff] }
 0x560   : > { %v6044_v35 = vpop.f32.mrb[27].mxu0  ;;  %v6046_v27 = vpop.f32.mrb[27].mxu1 }
 0x569   : > { %v4716_v12 = vpop.eup %4715 }
 0x56a   : > { %v1601_v24 = vmul.f32 %v4716_v12, %v4714_v10  ;;  %v6115_v10 = vrot.slane %v1671_v18, %v6785_v42  ;;  %v1906_v12 = vadd.f32 %v6032_v14, %v6102_v11 }
 0x56c   : > { %v1602_v26 = vpack.c.bf16 %v1601_v24, %v1601_v24  ;;  %1605 = vst [vmem:[#allocation2] sm:$0xff] %v1601_v24  ;;  %v1959_v24 = vadd.f32 %v6034_v15, %v6105_v30 }
 0x56e   : > { %4016 = vst [vmem:[%s5648_s10 + $0xc] sm:$0xf] %v1602_v26  ;;  %v1908_v26 = vadd.f32 %v6036_v16, %v6112_v41 }
 0x575   : > { %v4542_v28 = vld [vmem:[%s5648_s10 + $0x8] sm:$0xff]  }
 0x576   : > { %1914 = vmatmul.mubr.bf16.gmra.mrb[28].mxu0 %v4542_v28  ;;  %1967 = vmatmul.mubr.bf16.gmra.mrb[28].mxu1 %v4542_v28  ;;  %v1961_v28 = vadd.f32 %v6038_v17, %v6115_v10 }
 0x577   : > { %2190 = vmatprep.mubr.bf16.mxu0 %v6766_v23  ;;  %2231 = vmatprep.mubr.bf16.mxu1 %v6766_v23 }
 0x57e   : > { %2191 = vmatmul.mubr.bf16.vlgmr.msra.gmra.mrb[32].mxu0 %v1997_v13  ;;  %2232 = vmatmul.mubr.bf16.vlgmr.msra.gmra.mrb[32].mxu1 %v1997_v13 }
 0x57f   : > { %2275 = vmatpush1.bf16.msra.mxu0 %v5933_v45  ;;  %2316 = vmatpush1.bf16.msra.mxu1 %v5935_v47 }
 0x580   : > { %2276 = vmatprep.subr.bf16.mxu0 %v5941_v48  ;;  %2317 = vmatprep.subr.bf16.mxu1 %v5943_v49 }
 0x581   : > { %2306 = vmatprep.mubr.bf16.mxu0 %v6766_v23  ;;  %2347 = vmatprep.mubr.bf16.mxu1 %v6766_v23 }
 0x583   : > { %2277 = vmatpush1.bf16.msra.mxu0 %v5945_v50  ;;  %2318 = vmatpush1.bf16.msra.mxu1 %v5947_v51 }
 0x584   : > { %2278 = vmatprep.subr.bf16.mxu0 %v5953_v52  ;;  %2319 = vmatprep.subr.bf16.mxu1 %v5955_v53 }
 0x587   : > { %2279 = vmatpush1.bf16.msra.mxu0 %v5957_v54  ;;  %2320 = vmatpush1.bf16.msra.mxu1 %v5959_v55 }
 0x588   : > { %2280 = vmatprep.subr.bf16.mxu0 %v5965_v56  ;;  %2321 = vmatprep.subr.bf16.mxu1 %v5967_v57 }
 0x58b   : > { %2281 = vmatpush1.bf16.msra.mxu0 %v5969_v58  ;;  %2322 = vmatpush1.bf16.msra.mxu1 %v5971_v59 }
 0x58c   : > { %2282 = vmatprep.subr.bf16.mxu0 %v5977_v60  ;;  %2323 = vmatprep.subr.bf16.mxu1 %v5979_v61 }
 0x58f   : > { %2283 = vmatpush1.bf16.msra.mxu0 %v5981_v62  ;;  %2324 = vmatpush1.bf16.msra.mxu1 %v5983_v63 }
 0x590   : > { %2284 = vmatprep.subr.bf16.mxu0 %v5985_v0  ;;  %2325 = vmatprep.subr.bf16.mxu1 %v5987_v1 }
 0x593   : > { %2285 = vmatpush1.bf16.msra.mxu0 %v5993_v2  ;;  %2326 = vmatpush1.bf16.msra.mxu1 %v5995_v4 }
 0x594   : > { %2286 = vmatprep.subr.bf16.mxu0 %v6001_v32  ;;  %2327 = vmatprep.subr.bf16.mxu1 %v6003_v25 }
 0x597   : > { %2287 = vmatpush1.bf16.msra.mxu0 %v6005_v31  ;;  %2328 = vmatpush1.bf16.msra.mxu1 %v6007_v33 }
 0x598   : > { %2288 = vmatprep.subr.bf16.mxu0 %v6009_v46  ;;  %2329 = vmatprep.subr.bf16.mxu1 %v6013_v6 }
 0x59b   : > { %2289 = vmatpush1.bf16.msra.mxu0 %v6017_v8  ;;  %2330 = vmatpush1.bf16.msra.mxu1 %v6019_v22 }
 0x59c   : > { %2391 = vmatprep.subr.bf16.mxu0 %v5929_v43  ;;  %2432 = vmatprep.subr.bf16.mxu1 %v5931_v44 }
 0x649   : > { %v6089_v9 = vpop.f32.mrb[28].mxu0  ;;  %v6091_v19 = vpop.f32.mrb[28].mxu1 }
 0x64a   : > { %6775 = vst [vmem:[#allocation37_spill] sm:$0xff] %v6091_v19  ;;  %v6093_v20 = vpop.f32.mrb[29].mxu0  ;;  %v6095_v21 = vpop.f32.mrb[29].mxu1 }
 0x64b   : > { %6776 = vst [vmem:[#allocation38_spill] sm:$0xff] %v6093_v20  ;;  %6777 = vst [vmem:[#allocation39_spill] sm:$0xff] %v6095_v21  ;;  %v6097_v36 = vpop.f32.mrb[30].mxu0  ;;  %v6099_v5 = vpop.f32.mrb[30].mxu1 }
 0x64c   : > { %6778 = vst [vmem:[#allocation40_spill] sm:$0xff] %v6097_v36  ;;  %6779 = vst [vmem:[#allocation41_spill] sm:$0xff] %v6099_v5  ;;  %v6107_v38 = vpop.f32.mrb[31].mxu0  ;;  %v6109_v39 = vpop.f32.mrb[31].mxu1 }
 0x64d   : > { %6782 = vst [vmem:[#allocation42_spill] sm:$0xff] %v6107_v38  ;;  %6783 = vst [vmem:[#allocation43_spill] sm:$0xff] %v6109_v39 }
 0x651   : > { %v2192_v29 = vpop.f32.mrb[32].mxu0  ;;  %v2233_v13 = vpop.f32.mrb[32].mxu1 }
 0x652   : > { %v2240_v37 = vadd.f32 %v2192_v29, %v1906_v12  ;;  %v2242_v40 = vadd.f32 %v2233_v13, %v1959_v24  ;;  %v2194_v7 = vpop.f32.mrb[33].mxu0  ;;  %v2235_v39 = vpop.f32.mrb[33].mxu1  ;;  %v1963_v29 = vadd.f32 %v6042_v34, %v6105_v30  ;;  %v1912_v13 = vadd.f32 %v6044_v35, %v6112_v41 }
 0x653   : > { %v2241_v18 = vadd.f32 %v2194_v7, %v1908_v26  ;;  %v2243_v42 = vadd.f32 %v2235_v39, %v1961_v28  ;;  %v2196_v38 = vpop.f32.mrb[34].mxu0  ;;  %v2237_v5 = vpop.f32.mrb[34].mxu1  ;;  %v1910_v28 = vadd.f32 %v6040_v3, %v6102_v11 }
 0x654   : > { %v4083_v14 = vmul.f32 -1.442695, %v2240_v37  ;;  %v2197_v36 = vpop.f32.mrb[35].mxu0  ;;  %v2238_v21 = vpop.f32.mrb[35].mxu1  ;;  %v1673_v38 = vld [vmem:[#allocation6] sm:$0xff] }
 0x655   : > { %v4084_v15 = vmul.f32 -1.442695, %v2241_v18  ;;  %v4085_v16 = vmul.f32 -1.442695, %v2243_v42  ;;  %v1965_v18 = vadd.f32 %v6046_v27, %v6115_v10 }
 0x656   : > { %4717 = vpow2.f32 %v4083_v14 }
 0x657   : > { %4719 = vpow2.f32 %v4084_v15 }
 0x658   : > { %4721 = vpow2.f32 %v4085_v16 }
 0x659   : > { %4723 = vtanh.f32 %v2242_v40 }
 0x660   : > { %v4718_v20 = vpop.eup %4717 }
 0x661   : > { %v4720_v19 = vpop.eup %4719  ;;  %v2247_v17 = vadd.f32 1.0, %v4718_v20 }
 0x662   : > { %v2253_v12 = vadd.f32 1.0, %v4720_v19  ;;  %v4722_v7 = vpop.eup %4721 }
 0x663   : > { %4725 = vrcp.f32 %v2247_v17  ;;  %v4724_v39 = vpop.eup %4723  ;;  %v2260_v21 = vadd.f32 1.0, %v4722_v7 }
 0x664   : > { %4727 = vrcp.f32 %v2253_v12 }
 0x665   : > { %4729 = vrcp.f32 %v2260_v21 }
 0x66d   : > { %v4726_v5 = vpop.eup %4725 }
 0x66e   : > { %v4728_v37 = vpop.eup %4727  ;;  %v2264_v36 = vmul.f32 %v4726_v5, %v4724_v39 }
 0x66f   : > { %v2263_v24 = vmul.f32 %v4728_v37, %v1673_v38  ;;  %v4730_v20 = vpop.eup %4729 }
 0x671   : > { %v6125_v26 = vadd.f32 %v2264_v36, %v2263_v24 }
 0x673   : > { %4731 = vtanh.f32 %v6125_v26 }
 0x67d   : > { %v4732_v42 = vpop.eup %4731 }
 0x67e   : > { %v2267_v40 = vmul.f32 %v4732_v42, %v4730_v20 }
 0x680   : > { %v2268_v19 = vpack.c.bf16 %v2267_v40, %v2267_v40 }
 0x682   : > { %2269 = vst [vmem:[%s5650_s18] sm:$0xf] %v2268_v19  ;;  %2307 = vmatmul.mubr.bf16.vlgmr.msra.gmra.mrb[36].mxu0 %v2268_v19  ;;  %2348 = vmatmul.mubr.bf16.vlgmr.msra.gmra.mrb[36].mxu1 %v2268_v19 }
 0x683   : > { %2392 = vmatpush1.bf16.msra.mxu0 %v5933_v45  ;;  %2433 = vmatpush1.bf16.msra.mxu1 %v5935_v47 }
 0x684   : > { %2393 = vmatprep.subr.bf16.mxu0 %v5941_v48  ;;  %2434 = vmatprep.subr.bf16.mxu1 %v5943_v49 }
 0x685   : > { %2423 = vmatprep.mubr.bf16.mxu0 %v6766_v23  ;;  %2464 = vmatprep.mubr.bf16.mxu1 %v6766_v23 }
 0x687   : > { %2394 = vmatpush1.bf16.msra.mxu0 %v5945_v50  ;;  %2435 = vmatpush1.bf16.msra.mxu1 %v5947_v51 }
 0x688   : > { %2395 = vmatprep.subr.bf16.mxu0 %v5953_v52  ;;  %2436 = vmatprep.subr.bf16.mxu1 %v5955_v53 }
 0x68b   : > { %2396 = vmatpush1.bf16.msra.mxu0 %v5957_v54  ;;  %2437 = vmatpush1.bf16.msra.mxu1 %v5959_v55 }
 0x68c   : > { %2397 = vmatprep.subr.bf16.mxu0 %v5965_v56  ;;  %2438 = vmatprep.subr.bf16.mxu1 %v5967_v57 }
 0x68f   : > { %2398 = vmatpush1.bf16.msra.mxu0 %v5969_v58  ;;  %2439 = vmatpush1.bf16.msra.mxu1 %v5971_v59 }
 0x690   : > { %2399 = vmatprep.subr.bf16.mxu0 %v5977_v60  ;;  %2440 = vmatprep.subr.bf16.mxu1 %v5979_v61 }
 0x693   : > { %2400 = vmatpush1.bf16.msra.mxu0 %v5981_v62  ;;  %2441 = vmatpush1.bf16.msra.mxu1 %v5983_v63 }
 0x694   : > { %2401 = vmatprep.subr.bf16.mxu0 %v5985_v0  ;;  %2442 = vmatprep.subr.bf16.mxu1 %v5987_v1 }
 0x697   : > { %2402 = vmatpush1.bf16.msra.mxu0 %v5993_v2  ;;  %2443 = vmatpush1.bf16.msra.mxu1 %v5995_v4 }
 0x698   : > { %2403 = vmatprep.subr.bf16.mxu0 %v6001_v32  ;;  %2444 = vmatprep.subr.bf16.mxu1 %v6003_v25 }
 0x69b   : > { %2404 = vmatpush1.bf16.msra.mxu0 %v6005_v31  ;;  %2445 = vmatpush1.bf16.msra.mxu1 %v6007_v33 }
 0x69c   : > { %2405 = vmatprep.subr.bf16.mxu0 %v6009_v46  ;;  %2446 = vmatprep.subr.bf16.mxu1 %v6013_v6 }
 0x69f   : > { %2406 = vmatpush1.bf16.msra.mxu0 %v6017_v8  ;;  %2447 = vmatpush1.bf16.msra.mxu1 %v6019_v22 }
 0x6a0   : > { %2508 = vmatprep.subr.bf16.mxu0 %v5929_v43  ;;  %2549 = vmatprep.subr.bf16.mxu1 %v5931_v44 }
 0x755   : > { %v2308_v14 = vpop.f32.mrb[36].mxu0  ;;  %v2349_v15 = vpop.f32.mrb[36].mxu1 }
 0x756   : > { %v2356_v16 = vadd.f32 %v2308_v14, %v1910_v28  ;;  %v2358_v17 = vadd.f32 %v2349_v15, %v1963_v29  ;;  %v2310_v12 = vpop.f32.mrb[37].mxu0  ;;  %v2351_v43 = vpop.f32.mrb[37].mxu1 }
 0x757   : > { %v2357_v7 = vadd.f32 %v2310_v12, %v1912_v13  ;;  %v2359_v44 = vadd.f32 %v2351_v43, %v1965_v18  ;;  %v2312_v39 = vpop.f32.mrb[38].mxu0  ;;  %v2353_v38 = vpop.f32.mrb[38].mxu1 }
 0x758   : > { %v4086_v3 = vmul.f32 -1.442695, %v2356_v16  ;;  %v2313_v5 = vpop.f32.mrb[39].mxu0  ;;  %v2354_v37 = vpop.f32.mrb[39].mxu1 }
 0x759   : > { %v4087_v34 = vmul.f32 -1.442695, %v2357_v7  ;;  %v4088_v35 = vmul.f32 -1.442695, %v2359_v44  ;;  %v4555_v5 = vld [vmem:[#allocation15] ss:$16 sps:$4 sm:$0xff]  }
 0x75a   : > { %4733 = vpow2.f32 %v4086_v3  ;;  %v4558_v37 = vld [vmem:[#allocation15 + $0x8] ss:$16 sps:$4 sm:$0xff]  }
 0x75b   : > { %4735 = vpow2.f32 %v4087_v34 }
 0x75c   : > { %4737 = vpow2.f32 %v4088_v35  ;;  %v4563_v35 = vld [vmem:[#allocation15 + $0x24] ss:$16 sps:$4 sm:$0xff]  }
 0x75d   : > { %4739 = vtanh.f32 %v2358_v17 }
 0x764   : > { %v4734_v36 = vpop.eup %4733 }
 0x765   : > { %v4736_v21 = vpop.eup %4735  ;;  %v2363_v27 = vadd.f32 1.0, %v4734_v36  ;;  %v4566_v36 = vld [vmem:[#allocation15 + $0x2c] ss:$16 sps:$4 sm:$0xff]  }
 0x766   : > { %v2369_v24 = vadd.f32 1.0, %v4736_v21  ;;  %v4738_v20 = vpop.eup %4737  ;;  %v4561_v21 = vld [vmem:[#allocation15 + $0x20] ss:$16 sps:$4 sm:$0xff]  }
 0x767   : > { %4741 = vrcp.f32 %v2363_v27  ;;  %v4740_v42 = vpop.eup %4739  ;;  %v2376_v29 = vadd.f32 1.0, %v4738_v20  ;;  %v4564_v27 = vld [vmem:[#allocation15 + $0x28] ss:$16 sps:$4 sm:$0xff]   ;;  %v4572_v20 = vld [vmem:[#allocation15 + $0x4c] ss:$16 sps:$4 sm:$0xff]  }
 0x768   : > { %4743 = vrcp.f32 %v2369_v24  ;;  %v4569_v24 = vld [vmem:[#allocation15 + $0x44] ss:$16 sps:$4 sm:$0xff]  }
 0x769   : > { %4745 = vrcp.f32 %v2376_v29  ;;  %v4573_v29 = vld [vmem:[#allocation15 + $0x60] ss:$16 sps:$4 sm:$0xff]  }
 0x771   : > { %v4742_v40 = vpop.eup %4741 }
 0x772   : > { %v4744_v19 = vpop.eup %4743  ;;  %v2380_v28 = vmul.f32 %v4742_v40, %v4740_v42  ;;  %v4567_v42 = vld [vmem:[#allocation15 + $0x40] ss:$16 sps:$4 sm:$0xff]   ;;  %v4570_v40 = vld [vmem:[#allocation15 + $0x48] ss:$16 sps:$4 sm:$0xff]  }
 0x773   : > { %v2379_v13 = vmul.f32 %v4744_v19, %v6125_v26  ;;  %v4746_v14 = vpop.eup %4745  ;;  %v4575_v19 = vld [vmem:[#allocation15 + $0x64] ss:$16 sps:$4 sm:$0xff]  }
 0x775   : > { %v6172_v18 = vadd.f32 %v2380_v28, %v2379_v13  ;;  %v4578_v28 = vld [vmem:[#allocation15 + $0x6c] ss:$16 sps:$4 sm:$0xff]   ;;  %v4576_v13 = vld [vmem:[#allocation15 + $0x68] ss:$16 sps:$4 sm:$0xff]  }
 0x777   : > { %4747 = vtanh.f32 %v6172_v18 }
 0x781   : > { %v4748_v15 = vpop.eup %4747 }
 0x782   : > { %v2383_v16 = vmul.f32 %v4748_v15, %v4746_v14  ;;  %v4584_v14 = vld [vmem:[#allocation15 + $0x8c] ss:$16 sps:$4 sm:$0xff]   ;;  %v4579_v15 = vld [vmem:[#allocation15 + $0x80] ss:$16 sps:$4 sm:$0xff]  }
 0x784   : > { %v2384_v17 = vpack.c.bf16 %v2383_v16, %v2383_v16  ;;  %v4582_v16 = vld [vmem:[#allocation15 + $0x88] ss:$16 sps:$4 sm:$0xff]  }
 0x786   : > { %4089 = vst [vmem:[%s5650_s18 + $0x4] sm:$0xf] %v2384_v17  ;;  %2424 = vmatmul.mubr.bf16.vlgmr.msra.gmra.mrb[40].mxu0 %v2384_v17  ;;  %2465 = vmatmul.mubr.bf16.vlgmr.msra.gmra.mrb[40].mxu1 %v2384_v17  ;;  %v4587_v17 = vld [vmem:[#allocation15 + $0xa4] ss:$16 sps:$4 sm:$0xff]  }
 0x787   : > { %2509 = vmatpush1.bf16.msra.mxu0 %v5933_v45  ;;  %2550 = vmatpush1.bf16.msra.mxu1 %v5935_v47  ;;  %v4557_v45 = vld [vmem:[#allocation15 + $0x4] ss:$16 sps:$4 sm:$0xff]   ;;  %v4560_v47 = vld [vmem:[#allocation15 + $0xc] ss:$16 sps:$4 sm:$0xff]  }
 0x788   : > { %2510 = vmatprep.subr.bf16.mxu0 %v5941_v48  ;;  %2551 = vmatprep.subr.bf16.mxu1 %v5943_v49  ;;  %v1916_v48 = vadd.f32 %v6089_v9, %v6102_v11  ;;  %v6786_v49 = vld [vmem:[#allocation37_spill] sm:$0xff] }
 0x789   : > { %2540 = vmatprep.mubr.bf16.mxu0 %v6766_v23  ;;  %2581 = vmatprep.mubr.bf16.mxu1 %v6766_v23 }
 0x78b   : > { %2511 = vmatpush1.bf16.msra.mxu0 %v5945_v50  ;;  %2552 = vmatpush1.bf16.msra.mxu1 %v5947_v51  ;;  %v1969_v50 = vadd.f32 %v6786_v49, %v6105_v30  ;;  %v6787_v51 = vld [vmem:[#allocation38_spill] sm:$0xff]  ;;  %v4593_v49 = vld [vmem:[#allocation15 + $0xc4] ss:$16 sps:$4 sm:$0xff]  }
 0x78c   : > { %2512 = vmatprep.subr.bf16.mxu0 %v5953_v52  ;;  %2553 = vmatprep.subr.bf16.mxu1 %v5955_v53  ;;  %v1918_v52 = vadd.f32 %v6787_v51, %v6112_v41  ;;  %v6788_v53 = vld [vmem:[#allocation39_spill] sm:$0xff] }
 0x78d   : > { %v4591_v51 = vld [vmem:[#allocation15 + $0xc0] ss:$16 sps:$4 sm:$0xff]  }
 0x78f   : > { %2513 = vmatpush1.bf16.msra.mxu0 %v5957_v54  ;;  %2554 = vmatpush1.bf16.msra.mxu1 %v5959_v55  ;;  %v1971_v54 = vadd.f32 %v6788_v53, %v6115_v10  ;;  %v4599_v53 = vld [vmem:[#allocation15 + $0xe4] ss:$16 sps:$4 sm:$0xff]  }
 0x790   : > { %2514 = vmatprep.subr.bf16.mxu0 %v5965_v56  ;;  %2555 = vmatprep.subr.bf16.mxu1 %v5967_v57 }
 0x793   : > { %2515 = vmatpush1.bf16.msra.mxu0 %v5969_v58  ;;  %2556 = vmatpush1.bf16.msra.mxu1 %v5971_v59 }
 0x794   : > { %2516 = vmatprep.subr.bf16.mxu0 %v5977_v60  ;;  %2557 = vmatprep.subr.bf16.mxu1 %v5979_v61 }
 0x797   : > { %2517 = vmatpush1.bf16.msra.mxu0 %v5981_v62  ;;  %2558 = vmatpush1.bf16.msra.mxu1 %v5983_v63 }
 0x798   : > { %2518 = vmatprep.subr.bf16.mxu0 %v5985_v0  ;;  %2559 = vmatprep.subr.bf16.mxu1 %v5987_v1 }
 0x79b   : > { %2519 = vmatpush1.bf16.msra.mxu0 %v5993_v2  ;;  %2560 = vmatpush1.bf16.msra.mxu1 %v5995_v4 }
 0x79c   : > { %2520 = vmatprep.subr.bf16.mxu0 %v6001_v32  ;;  %2561 = vmatprep.subr.bf16.mxu1 %v6003_v25 }
 0x79f   : > { %2521 = vmatpush1.bf16.msra.mxu0 %v6005_v31  ;;  %2562 = vmatpush1.bf16.msra.mxu1 %v6007_v33 }
 0x7a0   : > { %2522 = vmatprep.subr.bf16.mxu0 %v6009_v46  ;;  %2563 = vmatprep.subr.bf16.mxu1 %v6013_v6 }
 0x7a3   : > { %2523 = vmatpush1.bf16.msra.mxu0 %v6017_v8  ;;  %2564 = vmatpush1.bf16.msra.mxu1 %v6019_v22 }
 0x7a4   : > { %2887 = vmatprep.subr.bf16.mxu0 %v4557_v45  ;;  %2940 = vmatprep.subr.bf16.mxu1 %v4560_v47  ;;  %v4590_v45 = vld [vmem:[#allocation15 + $0xac] ss:$16 sps:$4 sm:$0xff]   ;;  %v4585_v47 = vld [vmem:[#allocation15 + $0xa0] ss:$16 sps:$4 sm:$0xff]  }
 0x859   : > { %v2425_v55 = vpop.f32.mrb[40].mxu0  ;;  %v2466_v56 = vpop.f32.mrb[40].mxu1 }
 0x85a   : > { %v2473_v57 = vadd.f32 %v2425_v55, %v1916_v48  ;;  %v2475_v58 = vadd.f32 %v2466_v56, %v1969_v50  ;;  %v2427_v59 = vpop.f32.mrb[41].mxu0  ;;  %v2468_v60 = vpop.f32.mrb[41].mxu1  ;;  %v4588_v48 = vld [vmem:[#allocation15 + $0xa8] ss:$16 sps:$4 sm:$0xff]   ;;  %v4596_v50 = vld [vmem:[#allocation15 + $0xcc] ss:$16 sps:$4 sm:$0xff]  }
 0x85b   : > { %v2474_v61 = vadd.f32 %v2427_v59, %v1918_v52  ;;  %v2476_v62 = vadd.f32 %v2468_v60, %v1971_v54  ;;  %v2429_v63 = vpop.f32.mrb[42].mxu0  ;;  %v2470_v0 = vpop.f32.mrb[42].mxu1  ;;  %v4594_v52 = vld [vmem:[#allocation15 + $0xc8] ss:$16 sps:$4 sm:$0xff]   ;;  %v4602_v54 = vld [vmem:[#allocation15 + $0xec] ss:$16 sps:$4 sm:$0xff]  }
 0x85c   : > { %v4090_v1 = vmul.f32 -1.442695, %v2473_v57  ;;  %v2430_v2 = vpop.f32.mrb[43].mxu0  ;;  %v2471_v4 = vpop.f32.mrb[43].mxu1  ;;  %v4597_v55 = vld [vmem:[#allocation15 + $0xe0] ss:$16 sps:$4 sm:$0xff]  }
 0x85d   : > { %v4091_v32 = vmul.f32 -1.442695, %v2474_v61  ;;  %v4092_v25 = vmul.f32 -1.442695, %v2476_v62  ;;  %v4600_v56 = vld [vmem:[#allocation15 + $0xe8] ss:$16 sps:$4 sm:$0xff]  }
 0x85e   : > { %4749 = vpow2.f32 %v4090_v1  ;;  %v4603_v57 = vld [vmem:[%s5650_s18] sm:$0xff]   ;;  %v6228_v59 = vld [vmem:[#allocation20 + $0xc] ss:$16 sps:$4 sm:$0xff]   ;;  %v6232_v61 = vld [vmem:[#allocation20 + $0x8] ss:$16 sps:$4 sm:$0xff]  }
 0x85f   : > { %4751 = vpow2.f32 %v4091_v32  ;;  %v6230_v60 = vld [vmem:[#allocation20] ss:$16 sps:$4 sm:$0xff]   ;;  %v6238_v62 = vld [vmem:[#allocation20 + $0x24] ss:$16 sps:$4 sm:$0xff]   ;;  %v6240_v63 = vld [vmem:[#allocation20 + $0x2c] ss:$16 sps:$4 sm:$0xff]  }
 0x860   : > { %4753 = vpow2.f32 %v4092_v25  ;;  %v6242_v0 = vld [vmem:[#allocation20 + $0x20] ss:$16 sps:$4 sm:$0xff]   ;;  %v6244_v1 = vld [vmem:[#allocation20 + $0x28] ss:$16 sps:$4 sm:$0xff]   ;;  %v6250_v2 = vld [vmem:[#allocation20 + $0x44] ss:$16 sps:$4 sm:$0xff]  }
 0x861   : > { %4755 = vtanh.f32 %v2475_v58  ;;  %v6226_v58 = vld [vmem:[#allocation20 + $0x4] ss:$16 sps:$4 sm:$0xff]   ;;  %v6252_v4 = vld [vmem:[#allocation20 + $0x4c] ss:$16 sps:$4 sm:$0xff]   ;;  %v6254_v32 = vld [vmem:[#allocation20 + $0x40] ss:$16 sps:$4 sm:$0xff]  }
 0x862   : > { %v6256_v25 = vld [vmem:[#allocation20 + $0x48] ss:$16 sps:$4 sm:$0xff]  }
 0x868   : > { %v4750_v31 = vpop.eup %4749 }
 0x869   : > { %v4752_v33 = vpop.eup %4751  ;;  %v2480_v46 = vadd.f32 1.0, %v4750_v31  ;;  %v6262_v31 = vld [vmem:[#allocation20 + $0x64] ss:$16 sps:$4 sm:$0xff]  }
 0x86a   : > { %v2486_v6 = vadd.f32 1.0, %v4752_v33  ;;  %v4754_v8 = vpop.eup %4753  ;;  %v6264_v33 = vld [vmem:[#allocation20 + $0x6c] ss:$16 sps:$4 sm:$0xff]  }
 0x86b   : > { %4757 = vrcp.f32 %v2480_v46  ;;  %v4756_v22 = vpop.eup %4755  ;;  %v2493_v43 = vadd.f32 1.0, %v4754_v8  ;;  %v6266_v46 = vld [vmem:[#allocation20 + $0x60] ss:$16 sps:$4 sm:$0xff]   ;;  %v6274_v8 = vld [vmem:[#allocation20 + $0x84] ss:$16 sps:$4 sm:$0xff]  }
 0x86c   : > { %4759 = vrcp.f32 %v2486_v6  ;;  %v6268_v6 = vld [vmem:[#allocation20 + $0x68] ss:$16 sps:$4 sm:$0xff]  }
 0x86d   : > { %4761 = vrcp.f32 %v2493_v43  ;;  %v6284_v43 = vld [vmem:[#allocation20 + $0xac] ss:$16 sps:$4 sm:$0xff]  }
 0x875   : > { %v4758_v9 = vpop.eup %4757 }
 0x876   : > { %v4760_v26 = vpop.eup %4759  ;;  %v2497_v12 = vmul.f32 %v4758_v9, %v4756_v22  ;;  %v6276_v22 = vld [vmem:[#allocation20 + $0x8c] ss:$16 sps:$4 sm:$0xff]   ;;  %v6278_v9 = vld [vmem:[#allocation20 + $0x80] ss:$16 sps:$4 sm:$0xff]  }
 0x877   : > { %v2496_v7 = vmul.f32 %v4760_v26, %v6172_v18  ;;  %v4762_v39 = vpop.eup %4761  ;;  %v4581_v18 = vld [vmem:[#allocation15 + $0x84] ss:$16 sps:$4 sm:$0xff]   ;;  %v6280_v26 = vld [vmem:[#allocation20 + $0x88] ss:$16 sps:$4 sm:$0xff]  }
 0x879   : > { %v6217_v44 = vadd.f32 %v2497_v12, %v2496_v7  ;;  %v6282_v12 = vld [vmem:[#allocation20 + $0xa4] ss:$16 sps:$4 sm:$0xff]   ;;  %v6290_v7 = vld [vmem:[#allocation20 + $0xa0] ss:$16 sps:$4 sm:$0xff]  }
 0x87b   : > { %4763 = vtanh.f32 %v6217_v44 }
 0x885   : > { %v4764_v38 = vpop.eup %4763 }
 0x886   : > { %v2500_v3 = vmul.f32 %v4764_v38, %v4762_v39  ;;  %v6292_v39 = vld [vmem:[#allocation20 + $0xa8] ss:$16 sps:$4 sm:$0xff]   ;;  %v6298_v38 = vld [vmem:[#allocation20 + $0xc4] ss:$16 sps:$4 sm:$0xff]  }
 0x888   : > { %v2501_v34 = vpack.c.bf16 %v2500_v3, %v2500_v3  ;;  %v6300_v3 = vld [vmem:[#allocation20 + $0xcc] ss:$16 sps:$4 sm:$0xff]  }
 0x88a   : > { %4093 = vst [vmem:[%s5650_s18 + $0x8] sm:$0xf] %v2501_v34  ;;  %2541 = vmatmul.mubr.bf16.vlgmr.msra.gmra.mrb[44].mxu0 %v2501_v34  ;;  %2582 = vmatmul.mubr.bf16.vlgmr.msra.gmra.mrb[44].mxu1 %v2501_v34  ;;  %v6306_v34 = vld [vmem:[#allocation20 + $0xe4] ss:$16 sps:$4 sm:$0xff]  }
 0x88b   : > { %2888 = vmatpush1.bf16.msra.mxu0 %v4555_v5  ;;  %2941 = vmatpush1.bf16.msra.mxu1 %v4558_v37  ;;  %v6302_v5 = vld [vmem:[#allocation20 + $0xc0] ss:$16 sps:$4 sm:$0xff]   ;;  %v6304_v37 = vld [vmem:[#allocation20 + $0xc8] ss:$16 sps:$4 sm:$0xff]  }
 0x88c   : > { %2889 = vmatprep.subr.bf16.mxu0 %v4563_v35  ;;  %2942 = vmatprep.subr.bf16.mxu1 %v4566_v36  ;;  %v6310_v35 = vld [vmem:[#allocation20 + $0xec] ss:$16 sps:$4 sm:$0xff]   ;;  %v6314_v36 = vld [vmem:[#allocation20 + $0xe0] ss:$16 sps:$4 sm:$0xff]  }
 0x88d   : > { %2919 = vmatprep.mubr.bf16.mxu0 %v6766_v23  ;;  %2972 = vmatprep.mubr.bf16.mxu1 %v6766_v23 }
 0x88f   : > { %2890 = vmatpush1.bf16.msra.mxu0 %v4561_v21  ;;  %2943 = vmatpush1.bf16.msra.mxu1 %v4564_v27  ;;  %v6316_v21 = vld [vmem:[#allocation20 + $0xe8] ss:$16 sps:$4 sm:$0xff]  }
 0x890   : > { %2891 = vmatprep.subr.bf16.mxu0 %v4569_v24  ;;  %2944 = vmatprep.subr.bf16.mxu1 %v4572_v20  ;;  %v6789_v27 = vld [vmem:[#allocation40_spill] sm:$0xff]  ;;  %v6790_v20 = vld [vmem:[#allocation41_spill] sm:$0xff] }
 0x891   : > { %v1920_v24 = vadd.f32 %v6789_v27, %v6102_v11 }
 0x893   : > { %2892 = vmatpush1.bf16.msra.mxu0 %v4567_v42  ;;  %2945 = vmatpush1.bf16.msra.mxu1 %v4570_v40  ;;  %v1973_v42 = vadd.f32 %v6790_v20, %v6105_v30  ;;  %v6791_v40 = vld [vmem:[#allocation42_spill] sm:$0xff] }
 0x894   : > { %2893 = vmatprep.subr.bf16.mxu0 %v4575_v19  ;;  %2946 = vmatprep.subr.bf16.mxu1 %v4578_v28  ;;  %v1922_v19 = vadd.f32 %v6791_v40, %v6112_v41  ;;  %v6792_v28 = vld [vmem:[#allocation43_spill] sm:$0xff] }
 0x897   : > { %2894 = vmatpush1.bf16.msra.mxu0 %v4573_v29  ;;  %2947 = vmatpush1.bf16.msra.mxu1 %v4576_v13  ;;  %v1975_v29 = vadd.f32 %v6792_v28, %v6115_v10 }
 0x898   : > { %2895 = vmatprep.subr.bf16.mxu0 %v4581_v18  ;;  %2948 = vmatprep.subr.bf16.mxu1 %v4584_v14 }
 0x89b   : > { %2896 = vmatpush1.bf16.msra.mxu0 %v4579_v15  ;;  %2949 = vmatpush1.bf16.msra.mxu1 %v4582_v16 }
 0x89c   : > { %2897 = vmatprep.subr.bf16.mxu0 %v4587_v17  ;;  %2950 = vmatprep.subr.bf16.mxu1 %v4590_v45 }
 0x89f   : > { %2898 = vmatpush1.bf16.msra.mxu0 %v4585_v47  ;;  %2951 = vmatpush1.bf16.msra.mxu1 %v4588_v48 }
 0x8a0   : > { %2899 = vmatprep.subr.bf16.mxu0 %v4593_v49  ;;  %2952 = vmatprep.subr.bf16.mxu1 %v4596_v50 }
 0x8a3   : > { %2900 = vmatpush1.bf16.msra.mxu0 %v4591_v51  ;;  %2953 = vmatpush1.bf16.msra.mxu1 %v4594_v52 }
 0x8a4   : > { %2901 = vmatprep.subr.bf16.mxu0 %v4599_v53  ;;  %2954 = vmatprep.subr.bf16.mxu1 %v4602_v54 }
 0x8a7   : > { %2902 = vmatpush1.bf16.msra.mxu0 %v4597_v55  ;;  %2955 = vmatpush1.bf16.msra.mxu1 %v4600_v56 }
 0x8a8   : > { %3174 = vmatprep.subr.bf16.mxu0 %v6226_v58  ;;  %3215 = vmatprep.subr.bf16.mxu1 %v6228_v59 }
 0x8aa   : > { %2920 = vmatmul.mubr.bf16.vlgmr.msra.gmra.mrb[48].mxu0 %v4603_v57  ;;  %2973 = vmatmul.mubr.bf16.vlgmr.msra.gmra.mrb[48].mxu1 %v4603_v57 }
 0x8ab   : > { %2929 = vmatprep.mubr.bf16.mxu0 %v6766_v23  ;;  %2982 = vmatprep.mubr.bf16.mxu1 %v6766_v23 }
 0x8ac   : > { %3175 = vmatpush1.bf16.msra.mxu0 %v6230_v60  ;;  %3216 = vmatpush1.bf16.msra.mxu1 %v6232_v61 }
 0x8ad   : > { %3176 = vmatprep.subr.bf16.mxu0 %v6238_v62  ;;  %3217 = vmatprep.subr.bf16.mxu1 %v6240_v63 }
 0x8b0   : > { %3177 = vmatpush1.bf16.msra.mxu0 %v6242_v0  ;;  %3218 = vmatpush1.bf16.msra.mxu1 %v6244_v1 }
 0x8b1   : > { %3178 = vmatprep.subr.bf16.mxu0 %v6250_v2  ;;  %3219 = vmatprep.subr.bf16.mxu1 %v6252_v4 }
 0x8b4   : > { %3179 = vmatpush1.bf16.msra.mxu0 %v6254_v32  ;;  %3220 = vmatpush1.bf16.msra.mxu1 %v6256_v25 }
 0x8b5   : > { %3180 = vmatprep.subr.bf16.mxu0 %v6262_v31  ;;  %3221 = vmatprep.subr.bf16.mxu1 %v6264_v33 }
 0x8b8   : > { %3181 = vmatpush1.bf16.msra.mxu0 %v6266_v46  ;;  %3222 = vmatpush1.bf16.msra.mxu1 %v6268_v6 }
 0x8b9   : > { %3182 = vmatprep.subr.bf16.mxu0 %v6274_v8  ;;  %3223 = vmatprep.subr.bf16.mxu1 %v6276_v22 }
 0x8bc   : > { %3183 = vmatpush1.bf16.msra.mxu0 %v6278_v9  ;;  %3224 = vmatpush1.bf16.msra.mxu1 %v6280_v26 }
 0x8bd   : > { %3184 = vmatprep.subr.bf16.mxu0 %v6282_v12  ;;  %3225 = vmatprep.subr.bf16.mxu1 %v6284_v43 }
 0x8c0   : > { %3185 = vmatpush1.bf16.msra.mxu0 %v6290_v7  ;;  %3226 = vmatpush1.bf16.msra.mxu1 %v6292_v39 }
 0x8c1   : > { %3186 = vmatprep.subr.bf16.mxu0 %v6298_v38  ;;  %3227 = vmatprep.subr.bf16.mxu1 %v6300_v3 }
 0x8c4   : > { %3187 = vmatpush1.bf16.msra.mxu0 %v6302_v5  ;;  %3228 = vmatpush1.bf16.msra.mxu1 %v6304_v37 }
 0x8c5   : > { %3188 = vmatprep.subr.bf16.mxu0 %v6306_v34  ;;  %3229 = vmatprep.subr.bf16.mxu1 %v6310_v35 }
 0x8c8   : > { %3189 = vmatpush1.bf16.msra.mxu0 %v6314_v36  ;;  %3230 = vmatpush1.bf16.msra.mxu1 %v6316_v21 }
 0x8c9   : > { %3290 = vmatprep.subr.bf16.mxu0 %v6226_v58  ;;  %3331 = vmatprep.subr.bf16.mxu1 %v6228_v59 }
 0x95d   : > { %v2542_v13 = vpop.f32.mrb[44].mxu0  ;;  %v2583_v18 = vpop.f32.mrb[44].mxu1 }
 0x95e   : > { %v2590_v14 = vadd.f32 %v2542_v13, %v1920_v24  ;;  %v2592_v15 = vadd.f32 %v2583_v18, %v1973_v42  ;;  %v2544_v16 = vpop.f32.mrb[45].mxu0  ;;  %v2585_v17 = vpop.f32.mrb[45].mxu1 }
 0x95f   : > { %v2591_v45 = vadd.f32 %v2544_v16, %v1922_v19  ;;  %v2593_v47 = vadd.f32 %v2585_v17, %v1975_v29  ;;  %v2546_v48 = vpop.f32.mrb[46].mxu0  ;;  %v2587_v49 = vpop.f32.mrb[46].mxu1 }
 0x960   : > { %v4094_v11 = vmul.f32 -1.442695, %v2590_v14  ;;  %v2547_v50 = vpop.f32.mrb[47].mxu0  ;;  %v2588_v51 = vpop.f32.mrb[47].mxu1  ;;  %v2688_v49 = vld [vmem:[#allocation4] sm:$0xff] }
 0x961   : > { %v4095_v30 = vmul.f32 -1.442695, %v2591_v45  ;;  %v4096_v41 = vmul.f32 -1.442695, %v2593_v47  ;;  %v2687_v50 = vld [vmem:[%s6793_s0] sm:$0xf] }
 0x962   : > { %4765 = vpow2.f32 %v4094_v11  ;;  %v3013_v11 = vpack.c.bf16 %v2688_v49, %v2688_v49  ;;  %s6536_s0 = scalar_lea.sflag [#allocation23], %s3644_s11 }
 0x963   : > { %4767 = vpow2.f32 %v4095_v30 }
 0x964   : > { %4769 = vpow2.f32 %v4096_v41 }
 0x965   : > { %4771 = vtanh.f32 %v2592_v15 }
 0x96c   : > { %v4766_v52 = vpop.eup %4765 }
 0x96d   : > { %v4768_v53 = vpop.eup %4767  ;;  %v2597_v10 = vadd.f32 1.0, %v4766_v52 }
 0x96e   : > { %v2603_v54 = vadd.f32 1.0, %v4768_v53  ;;  %v4770_v55 = vpop.eup %4769 }
 0x96f   : > { %4773 = vrcp.f32 %v2597_v10  ;;  %v4772_v56 = vpop.eup %4771  ;;  %v2610_v20 = vadd.f32 1.0, %v4770_v55 }
 0x970   : > { %4775 = vrcp.f32 %v2603_v54  ;;  %v6799_v54 = vld [vmem:[#allocation33_spill] sm:$0xff] }
 0x971   : > { %4777 = vrcp.f32 %v2610_v20  ;;  %v6403_v55 = vrot.slane %v2687_v50, %v6799_v54  ;;  %v6803_v20 = vld [vmem:[#allocation36_spill] sm:$0xff] }
 0x979   : > { %v4774_v57 = vpop.eup %4773 }
 0x97a   : > { %v4776_v27 = vpop.eup %4775  ;;  %v2614_v24 = vmul.f32 %v4774_v57, %v4772_v56  ;;  %v6800_v56 = vld [vmem:[#allocation34_spill] sm:$0xff] }
 0x97b   : > { %v2613_v42 = vmul.f32 %v4776_v27, %v6217_v44  ;;  %v4778_v16 = vpop.eup %4777  ;;  %v6406_v57 = vrot.slane %v2687_v50, %v6800_v56 }
 0x97d   : > { %v2615_v40 = vadd.f32 %v2614_v24, %v2613_v42  ;;  %v6333_v19 = vpop.f32.mrb[48].mxu0  ;;  %v6335_v28 = vpop.f32.mrb[48].mxu1  ;;  %v6413_v42 = vrot.slane %v2687_v50, %v6803_v20 }
 0x97e   : > { %v6337_v29 = vpop.f32.mrb[49].mxu0  ;;  %v6339_v13 = vpop.f32.mrb[49].mxu1 }
 0x97f   : > { %4779 = vtanh.f32 %v2615_v40  ;;  %2622 = vst [vmem:[#allocation6] sm:$0xff] %v2615_v40  ;;  %v6341_v18 = vpop.f32.mrb[50].mxu0  ;;  %v6343_v14 = vpop.f32.mrb[50].mxu1  ;;  %v6804_v40 = vld [vmem:[#allocation35_spill] sm:$0xff] }
 0x980   : > { %v6345_v15 = vpop.f32.mrb[51].mxu0  ;;  %v6347_v44 = vpop.f32.mrb[51].mxu1 }
 0x989   : > { %v4780_v17 = vpop.eup %4779 }
 0x98a   : > { %v2617_v45 = vmul.f32 %v4780_v17, %v4778_v16  ;;  %v6416_v16 = vrot.slane %v2687_v50, %v6804_v40  ;;  %v2922_v17 = vadd.f32 %v6333_v19, %v6403_v55 }
 0x98c   : > { %v2618_v47 = vpack.c.bf16 %v2617_v45, %v2617_v45  ;;  %2621 = vst [vmem:[#allocation3] sm:$0xff] %v2617_v45  ;;  %v2975_v45 = vadd.f32 %v6335_v28, %v6406_v57 }
 0x98e   : > { %4097 = vst [vmem:[%s5650_s18 + $0xc] sm:$0xf] %v2618_v47  ;;  %v2924_v47 = vadd.f32 %v6337_v29, %v6413_v42 }
 0x995   : > { %v4640_v48 = vld [vmem:[%s5650_s18 + $0x8] sm:$0xff]  }
 0x996   : > { %2930 = vmatmul.mubr.bf16.gmra.mrb[52].mxu0 %v4640_v48  ;;  %2983 = vmatmul.mubr.bf16.gmra.mrb[52].mxu1 %v4640_v48  ;;  %v2977_v48 = vadd.f32 %v6339_v13, %v6416_v16 }
 0x997   : > { %3206 = vmatprep.mubr.bf16.mxu0 %v6766_v23  ;;  %3247 = vmatprep.mubr.bf16.mxu1 %v6766_v23 }
 0x99e   : > { %3207 = vmatmul.mubr.bf16.vlgmr.msra.gmra.mrb[56].mxu0 %v3013_v11  ;;  %3248 = vmatmul.mubr.bf16.vlgmr.msra.gmra.mrb[56].mxu1 %v3013_v11 }
 0x99f   : > { %3291 = vmatpush1.bf16.msra.mxu0 %v6230_v60  ;;  %3332 = vmatpush1.bf16.msra.mxu1 %v6232_v61 }
 0x9a0   : > { %3292 = vmatprep.subr.bf16.mxu0 %v6238_v62  ;;  %3333 = vmatprep.subr.bf16.mxu1 %v6240_v63 }
 0x9a1   : > { %3322 = vmatprep.mubr.bf16.mxu0 %v6766_v23  ;;  %3363 = vmatprep.mubr.bf16.mxu1 %v6766_v23 }
 0x9a3   : > { %3293 = vmatpush1.bf16.msra.mxu0 %v6242_v0  ;;  %3334 = vmatpush1.bf16.msra.mxu1 %v6244_v1 }
 0x9a4   : > { %3294 = vmatprep.subr.bf16.mxu0 %v6250_v2  ;;  %3335 = vmatprep.subr.bf16.mxu1 %v6252_v4 }
 0x9a7   : > { %3295 = vmatpush1.bf16.msra.mxu0 %v6254_v32  ;;  %3336 = vmatpush1.bf16.msra.mxu1 %v6256_v25 }
 0x9a8   : > { %3296 = vmatprep.subr.bf16.mxu0 %v6262_v31  ;;  %3337 = vmatprep.subr.bf16.mxu1 %v6264_v33 }
 0x9ab   : > { %3297 = vmatpush1.bf16.msra.mxu0 %v6266_v46  ;;  %3338 = vmatpush1.bf16.msra.mxu1 %v6268_v6 }
 0x9ac   : > { %3298 = vmatprep.subr.bf16.mxu0 %v6274_v8  ;;  %3339 = vmatprep.subr.bf16.mxu1 %v6276_v22 }
 0x9af   : > { %3299 = vmatpush1.bf16.msra.mxu0 %v6278_v9  ;;  %3340 = vmatpush1.bf16.msra.mxu1 %v6280_v26 }
 0x9b0   : > { %3300 = vmatprep.subr.bf16.mxu0 %v6282_v12  ;;  %3341 = vmatprep.subr.bf16.mxu1 %v6284_v43 }
 0x9b3   : > { %3301 = vmatpush1.bf16.msra.mxu0 %v6290_v7  ;;  %3342 = vmatpush1.bf16.msra.mxu1 %v6292_v39 }
 0x9b4   : > { %3302 = vmatprep.subr.bf16.mxu0 %v6298_v38  ;;  %3343 = vmatprep.subr.bf16.mxu1 %v6300_v3 }
 0x9b7   : > { %3303 = vmatpush1.bf16.msra.mxu0 %v6302_v5  ;;  %3344 = vmatpush1.bf16.msra.mxu1 %v6304_v37 }
 0x9b8   : > { %3304 = vmatprep.subr.bf16.mxu0 %v6306_v34  ;;  %3345 = vmatprep.subr.bf16.mxu1 %v6310_v35 }
 0x9bb   : > { %3305 = vmatpush1.bf16.msra.mxu0 %v6314_v36  ;;  %3346 = vmatpush1.bf16.msra.mxu1 %v6316_v21 }
 0x9bc   : > { %3407 = vmatprep.subr.bf16.mxu0 %v6226_v58  ;;  %3448 = vmatprep.subr.bf16.mxu1 %v6228_v59 }
 0xa69   : > { %v6390_v51 = vpop.f32.mrb[52].mxu0  ;;  %v6392_v30 = vpop.f32.mrb[52].mxu1 }
 0xa6a   : > { %6794 = vst [vmem:[#allocation37_spill] sm:$0xff] %v6392_v30  ;;  %v6394_v41 = vpop.f32.mrb[53].mxu0  ;;  %v6396_v52 = vpop.f32.mrb[53].mxu1 }
 0xa6b   : > { %6795 = vst [vmem:[#allocation38_spill] sm:$0xff] %v6394_v41  ;;  %6796 = vst [vmem:[#allocation39_spill] sm:$0xff] %v6396_v52  ;;  %v6398_v53 = vpop.f32.mrb[54].mxu0  ;;  %v6400_v10 = vpop.f32.mrb[54].mxu1 }
 0xa6c   : > { %6797 = vst [vmem:[#allocation40_spill] sm:$0xff] %v6398_v53  ;;  %6798 = vst [vmem:[#allocation41_spill] sm:$0xff] %v6400_v10  ;;  %v6408_v27 = vpop.f32.mrb[55].mxu0  ;;  %v6410_v24 = vpop.f32.mrb[55].mxu1 }
 0xa6d   : > { %6801 = vst [vmem:[#allocation42_spill] sm:$0xff] %v6408_v27  ;;  %6802 = vst [vmem:[#allocation43_spill] sm:$0xff] %v6410_v24 }
 0xa71   : > { %v3208_v49 = vpop.f32.mrb[56].mxu0  ;;  %v3249_v11 = vpop.f32.mrb[56].mxu1 }
 0xa72   : > { %v3256_v54 = vadd.f32 %v3208_v49, %v2922_v17  ;;  %v3258_v56 = vadd.f32 %v3249_v11, %v2975_v45  ;;  %v3210_v20 = vpop.f32.mrb[57].mxu0  ;;  %v3251_v24 = vpop.f32.mrb[57].mxu1 }
 0xa73   : > { %v3257_v50 = vadd.f32 %v3210_v20, %v2924_v47  ;;  %v3259_v40 = vadd.f32 %v3251_v24, %v2977_v48  ;;  %v3212_v27 = vpop.f32.mrb[58].mxu0  ;;  %v3253_v10 = vpop.f32.mrb[58].mxu1  ;;  %v2979_v20 = vadd.f32 %v6343_v14, %v6406_v57 }
 0xa74   : > { %v4164_v19 = vmul.f32 -1.442695, %v3256_v54  ;;  %v3213_v53 = vpop.f32.mrb[59].mxu0  ;;  %v3254_v52 = vpop.f32.mrb[59].mxu1  ;;  %v2689_v27 = vld [vmem:[#allocation7] sm:$0xff] }
 0xa75   : > { %v4165_v28 = vmul.f32 -1.442695, %v3257_v50  ;;  %v4166_v29 = vmul.f32 -1.442695, %v3259_v40  ;;  %v2928_v50 = vadd.f32 %v6345_v15, %v6413_v42  ;;  %v2981_v40 = vadd.f32 %v6347_v44, %v6416_v16 }
 0xa76   : > { %4781 = vpow2.f32 %v4164_v19 }
 0xa77   : > { %4783 = vpow2.f32 %v4165_v28 }
 0xa78   : > { %4785 = vpow2.f32 %v4166_v29 }
 0xa79   : > { %4787 = vtanh.f32 %v3258_v56  ;;  %v2926_v56 = vadd.f32 %v6341_v18, %v6403_v55 }
 0xa80   : > { %v4782_v41 = vpop.eup %4781 }
 0xa81   : > { %v4784_v30 = vpop.eup %4783  ;;  %v3263_v13 = vadd.f32 1.0, %v4782_v41 }
 0xa82   : > { %v3269_v17 = vadd.f32 1.0, %v4784_v30  ;;  %v4786_v45 = vpop.eup %4785 }
 0xa83   : > { %4789 = vrcp.f32 %v3263_v13  ;;  %v4788_v24 = vpop.eup %4787  ;;  %v3276_v52 = vadd.f32 1.0, %v4786_v45 }
 0xa84   : > { %4791 = vrcp.f32 %v3269_v17 }
 0xa85   : > { %4793 = vrcp.f32 %v3276_v52 }
 0xa8d   : > { %v4790_v10 = vpop.eup %4789 }
 0xa8e   : > { %v4792_v47 = vpop.eup %4791  ;;  %v3280_v53 = vmul.f32 %v4790_v10, %v4788_v24 }
 0xa8f   : > { %v3279_v48 = vmul.f32 %v4792_v47, %v2689_v27  ;;  %v4794_v41 = vpop.eup %4793 }
 0xa91   : > { %v6426_v49 = vadd.f32 %v3280_v53, %v3279_v48 }
 0xa93   : > { %4795 = vtanh.f32 %v6426_v49 }
 0xa9d   : > { %v4796_v11 = vpop.eup %4795 }
 0xa9e   : > { %v3283_v54 = vmul.f32 %v4796_v11, %v4794_v41 }
 0xaa0   : > { %v3284_v30 = vpack.c.bf16 %v3283_v54, %v3283_v54 }
 0xaa2   : > { %3285 = vst [vmem:[%s5652_s9] sm:$0xf] %v3284_v30  ;;  %3323 = vmatmul.mubr.bf16.vlgmr.msra.gmra.mrb[60].mxu0 %v3284_v30  ;;  %3364 = vmatmul.mubr.bf16.vlgmr.msra.gmra.mrb[60].mxu1 %v3284_v30 }
 0xaa3   : > { %3408 = vmatpush1.bf16.msra.mxu0 %v6230_v60  ;;  %3449 = vmatpush1.bf16.msra.mxu1 %v6232_v61 }
 0xaa4   : > { %3409 = vmatprep.subr.bf16.mxu0 %v6238_v62  ;;  %3450 = vmatprep.subr.bf16.mxu1 %v6240_v63 }
 0xaa5   : > { %3439 = vmatprep.mubr.bf16.mxu0 %v6766_v23  ;;  %3480 = vmatprep.mubr.bf16.mxu1 %v6766_v23 }
 0xaa7   : > { %3410 = vmatpush1.bf16.msra.mxu0 %v6242_v0  ;;  %3451 = vmatpush1.bf16.msra.mxu1 %v6244_v1 }
 0xaa8   : > { %3411 = vmatprep.subr.bf16.mxu0 %v6250_v2  ;;  %3452 = vmatprep.subr.bf16.mxu1 %v6252_v4 }
 0xaab   : > { %3412 = vmatpush1.bf16.msra.mxu0 %v6254_v32  ;;  %3453 = vmatpush1.bf16.msra.mxu1 %v6256_v25 }
 0xaac   : > { %3413 = vmatprep.subr.bf16.mxu0 %v6262_v31  ;;  %3454 = vmatprep.subr.bf16.mxu1 %v6264_v33 }
 0xaaf   : > { %3414 = vmatpush1.bf16.msra.mxu0 %v6266_v46  ;;  %3455 = vmatpush1.bf16.msra.mxu1 %v6268_v6 }
 0xab0   : > { %3415 = vmatprep.subr.bf16.mxu0 %v6274_v8  ;;  %3456 = vmatprep.subr.bf16.mxu1 %v6276_v22 }
 0xab3   : > { %3416 = vmatpush1.bf16.msra.mxu0 %v6278_v9  ;;  %3457 = vmatpush1.bf16.msra.mxu1 %v6280_v26 }
 0xab4   : > { %3417 = vmatprep.subr.bf16.mxu0 %v6282_v12  ;;  %3458 = vmatprep.subr.bf16.mxu1 %v6284_v43 }
 0xab7   : > { %3418 = vmatpush1.bf16.msra.mxu0 %v6290_v7  ;;  %3459 = vmatpush1.bf16.msra.mxu1 %v6292_v39 }
 0xab8   : > { %3419 = vmatprep.subr.bf16.mxu0 %v6298_v38  ;;  %3460 = vmatprep.subr.bf16.mxu1 %v6300_v3 }
 0xabb   : > { %3420 = vmatpush1.bf16.msra.mxu0 %v6302_v5  ;;  %3461 = vmatpush1.bf16.msra.mxu1 %v6304_v37 }
 0xabc   : > { %3421 = vmatprep.subr.bf16.mxu0 %v6306_v34  ;;  %3462 = vmatprep.subr.bf16.mxu1 %v6310_v35 }
 0xabf   : > { %3422 = vmatpush1.bf16.msra.mxu0 %v6314_v36  ;;  %3463 = vmatpush1.bf16.msra.mxu1 %v6316_v21 }
 0xac0   : > { %3524 = vmatprep.subr.bf16.mxu0 %v6226_v58  ;;  %3565 = vmatprep.subr.bf16.mxu1 %v6228_v59 }
 0xb75   : > { %v3324_v19 = vpop.f32.mrb[60].mxu0  ;;  %v3365_v28 = vpop.f32.mrb[60].mxu1 }
 0xb76   : > { %v3372_v29 = vadd.f32 %v3324_v19, %v2926_v56  ;;  %v3374_v13 = vadd.f32 %v3365_v28, %v2979_v20  ;;  %v3326_v17 = vpop.f32.mrb[61].mxu0  ;;  %v3367_v58 = vpop.f32.mrb[61].mxu1 }
 0xb77   : > { %v3373_v45 = vadd.f32 %v3326_v17, %v2928_v50  ;;  %v3375_v59 = vadd.f32 %v3367_v58, %v2981_v40  ;;  %v3328_v24 = vpop.f32.mrb[62].mxu0  ;;  %v3369_v27 = vpop.f32.mrb[62].mxu1 }
 0xb78   : > { %v4167_v18 = vmul.f32 -1.442695, %v3372_v29  ;;  %v3329_v10 = vpop.f32.mrb[63].mxu0  ;;  %v3370_v47 = vpop.f32.mrb[63].mxu1 }
 0xb79   : > { %v4168_v14 = vmul.f32 -1.442695, %v3373_v45  ;;  %v4169_v15 = vmul.f32 -1.442695, %v3375_v59 }
 0xb7a   : > { %4797 = vpow2.f32 %v4167_v18 }
 0xb7b   : > { %4799 = vpow2.f32 %v4168_v14 }
 0xb7c   : > { %4801 = vpow2.f32 %v4169_v15 }
 0xb7d   : > { %4803 = vtanh.f32 %v3374_v13 }
 0xb84   : > { %v4798_v53 = vpop.eup %4797 }
 0xb85   : > { %v4800_v52 = vpop.eup %4799  ;;  %v3379_v44 = vadd.f32 1.0, %v4798_v53 }
 0xb86   : > { %v3385_v48 = vadd.f32 1.0, %v4800_v52  ;;  %v4802_v41 = vpop.eup %4801 }
 0xb87   : > { %4805 = vrcp.f32 %v3379_v44  ;;  %v4804_v11 = vpop.eup %4803  ;;  %v3392_v20 = vadd.f32 1.0, %v4802_v41 }
 0xb88   : > { %4807 = vrcp.f32 %v3385_v48 }
 0xb89   : > { %4809 = vrcp.f32 %v3392_v20 }
 0xb91   : > { %v4806_v54 = vpop.eup %4805 }
 0xb92   : > { %v4808_v30 = vpop.eup %4807  ;;  %v3396_v56 = vmul.f32 %v4806_v54, %v4804_v11 }
 0xb93   : > { %v3395_v50 = vmul.f32 %v4808_v30, %v6426_v49  ;;  %v4810_v19 = vpop.eup %4809 }
 0xb95   : > { %v6473_v40 = vadd.f32 %v3396_v56, %v3395_v50 }
 0xb97   : > { %4811 = vtanh.f32 %v6473_v40 }
 0xba1   : > { %v4812_v28 = vpop.eup %4811 }
 0xba2   : > { %v3399_v29 = vmul.f32 %v4812_v28, %v4810_v19 }
 0xba4   : > { %v3400_v13 = vpack.c.bf16 %v3399_v29, %v3399_v29 }
 0xba6   : > { %4170 = vst [vmem:[%s5652_s9 + $0x4] sm:$0xf] %v3400_v13  ;;  %3440 = vmatmul.mubr.bf16.vlgmr.msra.gmra.mrb[64].mxu0 %v3400_v13  ;;  %3481 = vmatmul.mubr.bf16.vlgmr.msra.gmra.mrb[64].mxu1 %v3400_v13 }
 0xba7   : > { %3525 = vmatpush1.bf16.msra.mxu0 %v6230_v60  ;;  %3566 = vmatpush1.bf16.msra.mxu1 %v6232_v61  ;;  %v6805_v60 = vld [vmem:[#allocation37_spill] sm:$0xff] }
 0xba8   : > { %3526 = vmatprep.subr.bf16.mxu0 %v6238_v62  ;;  %3567 = vmatprep.subr.bf16.mxu1 %v6240_v63  ;;  %v2985_v61 = vadd.f32 %v6805_v60, %v6406_v57  ;;  %v6806_v62 = vld [vmem:[#allocation38_spill] sm:$0xff] }
 0xba9   : > { %3556 = vmatprep.mubr.bf16.mxu0 %v6766_v23  ;;  %3597 = vmatprep.mubr.bf16.mxu1 %v6766_v23  ;;  %v2932_v23 = vadd.f32 %v6390_v51, %v6403_v55  ;;  %v2934_v63 = vadd.f32 %v6806_v62, %v6413_v42 }
 0xbab   : > { %3527 = vmatpush1.bf16.msra.mxu0 %v6242_v0  ;;  %3568 = vmatpush1.bf16.msra.mxu1 %v6244_v1  ;;  %v6807_v0 = vld [vmem:[#allocation39_spill] sm:$0xff] }
 0xbac   : > { %3528 = vmatprep.subr.bf16.mxu0 %v6250_v2  ;;  %3569 = vmatprep.subr.bf16.mxu1 %v6252_v4  ;;  %v2987_v1 = vadd.f32 %v6807_v0, %v6416_v16 }
 0xbaf   : > { %3529 = vmatpush1.bf16.msra.mxu0 %v6254_v32  ;;  %3570 = vmatpush1.bf16.msra.mxu1 %v6256_v25 }
 0xbb0   : > { %3530 = vmatprep.subr.bf16.mxu0 %v6262_v31  ;;  %3571 = vmatprep.subr.bf16.mxu1 %v6264_v33 }
 0xbb3   : > { %3531 = vmatpush1.bf16.msra.mxu0 %v6266_v46  ;;  %3572 = vmatpush1.bf16.msra.mxu1 %v6268_v6 }
 0xbb4   : > { %3532 = vmatprep.subr.bf16.mxu0 %v6274_v8  ;;  %3573 = vmatprep.subr.bf16.mxu1 %v6276_v22 }
 0xbb7   : > { %3533 = vmatpush1.bf16.msra.mxu0 %v6278_v9  ;;  %3574 = vmatpush1.bf16.msra.mxu1 %v6280_v26 }
 0xbb8   : > { %3534 = vmatprep.subr.bf16.mxu0 %v6282_v12  ;;  %3575 = vmatprep.subr.bf16.mxu1 %v6284_v43 }
 0xbbb   : > { %3535 = vmatpush1.bf16.msra.mxu0 %v6290_v7  ;;  %3576 = vmatpush1.bf16.msra.mxu1 %v6292_v39 }
 0xbbc   : > { %3536 = vmatprep.subr.bf16.mxu0 %v6298_v38  ;;  %3577 = vmatprep.subr.bf16.mxu1 %v6300_v3 }
 0xbbf   : > { %3537 = vmatpush1.bf16.msra.mxu0 %v6302_v5  ;;  %3578 = vmatpush1.bf16.msra.mxu1 %v6304_v37 }
 0xbc0   : > { %3538 = vmatprep.subr.bf16.mxu0 %v6306_v34  ;;  %3579 = vmatprep.subr.bf16.mxu1 %v6310_v35 }
 0xbc3   : > { %3539 = vmatpush1.bf16.msra.mxu0 %v6314_v36  ;;  %3580 = vmatpush1.bf16.msra.mxu1 %v6316_v21 }
 0xc79   : > { %v3441_v2 = vpop.f32.mrb[64].mxu0  ;;  %v3482_v4 = vpop.f32.mrb[64].mxu1 }
 0xc7a   : > { %v3489_v32 = vadd.f32 %v3441_v2, %v2932_v23  ;;  %v3491_v25 = vadd.f32 %v3482_v4, %v2985_v61  ;;  %v3443_v31 = vpop.f32.mrb[65].mxu0  ;;  %v3484_v33 = vpop.f32.mrb[65].mxu1 }
 0xc7b   : > { %v3490_v46 = vadd.f32 %v3443_v31, %v2934_v63  ;;  %v3492_v6 = vadd.f32 %v3484_v33, %v2987_v1  ;;  %v3445_v8 = vpop.f32.mrb[66].mxu0  ;;  %v3486_v22 = vpop.f32.mrb[66].mxu1 }
 0xc7c   : > { %v4171_v9 = vmul.f32 -1.442695, %v3489_v32  ;;  %v3446_v26 = vpop.f32.mrb[67].mxu0  ;;  %v3487_v12 = vpop.f32.mrb[67].mxu1 }
 0xc7d   : > { %v4172_v43 = vmul.f32 -1.442695, %v3490_v46  ;;  %v4173_v7 = vmul.f32 -1.442695, %v3492_v6 }
 0xc7e   : > { %4813 = vpow2.f32 %v4171_v9 }
 0xc7f   : > { %4815 = vpow2.f32 %v4172_v43 }
 0xc80   : > { %4817 = vpow2.f32 %v4173_v7 }
 0xc81   : > { %4819 = vtanh.f32 %v3491_v25 }
 0xc88   : > { %v4814_v39 = vpop.eup %4813 }
 0xc89   : > { %v4816_v38 = vpop.eup %4815  ;;  %v3496_v3 = vadd.f32 1.0, %v4814_v39 }
 0xc8a   : > { %v3502_v5 = vadd.f32 1.0, %v4816_v38  ;;  %v4818_v37 = vpop.eup %4817 }
 0xc8b   : > { %4821 = vrcp.f32 %v3496_v3  ;;  %v4820_v34 = vpop.eup %4819  ;;  %v3509_v51 = vadd.f32 1.0, %v4818_v37 }
 0xc8c   : > { %4823 = vrcp.f32 %v3502_v5 }
 0xc8d   : > { %4825 = vrcp.f32 %v3509_v51 }
 0xc95   : > { %v4822_v35 = vpop.eup %4821 }
 0xc96   : > { %v4824_v36 = vpop.eup %4823  ;;  %v3513_v21 = vmul.f32 %v4822_v35, %v4820_v34 }
 0xc97   : > { %v3512_v49 = vmul.f32 %v4824_v36, %v6473_v40  ;;  %v4826_v58 = vpop.eup %4825 }
 0xc99   : > { %v6518_v17 = vadd.f32 %v3513_v21, %v3512_v49 }
 0xc9b   : > { %4827 = vtanh.f32 %v6518_v17 }
 0xca5   : > { %v4828_v45 = vpop.eup %4827 }
 0xca6   : > { %v3516_v59 = vmul.f32 %v4828_v45, %v4826_v58 }
 0xca8   : > { %v3517_v24 = vpack.c.bf16 %v3516_v59, %v3516_v59 }
 0xcaa   : > { %4174 = vst [vmem:[%s5652_s9 + $0x8] sm:$0xf] %v3517_v24  ;;  %3557 = vmatmul.mubr.bf16.vlgmr.msra.gmra.mrb[68].mxu0 %v3517_v24  ;;  %3598 = vmatmul.mubr.bf16.vlgmr.msra.gmra.mrb[68].mxu1 %v3517_v24 }
 0xcab   : > { %5056 = shalt.err (!%p5053_p4)
}
 0xcac   : > { %s5057_s18 = scalar_lea.hbm %s6531_s8, 256  ;;  %s5061_s24 = scalar_lea.hbm %s6809_s12, 768 }
 0xcad   : > { %p5058_p0 = scmp.ne.s32.totalorder %s6531_s8, %s5057_s18  ;;  %p5062_p13 = scmp.lt.u32.totalorder %s6531_s8, %s6809_s12 }
 0xcae   : > { %p5063_p3 = scmp.lt.u32.totalorder %s5061_s24, %s5057_s18  ;;  %p5065_p5 = scmp.lt.u32.totalorder %s5057_s18, %s6531_s8 }
 0xcaf   : > { %p5059_p2 = pnand %p5058_p0, %p6810_p9 }
 0xcb0   : > { %p5064_p1 = por %p5063_p3, %p5062_p13 }
 0xcb1   : > { %p5060_p12 = pneg %p5059_p2 }
 0xcb2   : > { %p5066_p6 = por %p5065_p5, %p5064_p1 }
 0xcb4   : > { %p5067_p10 = pnand %p5066_p6, %p5060_p12 }
 0xcb6   : > { %5070 = shalt.err (!%p5067_p10)
}
 0xcb7   : > { %s6712_s3 = smov 64   ;;  %s5238_s1 = smov 4  }
 0xcb8   : > { %4221 = dma.vmem_to_hbm [thread:$0]  (%p6810_p9), %s6534_s2, 256, %s6531_s8, %s6536_s0, %s6712_s3, %s6712_s3, %s5238_s1  }
 0xcb9   : > { %s6811_s14 = sld [smem:[#allocation53_spill]]  ;;  %s3666_s30 = sshll.u32 %s5648_s10, 4  ;;  %s6570_s30 = int_to_ptr.vmem [resolvable:$true] %s3666_s30 }
 0xcba   : > { %s6812_s13 = sand.u32 1, %s5193_s22   ;;  %s5071_s5 = scalar_lea.vmem %s6570_s30, 256 }
 0xcbb   : > { %s6574_s4 = scalar_lea.sflag [#allocation11], %s6812_s13  ;;  %p5072_p11 = scmp.ne.s32.totalorder %s6570_s30, %s5071_s5 }
 0xcbc   : > { %s5239_s8 = smov [#allocation21]  }
 0xcbd   : > { %p5073_p7 = pnand %p5072_p11, %p6810_p9  ;;  %s5075_s2 = sshll.u32 %s5239_s8, 4  ;;  %s5076_s2 = int_to_ptr.vmem [resolvable:$false] %s5075_s2 }
 0xcbe   : > { %s5077_s11 = scalar_lea.vmem %s5076_s2, 512  ;;  %p5078_p4 = scmp.lt.s32.totalorder %s6570_s30, %s5076_s2 }
 0xcbf   : > { %s6567_s24 = scalar_lea.hbm %s6811_s14, %s6525_s7  ;;  %p5074_p8 = pneg %p5073_p7 }
 0xcc0   : > { %p5079_p0 = scmp.lt.s32.totalorder %s5077_s11, %s5071_s5 }
 0xcc2   : > { %p5080_p2 = por %p5079_p0, %p5078_p4 }
 0xcc4   : > { %p5081_p12 = pnand %p5080_p2, %p5074_p8 }
 0xcc6   : > { %5084 = shalt.err (!%p5081_p12)
}
 0xcc7   : > { %s5085_s10 = scalar_lea.hbm %s6567_s24, 256  ;;  %s5089_s8 = scalar_lea.hbm %s6811_s14, 768 }
 0xcc8   : > { %p5086_p13 = scmp.ne.s32.totalorder %s6567_s24, %s5085_s10  ;;  %p5090_p5 = scmp.lt.u32.totalorder %s6567_s24, %s6811_s14 }
 0xcc9   : > { %p5091_p6 = scmp.lt.u32.totalorder %s5089_s8, %s5085_s10  ;;  %p5093_p11 = scmp.lt.u32.totalorder %s5085_s10, %s6567_s24 }
 0xcca   : > { %p5087_p3 = pnand %p5086_p13, %p6810_p9 }
 0xccb   : > { %p5092_p10 = por %p5091_p6, %p5090_p5 }
 0xccc   : > { %p5088_p1 = pneg %p5087_p3 }
 0xccd   : > { %p5094_p7 = por %p5093_p11, %p5092_p10 }
 0xccf   : > { %p5095_p8 = pnand %p5094_p7, %p5088_p1 }
 0xcd1   : > { %5098 = shalt.err (!%p5095_p8)
}
 0xcd2   : > { %s6813_s5 = smov 64   ;;  %v6814_v27 = vld [vmem:[#allocation40_spill] sm:$0xff]  ;;  %v6815_v10 = vld [vmem:[#allocation41_spill] sm:$0xff]  ;;  %v6816_v14 = vld [vmem:[#allocation42_spill] sm:$0xff]  ;;  %s5240_s18 = smov [#allocation24]  }
 0xcd3   : > { %4220 = dma.vmem_to_hbm [thread:$0]  (%p6810_p9), %s6570_s30, 256, %s6567_s24, %s6574_s4, %s6813_s5, %s6813_s5, %s5238_s1   ;;  %v2936_v18 = vadd.f32 %v6814_v27, %v6403_v55  ;;  %v2989_v47 = vadd.f32 %v6815_v10, %v6406_v57  ;;  %v2938_v15 = vadd.f32 %v6816_v14, %v6413_v42  ;;  %v6817_v53 = vld [vmem:[#allocation43_spill] sm:$0xff] }
 0xcd4   : > { %v2991_v52 = vadd.f32 %v6817_v53, %v6416_v16  ;;  %s3704_s4 = sshll.u32 %s5652_s9, 4  ;;  %s6818_s30 = sld [smem:[#allocation55_spill]]  ;;  %s6617_s4 = int_to_ptr.vmem [resolvable:$true] %s3704_s4 }
 0xcd5   : > { %s5099_s10 = scalar_lea.vmem %s6617_s4, 256  ;;  %s5103_s13 = sshll.u32 %s5240_s18, 4  ;;  %s5104_s13 = int_to_ptr.vmem [resolvable:$false] %s5103_s13 }
 0xcd6   : > { %p5100_p4 = scmp.ne.s32.totalorder %s6617_s4, %s5099_s10  ;;  %s5105_s8 = scalar_lea.vmem %s5104_s13, 512 }
 0xcd7   : > { %p5106_p12 = scmp.lt.s32.totalorder %s6617_s4, %s5104_s13  ;;  %p5107_p13 = scmp.lt.s32.totalorder %s5105_s8, %s5099_s10 }
 0xcd8   : > { %p5101_p0 = pnand %p5100_p4, %p6810_p9 }
 0xcd9   : > { %p5108_p3 = por %p5107_p13, %p5106_p12 }
 0xcda   : > { %s6615_s11 = scalar_lea.hbm %s6818_s30, %s6525_s7  ;;  %p5102_p2 = pneg %p5101_p0 }
 0xcdc   : > { %p5109_p1 = pnand %p5108_p3, %p5102_p2 }
 0xd7d   : > { %v3558_v44 = vpop.f32.mrb[68].mxu0  ;;  %v3599_v48 = vpop.f32.mrb[68].mxu1 }
 0xd7e   : > { %v3606_v41 = vadd.f32 %v3558_v44, %v2936_v18  ;;  %v3608_v11 = vadd.f32 %v3599_v48, %v2989_v47  ;;  %v3560_v54 = vpop.f32.mrb[69].mxu0  ;;  %v3601_v30 = vpop.f32.mrb[69].mxu1 }
 0xd7f   : > { %v3607_v56 = vadd.f32 %v3560_v54, %v2938_v15  ;;  %v3609_v20 = vadd.f32 %v3601_v30, %v2991_v52  ;;  %v3562_v50 = vpop.f32.mrb[70].mxu0  ;;  %v3603_v40 = vpop.f32.mrb[70].mxu1 }
 0xd80   : > { %v4175_v55 = vmul.f32 -1.442695, %v3606_v41  ;;  %v3563_v19 = vpop.f32.mrb[71].mxu0  ;;  %v3604_v28 = vpop.f32.mrb[71].mxu1 }
 0xd81   : > { %v4176_v57 = vmul.f32 -1.442695, %v3607_v56  ;;  %v4177_v42 = vmul.f32 -1.442695, %v3609_v20 }
 0xd82   : > { %4829 = vpow2.f32 %v4175_v55 }
 0xd83   : > { %4831 = vpow2.f32 %v4176_v57 }
 0xd84   : > { %4833 = vpow2.f32 %v4177_v42 }
 0xd85   : > { %4835 = vtanh.f32 %v3608_v11 }
 0xd8c   : > { %v4830_v29 = vpop.eup %4829 }
 0xd8d   : > { %v4832_v13 = vpop.eup %4831  ;;  %v3613_v16 = vadd.f32 1.0, %v4830_v29 }
 0xd8e   : > { %v3619_v23 = vadd.f32 1.0, %v4832_v13  ;;  %v4834_v60 = vpop.eup %4833 }
 0xd8f   : > { %4837 = vrcp.f32 %v3613_v16  ;;  %v4836_v61 = vpop.eup %4835  ;;  %v3626_v1 = vadd.f32 1.0, %v4834_v60 }
 0xd90   : > { %4839 = vrcp.f32 %v3619_v23 }
 0xd91   : > { %4841 = vrcp.f32 %v3626_v1 }
 0xd99   : > { %v4838_v62 = vpop.eup %4837 }
 0xd9a   : > { %v4840_v63 = vpop.eup %4839  ;;  %v3630_v0 = vmul.f32 %v4838_v62, %v4836_v61 }
 0xd9b   : > { %v3629_v2 = vmul.f32 %v4840_v63, %v6518_v17  ;;  %v4842_v32 = vpop.eup %4841 }
 0xd9d   : > { %v3631_v4 = vadd.f32 %v3630_v0, %v3629_v2 }
 0xd9f   : > { %4843 = vtanh.f32 %v3631_v4  ;;  %3638 = vst [vmem:[#allocation7] sm:$0xff] %v3631_v4 }
 0xda9   : > { %v4844_v25 = vpop.eup %4843 }
 0xdaa   : > { %v3633_v31 = vmul.f32 %v4844_v25, %v4842_v32 }
 0xdac   : > { %v3634_v33 = vpack.c.bf16 %v3633_v31, %v3633_v31  ;;  %3637 = vst [vmem:[#allocation4] sm:$0xff] %v3633_v31 }
 0xdae   : > { %4178 = vst [vmem:[%s5652_s9 + $0xc] sm:$0xf] %v3634_v33 }
 0xdaf   : > { %5112 = shalt.err (!%p5109_p1)
}
 0xdb0   : > { %s5113_s9 = scalar_lea.hbm %s6615_s11, 256  ;;  %s5117_s3 = scalar_lea.hbm %s6818_s30, 768 }
 0xdb1   : > { %p5114_p5 = scmp.ne.s32.totalorder %s6615_s11, %s5113_s9  ;;  %p5118_p11 = scmp.lt.u32.totalorder %s6615_s11, %s6818_s30 }
 0xdb2   : > { %p5119_p7 = scmp.lt.u32.totalorder %s5117_s3, %s5113_s9  ;;  %p5121_p4 = scmp.lt.u32.totalorder %s5113_s9, %s6615_s11 }
 0xdb3   : > { %p5115_p6 = pnand %p5114_p5, %p6810_p9 }
 0xdb4   : > { %p5120_p8 = por %p5119_p7, %p5118_p11 }
 0xdb5   : > { %p5116_p10 = pneg %p5115_p6 }
 0xdb6   : > { %p5122_p0 = por %p5121_p4, %p5120_p8 }
 0xdb8   : > { %p5123_p2 = pnand %p5122_p0, %p5116_p10 }
 0xdba   : > { %5126 = shalt.err (!%p5123_p2)
}
 0xdbb   : > { %4222 = dma.vmem_to_hbm [thread:$0]  (%p6810_p9), %s6617_s4, 256, %s6615_s11, %s6536_s0, %s6813_s5, %s6813_s5, %s5238_s1  }
 0xdbc PF: > { %p4272_p12 = scmp.ge.s32.totalorder %s5221_s29, 2  ;;  %s3719_s10 = sand.u32 1, %s5189_s21  }
 0xdbd   : > { %p6819_p13 = scmp.ne.s32.totalorder %s6741_s27, 0  ;;  %s3720_s13 = scalar_lea.sflag [#allocation11], %s3719_s10 }
 0xdbf   : > { %p4250_p3 = pnand %p4272_p12, %p6819_p13 }
 0xdc1   : > { %5180 = dma.done.wait (!%p4250_p3), %s3720_s13, 256  }
 0xdc2   : > { %5182 = vsyncadd (!%p4250_p3), %s3720_s13, 4294967040  ;;  %s6820_s15 = sadd.s32 4294967294, %s5221_s29  }
 0xdc3   : > { %s3728_s8 = sand.u32 1, %s6820_s15  }
 0xdc4   : > { %s3729_s9 = scalar_lea.sflag [#allocation23], %s3728_s8 }
 0xdc5   : > { %5184 = dma.done.wait (!%p4250_p3), %s3729_s9, 512  }
 0xdc6   : > { %5186 = vsyncadd (!%p4250_p3), %s3729_s9, 4294966784  ;;  %s35_s29 = sadd.s32 1, %s5221_s29   ;;  %s6821_s21 = smov %s5193_s22 }
 0xdc7   : > { %p32_p9 = scmp.ge.s32.totalorder %s35_s29, 5   ;;  %s6822_s22 = smov %s5197_s23 }
 0xdc8   : > { %s6823_s23 = smov %s5574_s20  ;;  %s6824_s24 = smov %s5205_s25 }
 0xdc9   : > { %s6825_s25 = smov %s5209_s26  ;;  %s6826_s26 = smov %s5556_s17 }
 0xdca   : > { %s6827_s27 = smov %s5217_s28  ;;  %s6828_s28 = smov %s6830_s16 }
 0xdcb   :  { %34 = sbr.rel (!%p32_p9) target bundleno = 26 (0x1a), region = 174 }
 0xdd2   :  { %3743 = vsyncpa [#allocation10], 1 }
 0xdd3   :  { %3745 = vsyncpa [#allocation10 + $0x1], 1 }
 0xdd4   :  { %3746 = vsyncpa [#allocation13], 1 }
 0xdd5   :  { %3747 = vsyncpa [#allocation16], 1 }
 0xdd6   :  { %3748 = vsyncpa [#allocation19], 1 }
 0xdd7   :  { %3749 = vsyncpa [#allocation11], 1 }
 0xdd8   :  { %3751 = vsyncpa [#allocation11 + $0x1], 1 }
 0xdd9   :  { %3752 = vsyncpa [#allocation23], 1 }
 0xdda   :  { %3754 = vsyncpa [#allocation23 + $0x1], 1 }

// kernel: tpu_custom_call.1
= control target key start
LH: loop header
LB: loop body
LE: loop exit
PB: predicated region body
PF: predicated region fallthrough
CT: control target
= control target key end

     0   :  { %s6678_s0 = inlined_call_operand.hbm [shape: bf16[12,8,128], index: 0, kind: input, shape index: {}]   ;;  %s6679_s1 = inlined_call_operand.hbm [shape: bf16[128,512], index: 1, kind: input, shape index: {}]   ;;  %s6680_s2 = inlined_call_operand.hbm [shape: bf16[128,512], index: 2, kind: input, shape index: {}]   ;;  %s6681_s3 = inlined_call_operand.hbm [shape: bf16[128,512], index: 3, kind: input, shape index: {}]   ;;  %s6682_s4 = inlined_call_operand.hbm [shape: bf16[128,512], index: 4, kind: input, shape index: {}]   ;;  %s6683_s5 = inlined_call_operand.hbm [shape: bf16[128,512], index: 5, kind: input, shape index: {}]   ;;  %s6684_s6 = inlined_call_operand.hbm [shape: bf16[128,512], index: 6, kind: input, shape index: {}]   ;;  %s6685_s7 = inlined_call_operand.vmem [shape: f32[1,512], index: 7, kind: input, shape index: {}]   ;;  %s6686_s8 = inlined_call_operand.vmem [shape: f32[1,512], index: 8, kind: input, shape index: {}]   ;;  %s6687_s9 = inlined_call_operand.vmem [shape: f32[1,512], index: 9, kind: input, shape index: {}]   ;;  %s6688_s10 = inlined_call_operand.hbm [shape: bf16[12,8,128], index: 10, kind: output, shape index: {0}]   ;;  %s6689_s11 = inlined_call_operand.hbm [shape: bf16[12,8,128], index: 11, kind: output, shape index: {1}]   ;;  %s6690_s12 = inlined_call_operand.hbm [shape: bf16[12,8,128], index: 12, kind: output, shape index: {2}]  }
   0x1   :  { %6714 = sst [smem:[#allocation44_spill]] %s6678_s0 }
   0x2   :  { %6715 = sst [smem:[#allocation45_spill]] %s6679_s1 }
   0x3   :  { %6716 = sst [smem:[#allocation46_spill]] %s6680_s2 }
   0x4   :  { %6717 = sst [smem:[#allocation47_spill]] %s6681_s3 }
   0x5   :  { %6718 = sst [smem:[#allocation48_spill]] %s6682_s4 }
   0x6   :  { %6719 = sst [smem:[#allocation49_spill]] %s6683_s5 }
   0x7   :  { %6720 = sst [smem:[#allocation50_spill]] %s6685_s7 }
   0x8   :  { %6721 = sst [smem:[#allocation51_spill]] %s6686_s8 }
   0x9   :  { %6722 = sst [smem:[#allocation52_spill]] %s6687_s9 }
   0xa   :  { %6723 = sst [smem:[#allocation53_spill]] %s6688_s10 }
   0xb   :  { %6724 = sst [smem:[#allocation54_spill]] %s6689_s11 }
   0xc   :  { %6725 = sst [smem:[#allocation55_spill]] %s6690_s12 }
   0xd   :  { %18 = vsyncpa [#allocation10], 0 }
   0xe   :  { %20 = vsyncpa [#allocation10 + $0x1], 0 }
   0xf   :  { %21 = vsyncpa [#allocation13], 0 }
  0x10   :  { %22 = vsyncpa [#allocation16], 0 }
  0x11   :  { %23 = vsyncpa [#allocation19], 0 }
  0x12   :  { %24 = vsyncpa [#allocation11], 0 }
  0x13   :  { %26 = vsyncpa [#allocation11 + $0x1], 0 }
  0x14   :  { %27 = vsyncpa [#allocation23], 0 }
  0x15   :  { %29 = vsyncpa [#allocation23 + $0x1], 0  ;;  %s5306_s21 = smov 0   ;;  %s5308_s22 = smov 0  }
  0x16   :  { %s5310_s23 = smov 0   ;;  %s5312_s24 = smov 0  }
  0x17   :  { %s5314_s25 = smov 0   ;;  %s5316_s26 = smov 0  }
  0x18   :  { %s5318_s27 = smov 0   ;;  %s5320_s28 = smov 0  }
  0x19   :  { %s5322_s29 = smov 0  }
  0x1a LB: > { %6726 = sst [smem:[#allocation31_spill]] %s5213_s27  ;;  %s5352_s30 = sadd.s32 4294967295, %s5221_s29   ;;  %s5221_s29 = sphi %s5322_s29, %s35_s29   ;;  %s5217_s28 = sphi %s5320_s28, %s6828_s28   ;;  %s5213_s27 = sphi %s5318_s27, %s6827_s27   ;;  %s5209_s26 = sphi %s5316_s26, %s6826_s26   ;;  %s5205_s25 = sphi %s5314_s25, %s6825_s25   ;;  %s5201_s24 = sphi %s5312_s24, %s6824_s24   ;;  %s5197_s23 = sphi %s5310_s23, %s6823_s23   ;;  %s5193_s22 = sphi %s5308_s22, %s6822_s22   ;;  %s5189_s21 = sphi %s5306_s21, %s6821_s21  }
  0x1b   : > { %p3913_p0 = scmp.ge.s32.totalorder %s5221_s29, 1  ;;  %p6697_p1 = scmp.eq.s32.totalorder %s5352_s30, 0 }
  0x1c   : > { %p365_p3 = scmp.lt.s32.totalorder %s5221_s29, 4  ;;  %s5223_s14 = smov [#allocation12]  }
  0x1d   : > { %s377_s15 = sshll.u32 %s5223_s14, 4  ;;  %s5224_s17 = smov [#allocation15]   ;;  %s5362_s15 = int_to_ptr.vmem [resolvable:$true] %s377_s15 }
  0x1e   : > { %p5358_p4 = pnand %p3913_p0, %p365_p3  ;;  %s403_s18 = sshll.u32 %s5224_s17, 4  ;;  %s5372_s18 = int_to_ptr.vmem [resolvable:$true] %s403_s18 }
  0x1f   : > { %s5225_s19 = smov [#allocation18]   ;;  %s6730_s1 = sld [smem:[#allocation45_spill]] }
  0x20   : > { %s6727_s13 = scalar_select %p5358_p4, 1, 0 }
  0x21   : > { %p4226_p5 = pneg %p5358_p4  ;;  %s429_s20 = sshll.u32 %s5225_s19, 4  ;;  %s5374_s20 = int_to_ptr.vmem [resolvable:$true] %s429_s20 }
  0x22   : > { %6728 = sst [smem:[#allocation32_spill]] %s6727_s13 }
  0x23   : > { %p5368_p6 = pnand %p4226_p5, %p6697_p1 }
  0x25   : > { %s4845_s10 = scalar_lea.hbm %s6730_s1, 4096  ;;  %p5384_p8 = pneg %p5368_p6 }
  0x26   : > { %p4846_p7 = scmp.ne.s32.totalorder %s6730_s1, %s4845_s10  ;;  %p4852_p11 = scmp.lt.u32.totalorder %s4845_s10, %s6730_s1 }
  0x28   : > { %p4848_p9 = pnand %p5384_p8, %p4846_p7 }
  0x2a   : > { %p4849_p10 = pneg %p4848_p9 }
  0x2c   : > { %p4854_p12 = pnand %p4852_p11, %p4849_p10 }
  0x2e   : > { %4857 = shalt.err (!%p4854_p12)
}
  0x2f   : > { %s4858_s9 = scalar_lea.vmem %s5362_s15, 4096  ;;  %p4866_p5 = scmp.lt.s32.totalorder %s5362_s15, %s5362_s15 }
  0x30   : > { %p4859_p13 = scmp.ne.s32.totalorder %s5362_s15, %s4858_s9  ;;  %p4867_p2 = scmp.lt.s32.totalorder %s4858_s9, %s4858_s9 }
  0x32   : > { %p4861_p0 = pnand %p4859_p13, %p5384_p8  ;;  %p4868_p7 = por %p4867_p2, %p4866_p5 }
  0x34   : > { %p4862_p3 = pneg %p4861_p0 }
  0x36   : > { %p4869_p9 = pnand %p4868_p7, %p4862_p3 }
  0x38   : > { %4872 = shalt.err (!%p4869_p9)
}
  0x39   : > { %s5226_s11 = smov 256   ;;  %s5227_s10 = smov 16  }
  0x3a   : > { %4229 = dma.hbm_to_vmem [thread:$0]  (!%p5368_p6), %s6730_s1, 4096, %s5362_s15, [#allocation13], %s5226_s11, %s5226_s11, %s5227_s10  }
  0x3b   : > { %s6732_s3 = sld [smem:[#allocation47_spill]] }
  0x41   : > { %s4873_s9 = scalar_lea.hbm %s6732_s3, 4096 }
  0x42   : > { %p4874_p2 = scmp.ne.s32.totalorder %s6732_s3, %s4873_s9  ;;  %p4880_p12 = scmp.lt.u32.totalorder %s4873_s9, %s6732_s3 }
  0x44   : > { %p4876_p10 = pnand %p4874_p2, %p5384_p8 }
  0x46   : > { %p4877_p11 = pneg %p4876_p10 }
  0x48   : > { %p4882_p13 = pnand %p4880_p12, %p4877_p11 }
  0x4a   : > { %4885 = shalt.err (!%p4882_p13)
}
  0x4b   : > { %s4886_s15 = scalar_lea.vmem %s5372_s18, 4096  ;;  %p4894_p7 = scmp.lt.s32.totalorder %s5372_s18, %s5372_s18 }
  0x4c   : > { %p4887_p0 = scmp.ne.s32.totalorder %s5372_s18, %s4886_s15  ;;  %p4895_p9 = scmp.lt.s32.totalorder %s4886_s15, %s4886_s15 }
  0x4e   : > { %p4889_p3 = pnand %p4887_p0, %p5384_p8  ;;  %p4896_p2 = por %p4895_p9, %p4894_p7 }
  0x50   : > { %p4890_p5 = pneg %p4889_p3 }
  0x52   : > { %p4897_p10 = pnand %p4896_p2, %p4890_p5 }
  0x54   : > { %4900 = shalt.err (!%p4897_p10)
}
  0x55   : > { %4235 = dma.hbm_to_vmem [thread:$0]  (!%p5368_p6), %s6732_s3, 4096, %s5372_s18, [#allocation16], %s5226_s11, %s5226_s11, %s5227_s10  }
  0x56   : > { %s6733_s5 = sld [smem:[#allocation49_spill]] }
  0x5c   : > { %s4901_s12 = scalar_lea.hbm %s6733_s5, 4096 }
  0x5d   : > { %p4902_p11 = scmp.ne.s32.totalorder %s6733_s5, %s4901_s12  ;;  %p4908_p0 = scmp.lt.u32.totalorder %s4901_s12, %s6733_s5 }
  0x5f   : > { %p4904_p12 = pnand %p4902_p11, %p5384_p8 }
  0x61   : > { %p4905_p13 = pneg %p4904_p12 }
  0x63   : > { %p4910_p3 = pnand %p4908_p0, %p4905_p13 }
  0x65   : > { %4913 = shalt.err (!%p4910_p3)
}
  0x66   : > { %s4914_s18 = scalar_lea.vmem %s5374_s20, 4096  ;;  %p4922_p2 = scmp.lt.s32.totalorder %s5374_s20, %s5374_s20 }
  0x67   : > { %p4915_p5 = scmp.ne.s32.totalorder %s5374_s20, %s4914_s18  ;;  %p4923_p10 = scmp.lt.s32.totalorder %s4914_s18, %s4914_s18 }
  0x69   : > { %p4917_p7 = pnand %p4915_p5, %p5384_p8  ;;  %p4924_p11 = por %p4923_p10, %p4922_p2 }
  0x6b   : > { %p4918_p9 = pneg %p4917_p7 }
  0x6d   : > { %p4925_p12 = pnand %p4924_p11, %p4918_p9 }
  0x6f   : > { %4928 = shalt.err (!%p4925_p12)
}
  0x70   : > { %4241 = dma.hbm_to_vmem [thread:$0]  (!%p5368_p6), %s6733_s5, 4096, %s5374_s20, [#allocation19], %s5226_s11, %s5226_s11, %s5227_s10  }
  0x71   : > { %s5228_s7 = smov [#allocation14]   ;;  %s5229_s13 = smov [#allocation17]  }
  0x72   : > { %s390_s27 = sshll.u32 %s5228_s7, 4  ;;  %s416_s12 = sshll.u32 %s5229_s13, 4  ;;  %s391_s27 = int_to_ptr.vmem [resolvable:$true] %s390_s27  ;;  %s5460_s12 = int_to_ptr.vmem [resolvable:$true] %s416_s12 }
  0x73   : > { %s6734_s2 = sld [smem:[#allocation46_spill]] }
  0x79   : > { %s4929_s19 = scalar_lea.hbm %s6734_s2, 4096 }
  0x7a   : > { %p4930_p13 = scmp.ne.s32.totalorder %s6734_s2, %s4929_s19  ;;  %p4936_p5 = scmp.lt.u32.totalorder %s4929_s19, %s6734_s2 }
  0x7c   : > { %p4932_p0 = pnand %p4930_p13, %p5384_p8 }
  0x7e   : > { %p4933_p3 = pneg %p4932_p0 }
  0x80   : > { %p4938_p7 = pnand %p4936_p5, %p4933_p3 }
  0x82   : > { %4941 = shalt.err (!%p4938_p7)
}
  0x83   : > { %s4942_s0 = scalar_lea.vmem %s391_s27, 4096  ;;  %p4950_p11 = scmp.lt.s32.totalorder %s391_s27, %s391_s27 }
  0x84   : > { %p4943_p9 = scmp.ne.s32.totalorder %s391_s27, %s4942_s0  ;;  %p4951_p12 = scmp.lt.s32.totalorder %s4942_s0, %s4942_s0 }
  0x86   : > { %p4945_p2 = pnand %p4943_p9, %p5384_p8  ;;  %p4952_p1 = por %p4951_p12, %p4950_p11 }
  0x88   : > { %p4946_p10 = pneg %p4945_p2 }
  0x8a   : > { %p4953_p4 = pnand %p4952_p1, %p4946_p10 }
  0x8c   : > { %4956 = shalt.err (!%p4953_p4)
}
  0x8d   : > { %4232 = dma.hbm_to_vmem [thread:$0]  (!%p5368_p6), %s6734_s2, 4096, %s391_s27, [#allocation13], %s5226_s11, %s5226_s11, %s5227_s10  }
  0x8e   : > { %s6735_s4 = sld [smem:[#allocation48_spill]] }
  0x94   : > { %s4957_s19 = scalar_lea.hbm %s6735_s4, 4096 }
  0x95   : > { %p4958_p13 = scmp.ne.s32.totalorder %s6735_s4, %s4957_s19  ;;  %p4964_p0 = scmp.lt.u32.totalorder %s4957_s19, %s6735_s4 }
  0x97   : > { %p4960_p1 = pnand %p4958_p13, %p5384_p8 }
  0x99   : > { %p4961_p4 = pneg %p4960_p1 }
  0x9b   : > { %p4966_p3 = pnand %p4964_p0, %p4961_p4 }
  0x9d   : > { %4969 = shalt.err (!%p4966_p3)
}
  0x9e   : > { %s4970_s27 = scalar_lea.vmem %s5460_s12, 4096  ;;  %p4978_p2 = scmp.lt.s32.totalorder %s5460_s12, %s5460_s12 }
  0x9f   : > { %p4971_p5 = scmp.ne.s32.totalorder %s5460_s12, %s4970_s27  ;;  %p4979_p10 = scmp.lt.s32.totalorder %s4970_s27, %s4970_s27 }
  0xa1   : > { %p4973_p7 = pnand %p4971_p5, %p5384_p8  ;;  %p4980_p11 = por %p4979_p10, %p4978_p2 }
  0xa3   : > { %p4974_p9 = pneg %p4973_p7 }
  0xa5   : > { %p4981_p12 = pnand %p4980_p11, %p4974_p9 }
  0xa7   : > { %4984 = shalt.err (!%p4981_p12)
}
  0xa8   : > { %4238 = dma.hbm_to_vmem [thread:$0]  (!%p5368_p6), %s6735_s4, 4096, %s5460_s12, [#allocation16], %s5226_s11, %s5226_s11, %s5227_s10  }
  0xa9   : > { %s5230_s13 = smov [#allocation20]   ;;  %s4985_s9 = scalar_lea.hbm %s6684_s6, 4096 }
  0xaa   : > { %s442_s14 = sshll.u32 %s5230_s13, 4  ;;  %p4986_p13 = scmp.ne.s32.totalorder %s6684_s6, %s4985_s9  ;;  %s443_s14 = int_to_ptr.vmem [resolvable:$true] %s442_s14 }
  0xab   : > { %p4992_p0 = scmp.lt.u32.totalorder %s4985_s9, %s6684_s6 }
  0xac   : > { %p4988_p1 = pnand %p4986_p13, %p5384_p8 }
  0xae   : > { %p4989_p4 = pneg %p4988_p1 }
  0xb0   : > { %p4994_p3 = pnand %p4992_p0, %p4989_p4 }
  0xb2   : > { %4997 = shalt.err (!%p4994_p3)
}
  0xb3   : > { %s4998_s12 = scalar_lea.vmem %s443_s14, 4096  ;;  %p5006_p2 = scmp.lt.s32.totalorder %s443_s14, %s443_s14 }
  0xb4   : > { %p4999_p5 = scmp.ne.s32.totalorder %s443_s14, %s4998_s12  ;;  %p5007_p10 = scmp.lt.s32.totalorder %s4998_s12, %s4998_s12 }
  0xb6   : > { %p5001_p7 = pnand %p4999_p5, %p5384_p8  ;;  %p5008_p11 = por %p5007_p10, %p5006_p2 }
  0xb8   : > { %p5002_p9 = pneg %p5001_p7 }
  0xba   : > { %p5009_p12 = pnand %p5008_p11, %p5002_p9 }
  0xbc   : > { %5012 = shalt.err (!%p5009_p12)
}
  0xbd   : > { %4244 = dma.hbm_to_vmem [thread:$0]  (!%p5368_p6), %s6684_s6, 4096, %s443_s14, [#allocation19], %s5226_s11, %s5226_s11, %s5227_s10  }
  0xbe   : > { %s6699_s8 = sadd.s32 4294967294, %s5221_s29   ;;  %s44_s16 = sadd.s32 1, %s5217_s28 }
  0xbf   : > { %s56_s13 = sadd.s32 1, %s5209_s26  ;;  %p45_p8 = scmp.ge.s32.totalorder %s44_s16, 3 }
  0xc0   : > { %p63_p13 = scmp.ne.s32.totalorder %s5209_s26, %s5205_s25  ;;  %p64_p1 = scmp.eq.s32.totalorder %s5221_s29, 0 }
  0xc1   : > { %p69_p4 = scmp.ne.s32.totalorder %s5205_s25, %s5201_s24  ;;  %s6830_s16 = smov (%p45_p8, %s44_s16), 0 }
  0xc2   : > { %p5540_p6 = por %p64_p1, %p63_p13  ;;  %p6737_p0 = scmp.eq.s32.totalorder %s5352_s30, 0 }
  0xc3   : > { %s51_s14 = ssub.s32 %s5217_s28, %s6830_s16  ;;  %p268_p5 = scmp.gt.s32.totalorder %s5217_s28, 0 }
  0xc4   : > { %p5546_p3 = por %p6737_p0, %p69_p4  ;;  %p54_p7 = scmp.eq.s32.totalorder %s51_s14, 0 }
  0xc5   : > { %p270_p9 = scmp.gt.s32.totalorder %s6830_s16, 0  ;;  %s277_s9 = sadd.s32 1, %s5197_s23 }
  0xc6   : > { %s269_s24 = scalar_select %p268_p5, %s5217_s28, 0 }
  0xc7   : > { %s5556_s17 = scalar_select %p54_p7, %s5209_s26, %s56_s13  }
  0xc8   : > { %s271_s19 = scalar_select %p270_p9, %s6830_s16, 0 }
  0xc9   : > { %p287_p2 = scmp.ne.s32.totalorder %s5197_s23, %s5193_s22  ;;  %p293_p10 = scmp.ne.s32.totalorder %s5193_s22, %s5189_s21 }
  0xca   : > { %s272_s18 = ssub.s32 %s269_s24, %s271_s19  ;;  %p6739_p12 = scmp.eq.s32.totalorder %s5352_s30, 2 }
  0xcb   : > { %p275_p11 = scmp.eq.s32.totalorder %s272_s18, 0  ;;  %p294_p13 = scmp.eq.s32.totalorder %s6699_s8, 2 }
  0xcc   : > { %p5566_p8 = por %p6739_p12, %p287_p2  ;;  %p4265_p1 = scmp.lt.s32.totalorder %s5221_s29, 3 }
  0xcd   : > { %s5574_s20 = scalar_select %p275_p11, %s5197_s23, %s277_s9  }
  0xce   : > { %s6740_s15 = scalar_select %p5566_p8, 1, 0 }
  0xcf   : > { %p5576_p4 = por %p294_p13, %p293_p10  ;;  %s465_s12 = sand.u32 1, %s5209_s26  }
  0xd0   : > { %s3921_s0 = sshll.u32 %s465_s12, 4  ;;  %s4190_s7 = sshll.u32 %s5217_s28, 8 }
  0xd1   : > { %s6741_s27 = scalar_select %p5576_p4, 1, 0 }
  0xd2   : > { %s6742_s24 = sld [smem:[#allocation44_spill]]  ;;  %s469_s8 = scalar_lea.vmem [#allocation9], %s3921_s0 }
  0xd3   : > { %s477_s1 = sshll.u32 %s469_s8, 4  ;;  %p5591_p0 = pnand %p4265_p1, %p5540_p6  ;;  %s5587_s1 = int_to_ptr.vmem [resolvable:$true] %s477_s1 }
  0xd4   : > { %s5595_s2 = scalar_lea.sflag [#allocation10], %s465_s12 }
  0xd5   : > { %p5015_p7 = pneg %p5591_p0 }
  0xd8   : > { %s6743_s19 = smov %s6742_s24  ;;  %s5585_s18 = scalar_lea.hbm %s6742_s24, %s4190_s7 }
  0xd9   : > { %s5013_s13 = scalar_lea.hbm %s5585_s18, 256  ;;  %s5018_s11 = scalar_lea.hbm %s6743_s19, 768 }
  0xda   : > { %p5014_p5 = scmp.ne.s32.totalorder %s5585_s18, %s5013_s13  ;;  %p5019_p6 = scmp.lt.u32.totalorder %s5585_s18, %s6743_s19 }
  0xdb   : > { %p5020_p10 = scmp.lt.u32.totalorder %s5018_s11, %s5013_s13  ;;  %p5022_p12 = scmp.lt.u32.totalorder %s5013_s13, %s5585_s18 }
  0xdc   : > { %p5016_p9 = pnand %p5015_p7, %p5014_p5 }
  0xdd   : > { %p5021_p11 = por %p5020_p10, %p5019_p6 }
  0xde   : > { %p5017_p2 = pneg %p5016_p9 }
  0xdf   : > { %p5023_p13 = por %p5022_p12, %p5021_p11 }
  0xe1   : > { %p5024_p1 = pnand %p5023_p13, %p5017_p2 }
  0xe3   : > { %5027 = shalt.err (!%p5024_p1)
}
  0xe4   : > { %s5028_s12 = scalar_lea.vmem %s5587_s1, 256  ;;  %s5231_s24 = smov [#allocation9]  }
  0xe5   : > { %p5029_p5 = scmp.ne.s32.totalorder %s5587_s1, %s5028_s12  ;;  %s5033_s8 = sshll.u32 %s5231_s24, 4  ;;  %s5034_s8 = int_to_ptr.vmem [resolvable:$false] %s5033_s8 }
  0xe6   : > { %s5035_s0 = scalar_lea.vmem %s5034_s8, 512  ;;  %p5036_p8 = scmp.lt.s32.totalorder %s5587_s1, %s5034_s8 }
  0xe7   : > { %p5031_p9 = pnand %p5029_p5, %p5015_p7  ;;  %p5037_p6 = scmp.lt.s32.totalorder %s5035_s0, %s5028_s12 }
  0xe9   : > { %p5032_p4 = pneg %p5031_p9  ;;  %p5038_p10 = por %p5037_p6, %p5036_p8 }
  0xeb   : > { %p5039_p11 = pnand %p5038_p10, %p5032_p4 }
  0xed   : > { %5042 = shalt.err (!%p5039_p11)
}
  0xee   : > { %s5232_s13 = smov 64   ;;  %s5233_s11 = smov 4  }
  0xef   : > { %4248 = dma.hbm_to_vmem [thread:$0]  (!%p5591_p0), %s5585_s18, 256, %s5587_s1, %s5595_s2, %s5232_s13, %s5232_s13, %s5233_s11  }
  0xf0   : > { %s6745_s7 = sld [smem:[#allocation32_spill]] }
  0xf6   : > { %p6746_p7 = scmp.ne.s32.totalorder %s6745_s7, 0 }
  0xf8   : > { %489 = sbr.rel (%p6746_p7) target bundleno = 3516 (0xdbc), region = 60 }
  0xff   : > { %s491_s14 = sand.u32 1, %s5205_s25  }
 0x100   : > { %s5626_s24 = sshll.u32 %s491_s14, 4  ;;  %s492_s12 = scalar_lea.sflag [#allocation10], %s491_s14 }
 0x101   : > { %s495_s8 = scalar_lea.vmem [#allocation9], %s5626_s24 }
 0x102   : > { %5164 = dma.done.wait (%p5546_p3), %s492_s12, 256  }
 0x103   : > { %5166 = vsyncadd (%p5546_p3), %s492_s12, 4294967040  ;;  %p6747_p8 = scmp.eq.s32.totalorder %s5352_s30, 0 }
 0x105   : > { %5168 = dma.done.wait (%p6747_p8), [#allocation13], 8192   ;;  %p6748_p4 = pmov %p6747_p8 }
 0x107   : > { %5170 = vsyncadd (%p6748_p4), [#allocation13], 4294959104  ;;  %p6749_p0 = pmov %p6748_p4 }
 0x109   : > { %5172 = dma.done.wait (%p6749_p0), [#allocation16], 8192   ;;  %p6750_p2 = pmov %p6749_p0 }
 0x10a   : > { %p6751_p12 = pmov %p6749_p0 }
 0x10b   : > { %5174 = vsyncadd (%p6750_p2), [#allocation16], 4294959104 }
 0x10c   : > { %5176 = dma.done.wait (%p6751_p12), [#allocation19], 8192   ;;  %p6752_p13 = pmov %p6749_p0 }
 0x10d   : > { %s6711_s1 = sand.u32 1, %s5193_s22   ;;  %s6753_s0 = sld [smem:[#allocation31_spill]] }
 0x10e   : > { %5178 = vsyncadd (%p6752_p13), [#allocation19], 4294959104  ;;  %s3932_s2 = sshll.u32 %s6711_s1, 4 }
 0x10f   : > { %s5648_s10 = scalar_lea.vmem [#allocation21], %s3932_s2  ;;  %s5650_s18 = scalar_lea.vmem [#allocation22], %s3932_s2 }
 0x110   : > { %s5652_s9 = scalar_lea.vmem [#allocation24], %s3932_s2 }
 0x113   : > { %p3935_p3 = scmp.ne.s32.totalorder %s6753_s0, 0 }
 0x114   : > { %v5234_v0 = vmov (!%p3935_p3), 0.0  }
 0x115   : > { %584 = sbr.rel (%p3935_p3) target bundleno = 284 (0x11c), region = 92  ;;  %585 = vst [vmem:[#allocation2] sm:$0xff] (!%p3935_p3), %v5234_v0  ;;  %586 = vst [vmem:[#allocation5] sm:$0xff] (!%p3935_p3), %v5234_v0 }
 0x116   : > { %587 = vst [vmem:[#allocation3] sm:$0xff] (!%p3935_p3), %v5234_v0  ;;  %588 = vst [vmem:[#allocation6] sm:$0xff] (!%p3935_p3), %v5234_v0 }
 0x117   : > { %589 = vst [vmem:[#allocation4] sm:$0xff] (!%p3935_p3), %v5234_v0  ;;  %590 = vst [vmem:[#allocation7] sm:$0xff] (!%p3935_p3), %v5234_v0 }
 0x11c PF: > { %v4359_v1 = vld [vmem:[#allocation12 + $0x4] ss:$16 sps:$4 sm:$0xff]   ;;  %v4361_v2 = vld [vmem:[#allocation12 + $0xc] ss:$16 sps:$4 sm:$0xff]   ;;  %v6701_v3 = vmov 0   ;;  %s6756_s7 = sld [smem:[#allocation50_spill]] }
 0x11d   : > { %887 = vmatprep.mubr.bf16.mxu0 %v6701_v3  ;;  %940 = vmatprep.mubr.bf16.mxu1 %v6701_v3  ;;  %v4363_v4 = vld [vmem:[#allocation12] ss:$16 sps:$4 sm:$0xff]   ;;  %v4364_v5 = vld [vmem:[#allocation12 + $0x8] ss:$16 sps:$4 sm:$0xff]   ;;  %v4365_v6 = vld [vmem:[#allocation12 + $0x24] ss:$16 sps:$4 sm:$0xff]  }
 0x11e   : > { %855 = vmatprep.subr.bf16.mxu0 %v4359_v1  ;;  %908 = vmatprep.subr.bf16.mxu1 %v4361_v2  ;;  %v4367_v7 = vld [vmem:[#allocation12 + $0x2c] ss:$16 sps:$4 sm:$0xff]   ;;  %v4369_v8 = vld [vmem:[#allocation12 + $0x20] ss:$16 sps:$4 sm:$0xff]   ;;  %v4370_v9 = vld [vmem:[#allocation12 + $0x28] ss:$16 sps:$4 sm:$0xff]  }
 0x11f   : > { %856 = vmatpush1.bf16.msra.mxu0 %v4363_v4  ;;  %909 = vmatpush1.bf16.msra.mxu1 %v4364_v5  ;;  %v4371_v10 = vld [vmem:[#allocation12 + $0x44] ss:$16 sps:$4 sm:$0xff]   ;;  %v4373_v11 = vld [vmem:[#allocation12 + $0x4c] ss:$16 sps:$4 sm:$0xff]   ;;  %v4375_v12 = vld [vmem:[#allocation12 + $0x40] ss:$16 sps:$4 sm:$0xff]  }
 0x120   : > { %857 = vmatprep.subr.bf16.mxu0 %v4365_v6  ;;  %910 = vmatprep.subr.bf16.mxu1 %v4367_v7  ;;  %v4376_v13 = vld [vmem:[#allocation12 + $0x48] ss:$16 sps:$4 sm:$0xff]   ;;  %v4377_v14 = vld [vmem:[#allocation12 + $0x64] ss:$16 sps:$4 sm:$0xff]   ;;  %v4379_v15 = vld [vmem:[#allocation12 + $0x6c] ss:$16 sps:$4 sm:$0xff]   ;;  %v663_v7 = vlaneseq }
 0x121   : > { %v4381_v16 = vld [vmem:[#allocation12 + $0x60] ss:$16 sps:$4 sm:$0xff]   ;;  %v4382_v17 = vld [vmem:[#allocation12 + $0x68] ss:$16 sps:$4 sm:$0xff]   ;;  %v4383_v18 = vld [vmem:[#allocation12 + $0x84] ss:$16 sps:$4 sm:$0xff]  }
 0x122   : > { %v4385_v19 = vld [vmem:[#allocation12 + $0x8c] ss:$16 sps:$4 sm:$0xff]   ;;  %v4387_v20 = vld [vmem:[#allocation12 + $0x80] ss:$16 sps:$4 sm:$0xff]   ;;  %v4388_v21 = vld [vmem:[#allocation12 + $0x88] ss:$16 sps:$4 sm:$0xff]  }
 0x123   : > { %858 = vmatpush1.bf16.msra.mxu0 %v4369_v8  ;;  %911 = vmatpush1.bf16.msra.mxu1 %v4370_v9  ;;  %v4389_v22 = vld [vmem:[#allocation12 + $0xa4] ss:$16 sps:$4 sm:$0xff]   ;;  %v4391_v23 = vld [vmem:[#allocation12 + $0xac] ss:$16 sps:$4 sm:$0xff]   ;;  %v4393_v24 = vld [vmem:[#allocation12 + $0xa0] ss:$16 sps:$4 sm:$0xff]  }
 0x124   : > { %859 = vmatprep.subr.bf16.mxu0 %v4371_v10  ;;  %912 = vmatprep.subr.bf16.mxu1 %v4373_v11  ;;  %v4394_v25 = vld [vmem:[#allocation12 + $0xa8] ss:$16 sps:$4 sm:$0xff]   ;;  %v4395_v26 = vld [vmem:[#allocation12 + $0xc4] ss:$16 sps:$4 sm:$0xff]   ;;  %v4397_v27 = vld [vmem:[#allocation12 + $0xcc] ss:$16 sps:$4 sm:$0xff]  }
 0x125   : > { %v4399_v28 = vld [vmem:[#allocation12 + $0xc0] ss:$16 sps:$4 sm:$0xff]   ;;  %v4400_v29 = vld [vmem:[#allocation12 + $0xc8] ss:$16 sps:$4 sm:$0xff]   ;;  %v4401_v30 = vld [vmem:[#allocation12 + $0xe4] ss:$16 sps:$4 sm:$0xff]  }
 0x126   : > { %v4403_v31 = vld [vmem:[#allocation12 + $0xec] ss:$16 sps:$4 sm:$0xff]   ;;  %v4405_v32 = vld [vmem:[#allocation12 + $0xe0] ss:$16 sps:$4 sm:$0xff]   ;;  %v4406_v33 = vld [vmem:[#allocation12 + $0xe8] ss:$16 sps:$4 sm:$0xff]  }
 0x127   : > { %860 = vmatpush1.bf16.msra.mxu0 %v4375_v12  ;;  %913 = vmatpush1.bf16.msra.mxu1 %v4376_v13  ;;  %v5657_v34 = vld [vmem:[#allocation17 + $0x4] ss:$16 sps:$4 sm:$0xff]   ;;  %v5659_v35 = vld [vmem:[#allocation17 + $0xc] ss:$16 sps:$4 sm:$0xff]   ;;  %v5663_v37 = vld [vmem:[#allocation17] ss:$16 sps:$4 sm:$0xff]  }
 0x128   : > { %861 = vmatprep.subr.bf16.mxu0 %v4377_v14  ;;  %914 = vmatprep.subr.bf16.mxu1 %v4379_v15  ;;  %v4407_v36 = vld [vmem:[%s495_s8] sm:$0xff]   ;;  %v5665_v38 = vld [vmem:[#allocation17 + $0x8] ss:$16 sps:$4 sm:$0xff]   ;;  %v5671_v40 = vld [vmem:[#allocation17 + $0x2c] ss:$16 sps:$4 sm:$0xff]   ;;  %v664_v8 = vshrl.u32 %v663_v7, 7 }
 0x129   : > { %v5667_v39 = vld [vmem:[#allocation17 + $0x24] ss:$16 sps:$4 sm:$0xff]   ;;  %v5673_v41 = vld [vmem:[#allocation17 + $0x20] ss:$16 sps:$4 sm:$0xff]   ;;  %v5675_v42 = vld [vmem:[#allocation17 + $0x28] ss:$16 sps:$4 sm:$0xff]  }
 0x12a   : > { %v5679_v43 = vld [vmem:[#allocation17 + $0x44] ss:$16 sps:$4 sm:$0xff]   ;;  %v5683_v44 = vld [vmem:[#allocation17 + $0x4c] ss:$16 sps:$4 sm:$0xff]   ;;  %v5685_v45 = vld [vmem:[#allocation17 + $0x40] ss:$16 sps:$4 sm:$0xff]  }
 0x12b   : > { %862 = vmatpush1.bf16.msra.mxu0 %v4381_v16  ;;  %915 = vmatpush1.bf16.msra.mxu1 %v4382_v17  ;;  %v4442_v46 = vld [vmem:[%s495_s8 + $0x8] sm:$0xff]   ;;  %v5697_v48 = vld [vmem:[#allocation17 + $0x64] ss:$16 sps:$4 sm:$0xff]   ;;  %v5703_v50 = vld [vmem:[#allocation17 + $0x60] ss:$16 sps:$4 sm:$0xff]   ;;  %v5797_v9 = vsub.s32 0, %v664_v8 }
 0x12c   : > { %863 = vmatprep.subr.bf16.mxu0 %v4383_v18  ;;  %916 = vmatprep.subr.bf16.mxu1 %v4385_v19  ;;  %v5693_v47 = vld [vmem:[#allocation17 + $0x48] ss:$16 sps:$4 sm:$0xff]   ;;  %v5699_v49 = vld [vmem:[#allocation17 + $0x6c] ss:$16 sps:$4 sm:$0xff]   ;;  %v5707_v52 = vld [vmem:[#allocation17 + $0x84] ss:$16 sps:$4 sm:$0xff]  }
 0x12d   : > { %v5705_v51 = vld [vmem:[#allocation17 + $0x68] ss:$16 sps:$4 sm:$0xff]   ;;  %v5711_v53 = vld [vmem:[#allocation17 + $0x8c] ss:$16 sps:$4 sm:$0xff]   ;;  %v5713_v54 = vld [vmem:[#allocation17 + $0x80] ss:$16 sps:$4 sm:$0xff]  }
 0x12e   : > { %v5715_v55 = vld [vmem:[#allocation17 + $0x88] ss:$16 sps:$4 sm:$0xff]   ;;  %v5719_v56 = vld [vmem:[#allocation17 + $0xa4] ss:$16 sps:$4 sm:$0xff]   ;;  %v5721_v57 = vld [vmem:[#allocation17 + $0xac] ss:$16 sps:$4 sm:$0xff]  }
 0x12f   : > { %864 = vmatpush1.bf16.msra.mxu0 %v4387_v20  ;;  %917 = vmatpush1.bf16.msra.mxu1 %v4388_v21  ;;  %v5727_v58 = vld [vmem:[#allocation17 + $0xa0] ss:$16 sps:$4 sm:$0xff]   ;;  %v5729_v59 = vld [vmem:[#allocation17 + $0xa8] ss:$16 sps:$4 sm:$0xff]   ;;  %v5731_v60 = vld [vmem:[#allocation17 + $0xc4] ss:$16 sps:$4 sm:$0xff]  }
 0x130   : > { %865 = vmatprep.subr.bf16.mxu0 %v4389_v22  ;;  %918 = vmatprep.subr.bf16.mxu1 %v4391_v23  ;;  %v5733_v61 = vld [vmem:[#allocation17 + $0xcc] ss:$16 sps:$4 sm:$0xff]   ;;  %v5739_v62 = vld [vmem:[#allocation17 + $0xc0] ss:$16 sps:$4 sm:$0xff]   ;;  %v5741_v63 = vld [vmem:[#allocation17 + $0xc8] ss:$16 sps:$4 sm:$0xff]  }
 0x131   : > { %v5743_v0 = vld [vmem:[#allocation17 + $0xe4] ss:$16 sps:$4 sm:$0xff]   ;;  %v5745_v1 = vld [vmem:[#allocation17 + $0xec] ss:$16 sps:$4 sm:$0xff]   ;;  %v5751_v2 = vld [vmem:[#allocation17 + $0xe0] ss:$16 sps:$4 sm:$0xff]  }
 0x132   : > { %v5753_v4 = vld [vmem:[#allocation17 + $0xe8] ss:$16 sps:$4 sm:$0xff]   ;;  %v656_v5 = vld [vmem:[#allocation2] sm:$0xff]  ;;  %6754 = vst [vmem:[#allocation33_spill] sm:$0xff] %v5797_v9  ;;  %v5799_v10 = vsub.s32 2, %v664_v8  ;;  %v5804_v12 = vsub.s32 3, %v664_v8 }
 0x133   : > { %866 = vmatpush1.bf16.msra.mxu0 %v4393_v24  ;;  %919 = vmatpush1.bf16.msra.mxu1 %v4394_v25  ;;  %v981_v6 = vpack.c.bf16 %v656_v5, %v656_v5  ;;  %v655_v11 = vld [vmem:[%s6756_s7] sm:$0xf]  ;;  %v5806_v13 = vsub.s32 1, %v664_v8  ;;  %s6774_s12 = sld [smem:[#allocation51_spill]]  ;;  %s6793_s0 = sld [smem:[#allocation52_spill]] }
 0x134   : > { %867 = vmatprep.subr.bf16.mxu0 %v4395_v26  ;;  %920 = vmatprep.subr.bf16.mxu1 %v4397_v27  ;;  %6755 = vst [vmem:[#allocation34_spill] sm:$0xff] %v5799_v10  ;;  %6757 = vst [vmem:[#allocation35_spill] sm:$0xff] %v5804_v12  ;;  %v666_v14 = vrot.slane %v655_v11, %v5797_v9  ;;  %v674_v15 = vrot.slane %v655_v11, %v5799_v10  ;;  %s6808_s13 = sld [smem:[#allocation31_spill]]  ;;  %s3644_s11 = sand.u32 1, %s5352_s30  }
 0x135   : > { %6758 = vst [vmem:[#allocation36_spill] sm:$0xff] %v5806_v13  ;;  %v678_v18 = vrot.slane %v655_v11, %v5804_v12  ;;  %v670_v21 = vrot.slane %v655_v11, %v5806_v13  ;;  %s3685_s2 = sshll.u32 %s5650_s18, 4  ;;  %p6810_p9 = scmp.ne.s32.totalorder %s6740_s15, 0  ;;  %s6534_s2 = int_to_ptr.vmem [resolvable:$true] %s3685_s2 }
 0x136   : > { %s5043_s1 = scalar_lea.vmem %s6534_s2, 256  ;;  %s5236_s30 = smov [#allocation22]  }
 0x137   : > { %868 = vmatpush1.bf16.msra.mxu0 %v4399_v28  ;;  %921 = vmatpush1.bf16.msra.mxu1 %v4400_v29  ;;  %p5044_p5 = scmp.ne.s32.totalorder %s6534_s2, %s5043_s1 }
 0x138   : > { %869 = vmatprep.subr.bf16.mxu0 %v4401_v30  ;;  %922 = vmatprep.subr.bf16.mxu1 %v4403_v31 }
 0x139   : > { %p5045_p6 = pnand %p5044_p5, %p6810_p9 }
 0x13a   : > { %p3657_p1 = scmp.gt.s32.totalorder %s6808_s13, 0 }
 0x13b   : > { %870 = vmatpush1.bf16.msra.mxu0 %v4405_v32  ;;  %923 = vmatpush1.bf16.msra.mxu1 %v4406_v33  ;;  %p5046_p10 = pneg %p5045_p6 }
 0x13c   : > { %1142 = vmatprep.subr.bf16.mxu0 %v5657_v34  ;;  %1183 = vmatprep.subr.bf16.mxu1 %v5659_v35  ;;  %s6832_s13 = smov (!%p3657_p1, %s6808_s13), 0 }
 0x13d   : > { %s6525_s7 = sshll.u32 %s6832_s13, 8  ;;  %s5047_s13 = sshll.u32 %s5236_s30, 4  ;;  %s5048_s13 = int_to_ptr.vmem [resolvable:$false] %s5047_s13 }
 0x13e   : > { %888 = vmatmul.mubr.bf16.vlgmr.msra.gmra.mrb[0].mxu0 %v4407_v36  ;;  %941 = vmatmul.mubr.bf16.vlgmr.msra.gmra.mrb[0].mxu1 %v4407_v36  ;;  %s5049_s3 = scalar_lea.vmem %s5048_s13, 512  ;;  %p5050_p11 = scmp.lt.s32.totalorder %s6534_s2, %s5048_s13 }
 0x13f   : > { %1143 = vmatpush1.bf16.msra.mxu0 %v5663_v37  ;;  %1184 = vmatpush1.bf16.msra.mxu1 %v5665_v38  ;;  %p5051_p7 = scmp.lt.s32.totalorder %s5049_s3, %s5043_s1 }
 0x140   : > { %1144 = vmatprep.subr.bf16.mxu0 %v5667_v39  ;;  %1185 = vmatprep.subr.bf16.mxu1 %v5671_v40 }
 0x141   : > { %897 = vmatprep.mubr.bf16.mxu0 %v6701_v3  ;;  %950 = vmatprep.mubr.bf16.mxu1 %v6701_v3  ;;  %p5052_p8 = por %p5051_p7, %p5050_p11 }
 0x143   : > { %1145 = vmatpush1.bf16.msra.mxu0 %v5673_v41  ;;  %1186 = vmatpush1.bf16.msra.mxu1 %v5675_v42  ;;  %p5053_p4 = pnand %p5052_p8, %p5046_p10 }
 0x144   : > { %1146 = vmatprep.subr.bf16.mxu0 %v5679_v43  ;;  %1187 = vmatprep.subr.bf16.mxu1 %v5683_v44 }
 0x146   : > { %898 = vmatmul.mubr.bf16.gmra.mrb[4].mxu0 %v4442_v46  ;;  %951 = vmatmul.mubr.bf16.gmra.mrb[4].mxu1 %v4442_v46 }
 0x147   : > { %1147 = vmatpush1.bf16.msra.mxu0 %v5685_v45  ;;  %1188 = vmatpush1.bf16.msra.mxu1 %v5693_v47 }
 0x148   : > { %1148 = vmatprep.subr.bf16.mxu0 %v5697_v48  ;;  %1189 = vmatprep.subr.bf16.mxu1 %v5699_v49 }
 0x149   : > { %1174 = vmatprep.mubr.bf16.mxu0 %v6701_v3  ;;  %1215 = vmatprep.mubr.bf16.mxu1 %v6701_v3 }
 0x14b   : > { %1149 = vmatpush1.bf16.msra.mxu0 %v5703_v50  ;;  %1190 = vmatpush1.bf16.msra.mxu1 %v5705_v51 }
 0x14c   : > { %1150 = vmatprep.subr.bf16.mxu0 %v5707_v52  ;;  %1191 = vmatprep.subr.bf16.mxu1 %v5711_v53 }
 0x14f   : > { %1151 = vmatpush1.bf16.msra.mxu0 %v5713_v54  ;;  %1192 = vmatpush1.bf16.msra.mxu1 %v5715_v55 }
 0x150   : > { %1152 = vmatprep.subr.bf16.mxu0 %v5719_v56  ;;  %1193 = vmatprep.subr.bf16.mxu1 %v5721_v57 }
 0x153   : > { %1153 = vmatpush1.bf16.msra.mxu0 %v5727_v58  ;;  %1194 = vmatpush1.bf16.msra.mxu1 %v5729_v59 }
 0x154   : > { %1154 = vmatprep.subr.bf16.mxu0 %v5731_v60  ;;  %1195 = vmatprep.subr.bf16.mxu1 %v5733_v61 }
 0x157   : > { %1155 = vmatpush1.bf16.msra.mxu0 %v5739_v62  ;;  %1196 = vmatpush1.bf16.msra.mxu1 %v5741_v63 }
 0x158   : > { %1156 = vmatprep.subr.bf16.mxu0 %v5743_v0  ;;  %1197 = vmatprep.subr.bf16.mxu1 %v5745_v1 }
 0x15b   : > { %1157 = vmatpush1.bf16.msra.mxu0 %v5751_v2  ;;  %1198 = vmatpush1.bf16.msra.mxu1 %v5753_v4 }
 0x15c   : > { %1258 = vmatprep.subr.bf16.mxu0 %v5657_v34  ;;  %1299 = vmatprep.subr.bf16.mxu1 %v5659_v35 }
 0x15e   : > { %1175 = vmatmul.mubr.bf16.vlgmr.msra.gmra.mrb[8].mxu0 %v981_v6  ;;  %1216 = vmatmul.mubr.bf16.vlgmr.msra.gmra.mrb[8].mxu1 %v981_v6 }
 0x15f   : > { %1259 = vmatpush1.bf16.msra.mxu0 %v5663_v37  ;;  %1300 = vmatpush1.bf16.msra.mxu1 %v5665_v38 }
 0x160   : > { %1260 = vmatprep.subr.bf16.mxu0 %v5667_v39  ;;  %1301 = vmatprep.subr.bf16.mxu1 %v5671_v40 }
 0x161   : > { %1290 = vmatprep.mubr.bf16.mxu0 %v6701_v3  ;;  %1331 = vmatprep.mubr.bf16.mxu1 %v6701_v3 }
 0x163   : > { %1261 = vmatpush1.bf16.msra.mxu0 %v5673_v41  ;;  %1302 = vmatpush1.bf16.msra.mxu1 %v5675_v42 }
 0x164   : > { %1262 = vmatprep.subr.bf16.mxu0 %v5679_v43  ;;  %1303 = vmatprep.subr.bf16.mxu1 %v5683_v44 }
 0x167   : > { %1263 = vmatpush1.bf16.msra.mxu0 %v5685_v45  ;;  %1304 = vmatpush1.bf16.msra.mxu1 %v5693_v47 }
 0x168   : > { %1264 = vmatprep.subr.bf16.mxu0 %v5697_v48  ;;  %1305 = vmatprep.subr.bf16.mxu1 %v5699_v49 }
 0x16b   : > { %1265 = vmatpush1.bf16.msra.mxu0 %v5703_v50  ;;  %1306 = vmatpush1.bf16.msra.mxu1 %v5705_v51 }
 0x16c   : > { %1266 = vmatprep.subr.bf16.mxu0 %v5707_v52  ;;  %1307 = vmatprep.subr.bf16.mxu1 %v5711_v53 }
 0x16f   : > { %1267 = vmatpush1.bf16.msra.mxu0 %v5713_v54  ;;  %1308 = vmatpush1.bf16.msra.mxu1 %v5715_v55 }
 0x170   : > { %1268 = vmatprep.subr.bf16.mxu0 %v5719_v56  ;;  %1309 = vmatprep.subr.bf16.mxu1 %v5721_v57 }
 0x173   : > { %1269 = vmatpush1.bf16.msra.mxu0 %v5727_v58  ;;  %1310 = vmatpush1.bf16.msra.mxu1 %v5729_v59 }
 0x174   : > { %1270 = vmatprep.subr.bf16.mxu0 %v5731_v60  ;;  %1311 = vmatprep.subr.bf16.mxu1 %v5733_v61 }
 0x177   : > { %1271 = vmatpush1.bf16.msra.mxu0 %v5739_v62  ;;  %1312 = vmatpush1.bf16.msra.mxu1 %v5741_v63 }
 0x178   : > { %1272 = vmatprep.subr.bf16.mxu0 %v5743_v0  ;;  %1313 = vmatprep.subr.bf16.mxu1 %v5745_v1 }
 0x17b   : > { %1273 = vmatpush1.bf16.msra.mxu0 %v5751_v2  ;;  %1314 = vmatpush1.bf16.msra.mxu1 %v5753_v4 }
 0x17c   : > { %1375 = vmatprep.subr.bf16.mxu0 %v5657_v34  ;;  %1416 = vmatprep.subr.bf16.mxu1 %v5659_v35 }
 0x211   : > { %v889_v16 = vpop.f32.mrb[0].mxu0  ;;  %v942_v17 = vpop.f32.mrb[0].mxu1 }
 0x212   : > { %v891_v19 = vpop.f32.mrb[1].mxu0  ;;  %v944_v20 = vpop.f32.mrb[1].mxu1  ;;  %v890_v3 = vadd.f32 %v889_v16, %v666_v14 }
 0x213   : > { %v893_v22 = vpop.f32.mrb[2].mxu0  ;;  %v946_v23 = vpop.f32.mrb[2].mxu1  ;;  %v892_v12 = vadd.f32 %v891_v19, %v670_v21  ;;  %v945_v13 = vadd.f32 %v944_v20, %v678_v18 }
 0x214   : > { %v5812_v24 = vadd.f32 %v893_v22, %v666_v14  ;;  %v895_v25 = vpop.f32.mrb[3].mxu0  ;;  %v5814_v26 = vadd.f32 %v946_v23, %v674_v15  ;;  %v948_v27 = vpop.f32.mrb[3].mxu1 }
 0x215   : > { %v5816_v28 = vadd.f32 %v895_v25, %v670_v21  ;;  %v5818_v29 = vadd.f32 %v948_v27, %v678_v18 }
 0x219   : > { %v899_v30 = vpop.f32.mrb[4].mxu0  ;;  %v952_v31 = vpop.f32.mrb[4].mxu1 }
 0x21a   : > { %v5820_v32 = vadd.f32 %v899_v30, %v666_v14  ;;  %v901_v33 = vpop.f32.mrb[5].mxu0  ;;  %v5822_v36 = vadd.f32 %v952_v31, %v674_v15  ;;  %v954_v46 = vpop.f32.mrb[5].mxu1  ;;  %v943_v31 = vadd.f32 %v942_v17, %v674_v15 }
 0x21b   : > { %v5824_v5 = vadd.f32 %v901_v33, %v670_v21  ;;  %v903_v6 = vpop.f32.mrb[6].mxu0  ;;  %v5826_v7 = vadd.f32 %v954_v46, %v678_v18  ;;  %v956_v8 = vpop.f32.mrb[6].mxu1 }
 0x21c   : > { %6759 = vst [vmem:[#allocation37_spill] sm:$0xff] %v5820_v32  ;;  %6760 = vst [vmem:[#allocation38_spill] sm:$0xff] %v5822_v36  ;;  %v5828_v11 = vadd.f32 %v903_v6, %v666_v14  ;;  %v905_v22 = vpop.f32.mrb[7].mxu0  ;;  %v5830_v23 = vadd.f32 %v956_v8, %v674_v15  ;;  %v958_v25 = vpop.f32.mrb[7].mxu1 }
 0x21d   : > { %6761 = vst [vmem:[#allocation39_spill] sm:$0xff] %v5824_v5  ;;  %6762 = vst [vmem:[#allocation40_spill] sm:$0xff] %v5826_v7  ;;  %v5832_v27 = vadd.f32 %v905_v22, %v670_v21  ;;  %v5834_v30 = vadd.f32 %v958_v25, %v678_v18 }
 0x21e   : > { %6763 = vst [vmem:[#allocation41_spill] sm:$0xff] %v5828_v11  ;;  %6764 = vst [vmem:[#allocation42_spill] sm:$0xff] %v5830_v23 }
 0x21f   : > { %6765 = vst [vmem:[#allocation43_spill] sm:$0xff] %v5832_v27 }
 0x231   : > { %v1176_v33 = vpop.f32.mrb[8].mxu0  ;;  %v1217_v10 = vpop.f32.mrb[8].mxu1 }
 0x232   : > { %v1224_v9 = vadd.f32 %v1176_v33, %v890_v3  ;;  %v1226_v46 = vadd.f32 %v1217_v10, %v943_v31  ;;  %v1178_v7 = vpop.f32.mrb[9].mxu0  ;;  %v1219_v5 = vpop.f32.mrb[9].mxu1 }
 0x233   : > { %v1225_v6 = vadd.f32 %v1178_v7, %v892_v12  ;;  %v1227_v11 = vadd.f32 %v1219_v5, %v945_v13  ;;  %v1180_v36 = vpop.f32.mrb[10].mxu0  ;;  %v1221_v8 = vpop.f32.mrb[10].mxu1  ;;  %v657_v13 = vld [vmem:[#allocation5] sm:$0xff] }
 0x234   : > { %v4002_v23 = vmul.f32 -1.442695, %v1224_v9  ;;  %v1181_v32 = vpop.f32.mrb[11].mxu0  ;;  %v1222_v22 = vpop.f32.mrb[11].mxu1 }
 0x235   : > { %v4003_v27 = vmul.f32 -1.442695, %v1225_v6  ;;  %v4004_v14 = vmul.f32 -1.442695, %v1227_v11 }
 0x236   : > { %4653 = vpow2.f32 %v4002_v23  ;;  %v6766_v23 = vmov 0  }
 0x237   : > { %4655 = vpow2.f32 %v4003_v27 }
 0x238   : > { %4657 = vpow2.f32 %v4004_v14 }
 0x239   : > { %4659 = vtanh.f32 %v1226_v46 }
 0x240   : > { %v4654_v15 = vpop.eup %4653 }
 0x241   : > { %v4656_v16 = vpop.eup %4655  ;;  %v1231_v17 = vadd.f32 1.0, %v4654_v15 }
 0x242   : > { %v1237_v3 = vadd.f32 1.0, %v4656_v16  ;;  %v4658_v10 = vpop.eup %4657 }
 0x243   : > { %4661 = vrcp.f32 %v1231_v17  ;;  %v4660_v12 = vpop.eup %4659  ;;  %v1244_v20 = vadd.f32 1.0, %v4658_v10 }
 0x244   : > { %4663 = vrcp.f32 %v1237_v3 }
 0x245   : > { %4665 = vrcp.f32 %v1244_v20 }
 0x24d   : > { %v4662_v18 = vpop.eup %4661 }
 0x24e   : > { %v4664_v9 = vpop.eup %4663  ;;  %v1248_v19 = vmul.f32 %v4662_v18, %v4660_v12 }
 0x24f   : > { %v1247_v21 = vmul.f32 %v4664_v9, %v657_v13  ;;  %v4666_v36 = vpop.eup %4665 }
 0x251   : > { %v5836_v32 = vadd.f32 %v1248_v19, %v1247_v21 }
 0x253   : > { %4667 = vtanh.f32 %v5836_v32 }
 0x25d   : > { %v4668_v5 = vpop.eup %4667 }
 0x25e   : > { %v1251_v7 = vmul.f32 %v4668_v5, %v4666_v36 }
 0x260   : > { %v1252_v11 = vpack.c.bf16 %v1251_v7, %v1251_v7 }
 0x262   : > { %1253 = vst [vmem:[%s5648_s10] sm:$0xf] %v1252_v11  ;;  %1291 = vmatmul.mubr.bf16.vlgmr.msra.gmra.mrb[12].mxu0 %v1252_v11  ;;  %1332 = vmatmul.mubr.bf16.vlgmr.msra.gmra.mrb[12].mxu1 %v1252_v11 }
 0x263   : > { %1376 = vmatpush1.bf16.msra.mxu0 %v5663_v37  ;;  %1417 = vmatpush1.bf16.msra.mxu1 %v5665_v38 }
 0x264   : > { %1377 = vmatprep.subr.bf16.mxu0 %v5667_v39  ;;  %1418 = vmatprep.subr.bf16.mxu1 %v5671_v40 }
 0x265   : > { %1407 = vmatprep.mubr.bf16.mxu0 %v6766_v23  ;;  %1448 = vmatprep.mubr.bf16.mxu1 %v6766_v23 }
 0x267   : > { %1378 = vmatpush1.bf16.msra.mxu0 %v5673_v41  ;;  %1419 = vmatpush1.bf16.msra.mxu1 %v5675_v42 }
 0x268   : > { %1379 = vmatprep.subr.bf16.mxu0 %v5679_v43  ;;  %1420 = vmatprep.subr.bf16.mxu1 %v5683_v44 }
 0x26b   : > { %1380 = vmatpush1.bf16.msra.mxu0 %v5685_v45  ;;  %1421 = vmatpush1.bf16.msra.mxu1 %v5693_v47 }
 0x26c   : > { %1381 = vmatprep.subr.bf16.mxu0 %v5697_v48  ;;  %1422 = vmatprep.subr.bf16.mxu1 %v5699_v49 }
 0x26f   : > { %1382 = vmatpush1.bf16.msra.mxu0 %v5703_v50  ;;  %1423 = vmatpush1.bf16.msra.mxu1 %v5705_v51 }
 0x270   : > { %1383 = vmatprep.subr.bf16.mxu0 %v5707_v52  ;;  %1424 = vmatprep.subr.bf16.mxu1 %v5711_v53 }
 0x273   : > { %1384 = vmatpush1.bf16.msra.mxu0 %v5713_v54  ;;  %1425 = vmatpush1.bf16.msra.mxu1 %v5715_v55 }
 0x274   : > { %1385 = vmatprep.subr.bf16.mxu0 %v5719_v56  ;;  %1426 = vmatprep.subr.bf16.mxu1 %v5721_v57 }
 0x277   : > { %1386 = vmatpush1.bf16.msra.mxu0 %v5727_v58  ;;  %1427 = vmatpush1.bf16.msra.mxu1 %v5729_v59 }
 0x278   : > { %1387 = vmatprep.subr.bf16.mxu0 %v5731_v60  ;;  %1428 = vmatprep.subr.bf16.mxu1 %v5733_v61 }
 0x27b   : > { %1388 = vmatpush1.bf16.msra.mxu0 %v5739_v62  ;;  %1429 = vmatpush1.bf16.msra.mxu1 %v5741_v63 }
 0x27c   : > { %1389 = vmatprep.subr.bf16.mxu0 %v5743_v0  ;;  %1430 = vmatprep.subr.bf16.mxu1 %v5745_v1 }
 0x27f   : > { %1390 = vmatpush1.bf16.msra.mxu0 %v5751_v2  ;;  %1431 = vmatpush1.bf16.msra.mxu1 %v5753_v4 }
 0x280   : > { %1492 = vmatprep.subr.bf16.mxu0 %v5657_v34  ;;  %1533 = vmatprep.subr.bf16.mxu1 %v5659_v35 }
 0x335   : > { %v1292_v25 = vpop.f32.mrb[12].mxu0  ;;  %v1333_v27 = vpop.f32.mrb[12].mxu1 }
 0x336   : > { %v1340_v31 = vadd.f32 %v1292_v25, %v5812_v24  ;;  %v1342_v33 = vadd.f32 %v1333_v27, %v5814_v26  ;;  %v1294_v46 = vpop.f32.mrb[13].mxu0  ;;  %v1335_v6 = vpop.f32.mrb[13].mxu1 }
 0x337   : > { %v1341_v8 = vadd.f32 %v1294_v46, %v5816_v28  ;;  %v1343_v22 = vadd.f32 %v1335_v6, %v5818_v29  ;;  %v1296_v14 = vpop.f32.mrb[14].mxu0  ;;  %v1337_v15 = vpop.f32.mrb[14].mxu1  ;;  %v4457_v6 = vld [vmem:[#allocation14] ss:$16 sps:$4 sm:$0xff]  }
 0x338   : > { %v4005_v16 = vmul.f32 -1.442695, %v1340_v31  ;;  %v1297_v17 = vpop.f32.mrb[15].mxu0  ;;  %v1338_v3 = vpop.f32.mrb[15].mxu1  ;;  %v4465_v14 = vld [vmem:[#allocation14 + $0x24] ss:$16 sps:$4 sm:$0xff]  }
 0x339   : > { %v4006_v34 = vmul.f32 -1.442695, %v1341_v8  ;;  %v4007_v35 = vmul.f32 -1.442695, %v1343_v22  ;;  %v4460_v8 = vld [vmem:[#allocation14 + $0x8] ss:$16 sps:$4 sm:$0xff]  }
 0x33a   : > { %4669 = vpow2.f32 %v4005_v16  ;;  %v4468_v15 = vld [vmem:[#allocation14 + $0x2c] ss:$16 sps:$4 sm:$0xff]   ;;  %v4463_v16 = vld [vmem:[#allocation14 + $0x20] ss:$16 sps:$4 sm:$0xff]   ;;  %v4466_v17 = vld [vmem:[#allocation14 + $0x28] ss:$16 sps:$4 sm:$0xff]  }
 0x33b   : > { %4671 = vpow2.f32 %v4006_v34  ;;  %v4471_v3 = vld [vmem:[#allocation14 + $0x44] ss:$16 sps:$4 sm:$0xff]   ;;  %v4474_v34 = vld [vmem:[#allocation14 + $0x4c] ss:$16 sps:$4 sm:$0xff]  }
 0x33c   : > { %4673 = vpow2.f32 %v4007_v35  ;;  %v4469_v35 = vld [vmem:[#allocation14 + $0x40] ss:$16 sps:$4 sm:$0xff]  }
 0x33d   : > { %4675 = vtanh.f32 %v1342_v33 }
 0x344   : > { %v4670_v10 = vpop.eup %4669 }
 0x345   : > { %v4672_v12 = vpop.eup %4671  ;;  %v1347_v24 = vadd.f32 1.0, %v4670_v10  ;;  %v4472_v10 = vld [vmem:[#allocation14 + $0x48] ss:$16 sps:$4 sm:$0xff]  }
 0x346   : > { %v1353_v26 = vadd.f32 1.0, %v4672_v12  ;;  %v4674_v28 = vpop.eup %4673  ;;  %v4477_v12 = vld [vmem:[#allocation14 + $0x64] ss:$16 sps:$4 sm:$0xff]  }
 0x347   : > { %4677 = vrcp.f32 %v1347_v24  ;;  %v4676_v29 = vpop.eup %4675  ;;  %v1360_v19 = vadd.f32 1.0, %v4674_v28  ;;  %v4480_v24 = vld [vmem:[#allocation14 + $0x6c] ss:$16 sps:$4 sm:$0xff]   ;;  %v4478_v28 = vld [vmem:[#allocation14 + $0x68] ss:$16 sps:$4 sm:$0xff]  }
 0x348   : > { %4679 = vrcp.f32 %v1353_v26  ;;  %v4475_v26 = vld [vmem:[#allocation14 + $0x60] ss:$16 sps:$4 sm:$0xff]  }
 0x349   : > { %4681 = vrcp.f32 %v1360_v19  ;;  %v4489_v19 = vld [vmem:[#allocation14 + $0xa4] ss:$16 sps:$4 sm:$0xff]  }
 0x351   : > { %v4678_v13 = vpop.eup %4677 }
 0x352   : > { %v4680_v18 = vpop.eup %4679  ;;  %v1364_v9 = vmul.f32 %v4678_v13, %v4676_v29  ;;  %v4483_v29 = vld [vmem:[#allocation14 + $0x84] ss:$16 sps:$4 sm:$0xff]   ;;  %v4486_v13 = vld [vmem:[#allocation14 + $0x8c] ss:$16 sps:$4 sm:$0xff]  }
 0x353   : > { %v1363_v20 = vmul.f32 %v4680_v18, %v5836_v32  ;;  %v4682_v36 = vpop.eup %4681  ;;  %v4481_v18 = vld [vmem:[#allocation14 + $0x80] ss:$16 sps:$4 sm:$0xff]  }
 0x355   : > { %v5879_v21 = vadd.f32 %v1364_v9, %v1363_v20  ;;  %v4484_v9 = vld [vmem:[#allocation14 + $0x88] ss:$16 sps:$4 sm:$0xff]   ;;  %v4492_v20 = vld [vmem:[#allocation14 + $0xac] ss:$16 sps:$4 sm:$0xff]  }
 0x357   : > { %4683 = vtanh.f32 %v5879_v21 }
 0x361   : > { %v4684_v5 = vpop.eup %4683 }
 0x362   : > { %v1367_v7 = vmul.f32 %v4684_v5, %v4682_v36  ;;  %v4490_v36 = vld [vmem:[#allocation14 + $0xa8] ss:$16 sps:$4 sm:$0xff]   ;;  %v4495_v5 = vld [vmem:[#allocation14 + $0xc4] ss:$16 sps:$4 sm:$0xff]  }
 0x364   : > { %v1368_v11 = vpack.c.bf16 %v1367_v7, %v1367_v7  ;;  %v4498_v7 = vld [vmem:[#allocation14 + $0xcc] ss:$16 sps:$4 sm:$0xff]  }
 0x366   : > { %4008 = vst [vmem:[%s5648_s10 + $0x4] sm:$0xf] %v1368_v11  ;;  %1408 = vmatmul.mubr.bf16.vlgmr.msra.gmra.mrb[16].mxu0 %v1368_v11  ;;  %1449 = vmatmul.mubr.bf16.vlgmr.msra.gmra.mrb[16].mxu1 %v1368_v11  ;;  %v4493_v11 = vld [vmem:[#allocation14 + $0xc0] ss:$16 sps:$4 sm:$0xff]  }
 0x367   : > { %1493 = vmatpush1.bf16.msra.mxu0 %v5663_v37  ;;  %1534 = vmatpush1.bf16.msra.mxu1 %v5665_v38  ;;  %v4459_v37 = vld [vmem:[#allocation14 + $0x4] ss:$16 sps:$4 sm:$0xff]   ;;  %v4462_v38 = vld [vmem:[#allocation14 + $0xc] ss:$16 sps:$4 sm:$0xff]  }
 0x368   : > { %1494 = vmatprep.subr.bf16.mxu0 %v5667_v39  ;;  %1535 = vmatprep.subr.bf16.mxu1 %v5671_v40 }
 0x369   : > { %1524 = vmatprep.mubr.bf16.mxu0 %v6766_v23  ;;  %1565 = vmatprep.mubr.bf16.mxu1 %v6766_v23 }
 0x36b   : > { %1495 = vmatpush1.bf16.msra.mxu0 %v5673_v41  ;;  %1536 = vmatpush1.bf16.msra.mxu1 %v5675_v42  ;;  %v6767_v41 = vld [vmem:[#allocation37_spill] sm:$0xff] }
 0x36c   : > { %1496 = vmatprep.subr.bf16.mxu0 %v5679_v43  ;;  %1537 = vmatprep.subr.bf16.mxu1 %v5683_v44  ;;  %v6768_v43 = vld [vmem:[#allocation38_spill] sm:$0xff] }
 0x36f   : > { %1497 = vmatpush1.bf16.msra.mxu0 %v5685_v45  ;;  %1538 = vmatpush1.bf16.msra.mxu1 %v5693_v47 }
 0x370   : > { %1498 = vmatprep.subr.bf16.mxu0 %v5697_v48  ;;  %1539 = vmatprep.subr.bf16.mxu1 %v5699_v49  ;;  %v6769_v48 = vld [vmem:[#allocation39_spill] sm:$0xff] }
 0x373   : > { %1499 = vmatpush1.bf16.msra.mxu0 %v5703_v50  ;;  %1540 = vmatpush1.bf16.msra.mxu1 %v5705_v51  ;;  %v6770_v50 = vld [vmem:[#allocation40_spill] sm:$0xff] }
 0x374   : > { %1500 = vmatprep.subr.bf16.mxu0 %v5707_v52  ;;  %1541 = vmatprep.subr.bf16.mxu1 %v5711_v53 }
 0x377   : > { %1501 = vmatpush1.bf16.msra.mxu0 %v5713_v54  ;;  %1542 = vmatpush1.bf16.msra.mxu1 %v5715_v55 }
 0x378   : > { %1502 = vmatprep.subr.bf16.mxu0 %v5719_v56  ;;  %1543 = vmatprep.subr.bf16.mxu1 %v5721_v57 }
 0x37b   : > { %1503 = vmatpush1.bf16.msra.mxu0 %v5727_v58  ;;  %1544 = vmatpush1.bf16.msra.mxu1 %v5729_v59 }
 0x37c   : > { %1504 = vmatprep.subr.bf16.mxu0 %v5731_v60  ;;  %1545 = vmatprep.subr.bf16.mxu1 %v5733_v61 }
 0x37f   : > { %1505 = vmatpush1.bf16.msra.mxu0 %v5739_v62  ;;  %1546 = vmatpush1.bf16.msra.mxu1 %v5741_v63 }
 0x380   : > { %1506 = vmatprep.subr.bf16.mxu0 %v5743_v0  ;;  %1547 = vmatprep.subr.bf16.mxu1 %v5745_v1 }
 0x383   : > { %1507 = vmatpush1.bf16.msra.mxu0 %v5751_v2  ;;  %1548 = vmatpush1.bf16.msra.mxu1 %v5753_v4 }
 0x384   : > { %1871 = vmatprep.subr.bf16.mxu0 %v4459_v37  ;;  %1924 = vmatprep.subr.bf16.mxu1 %v4462_v38  ;;  %v4496_v37 = vld [vmem:[#allocation14 + $0xc8] ss:$16 sps:$4 sm:$0xff]   ;;  %v4501_v38 = vld [vmem:[#allocation14 + $0xe4] ss:$16 sps:$4 sm:$0xff]  }
 0x439   : > { %v1409_v39 = vpop.f32.mrb[16].mxu0  ;;  %v1450_v40 = vpop.f32.mrb[16].mxu1 }
 0x43a   : > { %v1457_v42 = vadd.f32 %v1409_v39, %v6767_v41  ;;  %v1459_v44 = vadd.f32 %v1450_v40, %v6768_v43  ;;  %v1411_v45 = vpop.f32.mrb[17].mxu0  ;;  %v1452_v47 = vpop.f32.mrb[17].mxu1  ;;  %v4504_v39 = vld [vmem:[#allocation14 + $0xec] ss:$16 sps:$4 sm:$0xff]   ;;  %v4499_v40 = vld [vmem:[#allocation14 + $0xe0] ss:$16 sps:$4 sm:$0xff]  }
 0x43b   : > { %v1458_v49 = vadd.f32 %v1411_v45, %v6769_v48  ;;  %v1460_v51 = vadd.f32 %v1452_v47, %v6770_v50  ;;  %v1413_v52 = vpop.f32.mrb[18].mxu0  ;;  %v1454_v53 = vpop.f32.mrb[18].mxu1  ;;  %v4502_v41 = vld [vmem:[#allocation14 + $0xe8] ss:$16 sps:$4 sm:$0xff]   ;;  %v5929_v43 = vld [vmem:[#allocation18 + $0x4] ss:$16 sps:$4 sm:$0xff]  }
 0x43c   : > { %v4009_v54 = vmul.f32 -1.442695, %v1457_v42  ;;  %v1414_v55 = vpop.f32.mrb[19].mxu0  ;;  %v1455_v56 = vpop.f32.mrb[19].mxu1  ;;  %v4505_v42 = vld [vmem:[%s5648_s10] sm:$0xff]  }
 0x43d   : > { %v4010_v57 = vmul.f32 -1.442695, %v1458_v49  ;;  %v4011_v58 = vmul.f32 -1.442695, %v1460_v51  ;;  %v5933_v45 = vld [vmem:[#allocation18] ss:$16 sps:$4 sm:$0xff]  }
 0x43e   : > { %4685 = vpow2.f32 %v4009_v54  ;;  %v5935_v47 = vld [vmem:[#allocation18 + $0x8] ss:$16 sps:$4 sm:$0xff]   ;;  %v5941_v48 = vld [vmem:[#allocation18 + $0x24] ss:$16 sps:$4 sm:$0xff]   ;;  %v5943_v49 = vld [vmem:[#allocation18 + $0x2c] ss:$16 sps:$4 sm:$0xff]  }
 0x43f   : > { %4687 = vpow2.f32 %v4010_v57  ;;  %v5945_v50 = vld [vmem:[#allocation18 + $0x20] ss:$16 sps:$4 sm:$0xff]   ;;  %v5947_v51 = vld [vmem:[#allocation18 + $0x28] ss:$16 sps:$4 sm:$0xff]   ;;  %v5953_v52 = vld [vmem:[#allocation18 + $0x44] ss:$16 sps:$4 sm:$0xff]  }
 0x440   : > { %4689 = vpow2.f32 %v4011_v58  ;;  %v5955_v53 = vld [vmem:[#allocation18 + $0x4c] ss:$16 sps:$4 sm:$0xff]   ;;  %v5957_v54 = vld [vmem:[#allocation18 + $0x40] ss:$16 sps:$4 sm:$0xff]   ;;  %v5959_v55 = vld [vmem:[#allocation18 + $0x48] ss:$16 sps:$4 sm:$0xff]  }
 0x441   : > { %4691 = vtanh.f32 %v1459_v44  ;;  %v5931_v44 = vld [vmem:[#allocation18 + $0xc] ss:$16 sps:$4 sm:$0xff]   ;;  %v5965_v56 = vld [vmem:[#allocation18 + $0x64] ss:$16 sps:$4 sm:$0xff]   ;;  %v5969_v58 = vld [vmem:[#allocation18 + $0x60] ss:$16 sps:$4 sm:$0xff]  }
 0x442   : > { %v5967_v57 = vld [vmem:[#allocation18 + $0x6c] ss:$16 sps:$4 sm:$0xff]  }
 0x448   : > { %v4686_v59 = vpop.eup %4685 }
 0x449   : > { %v4688_v60 = vpop.eup %4687  ;;  %v1464_v61 = vadd.f32 1.0, %v4686_v59  ;;  %v5971_v59 = vld [vmem:[#allocation18 + $0x68] ss:$16 sps:$4 sm:$0xff]  }
 0x44a   : > { %v1470_v62 = vadd.f32 1.0, %v4688_v60  ;;  %v4690_v63 = vpop.eup %4689  ;;  %v5977_v60 = vld [vmem:[#allocation18 + $0x84] ss:$16 sps:$4 sm:$0xff]  }
 0x44b   : > { %4693 = vrcp.f32 %v1464_v61  ;;  %v4692_v0 = vpop.eup %4691  ;;  %v1477_v32 = vadd.f32 1.0, %v4690_v63  ;;  %v5979_v61 = vld [vmem:[#allocation18 + $0x8c] ss:$16 sps:$4 sm:$0xff]   ;;  %v5983_v63 = vld [vmem:[#allocation18 + $0x88] ss:$16 sps:$4 sm:$0xff]  }
 0x44c   : > { %4695 = vrcp.f32 %v1470_v62  ;;  %v5981_v62 = vld [vmem:[#allocation18 + $0x80] ss:$16 sps:$4 sm:$0xff]  }
 0x44d   : > { %4697 = vrcp.f32 %v1477_v32  ;;  %v6001_v32 = vld [vmem:[#allocation18 + $0xc4] ss:$16 sps:$4 sm:$0xff]  }
 0x455   : > { %v4694_v1 = vpop.eup %4693 }
 0x456   : > { %v4696_v2 = vpop.eup %4695  ;;  %v1481_v4 = vmul.f32 %v4694_v1, %v4692_v0  ;;  %v5985_v0 = vld [vmem:[#allocation18 + $0xa4] ss:$16 sps:$4 sm:$0xff]   ;;  %v5987_v1 = vld [vmem:[#allocation18 + $0xac] ss:$16 sps:$4 sm:$0xff]  }
 0x457   : > { %v1480_v25 = vmul.f32 %v4696_v2, %v5879_v21  ;;  %v4698_v31 = vpop.eup %4697  ;;  %v4487_v21 = vld [vmem:[#allocation14 + $0xa0] ss:$16 sps:$4 sm:$0xff]  }
 0x458   : > { %v5993_v2 = vld [vmem:[#allocation18 + $0xa0] ss:$16 sps:$4 sm:$0xff]  }
 0x459   : > { %v5920_v27 = vadd.f32 %v1481_v4, %v1480_v25  ;;  %v5995_v4 = vld [vmem:[#allocation18 + $0xa8] ss:$16 sps:$4 sm:$0xff]   ;;  %v6003_v25 = vld [vmem:[#allocation18 + $0xcc] ss:$16 sps:$4 sm:$0xff]  }
 0x45b   : > { %4699 = vtanh.f32 %v5920_v27 }
 0x465   : > { %v4700_v33 = vpop.eup %4699 }
 0x466   : > { %v1484_v46 = vmul.f32 %v4700_v33, %v4698_v31  ;;  %v6005_v31 = vld [vmem:[#allocation18 + $0xc0] ss:$16 sps:$4 sm:$0xff]   ;;  %v6007_v33 = vld [vmem:[#allocation18 + $0xc8] ss:$16 sps:$4 sm:$0xff]  }
 0x468   : > { %v1485_v22 = vpack.c.bf16 %v1484_v46, %v1484_v46  ;;  %v6009_v46 = vld [vmem:[#allocation18 + $0xe4] ss:$16 sps:$4 sm:$0xff]  }
 0x46a   : > { %4012 = vst [vmem:[%s5648_s10 + $0x8] sm:$0xf] %v1485_v22  ;;  %1525 = vmatmul.mubr.bf16.vlgmr.msra.gmra.mrb[20].mxu0 %v1485_v22  ;;  %1566 = vmatmul.mubr.bf16.vlgmr.msra.gmra.mrb[20].mxu1 %v1485_v22  ;;  %v6019_v22 = vld [vmem:[#allocation18 + $0xe8] ss:$16 sps:$4 sm:$0xff]  }
 0x46b   : > { %1872 = vmatpush1.bf16.msra.mxu0 %v4457_v6  ;;  %1925 = vmatpush1.bf16.msra.mxu1 %v4460_v8  ;;  %v6013_v6 = vld [vmem:[#allocation18 + $0xec] ss:$16 sps:$4 sm:$0xff]   ;;  %v6017_v8 = vld [vmem:[#allocation18 + $0xe0] ss:$16 sps:$4 sm:$0xff]  }
 0x46c   : > { %1873 = vmatprep.subr.bf16.mxu0 %v4465_v14  ;;  %1926 = vmatprep.subr.bf16.mxu1 %v4468_v15 }
 0x46d   : > { %1903 = vmatprep.mubr.bf16.mxu0 %v6766_v23  ;;  %1956 = vmatprep.mubr.bf16.mxu1 %v6766_v23 }
 0x46f   : > { %1874 = vmatpush1.bf16.msra.mxu0 %v4463_v16  ;;  %1927 = vmatpush1.bf16.msra.mxu1 %v4466_v17  ;;  %v6771_v16 = vld [vmem:[#allocation41_spill] sm:$0xff] }
 0x470   : > { %1875 = vmatprep.subr.bf16.mxu0 %v4471_v3  ;;  %1928 = vmatprep.subr.bf16.mxu1 %v4474_v34  ;;  %v6772_v3 = vld [vmem:[#allocation42_spill] sm:$0xff] }
 0x473   : > { %1876 = vmatpush1.bf16.msra.mxu0 %v4469_v35  ;;  %1929 = vmatpush1.bf16.msra.mxu1 %v4472_v10 }
 0x474   : > { %1877 = vmatprep.subr.bf16.mxu0 %v4477_v12  ;;  %1930 = vmatprep.subr.bf16.mxu1 %v4480_v24  ;;  %v6773_v12 = vld [vmem:[#allocation43_spill] sm:$0xff] }
 0x477   : > { %1878 = vmatpush1.bf16.msra.mxu0 %v4475_v26  ;;  %1931 = vmatpush1.bf16.msra.mxu1 %v4478_v28 }
 0x478   : > { %1879 = vmatprep.subr.bf16.mxu0 %v4483_v29  ;;  %1932 = vmatprep.subr.bf16.mxu1 %v4486_v13 }
 0x47b   : > { %1880 = vmatpush1.bf16.msra.mxu0 %v4481_v18  ;;  %1933 = vmatpush1.bf16.msra.mxu1 %v4484_v9 }
 0x47c   : > { %1881 = vmatprep.subr.bf16.mxu0 %v4489_v19  ;;  %1934 = vmatprep.subr.bf16.mxu1 %v4492_v20 }
 0x47f   : > { %1882 = vmatpush1.bf16.msra.mxu0 %v4487_v21  ;;  %1935 = vmatpush1.bf16.msra.mxu1 %v4490_v36 }
 0x480   : > { %1883 = vmatprep.subr.bf16.mxu0 %v4495_v5  ;;  %1936 = vmatprep.subr.bf16.mxu1 %v4498_v7 }
 0x483   : > { %1884 = vmatpush1.bf16.msra.mxu0 %v4493_v11  ;;  %1937 = vmatpush1.bf16.msra.mxu1 %v4496_v37 }
 0x484   : > { %1885 = vmatprep.subr.bf16.mxu0 %v4501_v38  ;;  %1938 = vmatprep.subr.bf16.mxu1 %v4504_v39 }
 0x487   : > { %1886 = vmatpush1.bf16.msra.mxu0 %v4499_v40  ;;  %1939 = vmatpush1.bf16.msra.mxu1 %v4502_v41 }
 0x488   : > { %2158 = vmatprep.subr.bf16.mxu0 %v5929_v43  ;;  %2199 = vmatprep.subr.bf16.mxu1 %v5931_v44 }
 0x48a   : > { %1904 = vmatmul.mubr.bf16.vlgmr.msra.gmra.mrb[24].mxu0 %v4505_v42  ;;  %1957 = vmatmul.mubr.bf16.vlgmr.msra.gmra.mrb[24].mxu1 %v4505_v42 }
 0x48b   : > { %1913 = vmatprep.mubr.bf16.mxu0 %v6766_v23  ;;  %1966 = vmatprep.mubr.bf16.mxu1 %v6766_v23 }
 0x48c   : > { %2159 = vmatpush1.bf16.msra.mxu0 %v5933_v45  ;;  %2200 = vmatpush1.bf16.msra.mxu1 %v5935_v47 }
 0x48d   : > { %2160 = vmatprep.subr.bf16.mxu0 %v5941_v48  ;;  %2201 = vmatprep.subr.bf16.mxu1 %v5943_v49 }
 0x490   : > { %2161 = vmatpush1.bf16.msra.mxu0 %v5945_v50  ;;  %2202 = vmatpush1.bf16.msra.mxu1 %v5947_v51 }
 0x491   : > { %2162 = vmatprep.subr.bf16.mxu0 %v5953_v52  ;;  %2203 = vmatprep.subr.bf16.mxu1 %v5955_v53 }
 0x494   : > { %2163 = vmatpush1.bf16.msra.mxu0 %v5957_v54  ;;  %2204 = vmatpush1.bf16.msra.mxu1 %v5959_v55 }
 0x495   : > { %2164 = vmatprep.subr.bf16.mxu0 %v5965_v56  ;;  %2205 = vmatprep.subr.bf16.mxu1 %v5967_v57 }
 0x498   : > { %2165 = vmatpush1.bf16.msra.mxu0 %v5969_v58  ;;  %2206 = vmatpush1.bf16.msra.mxu1 %v5971_v59 }
 0x499   : > { %2166 = vmatprep.subr.bf16.mxu0 %v5977_v60  ;;  %2207 = vmatprep.subr.bf16.mxu1 %v5979_v61 }
 0x49c   : > { %2167 = vmatpush1.bf16.msra.mxu0 %v5981_v62  ;;  %2208 = vmatpush1.bf16.msra.mxu1 %v5983_v63 }
 0x49d   : > { %2168 = vmatprep.subr.bf16.mxu0 %v5985_v0  ;;  %2209 = vmatprep.subr.bf16.mxu1 %v5987_v1 }
 0x4a0   : > { %2169 = vmatpush1.bf16.msra.mxu0 %v5993_v2  ;;  %2210 = vmatpush1.bf16.msra.mxu1 %v5995_v4 }
 0x4a1   : > { %2170 = vmatprep.subr.bf16.mxu0 %v6001_v32  ;;  %2211 = vmatprep.subr.bf16.mxu1 %v6003_v25 }
 0x4a4   : > { %2171 = vmatpush1.bf16.msra.mxu0 %v6005_v31  ;;  %2212 = vmatpush1.bf16.msra.mxu1 %v6007_v33 }
 0x4a5   : > { %2172 = vmatprep.subr.bf16.mxu0 %v6009_v46  ;;  %2213 = vmatprep.subr.bf16.mxu1 %v6013_v6 }
 0x4a8   : > { %2173 = vmatpush1.bf16.msra.mxu0 %v6017_v8  ;;  %2214 = vmatpush1.bf16.msra.mxu1 %v6019_v22 }
 0x4a9   : > { %2274 = vmatprep.subr.bf16.mxu0 %v5929_v43  ;;  %2315 = vmatprep.subr.bf16.mxu1 %v5931_v44 }
 0x53d   : > { %v1526_v14 = vpop.f32.mrb[20].mxu0  ;;  %v1567_v15 = vpop.f32.mrb[20].mxu1 }
 0x53e   : > { %v1574_v17 = vadd.f32 %v1526_v14, %v6771_v16  ;;  %v1576_v34 = vadd.f32 %v1567_v15, %v6772_v3  ;;  %v1528_v35 = vpop.f32.mrb[21].mxu0  ;;  %v1569_v10 = vpop.f32.mrb[21].mxu1 }
 0x53f   : > { %v1575_v24 = vadd.f32 %v1528_v35, %v6773_v12  ;;  %v1577_v26 = vadd.f32 %v1569_v10, %v5834_v30  ;;  %v1530_v28 = vpop.f32.mrb[22].mxu0  ;;  %v1571_v29 = vpop.f32.mrb[22].mxu1 }
 0x540   : > { %v4013_v13 = vmul.f32 -1.442695, %v1574_v17  ;;  %v1531_v18 = vpop.f32.mrb[23].mxu0  ;;  %v1572_v9 = vpop.f32.mrb[23].mxu1  ;;  %v1672_v29 = vld [vmem:[#allocation3] sm:$0xff] }
 0x541   : > { %v4014_v19 = vmul.f32 -1.442695, %v1575_v24  ;;  %v4015_v20 = vmul.f32 -1.442695, %v1577_v26  ;;  %v1671_v18 = vld [vmem:[%s6774_s12] sm:$0xf] }
 0x542   : > { %4701 = vpow2.f32 %v4013_v13  ;;  %v1997_v13 = vpack.c.bf16 %v1672_v29, %v1672_v29  ;;  %s6809_s12 = sld [smem:[#allocation54_spill]] }
 0x543   : > { %4703 = vpow2.f32 %v4014_v19 }
 0x544   : > { %4705 = vpow2.f32 %v4015_v20 }
 0x545   : > { %4707 = vtanh.f32 %v1576_v34 }
 0x548   : > { %s6531_s8 = scalar_lea.hbm %s6809_s12, %s6525_s7 }
 0x54c   : > { %v4702_v21 = vpop.eup %4701 }
 0x54d   : > { %v4704_v36 = vpop.eup %4703  ;;  %v1581_v5 = vadd.f32 1.0, %v4702_v21 }
 0x54e   : > { %v1587_v7 = vadd.f32 1.0, %v4704_v36  ;;  %v4706_v11 = vpop.eup %4705 }
 0x54f   : > { %4709 = vrcp.f32 %v1581_v5  ;;  %v4708_v37 = vpop.eup %4707  ;;  %v1594_v40 = vadd.f32 1.0, %v4706_v11 }
 0x550   : > { %4711 = vrcp.f32 %v1587_v7  ;;  %v6780_v7 = vld [vmem:[#allocation33_spill] sm:$0xff] }
 0x551   : > { %4713 = vrcp.f32 %v1594_v40  ;;  %v6102_v11 = vrot.slane %v1671_v18, %v6780_v7  ;;  %v6784_v40 = vld [vmem:[#allocation36_spill] sm:$0xff] }
 0x559   : > { %v4710_v30 = vpop.eup %4709 }
 0x55a   : > { %v4712_v38 = vpop.eup %4711  ;;  %v1598_v39 = vmul.f32 %v4710_v30, %v4708_v37  ;;  %v6781_v37 = vld [vmem:[#allocation34_spill] sm:$0xff] }
 0x55b   : > { %v1597_v41 = vmul.f32 %v4712_v38, %v5920_v27  ;;  %v4714_v10 = vpop.eup %4713  ;;  %v6105_v30 = vrot.slane %v1671_v18, %v6781_v37 }
 0x55d   : > { %v1599_v42 = vadd.f32 %v1598_v39, %v1597_v41  ;;  %v6032_v14 = vpop.f32.mrb[24].mxu0  ;;  %v6034_v15 = vpop.f32.mrb[24].mxu1  ;;  %v6112_v41 = vrot.slane %v1671_v18, %v6784_v40 }
 0x55e   : > { %v6036_v16 = vpop.f32.mrb[25].mxu0  ;;  %v6038_v17 = vpop.f32.mrb[25].mxu1 }
 0x55f   : > { %4715 = vtanh.f32 %v1599_v42  ;;  %1606 = vst [vmem:[#allocation5] sm:$0xff] %v1599_v42  ;;  %v6040_v3 = vpop.f32.mrb[26].mxu0  ;;  %v6042_v34 = vpop.f32.mrb[26].mxu1  ;;  %v6785_v42 = vld [vmem:[#allocation35_spill] sm:$0xff] }
 0x560   : > { %v6044_v35 = vpop.f32.mrb[27].mxu0  ;;  %v6046_v27 = vpop.f32.mrb[27].mxu1 }
 0x569   : > { %v4716_v12 = vpop.eup %4715 }
 0x56a   : > { %v1601_v24 = vmul.f32 %v4716_v12, %v4714_v10  ;;  %v6115_v10 = vrot.slane %v1671_v18, %v6785_v42  ;;  %v1906_v12 = vadd.f32 %v6032_v14, %v6102_v11 }
 0x56c   : > { %v1602_v26 = vpack.c.bf16 %v1601_v24, %v1601_v24  ;;  %1605 = vst [vmem:[#allocation2] sm:$0xff] %v1601_v24  ;;  %v1959_v24 = vadd.f32 %v6034_v15, %v6105_v30 }
 0x56e   : > { %4016 = vst [vmem:[%s5648_s10 + $0xc] sm:$0xf] %v1602_v26  ;;  %v1908_v26 = vadd.f32 %v6036_v16, %v6112_v41 }
 0x575   : > { %v4542_v28 = vld [vmem:[%s5648_s10 + $0x8] sm:$0xff]  }
 0x576   : > { %1914 = vmatmul.mubr.bf16.gmra.mrb[28].mxu0 %v4542_v28  ;;  %1967 = vmatmul.mubr.bf16.gmra.mrb[28].mxu1 %v4542_v28  ;;  %v1961_v28 = vadd.f32 %v6038_v17, %v6115_v10 }
 0x577   : > { %2190 = vmatprep.mubr.bf16.mxu0 %v6766_v23  ;;  %2231 = vmatprep.mubr.bf16.mxu1 %v6766_v23 }
 0x57e   : > { %2191 = vmatmul.mubr.bf16.vlgmr.msra.gmra.mrb[32].mxu0 %v1997_v13  ;;  %2232 = vmatmul.mubr.bf16.vlgmr.msra.gmra.mrb[32].mxu1 %v1997_v13 }
 0x57f   : > { %2275 = vmatpush1.bf16.msra.mxu0 %v5933_v45  ;;  %2316 = vmatpush1.bf16.msra.mxu1 %v5935_v47 }
 0x580   : > { %2276 = vmatprep.subr.bf16.mxu0 %v5941_v48  ;;  %2317 = vmatprep.subr.bf16.mxu1 %v5943_v49 }
 0x581   : > { %2306 = vmatprep.mubr.bf16.mxu0 %v6766_v23  ;;  %2347 = vmatprep.mubr.bf16.mxu1 %v6766_v23 }
 0x583   : > { %2277 = vmatpush1.bf16.msra.mxu0 %v5945_v50  ;;  %2318 = vmatpush1.bf16.msra.mxu1 %v5947_v51 }
 0x584   : > { %2278 = vmatprep.subr.bf16.mxu0 %v5953_v52  ;;  %2319 = vmatprep.subr.bf16.mxu1 %v5955_v53 }
 0x587   : > { %2279 = vmatpush1.bf16.msra.mxu0 %v5957_v54  ;;  %2320 = vmatpush1.bf16.msra.mxu1 %v5959_v55 }
 0x588   : > { %2280 = vmatprep.subr.bf16.mxu0 %v5965_v56  ;;  %2321 = vmatprep.subr.bf16.mxu1 %v5967_v57 }
 0x58b   : > { %2281 = vmatpush1.bf16.msra.mxu0 %v5969_v58  ;;  %2322 = vmatpush1.bf16.msra.mxu1 %v5971_v59 }
 0x58c   : > { %2282 = vmatprep.subr.bf16.mxu0 %v5977_v60  ;;  %2323 = vmatprep.subr.bf16.mxu1 %v5979_v61 }
 0x58f   : > { %2283 = vmatpush1.bf16.msra.mxu0 %v5981_v62  ;;  %2324 = vmatpush1.bf16.msra.mxu1 %v5983_v63 }
 0x590   : > { %2284 = vmatprep.subr.bf16.mxu0 %v5985_v0  ;;  %2325 = vmatprep.subr.bf16.mxu1 %v5987_v1 }
 0x593   : > { %2285 = vmatpush1.bf16.msra.mxu0 %v5993_v2  ;;  %2326 = vmatpush1.bf16.msra.mxu1 %v5995_v4 }
 0x594   : > { %2286 = vmatprep.subr.bf16.mxu0 %v6001_v32  ;;  %2327 = vmatprep.subr.bf16.mxu1 %v6003_v25 }
 0x597   : > { %2287 = vmatpush1.bf16.msra.mxu0 %v6005_v31  ;;  %2328 = vmatpush1.bf16.msra.mxu1 %v6007_v33 }
 0x598   : > { %2288 = vmatprep.subr.bf16.mxu0 %v6009_v46  ;;  %2329 = vmatprep.subr.bf16.mxu1 %v6013_v6 }
 0x59b   : > { %2289 = vmatpush1.bf16.msra.mxu0 %v6017_v8  ;;  %2330 = vmatpush1.bf16.msra.mxu1 %v6019_v22 }
 0x59c   : > { %2391 = vmatprep.subr.bf16.mxu0 %v5929_v43  ;;  %2432 = vmatprep.subr.bf16.mxu1 %v5931_v44 }
 0x649   : > { %v6089_v9 = vpop.f32.mrb[28].mxu0  ;;  %v6091_v19 = vpop.f32.mrb[28].mxu1 }
 0x64a   : > { %6775 = vst [vmem:[#allocation37_spill] sm:$0xff] %v6091_v19  ;;  %v6093_v20 = vpop.f32.mrb[29].mxu0  ;;  %v6095_v21 = vpop.f32.mrb[29].mxu1 }
 0x64b   : > { %6776 = vst [vmem:[#allocation38_spill] sm:$0xff] %v6093_v20  ;;  %6777 = vst [vmem:[#allocation39_spill] sm:$0xff] %v6095_v21  ;;  %v6097_v36 = vpop.f32.mrb[30].mxu0  ;;  %v6099_v5 = vpop.f32.mrb[30].mxu1 }
 0x64c   : > { %6778 = vst [vmem:[#allocation40_spill] sm:$0xff] %v6097_v36  ;;  %6779 = vst [vmem:[#allocation41_spill] sm:$0xff] %v6099_v5  ;;  %v6107_v38 = vpop.f32.mrb[31].mxu0  ;;  %v6109_v39 = vpop.f32.mrb[31].mxu1 }
 0x64d   : > { %6782 = vst [vmem:[#allocation42_spill] sm:$0xff] %v6107_v38  ;;  %6783 = vst [vmem:[#allocation43_spill] sm:$0xff] %v6109_v39 }
 0x651   : > { %v2192_v29 = vpop.f32.mrb[32].mxu0  ;;  %v2233_v13 = vpop.f32.mrb[32].mxu1 }
 0x652   : > { %v2240_v37 = vadd.f32 %v2192_v29, %v1906_v12  ;;  %v2242_v40 = vadd.f32 %v2233_v13, %v1959_v24  ;;  %v2194_v7 = vpop.f32.mrb[33].mxu0  ;;  %v2235_v39 = vpop.f32.mrb[33].mxu1  ;;  %v1963_v29 = vadd.f32 %v6042_v34, %v6105_v30  ;;  %v1912_v13 = vadd.f32 %v6044_v35, %v6112_v41 }
 0x653   : > { %v2241_v18 = vadd.f32 %v2194_v7, %v1908_v26  ;;  %v2243_v42 = vadd.f32 %v2235_v39, %v1961_v28  ;;  %v2196_v38 = vpop.f32.mrb[34].mxu0  ;;  %v2237_v5 = vpop.f32.mrb[34].mxu1  ;;  %v1910_v28 = vadd.f32 %v6040_v3, %v6102_v11 }
 0x654   : > { %v4083_v14 = vmul.f32 -1.442695, %v2240_v37  ;;  %v2197_v36 = vpop.f32.mrb[35].mxu0  ;;  %v2238_v21 = vpop.f32.mrb[35].mxu1  ;;  %v1673_v38 = vld [vmem:[#allocation6] sm:$0xff] }
 0x655   : > { %v4084_v15 = vmul.f32 -1.442695, %v2241_v18  ;;  %v4085_v16 = vmul.f32 -1.442695, %v2243_v42  ;;  %v1965_v18 = vadd.f32 %v6046_v27, %v6115_v10 }
 0x656   : > { %4717 = vpow2.f32 %v4083_v14 }
 0x657   : > { %4719 = vpow2.f32 %v4084_v15 }
 0x658   : > { %4721 = vpow2.f32 %v4085_v16 }
 0x659   : > { %4723 = vtanh.f32 %v2242_v40 }
 0x660   : > { %v4718_v20 = vpop.eup %4717 }
 0x661   : > { %v4720_v19 = vpop.eup %4719  ;;  %v2247_v17 = vadd.f32 1.0, %v4718_v20 }
 0x662   : > { %v2253_v12 = vadd.f32 1.0, %v4720_v19  ;;  %v4722_v7 = vpop.eup %4721 }
 0x663   : > { %4725 = vrcp.f32 %v2247_v17  ;;  %v4724_v39 = vpop.eup %4723  ;;  %v2260_v21 = vadd.f32 1.0, %v4722_v7 }
 0x664   : > { %4727 = vrcp.f32 %v2253_v12 }
 0x665   : > { %4729 = vrcp.f32 %v2260_v21 }
 0x66d   : > { %v4726_v5 = vpop.eup %4725 }
 0x66e   : > { %v4728_v37 = vpop.eup %4727  ;;  %v2264_v36 = vmul.f32 %v4726_v5, %v4724_v39 }
 0x66f   : > { %v2263_v24 = vmul.f32 %v4728_v37, %v1673_v38  ;;  %v4730_v20 = vpop.eup %4729 }
 0x671   : > { %v6125_v26 = vadd.f32 %v2264_v36, %v2263_v24 }
 0x673   : > { %4731 = vtanh.f32 %v6125_v26 }
 0x67d   : > { %v4732_v42 = vpop.eup %4731 }
 0x67e   : > { %v2267_v40 = vmul.f32 %v4732_v42, %v4730_v20 }
 0x680   : > { %v2268_v19 = vpack.c.bf16 %v2267_v40, %v2267_v40 }
 0x682   : > { %2269 = vst [vmem:[%s5650_s18] sm:$0xf] %v2268_v19  ;;  %2307 = vmatmul.mubr.bf16.vlgmr.msra.gmra.mrb[36].mxu0 %v2268_v19  ;;  %2348 = vmatmul.mubr.bf16.vlgmr.msra.gmra.mrb[36].mxu1 %v2268_v19 }
 0x683   : > { %2392 = vmatpush1.bf16.msra.mxu0 %v5933_v45  ;;  %2433 = vmatpush1.bf16.msra.mxu1 %v5935_v47 }
 0x684   : > { %2393 = vmatprep.subr.bf16.mxu0 %v5941_v48  ;;  %2434 = vmatprep.subr.bf16.mxu1 %v5943_v49 }
 0x685   : > { %2423 = vmatprep.mubr.bf16.mxu0 %v6766_v23  ;;  %2464 = vmatprep.mubr.bf16.mxu1 %v6766_v23 }
 0x687   : > { %2394 = vmatpush1.bf16.msra.mxu0 %v5945_v50  ;;  %2435 = vmatpush1.bf16.msra.mxu1 %v5947_v51 }
 0x688   : > { %2395 = vmatprep.subr.bf16.mxu0 %v5953_v52  ;;  %2436 = vmatprep.subr.bf16.mxu1 %v5955_v53 }
 0x68b   : > { %2396 = vmatpush1.bf16.msra.mxu0 %v5957_v54  ;;  %2437 = vmatpush1.bf16.msra.mxu1 %v5959_v55 }
 0x68c   : > { %2397 = vmatprep.subr.bf16.mxu0 %v5965_v56  ;;  %2438 = vmatprep.subr.bf16.mxu1 %v5967_v57 }
 0x68f   : > { %2398 = vmatpush1.bf16.msra.mxu0 %v5969_v58  ;;  %2439 = vmatpush1.bf16.msra.mxu1 %v5971_v59 }
 0x690   : > { %2399 = vmatprep.subr.bf16.mxu0 %v5977_v60  ;;  %2440 = vmatprep.subr.bf16.mxu1 %v5979_v61 }
 0x693   : > { %2400 = vmatpush1.bf16.msra.mxu0 %v5981_v62  ;;  %2441 = vmatpush1.bf16.msra.mxu1 %v5983_v63 }
 0x694   : > { %2401 = vmatprep.subr.bf16.mxu0 %v5985_v0  ;;  %2442 = vmatprep.subr.bf16.mxu1 %v5987_v1 }
 0x697   : > { %2402 = vmatpush1.bf16.msra.mxu0 %v5993_v2  ;;  %2443 = vmatpush1.bf16.msra.mxu1 %v5995_v4 }
 0x698   : > { %2403 = vmatprep.subr.bf16.mxu0 %v6001_v32  ;;  %2444 = vmatprep.subr.bf16.mxu1 %v6003_v25 }
 0x69b   : > { %2404 = vmatpush1.bf16.msra.mxu0 %v6005_v31  ;;  %2445 = vmatpush1.bf16.msra.mxu1 %v6007_v33 }
 0x69c   : > { %2405 = vmatprep.subr.bf16.mxu0 %v6009_v46  ;;  %2446 = vmatprep.subr.bf16.mxu1 %v6013_v6 }
 0x69f   : > { %2406 = vmatpush1.bf16.msra.mxu0 %v6017_v8  ;;  %2447 = vmatpush1.bf16.msra.mxu1 %v6019_v22 }
 0x6a0   : > { %2508 = vmatprep.subr.bf16.mxu0 %v5929_v43  ;;  %2549 = vmatprep.subr.bf16.mxu1 %v5931_v44 }
 0x755   : > { %v2308_v14 = vpop.f32.mrb[36].mxu0  ;;  %v2349_v15 = vpop.f32.mrb[36].mxu1 }
 0x756   : > { %v2356_v16 = vadd.f32 %v2308_v14, %v1910_v28  ;;  %v2358_v17 = vadd.f32 %v2349_v15, %v1963_v29  ;;  %v2310_v12 = vpop.f32.mrb[37].mxu0  ;;  %v2351_v43 = vpop.f32.mrb[37].mxu1 }
 0x757   : > { %v2357_v7 = vadd.f32 %v2310_v12, %v1912_v13  ;;  %v2359_v44 = vadd.f32 %v2351_v43, %v1965_v18  ;;  %v2312_v39 = vpop.f32.mrb[38].mxu0  ;;  %v2353_v38 = vpop.f32.mrb[38].mxu1 }
 0x758   : > { %v4086_v3 = vmul.f32 -1.442695, %v2356_v16  ;;  %v2313_v5 = vpop.f32.mrb[39].mxu0  ;;  %v2354_v37 = vpop.f32.mrb[39].mxu1 }
 0x759   : > { %v4087_v34 = vmul.f32 -1.442695, %v2357_v7  ;;  %v4088_v35 = vmul.f32 -1.442695, %v2359_v44  ;;  %v4555_v5 = vld [vmem:[#allocation15] ss:$16 sps:$4 sm:$0xff]  }
 0x75a   : > { %4733 = vpow2.f32 %v4086_v3  ;;  %v4558_v37 = vld [vmem:[#allocation15 + $0x8] ss:$16 sps:$4 sm:$0xff]  }
 0x75b   : > { %4735 = vpow2.f32 %v4087_v34 }
 0x75c   : > { %4737 = vpow2.f32 %v4088_v35  ;;  %v4563_v35 = vld [vmem:[#allocation15 + $0x24] ss:$16 sps:$4 sm:$0xff]  }
 0x75d   : > { %4739 = vtanh.f32 %v2358_v17 }
 0x764   : > { %v4734_v36 = vpop.eup %4733 }
 0x765   : > { %v4736_v21 = vpop.eup %4735  ;;  %v2363_v27 = vadd.f32 1.0, %v4734_v36  ;;  %v4566_v36 = vld [vmem:[#allocation15 + $0x2c] ss:$16 sps:$4 sm:$0xff]  }
 0x766   : > { %v2369_v24 = vadd.f32 1.0, %v4736_v21  ;;  %v4738_v20 = vpop.eup %4737  ;;  %v4561_v21 = vld [vmem:[#allocation15 + $0x20] ss:$16 sps:$4 sm:$0xff]  }
 0x767   : > { %4741 = vrcp.f32 %v2363_v27  ;;  %v4740_v42 = vpop.eup %4739  ;;  %v2376_v29 = vadd.f32 1.0, %v4738_v20  ;;  %v4564_v27 = vld [vmem:[#allocation15 + $0x28] ss:$16 sps:$4 sm:$0xff]   ;;  %v4572_v20 = vld [vmem:[#allocation15 + $0x4c] ss:$16 sps:$4 sm:$0xff]  }
 0x768   : > { %4743 = vrcp.f32 %v2369_v24  ;;  %v4569_v24 = vld [vmem:[#allocation15 + $0x44] ss:$16 sps:$4 sm:$0xff]  }
 0x769   : > { %4745 = vrcp.f32 %v2376_v29  ;;  %v4573_v29 = vld [vmem:[#allocation15 + $0x60] ss:$16 sps:$4 sm:$0xff]  }
 0x771   : > { %v4742_v40 = vpop.eup %4741 }
 0x772   : > { %v4744_v19 = vpop.eup %4743  ;;  %v2380_v28 = vmul.f32 %v4742_v40, %v4740_v42  ;;  %v4567_v42 = vld [vmem:[#allocation15 + $0x40] ss:$16 sps:$4 sm:$0xff]   ;;  %v4570_v40 = vld [vmem:[#allocation15 + $0x48] ss:$16 sps:$4 sm:$0xff]  }
 0x773   : > { %v2379_v13 = vmul.f32 %v4744_v19, %v6125_v26  ;;  %v4746_v14 = vpop.eup %4745  ;;  %v4575_v19 = vld [vmem:[#allocation15 + $0x64] ss:$16 sps:$4 sm:$0xff]  }
 0x775   : > { %v6172_v18 = vadd.f32 %v2380_v28, %v2379_v13  ;;  %v4578_v28 = vld [vmem:[#allocation15 + $0x6c] ss:$16 sps:$4 sm:$0xff]   ;;  %v4576_v13 = vld [vmem:[#allocation15 + $0x68] ss:$16 sps:$4 sm:$0xff]  }
 0x777   : > { %4747 = vtanh.f32 %v6172_v18 }
 0x781   : > { %v4748_v15 = vpop.eup %4747 }
 0x782   : > { %v2383_v16 = vmul.f32 %v4748_v15, %v4746_v14  ;;  %v4584_v14 = vld [vmem:[#allocation15 + $0x8c] ss:$16 sps:$4 sm:$0xff]   ;;  %v4579_v15 = vld [vmem:[#allocation15 + $0x80] ss:$16 sps:$4 sm:$0xff]  }
 0x784   : > { %v2384_v17 = vpack.c.bf16 %v2383_v16, %v2383_v16  ;;  %v4582_v16 = vld [vmem:[#allocation15 + $0x88] ss:$16 sps:$4 sm:$0xff]  }
 0x786   : > { %4089 = vst [vmem:[%s5650_s18 + $0x4] sm:$0xf] %v2384_v17  ;;  %2424 = vmatmul.mubr.bf16.vlgmr.msra.gmra.mrb[40].mxu0 %v2384_v17  ;;  %2465 = vmatmul.mubr.bf16.vlgmr.msra.gmra.mrb[40].mxu1 %v2384_v17  ;;  %v4587_v17 = vld [vmem:[#allocation15 + $0xa4] ss:$16 sps:$4 sm:$0xff]  }
 0x787   : > { %2509 = vmatpush1.bf16.msra.mxu0 %v5933_v45  ;;  %2550 = vmatpush1.bf16.msra.mxu1 %v5935_v47  ;;  %v4557_v45 = vld [vmem:[#allocation15 + $0x4] ss:$16 sps:$4 sm:$0xff]   ;;  %v4560_v47 = vld [vmem:[#allocation15 + $0xc] ss:$16 sps:$4 sm:$0xff]  }
 0x788   : > { %2510 = vmatprep.subr.bf16.mxu0 %v5941_v48  ;;  %2551 = vmatprep.subr.bf16.mxu1 %v5943_v49  ;;  %v1916_v48 = vadd.f32 %v6089_v9, %v6102_v11  ;;  %v6786_v49 = vld [vmem:[#allocation37_spill] sm:$0xff] }
 0x789   : > { %2540 = vmatprep.mubr.bf16.mxu0 %v6766_v23  ;;  %2581 = vmatprep.mubr.bf16.mxu1 %v6766_v23 }
 0x78b   : > { %2511 = vmatpush1.bf16.msra.mxu0 %v5945_v50  ;;  %2552 = vmatpush1.bf16.msra.mxu1 %v5947_v51  ;;  %v1969_v50 = vadd.f32 %v6786_v49, %v6105_v30  ;;  %v6787_v51 = vld [vmem:[#allocation38_spill] sm:$0xff]  ;;  %v4593_v49 = vld [vmem:[#allocation15 + $0xc4] ss:$16 sps:$4 sm:$0xff]  }
 0x78c   : > { %2512 = vmatprep.subr.bf16.mxu0 %v5953_v52  ;;  %2553 = vmatprep.subr.bf16.mxu1 %v5955_v53  ;;  %v1918_v52 = vadd.f32 %v6787_v51, %v6112_v41  ;;  %v6788_v53 = vld [vmem:[#allocation39_spill] sm:$0xff] }
 0x78d   : > { %v4591_v51 = vld [vmem:[#allocation15 + $0xc0] ss:$16 sps:$4 sm:$0xff]  }
 0x78f   : > { %2513 = vmatpush1.bf16.msra.mxu0 %v5957_v54  ;;  %2554 = vmatpush1.bf16.msra.mxu1 %v5959_v55  ;;  %v1971_v54 = vadd.f32 %v6788_v53, %v6115_v10  ;;  %v4599_v53 = vld [vmem:[#allocation15 + $0xe4] ss:$16 sps:$4 sm:$0xff]  }
 0x790   : > { %2514 = vmatprep.subr.bf16.mxu0 %v5965_v56  ;;  %2555 = vmatprep.subr.bf16.mxu1 %v5967_v57 }
 0x793   : > { %2515 = vmatpush1.bf16.msra.mxu0 %v5969_v58  ;;  %2556 = vmatpush1.bf16.msra.mxu1 %v5971_v59 }
 0x794   : > { %2516 = vmatprep.subr.bf16.mxu0 %v5977_v60  ;;  %2557 = vmatprep.subr.bf16.mxu1 %v5979_v61 }
 0x797   : > { %2517 = vmatpush1.bf16.msra.mxu0 %v5981_v62  ;;  %2558 = vmatpush1.bf16.msra.mxu1 %v5983_v63 }
 0x798   : > { %2518 = vmatprep.subr.bf16.mxu0 %v5985_v0  ;;  %2559 = vmatprep.subr.bf16.mxu1 %v5987_v1 }
 0x79b   : > { %2519 = vmatpush1.bf16.msra.mxu0 %v5993_v2  ;;  %2560 = vmatpush1.bf16.msra.mxu1 %v5995_v4 }
 0x79c   : > { %2520 = vmatprep.subr.bf16.mxu0 %v6001_v32  ;;  %2561 = vmatprep.subr.bf16.mxu1 %v6003_v25 }
 0x79f   : > { %2521 = vmatpush1.bf16.msra.mxu0 %v6005_v31  ;;  %2562 = vmatpush1.bf16.msra.mxu1 %v6007_v33 }
 0x7a0   : > { %2522 = vmatprep.subr.bf16.mxu0 %v6009_v46  ;;  %2563 = vmatprep.subr.bf16.mxu1 %v6013_v6 }
 0x7a3   : > { %2523 = vmatpush1.bf16.msra.mxu0 %v6017_v8  ;;  %2564 = vmatpush1.bf16.msra.mxu1 %v6019_v22 }
 0x7a4   : > { %2887 = vmatprep.subr.bf16.mxu0 %v4557_v45  ;;  %2940 = vmatprep.subr.bf16.mxu1 %v4560_v47  ;;  %v4590_v45 = vld [vmem:[#allocation15 + $0xac] ss:$16 sps:$4 sm:$0xff]   ;;  %v4585_v47 = vld [vmem:[#allocation15 + $0xa0] ss:$16 sps:$4 sm:$0xff]  }
 0x859   : > { %v2425_v55 = vpop.f32.mrb[40].mxu0  ;;  %v2466_v56 = vpop.f32.mrb[40].mxu1 }
 0x85a   : > { %v2473_v57 = vadd.f32 %v2425_v55, %v1916_v48  ;;  %v2475_v58 = vadd.f32 %v2466_v56, %v1969_v50  ;;  %v2427_v59 = vpop.f32.mrb[41].mxu0  ;;  %v2468_v60 = vpop.f32.mrb[41].mxu1  ;;  %v4588_v48 = vld [vmem:[#allocation15 + $0xa8] ss:$16 sps:$4 sm:$0xff]   ;;  %v4596_v50 = vld [vmem:[#allocation15 + $0xcc] ss:$16 sps:$4 sm:$0xff]  }
 0x85b   : > { %v2474_v61 = vadd.f32 %v2427_v59, %v1918_v52  ;;  %v2476_v62 = vadd.f32 %v2468_v60, %v1971_v54  ;;  %v2429_v63 = vpop.f32.mrb[42].mxu0  ;;  %v2470_v0 = vpop.f32.mrb[42].mxu1  ;;  %v4594_v52 = vld [vmem:[#allocation15 + $0xc8] ss:$16 sps:$4 sm:$0xff]   ;;  %v4602_v54 = vld [vmem:[#allocation15 + $0xec] ss:$16 sps:$4 sm:$0xff]  }
 0x85c   : > { %v4090_v1 = vmul.f32 -1.442695, %v2473_v57  ;;  %v2430_v2 = vpop.f32.mrb[43].mxu0  ;;  %v2471_v4 = vpop.f32.mrb[43].mxu1  ;;  %v4597_v55 = vld [vmem:[#allocation15 + $0xe0] ss:$16 sps:$4 sm:$0xff]  }
 0x85d   : > { %v4091_v32 = vmul.f32 -1.442695, %v2474_v61  ;;  %v4092_v25 = vmul.f32 -1.442695, %v2476_v62  ;;  %v4600_v56 = vld [vmem:[#allocation15 + $0xe8] ss:$16 sps:$4 sm:$0xff]  }
 0x85e   : > { %4749 = vpow2.f32 %v4090_v1  ;;  %v4603_v57 = vld [vmem:[%s5650_s18] sm:$0xff]   ;;  %v6228_v59 = vld [vmem:[#allocation20 + $0xc] ss:$16 sps:$4 sm:$0xff]   ;;  %v6232_v61 = vld [vmem:[#allocation20 + $0x8] ss:$16 sps:$4 sm:$0xff]  }
 0x85f   : > { %4751 = vpow2.f32 %v4091_v32  ;;  %v6230_v60 = vld [vmem:[#allocation20] ss:$16 sps:$4 sm:$0xff]   ;;  %v6238_v62 = vld [vmem:[#allocation20 + $0x24] ss:$16 sps:$4 sm:$0xff]   ;;  %v6240_v63 = vld [vmem:[#allocation20 + $0x2c] ss:$16 sps:$4 sm:$0xff]  }
 0x860   : > { %4753 = vpow2.f32 %v4092_v25  ;;  %v6242_v0 = vld [vmem:[#allocation20 + $0x20] ss:$16 sps:$4 sm:$0xff]   ;;  %v6244_v1 = vld [vmem:[#allocation20 + $0x28] ss:$16 sps:$4 sm:$0xff]   ;;  %v6250_v2 = vld [vmem:[#allocation20 + $0x44] ss:$16 sps:$4 sm:$0xff]  }
 0x861   : > { %4755 = vtanh.f32 %v2475_v58  ;;  %v6226_v58 = vld [vmem:[#allocation20 + $0x4] ss:$16 sps:$4 sm:$0xff]   ;;  %v6252_v4 = vld [vmem:[#allocation20 + $0x4c] ss:$16 sps:$4 sm:$0xff]   ;;  %v6254_v32 = vld [vmem:[#allocation20 + $0x40] ss:$16 sps:$4 sm:$0xff]  }
 0x862   : > { %v6256_v25 = vld [vmem:[#allocation20 + $0x48] ss:$16 sps:$4 sm:$0xff]  }
 0x868   : > { %v4750_v31 = vpop.eup %4749 }
 0x869   : > { %v4752_v33 = vpop.eup %4751  ;;  %v2480_v46 = vadd.f32 1.0, %v4750_v31  ;;  %v6262_v31 = vld [vmem:[#allocation20 + $0x64] ss:$16 sps:$4 sm:$0xff]  }
 0x86a   : > { %v2486_v6 = vadd.f32 1.0, %v4752_v33  ;;  %v4754_v8 = vpop.eup %4753  ;;  %v6264_v33 = vld [vmem:[#allocation20 + $0x6c] ss:$16 sps:$4 sm:$0xff]  }
 0x86b   : > { %4757 = vrcp.f32 %v2480_v46  ;;  %v4756_v22 = vpop.eup %4755  ;;  %v2493_v43 = vadd.f32 1.0, %v4754_v8  ;;  %v6266_v46 = vld [vmem:[#allocation20 + $0x60] ss:$16 sps:$4 sm:$0xff]   ;;  %v6274_v8 = vld [vmem:[#allocation20 + $0x84] ss:$16 sps:$4 sm:$0xff]  }
 0x86c   : > { %4759 = vrcp.f32 %v2486_v6  ;;  %v6268_v6 = vld [vmem:[#allocation20 + $0x68] ss:$16 sps:$4 sm:$0xff]  }
 0x86d   : > { %4761 = vrcp.f32 %v2493_v43  ;;  %v6284_v43 = vld [vmem:[#allocation20 + $0xac] ss:$16 sps:$4 sm:$0xff]  }
 0x875   : > { %v4758_v9 = vpop.eup %4757 }
 0x876   : > { %v4760_v26 = vpop.eup %4759  ;;  %v2497_v12 = vmul.f32 %v4758_v9, %v4756_v22  ;;  %v6276_v22 = vld [vmem:[#allocation20 + $0x8c] ss:$16 sps:$4 sm:$0xff]   ;;  %v6278_v9 = vld [vmem:[#allocation20 + $0x80] ss:$16 sps:$4 sm:$0xff]  }
 0x877   : > { %v2496_v7 = vmul.f32 %v4760_v26, %v6172_v18  ;;  %v4762_v39 = vpop.eup %4761  ;;  %v4581_v18 = vld [vmem:[#allocation15 + $0x84] ss:$16 sps:$4 sm:$0xff]   ;;  %v6280_v26 = vld [vmem:[#allocation20 + $0x88] ss:$16 sps:$4 sm:$0xff]  }
 0x879   : > { %v6217_v44 = vadd.f32 %v2497_v12, %v2496_v7  ;;  %v6282_v12 = vld [vmem:[#allocation20 + $0xa4] ss:$16 sps:$4 sm:$0xff]   ;;  %v6290_v7 = vld [vmem:[#allocation20 + $0xa0] ss:$16 sps:$4 sm:$0xff]  }
 0x87b   : > { %4763 = vtanh.f32 %v6217_v44 }
 0x885   : > { %v4764_v38 = vpop.eup %4763 }
 0x886   : > { %v2500_v3 = vmul.f32 %v4764_v38, %v4762_v39  ;;  %v6292_v39 = vld [vmem:[#allocation20 + $0xa8] ss:$16 sps:$4 sm:$0xff]   ;;  %v6298_v38 = vld [vmem:[#allocation20 + $0xc4] ss:$16 sps:$4 sm:$0xff]  }
 0x888   : > { %v2501_v34 = vpack.c.bf16 %v2500_v3, %v2500_v3  ;;  %v6300_v3 = vld [vmem:[#allocation20 + $0xcc] ss:$16 sps:$4 sm:$0xff]  }
 0x88a   : > { %4093 = vst [vmem:[%s5650_s18 + $0x8] sm:$0xf] %v2501_v34  ;;  %2541 = vmatmul.mubr.bf16.vlgmr.msra.gmra.mrb[44].mxu0 %v2501_v34  ;;  %2582 = vmatmul.mubr.bf16.vlgmr.msra.gmra.mrb[44].mxu1 %v2501_v34  ;;  %v6306_v34 = vld [vmem:[#allocation20 + $0xe4] ss:$16 sps:$4 sm:$0xff]  }
 0x88b   : > { %2888 = vmatpush1.bf16.msra.mxu0 %v4555_v5  ;;  %2941 = vmatpush1.bf16.msra.mxu1 %v4558_v37  ;;  %v6302_v5 = vld [vmem:[#allocation20 + $0xc0] ss:$16 sps:$4 sm:$0xff]   ;;  %v6304_v37 = vld [vmem:[#allocation20 + $0xc8] ss:$16 sps:$4 sm:$0xff]  }
 0x88c   : > { %2889 = vmatprep.subr.bf16.mxu0 %v4563_v35  ;;  %2942 = vmatprep.subr.bf16.mxu1 %v4566_v36  ;;  %v6310_v35 = vld [vmem:[#allocation20 + $0xec] ss:$16 sps:$4 sm:$0xff]   ;;  %v6314_v36 = vld [vmem:[#allocation20 + $0xe0] ss:$16 sps:$4 sm:$0xff]  }
 0x88d   : > { %2919 = vmatprep.mubr.bf16.mxu0 %v6766_v23  ;;  %2972 = vmatprep.mubr.bf16.mxu1 %v6766_v23 }
 0x88f   : > { %2890 = vmatpush1.bf16.msra.mxu0 %v4561_v21  ;;  %2943 = vmatpush1.bf16.msra.mxu1 %v4564_v27  ;;  %v6316_v21 = vld [vmem:[#allocation20 + $0xe8] ss:$16 sps:$4 sm:$0xff]  }
 0x890   : > { %2891 = vmatprep.subr.bf16.mxu0 %v4569_v24  ;;  %2944 = vmatprep.subr.bf16.mxu1 %v4572_v20  ;;  %v6789_v27 = vld [vmem:[#allocation40_spill] sm:$0xff]  ;;  %v6790_v20 = vld [vmem:[#allocation41_spill] sm:$0xff] }
 0x891   : > { %v1920_v24 = vadd.f32 %v6789_v27, %v6102_v11 }
 0x893   : > { %2892 = vmatpush1.bf16.msra.mxu0 %v4567_v42  ;;  %2945 = vmatpush1.bf16.msra.mxu1 %v4570_v40  ;;  %v1973_v42 = vadd.f32 %v6790_v20, %v6105_v30  ;;  %v6791_v40 = vld [vmem:[#allocation42_spill] sm:$0xff] }
 0x894   : > { %2893 = vmatprep.subr.bf16.mxu0 %v4575_v19  ;;  %2946 = vmatprep.subr.bf16.mxu1 %v4578_v28  ;;  %v1922_v19 = vadd.f32 %v6791_v40, %v6112_v41  ;;  %v6792_v28 = vld [vmem:[#allocation43_spill] sm:$0xff] }
 0x897   : > { %2894 = vmatpush1.bf16.msra.mxu0 %v4573_v29  ;;  %2947 = vmatpush1.bf16.msra.mxu1 %v4576_v13  ;;  %v1975_v29 = vadd.f32 %v6792_v28, %v6115_v10 }
 0x898   : > { %2895 = vmatprep.subr.bf16.mxu0 %v4581_v18  ;;  %2948 = vmatprep.subr.bf16.mxu1 %v4584_v14 }
 0x89b   : > { %2896 = vmatpush1.bf16.msra.mxu0 %v4579_v15  ;;  %2949 = vmatpush1.bf16.msra.mxu1 %v4582_v16 }
 0x89c   : > { %2897 = vmatprep.subr.bf16.mxu0 %v4587_v17  ;;  %2950 = vmatprep.subr.bf16.mxu1 %v4590_v45 }
 0x89f   : > { %2898 = vmatpush1.bf16.msra.mxu0 %v4585_v47  ;;  %2951 = vmatpush1.bf16.msra.mxu1 %v4588_v48 }
 0x8a0   : > { %2899 = vmatprep.subr.bf16.mxu0 %v4593_v49  ;;  %2952 = vmatprep.subr.bf16.mxu1 %v4596_v50 }
 0x8a3   : > { %2900 = vmatpush1.bf16.msra.mxu0 %v4591_v51  ;;  %2953 = vmatpush1.bf16.msra.mxu1 %v4594_v52 }
 0x8a4   : > { %2901 = vmatprep.subr.bf16.mxu0 %v4599_v53  ;;  %2954 = vmatprep.subr.bf16.mxu1 %v4602_v54 }
 0x8a7   : > { %2902 = vmatpush1.bf16.msra.mxu0 %v4597_v55  ;;  %2955 = vmatpush1.bf16.msra.mxu1 %v4600_v56 }
 0x8a8   : > { %3174 = vmatprep.subr.bf16.mxu0 %v6226_v58  ;;  %3215 = vmatprep.subr.bf16.mxu1 %v6228_v59 }
 0x8aa   : > { %2920 = vmatmul.mubr.bf16.vlgmr.msra.gmra.mrb[48].mxu0 %v4603_v57  ;;  %2973 = vmatmul.mubr.bf16.vlgmr.msra.gmra.mrb[48].mxu1 %v4603_v57 }
 0x8ab   : > { %2929 = vmatprep.mubr.bf16.mxu0 %v6766_v23  ;;  %2982 = vmatprep.mubr.bf16.mxu1 %v6766_v23 }
 0x8ac   : > { %3175 = vmatpush1.bf16.msra.mxu0 %v6230_v60  ;;  %3216 = vmatpush1.bf16.msra.mxu1 %v6232_v61 }
 0x8ad   : > { %3176 = vmatprep.subr.bf16.mxu0 %v6238_v62  ;;  %3217 = vmatprep.subr.bf16.mxu1 %v6240_v63 }
 0x8b0   : > { %3177 = vmatpush1.bf16.msra.mxu0 %v6242_v0  ;;  %3218 = vmatpush1.bf16.msra.mxu1 %v6244_v1 }
 0x8b1   : > { %3178 = vmatprep.subr.bf16.mxu0 %v6250_v2  ;;  %3219 = vmatprep.subr.bf16.mxu1 %v6252_v4 }
 0x8b4   : > { %3179 = vmatpush1.bf16.msra.mxu0 %v6254_v32  ;;  %3220 = vmatpush1.bf16.msra.mxu1 %v6256_v25 }
 0x8b5   : > { %3180 = vmatprep.subr.bf16.mxu0 %v6262_v31  ;;  %3221 = vmatprep.subr.bf16.mxu1 %v6264_v33 }
 0x8b8   : > { %3181 = vmatpush1.bf16.msra.mxu0 %v6266_v46  ;;  %3222 = vmatpush1.bf16.msra.mxu1 %v6268_v6 }
 0x8b9   : > { %3182 = vmatprep.subr.bf16.mxu0 %v6274_v8  ;;  %3223 = vmatprep.subr.bf16.mxu1 %v6276_v22 }
 0x8bc   : > { %3183 = vmatpush1.bf16.msra.mxu0 %v6278_v9  ;;  %3224 = vmatpush1.bf16.msra.mxu1 %v6280_v26 }
 0x8bd   : > { %3184 = vmatprep.subr.bf16.mxu0 %v6282_v12  ;;  %3225 = vmatprep.subr.bf16.mxu1 %v6284_v43 }
 0x8c0   : > { %3185 = vmatpush1.bf16.msra.mxu0 %v6290_v7  ;;  %3226 = vmatpush1.bf16.msra.mxu1 %v6292_v39 }
 0x8c1   : > { %3186 = vmatprep.subr.bf16.mxu0 %v6298_v38  ;;  %3227 = vmatprep.subr.bf16.mxu1 %v6300_v3 }
 0x8c4   : > { %3187 = vmatpush1.bf16.msra.mxu0 %v6302_v5  ;;  %3228 = vmatpush1.bf16.msra.mxu1 %v6304_v37 }
 0x8c5   : > { %3188 = vmatprep.subr.bf16.mxu0 %v6306_v34  ;;  %3229 = vmatprep.subr.bf16.mxu1 %v6310_v35 }
 0x8c8   : > { %3189 = vmatpush1.bf16.msra.mxu0 %v6314_v36  ;;  %3230 = vmatpush1.bf16.msra.mxu1 %v6316_v21 }
 0x8c9   : > { %3290 = vmatprep.subr.bf16.mxu0 %v6226_v58  ;;  %3331 = vmatprep.subr.bf16.mxu1 %v6228_v59 }
 0x95d   : > { %v2542_v13 = vpop.f32.mrb[44].mxu0  ;;  %v2583_v18 = vpop.f32.mrb[44].mxu1 }
 0x95e   : > { %v2590_v14 = vadd.f32 %v2542_v13, %v1920_v24  ;;  %v2592_v15 = vadd.f32 %v2583_v18, %v1973_v42  ;;  %v2544_v16 = vpop.f32.mrb[45].mxu0  ;;  %v2585_v17 = vpop.f32.mrb[45].mxu1 }
 0x95f   : > { %v2591_v45 = vadd.f32 %v2544_v16, %v1922_v19  ;;  %v2593_v47 = vadd.f32 %v2585_v17, %v1975_v29  ;;  %v2546_v48 = vpop.f32.mrb[46].mxu0  ;;  %v2587_v49 = vpop.f32.mrb[46].mxu1 }
 0x960   : > { %v4094_v11 = vmul.f32 -1.442695, %v2590_v14  ;;  %v2547_v50 = vpop.f32.mrb[47].mxu0  ;;  %v2588_v51 = vpop.f32.mrb[47].mxu1  ;;  %v2688_v49 = vld [vmem:[#allocation4] sm:$0xff] }
 0x961   : > { %v4095_v30 = vmul.f32 -1.442695, %v2591_v45  ;;  %v4096_v41 = vmul.f32 -1.442695, %v2593_v47  ;;  %v2687_v50 = vld [vmem:[%s6793_s0] sm:$0xf] }
 0x962   : > { %4765 = vpow2.f32 %v4094_v11  ;;  %v3013_v11 = vpack.c.bf16 %v2688_v49, %v2688_v49  ;;  %s6536_s0 = scalar_lea.sflag [#allocation23], %s3644_s11 }
 0x963   : > { %4767 = vpow2.f32 %v4095_v30 }
 0x964   : > { %4769 = vpow2.f32 %v4096_v41 }
 0x965   : > { %4771 = vtanh.f32 %v2592_v15 }
 0x96c   : > { %v4766_v52 = vpop.eup %4765 }
 0x96d   : > { %v4768_v53 = vpop.eup %4767  ;;  %v2597_v10 = vadd.f32 1.0, %v4766_v52 }
 0x96e   : > { %v2603_v54 = vadd.f32 1.0, %v4768_v53  ;;  %v4770_v55 = vpop.eup %4769 }
 0x96f   : > { %4773 = vrcp.f32 %v2597_v10  ;;  %v4772_v56 = vpop.eup %4771  ;;  %v2610_v20 = vadd.f32 1.0, %v4770_v55 }
 0x970   : > { %4775 = vrcp.f32 %v2603_v54  ;;  %v6799_v54 = vld [vmem:[#allocation33_spill] sm:$0xff] }
 0x971   : > { %4777 = vrcp.f32 %v2610_v20  ;;  %v6403_v55 = vrot.slane %v2687_v50, %v6799_v54  ;;  %v6803_v20 = vld [vmem:[#allocation36_spill] sm:$0xff] }
 0x979   : > { %v4774_v57 = vpop.eup %4773 }
 0x97a   : > { %v4776_v27 = vpop.eup %4775  ;;  %v2614_v24 = vmul.f32 %v4774_v57, %v4772_v56  ;;  %v6800_v56 = vld [vmem:[#allocation34_spill] sm:$0xff] }
 0x97b   : > { %v2613_v42 = vmul.f32 %v4776_v27, %v6217_v44  ;;  %v4778_v16 = vpop.eup %4777  ;;  %v6406_v57 = vrot.slane %v2687_v50, %v6800_v56 }
 0x97d   : > { %v2615_v40 = vadd.f32 %v2614_v24, %v2613_v42  ;;  %v6333_v19 = vpop.f32.mrb[48].mxu0  ;;  %v6335_v28 = vpop.f32.mrb[48].mxu1  ;;  %v6413_v42 = vrot.slane %v2687_v50, %v6803_v20 }
 0x97e   : > { %v6337_v29 = vpop.f32.mrb[49].mxu0  ;;  %v6339_v13 = vpop.f32.mrb[49].mxu1 }
 0x97f   : > { %4779 = vtanh.f32 %v2615_v40  ;;  %2622 = vst [vmem:[#allocation6] sm:$0xff] %v2615_v40  ;;  %v6341_v18 = vpop.f32.mrb[50].mxu0  ;;  %v6343_v14 = vpop.f32.mrb[50].mxu1  ;;  %v6804_v40 = vld [vmem:[#allocation35_spill] sm:$0xff] }
 0x980   : > { %v6345_v15 = vpop.f32.mrb[51].mxu0  ;;  %v6347_v44 = vpop.f32.mrb[51].mxu1 }
 0x989   : > { %v4780_v17 = vpop.eup %4779 }
 0x98a   : > { %v2617_v45 = vmul.f32 %v4780_v17, %v4778_v16  ;;  %v6416_v16 = vrot.slane %v2687_v50, %v6804_v40  ;;  %v2922_v17 = vadd.f32 %v6333_v19, %v6403_v55 }
 0x98c   : > { %v2618_v47 = vpack.c.bf16 %v2617_v45, %v2617_v45  ;;  %2621 = vst [vmem:[#allocation3] sm:$0xff] %v2617_v45  ;;  %v2975_v45 = vadd.f32 %v6335_v28, %v6406_v57 }
 0x98e   : > { %4097 = vst [vmem:[%s5650_s18 + $0xc] sm:$0xf] %v2618_v47  ;;  %v2924_v47 = vadd.f32 %v6337_v29, %v6413_v42 }
 0x995   : > { %v4640_v48 = vld [vmem:[%s5650_s18 + $0x8] sm:$0xff]  }
 0x996   : > { %2930 = vmatmul.mubr.bf16.gmra.mrb[52].mxu0 %v4640_v48  ;;  %2983 = vmatmul.mubr.bf16.gmra.mrb[52].mxu1 %v4640_v48  ;;  %v2977_v48 = vadd.f32 %v6339_v13, %v6416_v16 }
 0x997   : > { %3206 = vmatprep.mubr.bf16.mxu0 %v6766_v23  ;;  %3247 = vmatprep.mubr.bf16.mxu1 %v6766_v23 }
 0x99e   : > { %3207 = vmatmul.mubr.bf16.vlgmr.msra.gmra.mrb[56].mxu0 %v3013_v11  ;;  %3248 = vmatmul.mubr.bf16.vlgmr.msra.gmra.mrb[56].mxu1 %v3013_v11 }
 0x99f   : > { %3291 = vmatpush1.bf16.msra.mxu0 %v6230_v60  ;;  %3332 = vmatpush1.bf16.msra.mxu1 %v6232_v61 }
 0x9a0   : > { %3292 = vmatprep.subr.bf16.mxu0 %v6238_v62  ;;  %3333 = vmatprep.subr.bf16.mxu1 %v6240_v63 }
 0x9a1   : > { %3322 = vmatprep.mubr.bf16.mxu0 %v6766_v23  ;;  %3363 = vmatprep.mubr.bf16.mxu1 %v6766_v23 }
 0x9a3   : > { %3293 = vmatpush1.bf16.msra.mxu0 %v6242_v0  ;;  %3334 = vmatpush1.bf16.msra.mxu1 %v6244_v1 }
 0x9a4   : > { %3294 = vmatprep.subr.bf16.mxu0 %v6250_v2  ;;  %3335 = vmatprep.subr.bf16.mxu1 %v6252_v4 }
 0x9a7   : > { %3295 = vmatpush1.bf16.msra.mxu0 %v6254_v32  ;;  %3336 = vmatpush1.bf16.msra.mxu1 %v6256_v25 }
 0x9a8   : > { %3296 = vmatprep.subr.bf16.mxu0 %v6262_v31  ;;  %3337 = vmatprep.subr.bf16.mxu1 %v6264_v33 }
 0x9ab   : > { %3297 = vmatpush1.bf16.msra.mxu0 %v6266_v46  ;;  %3338 = vmatpush1.bf16.msra.mxu1 %v6268_v6 }
 0x9ac   : > { %3298 = vmatprep.subr.bf16.mxu0 %v6274_v8  ;;  %3339 = vmatprep.subr.bf16.mxu1 %v6276_v22 }
 0x9af   : > { %3299 = vmatpush1.bf16.msra.mxu0 %v6278_v9  ;;  %3340 = vmatpush1.bf16.msra.mxu1 %v6280_v26 }
 0x9b0   : > { %3300 = vmatprep.subr.bf16.mxu0 %v6282_v12  ;;  %3341 = vmatprep.subr.bf16.mxu1 %v6284_v43 }
 0x9b3   : > { %3301 = vmatpush1.bf16.msra.mxu0 %v6290_v7  ;;  %3342 = vmatpush1.bf16.msra.mxu1 %v6292_v39 }
 0x9b4   : > { %3302 = vmatprep.subr.bf16.mxu0 %v6298_v38  ;;  %3343 = vmatprep.subr.bf16.mxu1 %v6300_v3 }
 0x9b7   : > { %3303 = vmatpush1.bf16.msra.mxu0 %v6302_v5  ;;  %3344 = vmatpush1.bf16.msra.mxu1 %v6304_v37 }
 0x9b8   : > { %3304 = vmatprep.subr.bf16.mxu0 %v6306_v34  ;;  %3345 = vmatprep.subr.bf16.mxu1 %v6310_v35 }
 0x9bb   : > { %3305 = vmatpush1.bf16.msra.mxu0 %v6314_v36  ;;  %3346 = vmatpush1.bf16.msra.mxu1 %v6316_v21 }
 0x9bc   : > { %3407 = vmatprep.subr.bf16.mxu0 %v6226_v58  ;;  %3448 = vmatprep.subr.bf16.mxu1 %v6228_v59 }
 0xa69   : > { %v6390_v51 = vpop.f32.mrb[52].mxu0  ;;  %v6392_v30 = vpop.f32.mrb[52].mxu1 }
 0xa6a   : > { %6794 = vst [vmem:[#allocation37_spill] sm:$0xff] %v6392_v30  ;;  %v6394_v41 = vpop.f32.mrb[53].mxu0  ;;  %v6396_v52 = vpop.f32.mrb[53].mxu1 }
 0xa6b   : > { %6795 = vst [vmem:[#allocation38_spill] sm:$0xff] %v6394_v41  ;;  %6796 = vst [vmem:[#allocation39_spill] sm:$0xff] %v6396_v52  ;;  %v6398_v53 = vpop.f32.mrb[54].mxu0  ;;  %v6400_v10 = vpop.f32.mrb[54].mxu1 }
 0xa6c   : > { %6797 = vst [vmem:[#allocation40_spill] sm:$0xff] %v6398_v53  ;;  %6798 = vst [vmem:[#allocation41_spill] sm:$0xff] %v6400_v10  ;;  %v6408_v27 = vpop.f32.mrb[55].mxu0  ;;  %v6410_v24 = vpop.f32.mrb[55].mxu1 }
 0xa6d   : > { %6801 = vst [vmem:[#allocation42_spill] sm:$0xff] %v6408_v27  ;;  %6802 = vst [vmem:[#allocation43_spill] sm:$0xff] %v6410_v24 }
 0xa71   : > { %v3208_v49 = vpop.f32.mrb[56].mxu0  ;;  %v3249_v11 = vpop.f32.mrb[56].mxu1 }
 0xa72   : > { %v3256_v54 = vadd.f32 %v3208_v49, %v2922_v17  ;;  %v3258_v56 = vadd.f32 %v3249_v11, %v2975_v45  ;;  %v3210_v20 = vpop.f32.mrb[57].mxu0  ;;  %v3251_v24 = vpop.f32.mrb[57].mxu1 }
 0xa73   : > { %v3257_v50 = vadd.f32 %v3210_v20, %v2924_v47  ;;  %v3259_v40 = vadd.f32 %v3251_v24, %v2977_v48  ;;  %v3212_v27 = vpop.f32.mrb[58].mxu0  ;;  %v3253_v10 = vpop.f32.mrb[58].mxu1  ;;  %v2979_v20 = vadd.f32 %v6343_v14, %v6406_v57 }
 0xa74   : > { %v4164_v19 = vmul.f32 -1.442695, %v3256_v54  ;;  %v3213_v53 = vpop.f32.mrb[59].mxu0  ;;  %v3254_v52 = vpop.f32.mrb[59].mxu1  ;;  %v2689_v27 = vld [vmem:[#allocation7] sm:$0xff] }
 0xa75   : > { %v4165_v28 = vmul.f32 -1.442695, %v3257_v50  ;;  %v4166_v29 = vmul.f32 -1.442695, %v3259_v40  ;;  %v2928_v50 = vadd.f32 %v6345_v15, %v6413_v42  ;;  %v2981_v40 = vadd.f32 %v6347_v44, %v6416_v16 }
 0xa76   : > { %4781 = vpow2.f32 %v4164_v19 }
 0xa77   : > { %4783 = vpow2.f32 %v4165_v28 }
 0xa78   : > { %4785 = vpow2.f32 %v4166_v29 }
 0xa79   : > { %4787 = vtanh.f32 %v3258_v56  ;;  %v2926_v56 = vadd.f32 %v6341_v18, %v6403_v55 }
 0xa80   : > { %v4782_v41 = vpop.eup %4781 }
 0xa81   : > { %v4784_v30 = vpop.eup %4783  ;;  %v3263_v13 = vadd.f32 1.0, %v4782_v41 }
 0xa82   : > { %v3269_v17 = vadd.f32 1.0, %v4784_v30  ;;  %v4786_v45 = vpop.eup %4785 }
 0xa83   : > { %4789 = vrcp.f32 %v3263_v13  ;;  %v4788_v24 = vpop.eup %4787  ;;  %v3276_v52 = vadd.f32 1.0, %v4786_v45 }
 0xa84   : > { %4791 = vrcp.f32 %v3269_v17 }
 0xa85   : > { %4793 = vrcp.f32 %v3276_v52 }
 0xa8d   : > { %v4790_v10 = vpop.eup %4789 }
 0xa8e   : > { %v4792_v47 = vpop.eup %4791  ;;  %v3280_v53 = vmul.f32 %v4790_v10, %v4788_v24 }
 0xa8f   : > { %v3279_v48 = vmul.f32 %v4792_v47, %v2689_v27  ;;  %v4794_v41 = vpop.eup %4793 }
 0xa91   : > { %v6426_v49 = vadd.f32 %v3280_v53, %v3279_v48 }
 0xa93   : > { %4795 = vtanh.f32 %v6426_v49 }
 0xa9d   : > { %v4796_v11 = vpop.eup %4795 }
 0xa9e   : > { %v3283_v54 = vmul.f32 %v4796_v11, %v4794_v41 }
 0xaa0   : > { %v3284_v30 = vpack.c.bf16 %v3283_v54, %v3283_v54 }
 0xaa2   : > { %3285 = vst [vmem:[%s5652_s9] sm:$0xf] %v3284_v30  ;;  %3323 = vmatmul.mubr.bf16.vlgmr.msra.gmra.mrb[60].mxu0 %v3284_v30  ;;  %3364 = vmatmul.mubr.bf16.vlgmr.msra.gmra.mrb[60].mxu1 %v3284_v30 }
 0xaa3   : > { %3408 = vmatpush1.bf16.msra.mxu0 %v6230_v60  ;;  %3449 = vmatpush1.bf16.msra.mxu1 %v6232_v61 }
 0xaa4   : > { %3409 = vmatprep.subr.bf16.mxu0 %v6238_v62  ;;  %3450 = vmatprep.subr.bf16.mxu1 %v6240_v63 }
 0xaa5   : > { %3439 = vmatprep.mubr.bf16.mxu0 %v6766_v23  ;;  %3480 = vmatprep.mubr.bf16.mxu1 %v6766_v23 }
 0xaa7   : > { %3410 = vmatpush1.bf16.msra.mxu0 %v6242_v0  ;;  %3451 = vmatpush1.bf16.msra.mxu1 %v6244_v1 }
 0xaa8   : > { %3411 = vmatprep.subr.bf16.mxu0 %v6250_v2  ;;  %3452 = vmatprep.subr.bf16.mxu1 %v6252_v4 }
 0xaab   : > { %3412 = vmatpush1.bf16.msra.mxu0 %v6254_v32  ;;  %3453 = vmatpush1.bf16.msra.mxu1 %v6256_v25 }
 0xaac   : > { %3413 = vmatprep.subr.bf16.mxu0 %v6262_v31  ;;  %3454 = vmatprep.subr.bf16.mxu1 %v6264_v33 }
 0xaaf   : > { %3414 = vmatpush1.bf16.msra.mxu0 %v6266_v46  ;;  %3455 = vmatpush1.bf16.msra.mxu1 %v6268_v6 }
 0xab0   : > { %3415 = vmatprep.subr.bf16.mxu0 %v6274_v8  ;;  %3456 = vmatprep.subr.bf16.mxu1 %v6276_v22 }
 0xab3   : > { %3416 = vmatpush1.bf16.msra.mxu0 %v6278_v9  ;;  %3457 = vmatpush1.bf16.msra.mxu1 %v6280_v26 }
 0xab4   : > { %3417 = vmatprep.subr.bf16.mxu0 %v6282_v12  ;;  %3458 = vmatprep.subr.bf16.mxu1 %v6284_v43 }
 0xab7   : > { %3418 = vmatpush1.bf16.msra.mxu0 %v6290_v7  ;;  %3459 = vmatpush1.bf16.msra.mxu1 %v6292_v39 }
 0xab8   : > { %3419 = vmatprep.subr.bf16.mxu0 %v6298_v38  ;;  %3460 = vmatprep.subr.bf16.mxu1 %v6300_v3 }
 0xabb   : > { %3420 = vmatpush1.bf16.msra.mxu0 %v6302_v5  ;;  %3461 = vmatpush1.bf16.msra.mxu1 %v6304_v37 }
 0xabc   : > { %3421 = vmatprep.subr.bf16.mxu0 %v6306_v34  ;;  %3462 = vmatprep.subr.bf16.mxu1 %v6310_v35 }
 0xabf   : > { %3422 = vmatpush1.bf16.msra.mxu0 %v6314_v36  ;;  %3463 = vmatpush1.bf16.msra.mxu1 %v6316_v21 }
 0xac0   : > { %3524 = vmatprep.subr.bf16.mxu0 %v6226_v58  ;;  %3565 = vmatprep.subr.bf16.mxu1 %v6228_v59 }
 0xb75   : > { %v3324_v19 = vpop.f32.mrb[60].mxu0  ;;  %v3365_v28 = vpop.f32.mrb[60].mxu1 }
 0xb76   : > { %v3372_v29 = vadd.f32 %v3324_v19, %v2926_v56  ;;  %v3374_v13 = vadd.f32 %v3365_v28, %v2979_v20  ;;  %v3326_v17 = vpop.f32.mrb[61].mxu0  ;;  %v3367_v58 = vpop.f32.mrb[61].mxu1 }
 0xb77   : > { %v3373_v45 = vadd.f32 %v3326_v17, %v2928_v50  ;;  %v3375_v59 = vadd.f32 %v3367_v58, %v2981_v40  ;;  %v3328_v24 = vpop.f32.mrb[62].mxu0  ;;  %v3369_v27 = vpop.f32.mrb[62].mxu1 }
 0xb78   : > { %v4167_v18 = vmul.f32 -1.442695, %v3372_v29  ;;  %v3329_v10 = vpop.f32.mrb[63].mxu0  ;;  %v3370_v47 = vpop.f32.mrb[63].mxu1 }
 0xb79   : > { %v4168_v14 = vmul.f32 -1.442695, %v3373_v45  ;;  %v4169_v15 = vmul.f32 -1.442695, %v3375_v59 }
 0xb7a   : > { %4797 = vpow2.f32 %v4167_v18 }
 0xb7b   : > { %4799 = vpow2.f32 %v4168_v14 }
 0xb7c   : > { %4801 = vpow2.f32 %v4169_v15 }
 0xb7d   : > { %4803 = vtanh.f32 %v3374_v13 }
 0xb84   : > { %v4798_v53 = vpop.eup %4797 }
 0xb85   : > { %v4800_v52 = vpop.eup %4799  ;;  %v3379_v44 = vadd.f32 1.0, %v4798_v53 }
 0xb86   : > { %v3385_v48 = vadd.f32 1.0, %v4800_v52  ;;  %v4802_v41 = vpop.eup %4801 }
 0xb87   : > { %4805 = vrcp.f32 %v3379_v44  ;;  %v4804_v11 = vpop.eup %4803  ;;  %v3392_v20 = vadd.f32 1.0, %v4802_v41 }
 0xb88   : > { %4807 = vrcp.f32 %v3385_v48 }
 0xb89   : > { %4809 = vrcp.f32 %v3392_v20 }
 0xb91   : > { %v4806_v54 = vpop.eup %4805 }
 0xb92   : > { %v4808_v30 = vpop.eup %4807  ;;  %v3396_v56 = vmul.f32 %v4806_v54, %v4804_v11 }
 0xb93   : > { %v3395_v50 = vmul.f32 %v4808_v30, %v6426_v49  ;;  %v4810_v19 = vpop.eup %4809 }
 0xb95   : > { %v6473_v40 = vadd.f32 %v3396_v56, %v3395_v50 }
 0xb97   : > { %4811 = vtanh.f32 %v6473_v40 }
 0xba1   : > { %v4812_v28 = vpop.eup %4811 }
 0xba2   : > { %v3399_v29 = vmul.f32 %v4812_v28, %v4810_v19 }
 0xba4   : > { %v3400_v13 = vpack.c.bf16 %v3399_v29, %v3399_v29 }
 0xba6   : > { %4170 = vst [vmem:[%s5652_s9 + $0x4] sm:$0xf] %v3400_v13  ;;  %3440 = vmatmul.mubr.bf16.vlgmr.msra.gmra.mrb[64].mxu0 %v3400_v13  ;;  %3481 = vmatmul.mubr.bf16.vlgmr.msra.gmra.mrb[64].mxu1 %v3400_v13 }
 0xba7   : > { %3525 = vmatpush1.bf16.msra.mxu0 %v6230_v60  ;;  %3566 = vmatpush1.bf16.msra.mxu1 %v6232_v61  ;;  %v6805_v60 = vld [vmem:[#allocation37_spill] sm:$0xff] }
 0xba8   : > { %3526 = vmatprep.subr.bf16.mxu0 %v6238_v62  ;;  %3567 = vmatprep.subr.bf16.mxu1 %v6240_v63  ;;  %v2985_v61 = vadd.f32 %v6805_v60, %v6406_v57  ;;  %v6806_v62 = vld [vmem:[#allocation38_spill] sm:$0xff] }
 0xba9   : > { %3556 = vmatprep.mubr.bf16.mxu0 %v6766_v23  ;;  %3597 = vmatprep.mubr.bf16.mxu1 %v6766_v23  ;;  %v2932_v23 = vadd.f32 %v6390_v51, %v6403_v55  ;;  %v2934_v63 = vadd.f32 %v6806_v62, %v6413_v42 }
 0xbab   : > { %3527 = vmatpush1.bf16.msra.mxu0 %v6242_v0  ;;  %3568 = vmatpush1.bf16.msra.mxu1 %v6244_v1  ;;  %v6807_v0 = vld [vmem:[#allocation39_spill] sm:$0xff] }
 0xbac   : > { %3528 = vmatprep.subr.bf16.mxu0 %v6250_v2  ;;  %3569 = vmatprep.subr.bf16.mxu1 %v6252_v4  ;;  %v2987_v1 = vadd.f32 %v6807_v0, %v6416_v16 }
 0xbaf   : > { %3529 = vmatpush1.bf16.msra.mxu0 %v6254_v32  ;;  %3570 = vmatpush1.bf16.msra.mxu1 %v6256_v25 }
 0xbb0   : > { %3530 = vmatprep.subr.bf16.mxu0 %v6262_v31  ;;  %3571 = vmatprep.subr.bf16.mxu1 %v6264_v33 }
 0xbb3   : > { %3531 = vmatpush1.bf16.msra.mxu0 %v6266_v46  ;;  %3572 = vmatpush1.bf16.msra.mxu1 %v6268_v6 }
 0xbb4   : > { %3532 = vmatprep.subr.bf16.mxu0 %v6274_v8  ;;  %3573 = vmatprep.subr.bf16.mxu1 %v6276_v22 }
 0xbb7   : > { %3533 = vmatpush1.bf16.msra.mxu0 %v6278_v9  ;;  %3574 = vmatpush1.bf16.msra.mxu1 %v6280_v26 }
 0xbb8   : > { %3534 = vmatprep.subr.bf16.mxu0 %v6282_v12  ;;  %3575 = vmatprep.subr.bf16.mxu1 %v6284_v43 }
 0xbbb   : > { %3535 = vmatpush1.bf16.msra.mxu0 %v6290_v7  ;;  %3576 = vmatpush1.bf16.msra.mxu1 %v6292_v39 }
 0xbbc   : > { %3536 = vmatprep.subr.bf16.mxu0 %v6298_v38  ;;  %3577 = vmatprep.subr.bf16.mxu1 %v6300_v3 }
 0xbbf   : > { %3537 = vmatpush1.bf16.msra.mxu0 %v6302_v5  ;;  %3578 = vmatpush1.bf16.msra.mxu1 %v6304_v37 }
 0xbc0   : > { %3538 = vmatprep.subr.bf16.mxu0 %v6306_v34  ;;  %3579 = vmatprep.subr.bf16.mxu1 %v6310_v35 }
 0xbc3   : > { %3539 = vmatpush1.bf16.msra.mxu0 %v6314_v36  ;;  %3580 = vmatpush1.bf16.msra.mxu1 %v6316_v21 }
 0xc79   : > { %v3441_v2 = vpop.f32.mrb[64].mxu0  ;;  %v3482_v4 = vpop.f32.mrb[64].mxu1 }
 0xc7a   : > { %v3489_v32 = vadd.f32 %v3441_v2, %v2932_v23  ;;  %v3491_v25 = vadd.f32 %v3482_v4, %v2985_v61  ;;  %v3443_v31 = vpop.f32.mrb[65].mxu0  ;;  %v3484_v33 = vpop.f32.mrb[65].mxu1 }
 0xc7b   : > { %v3490_v46 = vadd.f32 %v3443_v31, %v2934_v63  ;;  %v3492_v6 = vadd.f32 %v3484_v33, %v2987_v1  ;;  %v3445_v8 = vpop.f32.mrb[66].mxu0  ;;  %v3486_v22 = vpop.f32.mrb[66].mxu1 }
 0xc7c   : > { %v4171_v9 = vmul.f32 -1.442695, %v3489_v32  ;;  %v3446_v26 = vpop.f32.mrb[67].mxu0  ;;  %v3487_v12 = vpop.f32.mrb[67].mxu1 }
 0xc7d   : > { %v4172_v43 = vmul.f32 -1.442695, %v3490_v46  ;;  %v4173_v7 = vmul.f32 -1.442695, %v3492_v6 }
 0xc7e   : > { %4813 = vpow2.f32 %v4171_v9 }
 0xc7f   : > { %4815 = vpow2.f32 %v4172_v43 }
 0xc80   : > { %4817 = vpow2.f32 %v4173_v7 }
 0xc81   : > { %4819 = vtanh.f32 %v3491_v25 }
 0xc88   : > { %v4814_v39 = vpop.eup %4813 }
 0xc89   : > { %v4816_v38 = vpop.eup %4815  ;;  %v3496_v3 = vadd.f32 1.0, %v4814_v39 }
 0xc8a   : > { %v3502_v5 = vadd.f32 1.0, %v4816_v38  ;;  %v4818_v37 = vpop.eup %4817 }
 0xc8b   : > { %4821 = vrcp.f32 %v3496_v3  ;;  %v4820_v34 = vpop.eup %4819  ;;  %v3509_v51 = vadd.f32 1.0, %v4818_v37 }
 0xc8c   : > { %4823 = vrcp.f32 %v3502_v5 }
 0xc8d   : > { %4825 = vrcp.f32 %v3509_v51 }
 0xc95   : > { %v4822_v35 = vpop.eup %4821 }
 0xc96   : > { %v4824_v36 = vpop.eup %4823  ;;  %v3513_v21 = vmul.f32 %v4822_v35, %v4820_v34 }
 0xc97   : > { %v3512_v49 = vmul.f32 %v4824_v36, %v6473_v40  ;;  %v4826_v58 = vpop.eup %4825 }
 0xc99   : > { %v6518_v17 = vadd.f32 %v3513_v21, %v3512_v49 }
 0xc9b   : > { %4827 = vtanh.f32 %v6518_v17 }
 0xca5   : > { %v4828_v45 = vpop.eup %4827 }
 0xca6   : > { %v3516_v59 = vmul.f32 %v4828_v45, %v4826_v58 }
 0xca8   : > { %v3517_v24 = vpack.c.bf16 %v3516_v59, %v3516_v59 }
 0xcaa   : > { %4174 = vst [vmem:[%s5652_s9 + $0x8] sm:$0xf] %v3517_v24  ;;  %3557 = vmatmul.mubr.bf16.vlgmr.msra.gmra.mrb[68].mxu0 %v3517_v24  ;;  %3598 = vmatmul.mubr.bf16.vlgmr.msra.gmra.mrb[68].mxu1 %v3517_v24 }
 0xcab   : > { %5056 = shalt.err (!%p5053_p4)
}
 0xcac   : > { %s5057_s18 = scalar_lea.hbm %s6531_s8, 256  ;;  %s5061_s24 = scalar_lea.hbm %s6809_s12, 768 }
 0xcad   : > { %p5058_p0 = scmp.ne.s32.totalorder %s6531_s8, %s5057_s18  ;;  %p5062_p13 = scmp.lt.u32.totalorder %s6531_s8, %s6809_s12 }
 0xcae   : > { %p5063_p3 = scmp.lt.u32.totalorder %s5061_s24, %s5057_s18  ;;  %p5065_p5 = scmp.lt.u32.totalorder %s5057_s18, %s6531_s8 }
 0xcaf   : > { %p5059_p2 = pnand %p5058_p0, %p6810_p9 }
 0xcb0   : > { %p5064_p1 = por %p5063_p3, %p5062_p13 }
 0xcb1   : > { %p5060_p12 = pneg %p5059_p2 }
 0xcb2   : > { %p5066_p6 = por %p5065_p5, %p5064_p1 }
 0xcb4   : > { %p5067_p10 = pnand %p5066_p6, %p5060_p12 }
 0xcb6   : > { %5070 = shalt.err (!%p5067_p10)
}
 0xcb7   : > { %s6712_s3 = smov 64   ;;  %s5238_s1 = smov 4  }
 0xcb8   : > { %4221 = dma.vmem_to_hbm [thread:$0]  (%p6810_p9), %s6534_s2, 256, %s6531_s8, %s6536_s0, %s6712_s3, %s6712_s3, %s5238_s1  }
 0xcb9   : > { %s6811_s14 = sld [smem:[#allocation53_spill]]  ;;  %s3666_s30 = sshll.u32 %s5648_s10, 4  ;;  %s6570_s30 = int_to_ptr.vmem [resolvable:$true] %s3666_s30 }
 0xcba   : > { %s6812_s13 = sand.u32 1, %s5193_s22   ;;  %s5071_s5 = scalar_lea.vmem %s6570_s30, 256 }
 0xcbb   : > { %s6574_s4 = scalar_lea.sflag [#allocation11], %s6812_s13  ;;  %p5072_p11 = scmp.ne.s32.totalorder %s6570_s30, %s5071_s5 }
 0xcbc   : > { %s5239_s8 = smov [#allocation21]  }
 0xcbd   : > { %p5073_p7 = pnand %p5072_p11, %p6810_p9  ;;  %s5075_s2 = sshll.u32 %s5239_s8, 4  ;;  %s5076_s2 = int_to_ptr.vmem [resolvable:$false] %s5075_s2 }
 0xcbe   : > { %s5077_s11 = scalar_lea.vmem %s5076_s2, 512  ;;  %p5078_p4 = scmp.lt.s32.totalorder %s6570_s30, %s5076_s2 }
 0xcbf   : > { %s6567_s24 = scalar_lea.hbm %s6811_s14, %s6525_s7  ;;  %p5074_p8 = pneg %p5073_p7 }
 0xcc0   : > { %p5079_p0 = scmp.lt.s32.totalorder %s5077_s11, %s5071_s5 }
 0xcc2   : > { %p5080_p2 = por %p5079_p0, %p5078_p4 }
 0xcc4   : > { %p5081_p12 = pnand %p5080_p2, %p5074_p8 }
 0xcc6   : > { %5084 = shalt.err (!%p5081_p12)
}
 0xcc7   : > { %s5085_s10 = scalar_lea.hbm %s6567_s24, 256  ;;  %s5089_s8 = scalar_lea.hbm %s6811_s14, 768 }
 0xcc8   : > { %p5086_p13 = scmp.ne.s32.totalorder %s6567_s24, %s5085_s10  ;;  %p5090_p5 = scmp.lt.u32.totalorder %s6567_s24, %s6811_s14 }
 0xcc9   : > { %p5091_p6 = scmp.lt.u32.totalorder %s5089_s8, %s5085_s10  ;;  %p5093_p11 = scmp.lt.u32.totalorder %s5085_s10, %s6567_s24 }
 0xcca   : > { %p5087_p3 = pnand %p5086_p13, %p6810_p9 }
 0xccb   : > { %p5092_p10 = por %p5091_p6, %p5090_p5 }
 0xccc   : > { %p5088_p1 = pneg %p5087_p3 }
 0xccd   : > { %p5094_p7 = por %p5093_p11, %p5092_p10 }
 0xccf   : > { %p5095_p8 = pnand %p5094_p7, %p5088_p1 }
 0xcd1   : > { %5098 = shalt.err (!%p5095_p8)
}
 0xcd2   : > { %s6813_s5 = smov 64   ;;  %v6814_v27 = vld [vmem:[#allocation40_spill] sm:$0xff]  ;;  %v6815_v10 = vld [vmem:[#allocation41_spill] sm:$0xff]  ;;  %v6816_v14 = vld [vmem:[#allocation42_spill] sm:$0xff]  ;;  %s5240_s18 = smov [#allocation24]  }
 0xcd3   : > { %4220 = dma.vmem_to_hbm [thread:$0]  (%p6810_p9), %s6570_s30, 256, %s6567_s24, %s6574_s4, %s6813_s5, %s6813_s5, %s5238_s1   ;;  %v2936_v18 = vadd.f32 %v6814_v27, %v6403_v55  ;;  %v2989_v47 = vadd.f32 %v6815_v10, %v6406_v57  ;;  %v2938_v15 = vadd.f32 %v6816_v14, %v6413_v42  ;;  %v6817_v53 = vld [vmem:[#allocation43_spill] sm:$0xff] }
 0xcd4   : > { %v2991_v52 = vadd.f32 %v6817_v53, %v6416_v16  ;;  %s3704_s4 = sshll.u32 %s5652_s9, 4  ;;  %s6818_s30 = sld [smem:[#allocation55_spill]]  ;;  %s6617_s4 = int_to_ptr.vmem [resolvable:$true] %s3704_s4 }
 0xcd5   : > { %s5099_s10 = scalar_lea.vmem %s6617_s4, 256  ;;  %s5103_s13 = sshll.u32 %s5240_s18, 4  ;;  %s5104_s13 = int_to_ptr.vmem [resolvable:$false] %s5103_s13 }
 0xcd6   : > { %p5100_p4 = scmp.ne.s32.totalorder %s6617_s4, %s5099_s10  ;;  %s5105_s8 = scalar_lea.vmem %s5104_s13, 512 }
 0xcd7   : > { %p5106_p12 = scmp.lt.s32.totalorder %s6617_s4, %s5104_s13  ;;  %p5107_p13 = scmp.lt.s32.totalorder %s5105_s8, %s5099_s10 }
 0xcd8   : > { %p5101_p0 = pnand %p5100_p4, %p6810_p9 }
 0xcd9   : > { %p5108_p3 = por %p5107_p13, %p5106_p12 }
 0xcda   : > { %s6615_s11 = scalar_lea.hbm %s6818_s30, %s6525_s7  ;;  %p5102_p2 = pneg %p5101_p0 }
 0xcdc   : > { %p5109_p1 = pnand %p5108_p3, %p5102_p2 }
 0xd7d   : > { %v3558_v44 = vpop.f32.mrb[68].mxu0  ;;  %v3599_v48 = vpop.f32.mrb[68].mxu1 }
 0xd7e   : > { %v3606_v41 = vadd.f32 %v3558_v44, %v2936_v18  ;;  %v3608_v11 = vadd.f32 %v3599_v48, %v2989_v47  ;;  %v3560_v54 = vpop.f32.mrb[69].mxu0  ;;  %v3601_v30 = vpop.f32.mrb[69].mxu1 }
 0xd7f   : > { %v3607_v56 = vadd.f32 %v3560_v54, %v2938_v15  ;;  %v3609_v20 = vadd.f32 %v3601_v30, %v2991_v52  ;;  %v3562_v50 = vpop.f32.mrb[70].mxu0  ;;  %v3603_v40 = vpop.f32.mrb[70].mxu1 }
 0xd80   : > { %v4175_v55 = vmul.f32 -1.442695, %v3606_v41  ;;  %v3563_v19 = vpop.f32.mrb[71].mxu0  ;;  %v3604_v28 = vpop.f32.mrb[71].mxu1 }
 0xd81   : > { %v4176_v57 = vmul.f32 -1.442695, %v3607_v56  ;;  %v4177_v42 = vmul.f32 -1.442695, %v3609_v20 }
 0xd82   : > { %4829 = vpow2.f32 %v4175_v55 }
 0xd83   : > { %4831 = vpow2.f32 %v4176_v57 }
 0xd84   : > { %4833 = vpow2.f32 %v4177_v42 }
 0xd85   : > { %4835 = vtanh.f32 %v3608_v11 }
 0xd8c   : > { %v4830_v29 = vpop.eup %4829 }
 0xd8d   : > { %v4832_v13 = vpop.eup %4831  ;;  %v3613_v16 = vadd.f32 1.0, %v4830_v29 }
 0xd8e   : > { %v3619_v23 = vadd.f32 1.0, %v4832_v13  ;;  %v4834_v60 = vpop.eup %4833 }
 0xd8f   : > { %4837 = vrcp.f32 %v3613_v16  ;;  %v4836_v61 = vpop.eup %4835  ;;  %v3626_v1 = vadd.f32 1.0, %v4834_v60 }
 0xd90   : > { %4839 = vrcp.f32 %v3619_v23 }
 0xd91   : > { %4841 = vrcp.f32 %v3626_v1 }
 0xd99   : > { %v4838_v62 = vpop.eup %4837 }
 0xd9a   : > { %v4840_v63 = vpop.eup %4839  ;;  %v3630_v0 = vmul.f32 %v4838_v62, %v4836_v61 }
 0xd9b   : > { %v3629_v2 = vmul.f32 %v4840_v63, %v6518_v17  ;;  %v4842_v32 = vpop.eup %4841 }
 0xd9d   : > { %v3631_v4 = vadd.f32 %v3630_v0, %v3629_v2 }
 0xd9f   : > { %4843 = vtanh.f32 %v3631_v4  ;;  %3638 = vst [vmem:[#allocation7] sm:$0xff] %v3631_v4 }
 0xda9   : > { %v4844_v25 = vpop.eup %4843 }
 0xdaa   : > { %v3633_v31 = vmul.f32 %v4844_v25, %v4842_v32 }
 0xdac   : > { %v3634_v33 = vpack.c.bf16 %v3633_v31, %v3633_v31  ;;  %3637 = vst [vmem:[#allocation4] sm:$0xff] %v3633_v31 }
 0xdae   : > { %4178 = vst [vmem:[%s5652_s9 + $0xc] sm:$0xf] %v3634_v33 }
 0xdaf   : > { %5112 = shalt.err (!%p5109_p1)
}
 0xdb0   : > { %s5113_s9 = scalar_lea.hbm %s6615_s11, 256  ;;  %s5117_s3 = scalar_lea.hbm %s6818_s30, 768 }
 0xdb1   : > { %p5114_p5 = scmp.ne.s32.totalorder %s6615_s11, %s5113_s9  ;;  %p5118_p11 = scmp.lt.u32.totalorder %s6615_s11, %s6818_s30 }
 0xdb2   : > { %p5119_p7 = scmp.lt.u32.totalorder %s5117_s3, %s5113_s9  ;;  %p5121_p4 = scmp.lt.u32.totalorder %s5113_s9, %s6615_s11 }
 0xdb3   : > { %p5115_p6 = pnand %p5114_p5, %p6810_p9 }
 0xdb4   : > { %p5120_p8 = por %p5119_p7, %p5118_p11 }
 0xdb5   : > { %p5116_p10 = pneg %p5115_p6 }
 0xdb6   : > { %p5122_p0 = por %p5121_p4, %p5120_p8 }
 0xdb8   : > { %p5123_p2 = pnand %p5122_p0, %p5116_p10 }
 0xdba   : > { %5126 = shalt.err (!%p5123_p2)
}
 0xdbb   : > { %4222 = dma.vmem_to_hbm [thread:$0]  (%p6810_p9), %s6617_s4, 256, %s6615_s11, %s6536_s0, %s6813_s5, %s6813_s5, %s5238_s1  }
 0xdbc PF: > { %p4272_p12 = scmp.ge.s32.totalorder %s5221_s29, 2  ;;  %s3719_s10 = sand.u32 1, %s5189_s21  }
 0xdbd   : > { %p6819_p13 = scmp.ne.s32.totalorder %s6741_s27, 0  ;;  %s3720_s13 = scalar_lea.sflag [#allocation11], %s3719_s10 }
 0xdbf   : > { %p4250_p3 = pnand %p4272_p12, %p6819_p13 }
 0xdc1   : > { %5180 = dma.done.wait (!%p4250_p3), %s3720_s13, 256  }
 0xdc2   : > { %5182 = vsyncadd (!%p4250_p3), %s3720_s13, 4294967040  ;;  %s6820_s15 = sadd.s32 4294967294, %s5221_s29  }
 0xdc3   : > { %s3728_s8 = sand.u32 1, %s6820_s15  }
 0xdc4   : > { %s3729_s9 = scalar_lea.sflag [#allocation23], %s3728_s8 }
 0xdc5   : > { %5184 = dma.done.wait (!%p4250_p3), %s3729_s9, 512  }
 0xdc6   : > { %5186 = vsyncadd (!%p4250_p3), %s3729_s9, 4294966784  ;;  %s35_s29 = sadd.s32 1, %s5221_s29   ;;  %s6821_s21 = smov %s5193_s22 }
 0xdc7   : > { %p32_p9 = scmp.ge.s32.totalorder %s35_s29, 5   ;;  %s6822_s22 = smov %s5197_s23 }
 0xdc8   : > { %s6823_s23 = smov %s5574_s20  ;;  %s6824_s24 = smov %s5205_s25 }
 0xdc9   : > { %s6825_s25 = smov %s5209_s26  ;;  %s6826_s26 = smov %s5556_s17 }
 0xdca   : > { %s6827_s27 = smov %s5217_s28  ;;  %s6828_s28 = smov %s6830_s16 }
 0xdcb   :  { %34 = sbr.rel (!%p32_p9) target bundleno = 26 (0x1a), region = 174 }
 0xdd2   :  { %3743 = vsyncpa [#allocation10], 1 }
 0xdd3   :  { %3745 = vsyncpa [#allocation10 + $0x1], 1 }
 0xdd4   :  { %3746 = vsyncpa [#allocation13], 1 }
 0xdd5   :  { %3747 = vsyncpa [#allocation16], 1 }
 0xdd6   :  { %3748 = vsyncpa [#allocation19], 1 }
 0xdd7   :  { %3749 = vsyncpa [#allocation11], 1 }
 0xdd8   :  { %3751 = vsyncpa [#allocation11 + $0x1], 1 }
 0xdd9   :  { %3752 = vsyncpa [#allocation23], 1 }
 0xdda   :  { %3754 = vsyncpa [#allocation23 + $0x1], 1 }

</bundles_post_ra>
